<compile_context>
chip_gen: v6e
topology: v6e:2x2x1
jax: 0.10.0
libtpu: 0.0.40
codegen_flags: <defaults>
</compile_context>

<pallas_src>
from functools import partial

import jax
import jax.numpy as jnp
from jax.experimental import pallas as pl
from jax.experimental.pallas import tpu as pltpu

N_CLASSES = 20          # semantic_num_classes
SEM_IGNORE = -1         # semantic_ignore_index
INST_IGNORE = -1        # instance_ignore_index
BN_EPS = 1e-3           # BatchNorm1d eps
LANES = 128             # lane width of the fused weights / output slab


def _pointgroup_kernel(
    num_classes,                      # static (bound via functools.partial)
    # scalar prefetch (SMEM)
    n_ref,                            # (1,) int32 : true number of points
    # inputs
    feat_ref,                         # (T, C)   matmul dtype
    pt_ref,                           # (T, 8)   f32: coord 0:3, centroid 3:6, segment 6, instance 7
    wf_ref,                           # (C, 128) fused [w1 | wseg | 0]
    bf_ref,                           # (1, 128) fused [b1 | bseg | 0]
    g_ref, bt_ref,                    # (1, 128) padded BN gamma / beta
    w2_ref,                           # (128, 128) padded second bias-head linear
    b2_ref,                           # (1, 128)
    # outputs
    slab_ref,                         # (T, 128) lanes 0:3 bias_pred, lanes C:C+K logits
    loss_ref, segl_ref, l1l_ref, cosl_ref,          # (1,1) each
    # scratch
    sum_ref, sq_ref,                  # (1,128) BN sum / sumsq  -> folded scale / shift
    segn_ref, vcnt_ref, l1n_ref, cosn_ref, mcnt_ref,  # (1,1) loss accumulators
):
    p = pl.program_id(0)              # 0: BN statistics pass, 1: heads + losses
    i = pl.program_id(1)              # point-tile index
    nt = pl.num_programs(1)
    tile, c = feat_ref.shape
    lw = wf_ref.shape[1]
    n_real = n_ref[0]

    # Fused matmul: lanes [0,c) = h (first bias-head linear), lanes [c,c+K) = seg logits.
    hz = jnp.dot(feat_ref[...], wf_ref[...],
                 preferred_element_type=jnp.float32) + bf_ref[...]

    # padded rows (beyond n_real) must not affect BN statistics
    row_id = i * tile + jax.lax.broadcasted_iota(jnp.int32, (tile, 1), 0)
    row_ok = (row_id < n_real).astype(jnp.float32)

    @pl.when(jnp.logical_and(p == 0, i == 0))
    def _init():
        sum_ref[...] = jnp.zeros_like(sum_ref)
        sq_ref[...] = jnp.zeros_like(sq_ref)
        segn_ref[...] = jnp.zeros_like(segn_ref)
        vcnt_ref[...] = jnp.zeros_like(vcnt_ref)
        l1n_ref[...] = jnp.zeros_like(l1n_ref)
        cosn_ref[...] = jnp.zeros_like(cosn_ref)
        mcnt_ref[...] = jnp.zeros_like(mcnt_ref)

    @pl.when(p == 0)
    def _stats_pass():
        hzm = hz * row_ok
        sum_ref[...] += jnp.sum(hzm, axis=0, keepdims=True)
        sq_ref[...] += jnp.sum(hzm * hz, axis=0, keepdims=True)

    @pl.when(p == 1)
    def _main_pass():
        # Fold batch statistics + affine into (scale, shift) once, reuse for all tiles.
        @pl.when(i == 0)
        def _fold_bn():
            n_f = n_real.astype(jnp.float32)
            mean = sum_ref[...] / n_f
            var = jnp.maximum(sq_ref[...] / n_f - mean * mean, 0.0)
            scale = g_ref[...] * jax.lax.rsqrt(var + BN_EPS)
            sum_ref[...] = scale
            sq_ref[...] = bt_ref[...] - mean * scale

        # bias head: BN(affine-folded) -> ReLU -> Linear (padded to 128 lanes)
        h_act = jnp.maximum(hz * sum_ref[...] + sq_ref[...], 0.0)
        bias_slab = jnp.dot(h_act.astype(w2_ref.dtype), w2_ref[...],
                            preferred_element_type=jnp.float32) + b2_ref[...]

        lane = jax.lax.broadcasted_iota(jnp.int32, (tile, lw), 1)
        cls_mask = jnp.logical_and(lane >= c, lane < c + num_classes)

        # lane-dense packed output: lanes 0..2 bias_pred, lanes c..c+K-1 logits
        slab_ref[...] = bias_slab + jnp.where(cls_mask, hz, 0.0)

        ptv = pt_ref[...]
        seg = ptv[:, 6:7].astype(jnp.int32)
        inst = ptv[:, 7:8]

        # ---- cross entropy with ignore_index (numerator/denominator accumulated) ----
        logits = jnp.where(cls_mask, hz, -1e30)
        m = jnp.max(logits, axis=1, keepdims=True)
        lse = m + jnp.log(jnp.sum(jnp.exp(logits - m), axis=1, keepdims=True))
        lsm = logits - lse
        valid = jnp.logical_and(seg != SEM_IGNORE, row_id < n_real).astype(jnp.float32)
        onehot = (lane == seg + c).astype(jnp.float32)
        picked = jnp.sum(lsm * onehot, axis=1, keepdims=True)
        segn_ref[...] += jnp.sum(-picked * valid, axis=0, keepdims=True)
        vcnt_ref[...] += jnp.sum(valid, axis=0, keepdims=True)

        # ---- offset (bias) regression losses ----
        mask = jnp.logical_and(inst != float(INST_IGNORE),
                               row_id < n_real).astype(jnp.float32)
        bias_pred = bias_slab[:, 0:3]
        bias_gt = ptv[:, 3:6] - ptv[:, 0:3]
        bias_dist = jnp.sum(jnp.abs(bias_pred - bias_gt), axis=1, keepdims=True)
        l1n_ref[...] += jnp.sum(bias_dist * mask, axis=0, keepdims=True)
        mcnt_ref[...] += jnp.sum(mask, axis=0, keepdims=True)

        pn = bias_pred * jax.lax.rsqrt(
            jnp.sum(bias_pred * bias_pred, axis=1, keepdims=True) + 1e-16)
        gn = bias_gt * jax.lax.rsqrt(
            jnp.sum(bias_gt * bias_gt, axis=1, keepdims=True) + 1e-16)
        cos = -jnp.sum(pn * gn, axis=1, keepdims=True)
        cosn_ref[...] += jnp.sum(cos * mask, axis=0, keepdims=True)

        @pl.when(i == nt - 1)
        def _finalize():
            # NOTE: like torch CE(mean, ignore_index), seg_loss is NaN if every label is ignored.
            seg_loss = segn_ref[...] / vcnt_ref[...]
            l1_loss = l1n_ref[...] / (mcnt_ref[...] + 1e-8)
            cos_loss = cosn_ref[...] / (mcnt_ref[...] + 1e-8)
            loss_ref[...] = seg_loss + l1_loss + cos_loss
            segl_ref[...] = seg_loss
            l1l_ref[...] = l1_loss
            cosl_ref[...] = cos_loss


def _pad_rows(x, n_pad, fill=0.0):
    return jnp.pad(x, ((0, n_pad - x.shape[0]), (0, 0)), constant_values=fill)


def pointgroup_forward(feat, coord, instance_centroid, segment, instance, params,
                       *, tile=1024, matmul_dtype=jnp.float32):
    """PointGroup heads + training losses as one tiled/pipelined Pallas TPU kernel.

    tile: rows per grid step.  Streams cost ~1.6 KB/row (f32) double-buffered;
          keep tile <= 8192 (f32) / 16384 (bf16) on v7x (64 MiB VMEM), v5e/v6e
          can take ~2x that.
    matmul_dtype: jnp.bfloat16 recommended on v6e/v7x (halves feat HBM traffic,
          full-rate MXU); BN / losses always stay in f32.
    """
    n, c = feat.shape
    k = params["wseg"].shape[1]
    assert 3 <= c and c + k <= LANES, "lane packing assumes C + K <= 128"

    tile = max(16, int(tile) - int(tile) % 16)
    n_pad = pl.cdiv(n, tile) * tile
    nt = n_pad // tile

    f32 = jnp.float32
    feat_p = _pad_rows(feat.astype(f32), n_pad).astype(matmul_dtype)
    pt = jnp.concatenate([
        _pad_rows(coord.astype(f32), n_pad),
        _pad_rows(instance_centroid.astype(f32), n_pad),
        _pad_rows(segment.reshape(n, 1).astype(f32), n_pad, fill=float(SEM_IGNORE)),
        _pad_rows(instance.reshape(n, 1).astype(f32), n_pad, fill=float(INST_IGNORE)),
    ], axis=1)                                                       # (n_pad, 8)

    # fused / lane-padded weights
    wf = jnp.zeros((c, LANES), f32).at[:, :c].set(params["w1"]) \
                                   .at[:, c:c + k].set(params["wseg"])
    bfu = jnp.zeros((1, LANES), f32).at[:, :c].set(params["b1"]) \
                                    .at[:, c:c + k].set(params["bseg"])
    gp = jnp.zeros((1, LANES), f32).at[:, :c].set(params["gamma"])
    bp = jnp.zeros((1, LANES), f32).at[:, :c].set(params["beta"])
    w2p = jnp.zeros((LANES, LANES), f32).at[:c, :3].set(params["w2"])
    b2p = jnp.zeros((1, LANES), f32).at[:, :3].set(params["b2"])
    wf = wf.astype(matmul_dtype)
    w2p = w2p.astype(matmul_dtype)

    n_arr = jnp.array([n], jnp.int32)

    grid_spec = pltpu.PrefetchScalarGridSpec(
        num_scalar_prefetch=1,
        grid=(2, nt),                                    # (pass, point tiles)
        in_specs=[
            pl.BlockSpec((tile, c), lambda p, i, n_: (i, 0)),        # feat (both passes)
            pl.BlockSpec((tile, 8), lambda p, i, n_: (p * i, 0)),    # aux (pass 1 only)
            pl.BlockSpec((c, LANES), lambda p, i, n_: (0, 0)),       # fused w1|wseg
            pl.BlockSpec((1, LANES), lambda p, i, n_: (0, 0)),       # fused b1|bseg
            pl.BlockSpec((1, LANES), lambda p, i, n_: (0, 0)),       # gamma
            pl.BlockSpec((1, LANES), lambda p, i, n_: (0, 0)),       # beta
            pl.BlockSpec((LANES, LANES), lambda p, i, n_: (0, 0)),   # w2 (padded)
            pl.BlockSpec((1, LANES), lambda p, i, n_: (0, 0)),       # b2 (padded)
        ],
        out_specs=[
            pl.BlockSpec((tile, LANES), lambda p, i, n_: (p * i, 0)),  # slab (pass 1)
            pl.BlockSpec((1, 1), lambda p, i, n_: (0, 0)),
            pl.BlockSpec((1, 1), lambda p, i, n_: (0, 0)),
            pl.BlockSpec((1, 1), lambda p, i, n_: (0, 0)),
            pl.BlockSpec((1, 1), lambda p, i, n_: (0, 0)),
        ],
        scratch_shapes=[
            pltpu.VMEM((1, LANES), f32),   # BN sum   -> folded scale
            pltpu.VMEM((1, LANES), f32),   # BN sumsq -> folded shift
            pltpu.VMEM((1, 1), f32),       # seg NLL numerator
            pltpu.VMEM((1, 1), f32),       # valid-label count
            pltpu.VMEM((1, 1), f32),       # l1 numerator
            pltpu.VMEM((1, 1), f32),       # cosine numerator
            pltpu.VMEM((1, 1), f32),       # instance-mask count
        ],
    )
    out_shape = (
        jax.ShapeDtypeStruct((n_pad, LANES), f32),   # packed predictions
        jax.ShapeDtypeStruct((1, 1), f32),           # loss
        jax.ShapeDtypeStruct((1, 1), f32),           # seg_loss
        jax.ShapeDtypeStruct((1, 1), f32),           # bias_l1_loss
        jax.ShapeDtypeStruct((1, 1), f32),           # bias_cosine_loss
    )
    itemsize = jnp.dtype(matmul_dtype).itemsize
    cost = pl.CostEstimate(
        flops=int(4 * n_pad * c * LANES + 2 * n_pad * LANES * LANES),
        transcendentals=int(n_pad * LANES + 4 * n_pad),
        bytes_accessed=int(2 * n_pad * c * itemsize + n_pad * 8 * 4
                           + n_pad * LANES * 4
                           + (c + LANES) * LANES * itemsize + 5 * LANES * 4),
    )

    outs = pl.pallas_call(
        partial(_pointgroup_kernel, k),
        grid_spec=grid_spec,
        out_shape=out_shape,
        compiler_params=pltpu.CompilerParams(
            dimension_semantics=("arbitrary", "arbitrary"),
            vmem_limit_bytes=32 * 1024 * 1024),
        cost_estimate=cost,
    )(n_arr, feat_p, pt, wf, bfu, gp, bp, w2p, b2p)

    slab, loss, seg_loss, l1_loss, cos_loss = outs
    return dict(
        bias_pred=slab[:n, 0:3],
        logit_pred=slab[:n, c:c + k],
        loss=loss[0, 0],
        seg_loss=seg_loss[0, 0],
        bias_l1_loss=l1_loss[0, 0],
        bias_cosine_loss=cos_loss[0, 0],
    )


def _reference_forward(feat, coord, centroid, segment, instance, params):
    """Pure-JAX reference mirroring the PyTorch module (training path)."""
    h = feat @ params["w1"] + params["b1"]
    mean = h.mean(axis=0, keepdims=True)
    var = ((h - mean) ** 2).mean(axis=0, keepdims=True)
    h = (h - mean) / jnp.sqrt(var + BN_EPS) * params["gamma"] + params["beta"]
    h = jnp.maximum(h, 0.0)
    bias_pred = h @ params["w2"] + params["b2"]
    logit_pred = feat @ params["wseg"] + params["bseg"]

    lsm = jax.nn.log_softmax(logit_pred, axis=-1)
    valid = (segment != SEM_IGNORE)
    safe_seg = jnp.where(valid, segment, 0)
    picked = jnp.take_along_axis(lsm, safe_seg[:, None], axis=1)[:, 0]
    seg_loss = -jnp.sum(picked * valid) / jnp.sum(valid)

    mask = (instance != INST_IGNORE).astype(jnp.float32)
    bias_gt = centroid - coord
    bias_dist = jnp.sum(jnp.abs(bias_pred - bias_gt), axis=-1)
    l1 = jnp.sum(bias_dist * mask) / (jnp.sum(mask) + 1e-8)
    pn = bias_pred / (jnp.linalg.norm(bias_pred, axis=1, keepdims=True) + 1e-8)
    gn = bias_gt / (jnp.linalg.norm(bias_gt, axis=1, keepdims=True) + 1e-8)
    cos = -jnp.sum(pn * gn, axis=-1)
    cosl = jnp.sum(cos * mask) / (jnp.sum(mask) + 1e-8)
    return dict(bias_pred=bias_pred, logit_pred=logit_pred,
                loss=seg_loss + l1 + cosl, seg_loss=seg_loss,
                bias_l1_loss=l1, bias_cosine_loss=cosl)


def init_params(key, c=64, k=N_CLASSES):
    k1, k2, k3 = jax.random.split(key, 3)
    scale = 1.0 / jnp.sqrt(c)
    return dict(
        w1=jax.random.normal(k1, (c, c), jnp.float32) * scale,
        b1=jnp.zeros((1, c), jnp.float32),
        gamma=jnp.ones((1, c), jnp.float32),
        beta=jnp.zeros((1, c), jnp.float32),
        w2=jax.random.normal(k2, (c, 3), jnp.float32) * scale,
        b2=jnp.zeros((1, 3), jnp.float32),
        wseg=jax.random.normal(k3, (c, k), jnp.float32) * scale,
        bseg=jnp.zeros((1, k), jnp.float32),
    )


if __name__ == "__main__":
    key = jax.random.PRNGKey(0)
    kp, kf, kc, kcen, ks, ki, km1, km2 = jax.random.split(key, 8)

    N, C, K = 1000, 64, 20          # small demo: pads to 1024 rows -> 4 tiles of 256
    params = init_params(kp, C, K)

    feat = jax.random.normal(kf, (N, C), jnp.float32)
    coord = jax.random.uniform(kc, (N, 3), jnp.float32, -2.0, 2.0)
    instance_centroid = coord + 0.3 * jax.random.normal(kcen, (N, 3), jnp.float32)
    segment = jax.random.randint(ks, (N,), 0, K, jnp.int32)
    instance = jax.random.randint(ki, (N,), 0, 8, jnp.int32)
    segment = jnp.where(jax.random.uniform(km1, (N,)) < 0.1, SEM_IGNORE, segment)
    instance = jnp.where(jax.random.uniform(km2, (N,)) < 0.1, INST_IGNORE, instance)

    out = pointgroup_forward(feat, coord, instance_centroid, segment, instance,
                             params, tile=256)
    jax.block_until_ready(out)

    ref = _reference_forward(feat, coord, instance_centroid, segment, instance, params)
    for name in ("loss", "seg_loss", "bias_l1_loss", "bias_cosine_loss"):
        assert jnp.isfinite(out[name]), name
        assert jnp.allclose(out[name], ref[name], rtol=1e-2, atol=1e-2), (
            name, out[name], ref[name])
    assert jnp.allclose(out["bias_pred"], ref["bias_pred"], rtol=3e-2, atol=3e-2)
    assert jnp.allclose(out["logit_pred"], ref["logit_pred"], rtol=3e-2, atol=3e-2)

    # bf16 MXU-operand path (recommended on v6e/v7x): halves feat HBM traffic.
    out16 = pointgroup_forward(feat, coord, instance_centroid, segment, instance,
                               params, tile=256, matmul_dtype=jnp.bfloat16)
    jax.block_until_ready(out16)
    assert jnp.isfinite(out16["loss"])
    assert jnp.allclose(out16["loss"], ref["loss"], rtol=5e-2, atol=5e-2), (
        out16["loss"], ref["loss"])

    print("KERNEL_OK")
</pallas_src>

<mosaic_0001>
module attributes {stable_mosaic.version = 11 : i64} {
  func.func @_pointgroup_kernel(%arg0: i32, %arg1: i32, %arg2: memref<1xi32, #tpu.memory_space<smem>>, %arg3: memref<256x64xf32, #tpu.memory_space<vmem>>, %arg4: memref<256x8xf32, #tpu.memory_space<vmem>>, %arg5: memref<64x128xf32, #tpu.memory_space<vmem>>, %arg6: memref<1x128xf32, #tpu.memory_space<vmem>>, %arg7: memref<1x128xf32, #tpu.memory_space<vmem>>, %arg8: memref<1x128xf32, #tpu.memory_space<vmem>>, %arg9: memref<128x128xf32, #tpu.memory_space<vmem>>, %arg10: memref<1x128xf32, #tpu.memory_space<vmem>>, %arg11: memref<256x128xf32, #tpu.memory_space<vmem>>, %arg12: memref<1x1xf32, #tpu.memory_space<vmem>>, %arg13: memref<1x1xf32, #tpu.memory_space<vmem>>, %arg14: memref<1x1xf32, #tpu.memory_space<vmem>>, %arg15: memref<1x1xf32, #tpu.memory_space<vmem>>, %arg16: memref<1x128xf32, #tpu.memory_space<vmem>>, %arg17: memref<1x128xf32, #tpu.memory_space<vmem>>, %arg18: memref<1x1xf32, #tpu.memory_space<vmem>>, %arg19: memref<1x1xf32, #tpu.memory_space<vmem>>, %arg20: memref<1x1xf32, #tpu.memory_space<vmem>>, %arg21: memref<1x1xf32, #tpu.memory_space<vmem>>, %arg22: memref<1x1xf32, #tpu.memory_space<vmem>>) attributes {dimension_semantics = [#tpu.dimension_semantics<arbitrary>, #tpu.dimension_semantics<arbitrary>], iteration_bounds = array<i64: 2, 4>, scalar_prefetch = 1 : i64, scratch_operands = 7 : i64, tpu.core_type = #tpu.core_type<tc>, window_params = [{transform_indices = @transform_0, window_bounds = array<i64: 256, 64>}, {transform_indices = @transform_1, window_bounds = array<i64: 256, 8>}, {pipeline_mode = #tpu.pipeline_mode<synchronous>, transform_indices = @transform_2, window_bounds = array<i64: 64, 128>}, {pipeline_mode = #tpu.pipeline_mode<synchronous>, transform_indices = @transform_3, window_bounds = array<i64: 1, 128>}, {pipeline_mode = #tpu.pipeline_mode<synchronous>, transform_indices = @transform_4, window_bounds = array<i64: 1, 128>}, {pipeline_mode = #tpu.pipeline_mode<synchronous>, transform_indices = @transform_5, window_bounds = array<i64: 1, 128>}, {pipeline_mode = #tpu.pipeline_mode<synchronous>, transform_indices = @transform_6, window_bounds = array<i64: 128, 128>}, {pipeline_mode = #tpu.pipeline_mode<synchronous>, transform_indices = @transform_7, window_bounds = array<i64: 1, 128>}, {transform_indices = @transform_8, window_bounds = array<i64: 256, 128>}, {pipeline_mode = #tpu.pipeline_mode<synchronous>, transform_indices = @transform_9, window_bounds = array<i64: 1, 1>}, {pipeline_mode = #tpu.pipeline_mode<synchronous>, transform_indices = @transform_10, window_bounds = array<i64: 1, 1>}, {pipeline_mode = #tpu.pipeline_mode<synchronous>, transform_indices = @transform_11, window_bounds = array<i64: 1, 1>}, {pipeline_mode = #tpu.pipeline_mode<synchronous>, transform_indices = @transform_12, window_bounds = array<i64: 1, 1>}]} {
    %c0 = arith.constant 0 : index
    %0 = memref.load %arg2[%c0] : memref<1xi32, #tpu.memory_space<smem>>
    %c0_0 = arith.constant 0 : index
    %c0_1 = arith.constant 0 : index
    %1 = vector.load %arg3[%c0_0, %c0_1] : memref<256x64xf32, #tpu.memory_space<vmem>>, vector<256x64xf32>
    %c0_2 = arith.constant 0 : index
    %c0_3 = arith.constant 0 : index
    %2 = vector.load %arg5[%c0_2, %c0_3] : memref<64x128xf32, #tpu.memory_space<vmem>>, vector<64x128xf32>
    %cst = arith.constant dense<0.000000e+00> : vector<256x128xf32>
    %3 = tpu.matmul %1, %2, %cst {dimension_numbers = #tpu.dot_dimension_numbers<[1], [0], [0], [1], [0, 0, 1, 1], [], []>} : vector<256x64xf32>, vector<64x128xf32>, vector<256x128xf32> -> vector<256x128xf32>
    %c0_4 = arith.constant 0 : index
    %c0_5 = arith.constant 0 : index
    %4 = vector.load %arg6[%c0_4, %c0_5] : memref<1x128xf32, #tpu.memory_space<vmem>>, vector<1x128xf32>
    %5 = vector.broadcast %4 : vector<1x128xf32> to vector<256x128xf32>
    %6 = arith.addf %3, %5 : vector<256x128xf32>
    %c256_i32 = arith.constant 256 : i32
    %7 = arith.muli %arg1, %c256_i32 : i32
    %8 = tpu.iota {dimensions = array<i32: 0>} : vector<256x1xi32>
    %9 = vector.broadcast %7 : i32 to vector<256x1xi32>
    %10 = arith.addi %9, %8 : vector<256x1xi32>
    %11 = vector.broadcast %0 : i32 to vector<256x1xi32>
    %12 = arith.cmpi slt, %10, %11 : vector<256x1xi32>
    %13 = arith.extui %12 : vector<256x1xi1> to vector<256x1xi32>
    %14 = arith.sitofp %13 : vector<256x1xi32> to vector<256x1xf32>
    %c0_i32 = arith.constant 0 : i32
    %15 = arith.cmpi eq, %arg0, %c0_i32 : i32
    %c0_i32_6 = arith.constant 0 : i32
    %16 = arith.cmpi eq, %arg1, %c0_i32_6 : i32
    %17 = arith.andi %15, %16 : i1
    %18 = arith.extui %17 : i1 to i32
    %c0_i32_7 = arith.constant 0 : i32
    %19 = arith.cmpi ne, %18, %c0_i32_7 : i32
    scf.if %19 {
      %cst_11 = arith.constant 0.000000e+00 : f32
      %26 = vector.broadcast %cst_11 : f32 to vector<1x128xf32>
      %c0_12 = arith.constant 0 : index
      %c0_13 = arith.constant 0 : index
      %27 = vector.load %arg16[%c0_12, %c0_13] : memref<1x128xf32, #tpu.memory_space<vmem>>, vector<1x128xf32>
      tpu.vector_store %arg16[%c0_12, %c0_13], %26 {strides = array<i32>} : memref<1x128xf32, #tpu.memory_space<vmem>>, vector<1x128xf32>,
      %cst_14 = arith.constant 0.000000e+00 : f32
      %28 = vector.broadcast %cst_14 : f32 to vector<1x128xf32>
      %c0_15 = arith.constant 0 : index
      %c0_16 = arith.constant 0 : index
      %29 = vector.load %arg17[%c0_15, %c0_16] : memref<1x128xf32, #tpu.memory_space<vmem>>, vector<1x128xf32>
      tpu.vector_store %arg17[%c0_15, %c0_16], %28 {strides = array<i32>} : memref<1x128xf32, #tpu.memory_space<vmem>>, vector<1x128xf32>,
      %cst_17 = arith.constant 0.000000e+00 : f32
      %30 = vector.broadcast %cst_17 : f32 to vector<1x1xf32>
      %c0_18 = arith.constant 0 : index
      %c0_19 = arith.constant 0 : index
      %31 = vector.load %arg18[%c0_18, %c0_19] : memref<1x1xf32, #tpu.memory_space<vmem>>, vector<1x1xf32>
      tpu.vector_store %arg18[%c0_18, %c0_19], %30 {strides = array<i32>} : memref<1x1xf32, #tpu.memory_space<vmem>>, vector<1x1xf32>,
      %cst_20 = arith.constant 0.000000e+00 : f32
      %32 = vector.broadcast %cst_20 : f32 to vector<1x1xf32>
      %c0_21 = arith.constant 0 : index
      %c0_22 = arith.constant 0 : index
      %33 = vector.load %arg19[%c0_21, %c0_22] : memref<1x1xf32, #tpu.memory_space<vmem>>, vector<1x1xf32>
      tpu.vector_store %arg19[%c0_21, %c0_22], %32 {strides = array<i32>} : memref<1x1xf32, #tpu.memory_space<vmem>>, vector<1x1xf32>,
      %cst_23 = arith.constant 0.000000e+00 : f32
      %34 = vector.broadcast %cst_23 : f32 to vector<1x1xf32>
      %c0_24 = arith.constant 0 : index
      %c0_25 = arith.constant 0 : index
      %35 = vector.load %arg20[%c0_24, %c0_25] : memref<1x1xf32, #tpu.memory_space<vmem>>, vector<1x1xf32>
      tpu.vector_store %arg20[%c0_24, %c0_25], %34 {strides = array<i32>} : memref<1x1xf32, #tpu.memory_space<vmem>>, vector<1x1xf32>,
      %cst_26 = arith.constant 0.000000e+00 : f32
      %36 = vector.broadcast %cst_26 : f32 to vector<1x1xf32>
      %c0_27 = arith.constant 0 : index
      %c0_28 = arith.constant 0 : index
      %37 = vector.load %arg21[%c0_27, %c0_28] : memref<1x1xf32, #tpu.memory_space<vmem>>, vector<1x1xf32>
      tpu.vector_store %arg21[%c0_27, %c0_28], %36 {strides = array<i32>} : memref<1x1xf32, #tpu.memory_space<vmem>>, vector<1x1xf32>,
      %cst_29 = arith.constant 0.000000e+00 : f32
      %38 = vector.broadcast %cst_29 : f32 to vector<1x1xf32>
      %c0_30 = arith.constant 0 : index
      %c0_31 = arith.constant 0 : index
      %39 = vector.load %arg22[%c0_30, %c0_31] : memref<1x1xf32, #tpu.memory_space<vmem>>, vector<1x1xf32>
      tpu.vector_store %arg22[%c0_30, %c0_31], %38 {strides = array<i32>} : memref<1x1xf32, #tpu.memory_space<vmem>>, vector<1x1xf32>,
    } else {
    }
    %c0_i32_8 = arith.constant 0 : i32
    %20 = arith.cmpi eq, %arg0, %c0_i32_8 : i32
    %21 = arith.extui %20 : i1 to i32
    %c0_i32_9 = arith.constant 0 : i32
    %22 = arith.cmpi ne, %21, %c0_i32_9 : i32
    scf.if %22 {
      %26 = vector.broadcast %14 : vector<256x1xf32> to vector<256x128xf32>
      %27 = arith.mulf %6, %26 : vector<256x128xf32>
      %c0_11 = arith.constant 0 : index
      %c0_12 = arith.constant 0 : index
      %28 = vector.load %arg16[%c0_11, %c0_12] : memref<1x128xf32, #tpu.memory_space<vmem>>, vector<1x128xf32>
      %cst_13 = arith.constant dense<0.000000e+00> : vector<128xf32>
      %29 = vector.multi_reduction <add>, %27, %cst_13 [0] : vector<256x128xf32> to vector<128xf32>
      %30 = vector.shape_cast %29 : vector<128xf32> to vector<1x128xf32>
      %31 = arith.addf %28, %30 : vector<1x128xf32>
      %c0_14 = arith.constant 0 : index
      %c0_15 = arith.constant 0 : index
      %32 = vector.load %arg16[%c0_14, %c0_15] : memref<1x128xf32, #tpu.memory_space<vmem>>, vector<1x128xf32>
      tpu.vector_store %arg16[%c0_14, %c0_15], %31 {strides = array<i32>} : memref<1x128xf32, #tpu.memory_space<vmem>>, vector<1x128xf32>,
      %c0_16 = arith.constant 0 : index
      %c0_17 = arith.constant 0 : index
      %33 = vector.load %arg17[%c0_16, %c0_17] : memref<1x128xf32, #tpu.memory_space<vmem>>, vector<1x128xf32>
      %34 = arith.mulf %27, %6 : vector<256x128xf32>
      %cst_18 = arith.constant dense<0.000000e+00> : vector<128xf32>
      %35 = vector.multi_reduction <add>, %34, %cst_18 [0] : vector<256x128xf32> to vector<128xf32>
      %36 = vector.shape_cast %35 : vector<128xf32> to vector<1x128xf32>
      %37 = arith.addf %33, %36 : vector<1x128xf32>
      %c0_19 = arith.constant 0 : index
      %c0_20 = arith.constant 0 : index
      %38 = vector.load %arg17[%c0_19, %c0_20] : memref<1x128xf32, #tpu.memory_space<vmem>>, vector<1x128xf32>
      tpu.vector_store %arg17[%c0_19, %c0_20], %37 {strides = array<i32>} : memref<1x128xf32, #tpu.memory_space<vmem>>, vector<1x128xf32>,
    } else {
    }
    %c1_i32 = arith.constant 1 : i32
    %23 = arith.cmpi eq, %arg0, %c1_i32 : i32
    %24 = arith.extui %23 : i1 to i32
    %c0_i32_10 = arith.constant 0 : i32
    %25 = arith.cmpi ne, %24, %c0_i32_10 : i32
    scf.if %25 {
      %c0_i32_11 = arith.constant 0 : i32
      %26 = arith.cmpi eq, %arg1, %c0_i32_11 : i32
      %27 = arith.extui %26 : i1 to i32
      %c0_i32_12 = arith.constant 0 : i32
      %28 = arith.cmpi ne, %27, %c0_i32_12 : i32
      scf.if %28 {
        %154 = arith.sitofp %0 : i32 to f32
        %c0_68 = arith.constant 0 : index
        %c0_69 = arith.constant 0 : index
        %155 = vector.load %arg16[%c0_68, %c0_69] : memref<1x128xf32, #tpu.memory_space<vmem>>, vector<1x128xf32>
        %156 = vector.broadcast %154 : f32 to vector<1x128xf32>
        %157 = arith.divf %155, %156 : vector<1x128xf32>
        %c0_70 = arith.constant 0 : index
        %c0_71 = arith.constant 0 : index
        %158 = vector.load %arg17[%c0_70, %c0_71] : memref<1x128xf32, #tpu.memory_space<vmem>>, vector<1x128xf32>
        %159 = vector.broadcast %154 : f32 to vector<1x128xf32>
        %160 = arith.divf %158, %159 : vector<1x128xf32>
        %161 = arith.mulf %157, %157 : vector<1x128xf32>
        %162 = arith.subf %160, %161 : vector<1x128xf32>
        %cst_72 = arith.constant 0.000000e+00 : f32
        %163 = vector.broadcast %cst_72 : f32 to vector<1x128xf32>
        %164 = arith.maximumf %162, %163 : vector<1x128xf32>
        %c0_73 = arith.constant 0 : index
        %c0_74 = arith.constant 0 : index
        %165 = vector.load %arg7[%c0_73, %c0_74] : memref<1x128xf32, #tpu.memory_space<vmem>>, vector<1x128xf32>
        %cst_75 = arith.constant 1.000000e-03 : f32
        %166 = vector.broadcast %cst_75 : f32 to vector<1x128xf32>
        %167 = arith.addf %164, %166 : vector<1x128xf32>
        %168 = math.rsqrt %167 : vector<1x128xf32>
        %169 = arith.mulf %165, %168 : vector<1x128xf32>
        %c0_76 = arith.constant 0 : index
        %c0_77 = arith.constant 0 : index
        %170 = vector.load %arg16[%c0_76, %c0_77] : memref<1x128xf32, #tpu.memory_space<vmem>>, vector<1x128xf32>
        tpu.vector_store %arg16[%c0_76, %c0_77], %169 {strides = array<i32>} : memref<1x128xf32, #tpu.memory_space<vmem>>, vector<1x128xf32>,
        %c0_78 = arith.constant 0 : index
        %c0_79 = arith.constant 0 : index
        %171 = vector.load %arg8[%c0_78, %c0_79] : memref<1x128xf32, #tpu.memory_space<vmem>>, vector<1x128xf32>
        %172 = arith.mulf %157, %169 : vector<1x128xf32>
        %173 = arith.subf %171, %172 : vector<1x128xf32>
        %c0_80 = arith.constant 0 : index
        %c0_81 = arith.constant 0 : index
        %174 = vector.load %arg17[%c0_80, %c0_81] : memref<1x128xf32, #tpu.memory_space<vmem>>, vector<1x128xf32>
        tpu.vector_store %arg17[%c0_80, %c0_81], %173 {strides = array<i32>} : memref<1x128xf32, #tpu.memory_space<vmem>>, vector<1x128xf32>,
      } else {
      }
      %c0_13 = arith.constant 0 : index
      %c0_14 = arith.constant 0 : index
      %29 = vector.load %arg16[%c0_13, %c0_14] : memref<1x128xf32, #tpu.memory_space<vmem>>, vector<1x128xf32>
      %30 = vector.broadcast %29 : vector<1x128xf32> to vector<256x128xf32>
      %31 = arith.mulf %6, %30 : vector<256x128xf32>
      %c0_15 = arith.constant 0 : index
      %c0_16 = arith.constant 0 : index
      %32 = vector.load %arg17[%c0_15, %c0_16] : memref<1x128xf32, #tpu.memory_space<vmem>>, vector<1x128xf32>
      %33 = vector.broadcast %32 : vector<1x128xf32> to vector<256x128xf32>
      %34 = arith.addf %31, %33 : vector<256x128xf32>
      %cst_17 = arith.constant 0.000000e+00 : f32
      %35 = vector.broadcast %cst_17 : f32 to vector<256x128xf32>
      %36 = arith.maximumf %34, %35 : vector<256x128xf32>
      %c0_18 = arith.constant 0 : index
      %c0_19 = arith.constant 0 : index
      %37 = vector.load %arg9[%c0_18, %c0_19] : memref<128x128xf32, #tpu.memory_space<vmem>>, vector<128x128xf32>
      %cst_20 = arith.constant dense<0.000000e+00> : vector<256x128xf32>
      %38 = tpu.matmul %36, %37, %cst_20 {dimension_numbers = #tpu.dot_dimension_numbers<[1], [0], [0], [1], [0, 0, 1, 1], [], []>} : vector<256x128xf32>, vector<128x128xf32>, vector<256x128xf32> -> vector<256x128xf32>
      %c0_21 = arith.constant 0 : index
      %c0_22 = arith.constant 0 : index
      %39 = vector.load %arg10[%c0_21, %c0_22] : memref<1x128xf32, #tpu.memory_space<vmem>>, vector<1x128xf32>
      %40 = vector.broadcast %39 : vector<1x128xf32> to vector<256x128xf32>
      %41 = arith.addf %38, %40 : vector<256x128xf32>
      %42 = tpu.iota {dimensions = array<i32: 1>} : vector<256x128xi32>
      %c64_i32 = arith.constant 64 : i32
      %43 = vector.broadcast %c64_i32 : i32 to vector<256x128xi32>
      %44 = arith.cmpi sge, %42, %43 : vector<256x128xi32>
      %c84_i32 = arith.constant 84 : i32
      %45 = vector.broadcast %c84_i32 : i32 to vector<256x128xi32>
      %46 = arith.cmpi slt, %42, %45 : vector<256x128xi32>
      %47 = arith.andi %44, %46 : vector<256x128xi1>
      %cst_23 = arith.constant 0.000000e+00 : f32
      %48 = vector.broadcast %cst_23 : f32 to vector<256x128xf32>
      %49 = arith.select %47, %6, %48 : vector<256x128xi1>, vector<256x128xf32>
      %50 = arith.addf %41, %49 : vector<256x128xf32>
      %c0_24 = arith.constant 0 : index
      %c0_25 = arith.constant 0 : index
      %51 = vector.load %arg11[%c0_24, %c0_25] : memref<256x128xf32, #tpu.memory_space<vmem>>, vector<256x128xf32>
      tpu.vector_store %arg11[%c0_24, %c0_25], %50 {strides = array<i32>} : memref<256x128xf32, #tpu.memory_space<vmem>>, vector<256x128xf32>,
      %c0_26 = arith.constant 0 : index
      %c0_27 = arith.constant 0 : index
      %52 = vector.load %arg4[%c0_26, %c0_27] : memref<256x8xf32, #tpu.memory_space<vmem>>, vector<256x8xf32>
      %53 = vector.extract_strided_slice %52 {offsets = [0, 6], sizes = [256, 1], strides = [1, 1]} : vector<256x8xf32> to vector<256x1xf32>
      %54 = arith.fptosi %53 : vector<256x1xf32> to vector<256x1xi32>
      %55 = vector.extract_strided_slice %52 {offsets = [0, 7], sizes = [256, 1], strides = [1, 1]} : vector<256x8xf32> to vector<256x1xf32>
      %cst_28 = arith.constant -1.000000e+30 : f32
      %56 = vector.broadcast %cst_28 : f32 to vector<256x128xf32>
      %57 = arith.select %47, %6, %56 : vector<256x128xi1>, vector<256x128xf32>
      %cst_29 = arith.constant dense<0xFF800000> : vector<256xf32>
      %58 = vector.multi_reduction <maximumf>, %57, %cst_29 [1] : vector<256x128xf32> to vector<256xf32>
      %59 = vector.shape_cast %58 : vector<256xf32> to vector<256x1xf32>
      %60 = vector.broadcast %59 : vector<256x1xf32> to vector<256x128xf32>
      %61 = arith.subf %57, %60 : vector<256x128xf32>
      %62 = math.exp %61 : vector<256x128xf32>
      %cst_30 = arith.constant dense<0.000000e+00> : vector<256xf32>
      %63 = vector.multi_reduction <add>, %62, %cst_30 [1] : vector<256x128xf32> to vector<256xf32>
      %64 = vector.shape_cast %63 : vector<256xf32> to vector<256x1xf32>
      %65 = math.log %64 : vector<256x1xf32>
      %66 = arith.addf %59, %65 : vector<256x1xf32>
      %67 = vector.broadcast %66 : vector<256x1xf32> to vector<256x128xf32>
      %68 = arith.subf %57, %67 : vector<256x128xf32>
      %c-1_i32 = arith.constant -1 : i32
      %69 = vector.broadcast %c-1_i32 : i32 to vector<256x1xi32>
      %70 = arith.cmpi ne, %54, %69 : vector<256x1xi32>
      %71 = vector.broadcast %0 : i32 to vector<256x1xi32>
      %72 = arith.cmpi slt, %10, %71 : vector<256x1xi32>
      %73 = arith.andi %70, %72 : vector<256x1xi1>
      %74 = arith.extui %73 : vector<256x1xi1> to vector<256x1xi32>
      %75 = arith.sitofp %74 : vector<256x1xi32> to vector<256x1xf32>
      %c64_i32_31 = arith.constant 64 : i32
      %76 = vector.broadcast %c64_i32_31 : i32 to vector<256x1xi32>
      %77 = arith.addi %54, %76 : vector<256x1xi32>
      %78 = vector.broadcast %77 : vector<256x1xi32> to vector<256x128xi32>
      %79 = arith.cmpi eq, %42, %78 : vector<256x128xi32>
      %80 = arith.extui %79 : vector<256x128xi1> to vector<256x128xi32>
      %81 = arith.sitofp %80 : vector<256x128xi32> to vector<256x128xf32>
      %82 = arith.mulf %68, %81 : vector<256x128xf32>
      %cst_32 = arith.constant dense<0.000000e+00> : vector<256xf32>
      %83 = vector.multi_reduction <add>, %82, %cst_32 [1] : vector<256x128xf32> to vector<256xf32>
      %84 = vector.shape_cast %83 : vector<256xf32> to vector<256x1xf32>
      %c0_33 = arith.constant 0 : index
      %c0_34 = arith.constant 0 : index
      %85 = vector.load %arg18[%c0_33, %c0_34] : memref<1x1xf32, #tpu.memory_space<vmem>>, vector<1x1xf32>
      %cst_35 = arith.constant 0.000000e+00 : f32
      %86 = vector.broadcast %cst_35 : f32 to vector<256x1xf32>
      %87 = arith.subf %86, %84 : vector<256x1xf32>
      %88 = arith.mulf %87, %75 : vector<256x1xf32>
      %cst_36 = arith.constant dense<0.000000e+00> : vector<1xf32>
      %89 = vector.multi_reduction <add>, %88, %cst_36 [0] : vector<256x1xf32> to vector<1xf32>
      %90 = vector.shape_cast %89 : vector<1xf32> to vector<1x1xf32>
      %91 = arith.addf %85, %90 : vector<1x1xf32>
      %c0_37 = arith.constant 0 : index
      %c0_38 = arith.constant 0 : index
      %92 = vector.load %arg18[%c0_37, %c0_38] : memref<1x1xf32, #tpu.memory_space<vmem>>, vector<1x1xf32>
      tpu.vector_store %arg18[%c0_37, %c0_38], %91 {strides = array<i32>} : memref<1x1xf32, #tpu.memory_space<vmem>>, vector<1x1xf32>,
      %c0_39 = arith.constant 0 : index
      %c0_40 = arith.constant 0 : index
      %93 = vector.load %arg19[%c0_39, %c0_40] : memref<1x1xf32, #tpu.memory_space<vmem>>, vector<1x1xf32>
      %cst_41 = arith.constant dense<0.000000e+00> : vector<1xf32>
      %94 = vector.multi_reduction <add>, %75, %cst_41 [0] : vector<256x1xf32> to vector<1xf32>
      %95 = vector.shape_cast %94 : vector<1xf32> to vector<1x1xf32>
      %96 = arith.addf %93, %95 : vector<1x1xf32>
      %c0_42 = arith.constant 0 : index
      %c0_43 = arith.constant 0 : index
      %97 = vector.load %arg19[%c0_42, %c0_43] : memref<1x1xf32, #tpu.memory_space<vmem>>, vector<1x1xf32>
      tpu.vector_store %arg19[%c0_42, %c0_43], %96 {strides = array<i32>} : memref<1x1xf32, #tpu.memory_space<vmem>>, vector<1x1xf32>,
      %cst_44 = arith.constant -1.000000e+00 : f32
      %98 = vector.broadcast %cst_44 : f32 to vector<256x1xf32>
      %99 = arith.cmpf one, %55, %98 : vector<256x1xf32>
      %100 = vector.broadcast %0 : i32 to vector<256x1xi32>
      %101 = arith.cmpi slt, %10, %100 : vector<256x1xi32>
      %102 = arith.andi %99, %101 : vector<256x1xi1>
      %103 = arith.extui %102 : vector<256x1xi1> to vector<256x1xi32>
      %104 = arith.sitofp %103 : vector<256x1xi32> to vector<256x1xf32>
      %105 = vector.extract_strided_slice %41 {offsets = [0, 0], sizes = [256, 3], strides = [1, 1]} : vector<256x128xf32> to vector<256x3xf32>
      %106 = vector.extract_strided_slice %52 {offsets = [0, 3], sizes = [256, 3], strides = [1, 1]} : vector<256x8xf32> to vector<256x3xf32>
      %107 = vector.extract_strided_slice %52 {offsets = [0, 0], sizes = [256, 3], strides = [1, 1]} : vector<256x8xf32> to vector<256x3xf32>
      %108 = arith.subf %106, %107 : vector<256x3xf32>
      %109 = arith.subf %105, %108 : vector<256x3xf32>
      %110 = math.absf %109 : vector<256x3xf32>
      %cst_45 = arith.constant dense<0.000000e+00> : vector<256xf32>
      %111 = vector.multi_reduction <add>, %110, %cst_45 [1] : vector<256x3xf32> to vector<256xf32>
      %112 = vector.shape_cast %111 : vector<256xf32> to vector<256x1xf32>
      %c0_46 = arith.constant 0 : index
      %c0_47 = arith.constant 0 : index
      %113 = vector.load %arg20[%c0_46, %c0_47] : memref<1x1xf32, #tpu.memory_space<vmem>>, vector<1x1xf32>
      %114 = arith.mulf %112, %104 : vector<256x1xf32>
      %cst_48 = arith.constant dense<0.000000e+00> : vector<1xf32>
      %115 = vector.multi_reduction <add>, %114, %cst_48 [0] : vector<256x1xf32> to vector<1xf32>
      %116 = vector.shape_cast %115 : vector<1xf32> to vector<1x1xf32>
      %117 = arith.addf %113, %116 : vector<1x1xf32>
      %c0_49 = arith.constant 0 : index
      %c0_50 = arith.constant 0 : index
      %118 = vector.load %arg20[%c0_49, %c0_50] : memref<1x1xf32, #tpu.memory_space<vmem>>, vector<1x1xf32>
      tpu.vector_store %arg20[%c0_49, %c0_50], %117 {strides = array<i32>} : memref<1x1xf32, #tpu.memory_space<vmem>>, vector<1x1xf32>,
      %c0_51 = arith.constant 0 : index
      %c0_52 = arith.constant 0 : index
      %119 = vector.load %arg22[%c0_51, %c0_52] : memref<1x1xf32, #tpu.memory_space<vmem>>, vector<1x1xf32>
      %cst_53 = arith.constant dense<0.000000e+00> : vector<1xf32>
      %120 = vector.multi_reduction <add>, %104, %cst_53 [0] : vector<256x1xf32> to vector<1xf32>
      %121 = vector.shape_cast %120 : vector<1xf32> to vector<1x1xf32>
      %122 = arith.addf %119, %121 : vector<1x1xf32>
      %c0_54 = arith.constant 0 : index
      %c0_55 = arith.constant 0 : index
      %123 = vector.load %arg22[%c0_54, %c0_55] : memref<1x1xf32, #tpu.memory_space<vmem>>, vector<1x1xf32>
      tpu.vector_store %arg22[%c0_54, %c0_55], %122 {strides = array<i32>} : memref<1x1xf32, #tpu.memory_space<vmem>>, vector<1x1xf32>,
      %124 = arith.mulf %105, %105 : vector<256x3xf32>
      %cst_56 = arith.constant dense<0.000000e+00> : vector<256xf32>
      %125 = vector.multi_reduction <add>, %124, %cst_56 [1] : vector<256x3xf32> to vector<256xf32>
      %126 = vector.shape_cast %125 : vector<256xf32> to vector<256x1xf32>
      %cst_57 = arith.constant 1.000000e-16 : f32
      %127 = vector.broadcast %cst_57 : f32 to vector<256x1xf32>
      %128 = arith.addf %126, %127 : vector<256x1xf32>
      %129 = math.rsqrt %128 : vector<256x1xf32>
      %130 = vector.broadcast %129 : vector<256x1xf32> to vector<256x3xf32>
      %131 = arith.mulf %105, %130 : vector<256x3xf32>
      %132 = arith.mulf %108, %108 : vector<256x3xf32>
      %cst_58 = arith.constant dense<0.000000e+00> : vector<256xf32>
      %133 = vector.multi_reduction <add>, %132, %cst_58 [1] : vector<256x3xf32> to vector<256xf32>
      %134 = vector.shape_cast %133 : vector<256xf32> to vector<256x1xf32>
      %cst_59 = arith.constant 1.000000e-16 : f32
      %135 = vector.broadcast %cst_59 : f32 to vector<256x1xf32>
      %136 = arith.addf %134, %135 : vector<256x1xf32>
      %137 = math.rsqrt %136 : vector<256x1xf32>
      %138 = vector.broadcast %137 : vector<256x1xf32> to vector<256x3xf32>
      %139 = arith.mulf %108, %138 : vector<256x3xf32>
      %140 = arith.mulf %131, %139 : vector<256x3xf32>
      %cst_60 = arith.constant dense<0.000000e+00> : vector<256xf32>
      %141 = vector.multi_reduction <add>, %140, %cst_60 [1] : vector<256x3xf32> to vector<256xf32>
      %142 = vector.shape_cast %141 : vector<256xf32> to vector<256x1xf32>
      %cst_61 = arith.constant 0.000000e+00 : f32
      %143 = vector.broadcast %cst_61 : f32 to vector<256x1xf32>
      %144 = arith.subf %143, %142 : vector<256x1xf32>
      %c0_62 = arith.constant 0 : index
      %c0_63 = arith.constant 0 : index
      %145 = vector.load %arg21[%c0_62, %c0_63] : memref<1x1xf32, #tpu.memory_space<vmem>>, vector<1x1xf32>
      %146 = arith.mulf %144, %104 : vector<256x1xf32>
      %cst_64 = arith.constant dense<0.000000e+00> : vector<1xf32>
      %147 = vector.multi_reduction <add>, %146, %cst_64 [0] : vector<256x1xf32> to vector<1xf32>
      %148 = vector.shape_cast %147 : vector<1xf32> to vector<1x1xf32>
      %149 = arith.addf %145, %148 : vector<1x1xf32>
      %c0_65 = arith.constant 0 : index
      %c0_66 = arith.constant 0 : index
      %150 = vector.load %arg21[%c0_65, %c0_66] : memref<1x1xf32, #tpu.memory_space<vmem>>, vector<1x1xf32>
      tpu.vector_store %arg21[%c0_65, %c0_66], %149 {strides = array<i32>} : memref<1x1xf32, #tpu.memory_space<vmem>>, vector<1x1xf32>,
      %c3_i32 = arith.constant 3 : i32
      %151 = arith.cmpi eq, %arg1, %c3_i32 : i32
      %152 = arith.extui %151 : i1 to i32
      %c0_i32_67 = arith.constant 0 : i32
      %153 = arith.cmpi ne, %152, %c0_i32_67 : i32
      scf.if %153 {
        %c0_68 = arith.constant 0 : index
        %c0_69 = arith.constant 0 : index
        %154 = vector.load %arg18[%c0_68, %c0_69] : memref<1x1xf32, #tpu.memory_space<vmem>>, vector<1x1xf32>
        %c0_70 = arith.constant 0 : index
        %c0_71 = arith.constant 0 : index
        %155 = vector.load %arg19[%c0_70, %c0_71] : memref<1x1xf32, #tpu.memory_space<vmem>>, vector<1x1xf32>
        %156 = arith.divf %154, %155 : vector<1x1xf32>
        %c0_72 = arith.constant 0 : index
        %c0_73 = arith.constant 0 : index
        %157 = vector.load %arg20[%c0_72, %c0_73] : memref<1x1xf32, #tpu.memory_space<vmem>>, vector<1x1xf32>
        %c0_74 = arith.constant 0 : index
        %c0_75 = arith.constant 0 : index
        %158 = vector.load %arg22[%c0_74, %c0_75] : memref<1x1xf32, #tpu.memory_space<vmem>>, vector<1x1xf32>
        %cst_76 = arith.constant 9.99999993E-9 : f32
        %159 = vector.broadcast %cst_76 : f32 to vector<1x1xf32>
        %160 = arith.addf %158, %159 : vector<1x1xf32>
        %161 = arith.divf %157, %160 : vector<1x1xf32>
        %c0_77 = arith.constant 0 : index
        %c0_78 = arith.constant 0 : index
        %162 = vector.load %arg21[%c0_77, %c0_78] : memref<1x1xf32, #tpu.memory_space<vmem>>, vector<1x1xf32>
        %c0_79 = arith.constant 0 : index
        %c0_80 = arith.constant 0 : index
        %163 = vector.load %arg22[%c0_79, %c0_80] : memref<1x1xf32, #tpu.memory_space<vmem>>, vector<1x1xf32>
        %cst_81 = arith.constant 9.99999993E-9 : f32
        %164 = vector.broadcast %cst_81 : f32 to vector<1x1xf32>
        %165 = arith.addf %163, %164 : vector<1x1xf32>
        %166 = arith.divf %162, %165 : vector<1x1xf32>
        %167 = arith.addf %156, %161 : vector<1x1xf32>
        %168 = arith.addf %167, %166 : vector<1x1xf32>
        %c0_82 = arith.constant 0 : index
        %c0_83 = arith.constant 0 : index
        %169 = vector.load %arg12[%c0_82, %c0_83] : memref<1x1xf32, #tpu.memory_space<vmem>>, vector<1x1xf32>
        tpu.vector_store %arg12[%c0_82, %c0_83], %168 {strides = array<i32>} : memref<1x1xf32, #tpu.memory_space<vmem>>, vector<1x1xf32>,
        %c0_84 = arith.constant 0 : index
        %c0_85 = arith.constant 0 : index
        %170 = vector.load %arg13[%c0_84, %c0_85] : memref<1x1xf32, #tpu.memory_space<vmem>>, vector<1x1xf32>
        tpu.vector_store %arg13[%c0_84, %c0_85], %156 {strides = array<i32>} : memref<1x1xf32, #tpu.memory_space<vmem>>, vector<1x1xf32>,
        %c0_86 = arith.constant 0 : index
        %c0_87 = arith.constant 0 : index
        %171 = vector.load %arg14[%c0_86, %c0_87] : memref<1x1xf32, #tpu.memory_space<vmem>>, vector<1x1xf32>
        tpu.vector_store %arg14[%c0_86, %c0_87], %161 {strides = array<i32>} : memref<1x1xf32, #tpu.memory_space<vmem>>, vector<1x1xf32>,
        %c0_88 = arith.constant 0 : index
        %c0_89 = arith.constant 0 : index
        %172 = vector.load %arg15[%c0_88, %c0_89] : memref<1x1xf32, #tpu.memory_space<vmem>>, vector<1x1xf32>
        tpu.vector_store %arg15[%c0_88, %c0_89], %166 {strides = array<i32>} : memref<1x1xf32, #tpu.memory_space<vmem>>, vector<1x1xf32>,
      } else {
      }
    } else {
    }
    return
  }
  func.func @transform_0(%arg0: i32, %arg1: i32, %arg2: memref<1xi32, #tpu.memory_space<smem>>) -> (i32, i32) {
    %c0_i32 = arith.constant 0 : i32
    %c0_i32_0 = arith.constant 0 : i32
    return %arg1, %c0_i32 : i32, i32
  }
  func.func @transform_1(%arg0: i32, %arg1: i32, %arg2: memref<1xi32, #tpu.memory_space<smem>>) -> (i32, i32) {
    %0 = arith.muli %arg0, %arg1 : i32
    %c0_i32 = arith.constant 0 : i32
    %c0_i32_0 = arith.constant 0 : i32
    return %0, %c0_i32 : i32, i32
  }
  func.func @transform_2(%arg0: i32, %arg1: i32, %arg2: memref<1xi32, #tpu.memory_space<smem>>) -> (i32, i32) {
    %c0_i32 = arith.constant 0 : i32
    %c0_i32_0 = arith.constant 0 : i32
    %c0_i32_1 = arith.constant 0 : i32
    return %c0_i32, %c0_i32_0 : i32, i32
  }
  func.func @transform_3(%arg0: i32, %arg1: i32, %arg2: memref<1xi32, #tpu.memory_space<smem>>) -> (i32, i32) {
    %c0_i32 = arith.constant 0 : i32
    %c0_i32_0 = arith.constant 0 : i32
    %c0_i32_1 = arith.constant 0 : i32
    return %c0_i32, %c0_i32_0 : i32, i32
  }
  func.func @transform_4(%arg0: i32, %arg1: i32, %arg2: memref<1xi32, #tpu.memory_space<smem>>) -> (i32, i32) {
    %c0_i32 = arith.constant 0 : i32
    %c0_i32_0 = arith.constant 0 : i32
    %c0_i32_1 = arith.constant 0 : i32
    return %c0_i32, %c0_i32_0 : i32, i32
  }
  func.func @transform_5(%arg0: i32, %arg1: i32, %arg2: memref<1xi32, #tpu.memory_space<smem>>) -> (i32, i32) {
    %c0_i32 = arith.constant 0 : i32
    %c0_i32_0 = arith.constant 0 : i32
    %c0_i32_1 = arith.constant 0 : i32
    return %c0_i32, %c0_i32_0 : i32, i32
  }
  func.func @transform_6(%arg0: i32, %arg1: i32, %arg2: memref<1xi32, #tpu.memory_space<smem>>) -> (i32, i32) {
    %c0_i32 = arith.constant 0 : i32
    %c0_i32_0 = arith.constant 0 : i32
    %c0_i32_1 = arith.constant 0 : i32
    return %c0_i32, %c0_i32_0 : i32, i32
  }
  func.func @transform_7(%arg0: i32, %arg1: i32, %arg2: memref<1xi32, #tpu.memory_space<smem>>) -> (i32, i32) {
    %c0_i32 = arith.constant 0 : i32
    %c0_i32_0 = arith.constant 0 : i32
    %c0_i32_1 = arith.constant 0 : i32
    return %c0_i32, %c0_i32_0 : i32, i32
  }
  func.func @transform_8(%arg0: i32, %arg1: i32, %arg2: memref<1xi32, #tpu.memory_space<smem>>) -> (i32, i32) {
    %0 = arith.muli %arg0, %arg1 : i32
    %c0_i32 = arith.constant 0 : i32
    %c0_i32_0 = arith.constant 0 : i32
    return %0, %c0_i32 : i32, i32
  }
  func.func @transform_9(%arg0: i32, %arg1: i32, %arg2: memref<1xi32, #tpu.memory_space<smem>>) -> (i32, i32) {
    %c0_i32 = arith.constant 0 : i32
    %c0_i32_0 = arith.constant 0 : i32
    %c0_i32_1 = arith.constant 0 : i32
    return %c0_i32, %c0_i32_0 : i32, i32
  }
  func.func @transform_10(%arg0: i32, %arg1: i32, %arg2: memref<1xi32, #tpu.memory_space<smem>>) -> (i32, i32) {
    %c0_i32 = arith.constant 0 : i32
    %c0_i32_0 = arith.constant 0 : i32
    %c0_i32_1 = arith.constant 0 : i32
    return %c0_i32, %c0_i32_0 : i32, i32
  }
  func.func @transform_11(%arg0: i32, %arg1: i32, %arg2: memref<1xi32, #tpu.memory_space<smem>>) -> (i32, i32) {
    %c0_i32 = arith.constant 0 : i32
    %c0_i32_0 = arith.constant 0 : i32
    %c0_i32_1 = arith.constant 0 : i32
    return %c0_i32, %c0_i32_0 : i32, i32
  }
  func.func @transform_12(%arg0: i32, %arg1: i32, %arg2: memref<1xi32, #tpu.memory_space<smem>>) -> (i32, i32) {
    %c0_i32 = arith.constant 0 : i32
    %c0_i32_0 = arith.constant 0 : i32
    %c0_i32_1 = arith.constant 0 : i32
    return %c0_i32, %c0_i32_0 : i32, i32
  }
}

</mosaic_0001>

<bundles_post_ra>
// kernel: tpu_custom_call.1
= control target key start
LH: loop header
LB: loop body
LE: loop exit
PB: predicated region body
PF: predicated region fallthrough
CT: control target
= control target key end

     0   :  { %s10118_s0 = inlined_call_operand.<no memory space> [shape: s32[1], index: 0, kind: input, shape index: {}]   ;;  %s10119_s1 = inlined_call_operand.vmem [shape: f32[1024,64], index: 1, kind: input, shape index: {}]   ;;  %s10120_s2 = inlined_call_operand.vmem [shape: f32[1024,8], index: 2, kind: input, shape index: {}]   ;;  %s10121_s3 = inlined_call_operand.vmem [shape: f32[64,128], index: 3, kind: input, shape index: {}]   ;;  %s10122_s4 = inlined_call_operand.vmem [shape: f32[1,128], index: 4, kind: input, shape index: {}]   ;;  %s10123_s5 = inlined_call_operand.vmem [shape: f32[1,128], index: 5, kind: input, shape index: {}]   ;;  %s10124_s6 = inlined_call_operand.vmem [shape: f32[1,128], index: 6, kind: input, shape index: {}]   ;;  %s10125_s7 = inlined_call_operand.vmem [shape: f32[128,128], index: 7, kind: input, shape index: {}]   ;;  %s10126_s8 = inlined_call_operand.vmem [shape: f32[1,128], index: 8, kind: input, shape index: {}]   ;;  %s10127_s9 = inlined_call_operand.hbm [shape: f32[1024,128], index: 9, kind: output, shape index: {0}]   ;;  %s10128_s10 = inlined_call_operand.hbm [shape: f32[1,1], index: 10, kind: output, shape index: {1}]   ;;  %s10129_s11 = inlined_call_operand.hbm [shape: f32[1,1], index: 11, kind: output, shape index: {2}]   ;;  %s10130_s12 = inlined_call_operand.hbm [shape: f32[1,1], index: 12, kind: output, shape index: {3}]   ;;  %s10131_s13 = inlined_call_operand.hbm [shape: f32[1,1], index: 13, kind: output, shape index: {4}]  }
   0x1   :  { %10457 = sst [smem:[#allocation192_spill]] %s10131_s13 }
   0x2   :  { %19 = sst [smem:[#allocation10]] %s10118_s0 }
   0x3   :  { %20 = vsyncpa [#allocation12], 0 }
   0x4   :  { %22 = vsyncpa [#allocation12 + $0x1], 0 }
   0x5   :  { %23 = vsyncpa [#allocation14], 0 }
   0x6   :  { %24 = vsyncpa [#allocation17], 0  ;;  %s6021_s27 = smov 0   ;;  %s6023_s28 = smov 0  }
   0x7   :  { %s6025_s29 = smov 0   ;;  %s6027_s30 = smov 0  }
   0x8   :  { %s6029_s14 = smov 0   ;;  %s6031_s15 = smov 0  }
   0x9   :  { %s6033_s16 = smov 0   ;;  %s6035_s17 = smov 0  }
   0xa LB: > { %10458 = sst [smem:[#allocation22_spill]] %s5902_s27  ;;  %s4757_s0 = sadd.s32 4294967295, %s5930_s17   ;;  %s5930_s17 = sphi %s6035_s17, %s30_s17   ;;  %s5926_s16 = sphi %s6033_s16, %s11202_s16   ;;  %s5922_s15 = sphi %s6031_s15, %s11205_s15   ;;  %s5918_s14 = sphi %s6029_s14, %s11200_s14   ;;  %s5914_s30 = sphi %s6027_s30, %s11199_s30   ;;  %s5910_s29 = sphi %s6025_s29, %s11198_s29   ;;  %s5906_s28 = sphi %s6023_s28, %s11204_s28   ;;  %s5902_s27 = sphi %s6021_s27, %s11203_s27  }
   0xb   : > { %10459 = sst [smem:[#allocation23_spill]] %s5910_s29  ;;  %s4758_s18 = sadd.s32 4294967294, %s5930_s17  }
   0xc   : > { %10460 = sst [smem:[#allocation24_spill]] %s5922_s15  ;;  %s39_s19 = sadd.s32 1, %s5922_s15 }
   0xd   : > { %10461 = sst [smem:[#allocation25_spill]] %s5926_s16  ;;  %p40_p0 = scmp.ge.s32.totalorder %s39_s19, 4 }
   0xe   : > { %s42_s20 = sadd.s32 1, %s5926_s16  ;;  %s226_s21 = smul.u32 %s5922_s15, %s5926_s16 }
   0xf   : > { %p241_p1 = scmp.ne.s32.totalorder %s5910_s29, %s5906_s28  ;;  %s11207_s19 = smov (%p40_p0, %s39_s19), 0 }
  0x10   : > { %10462 = sst [smem:[#allocation26_spill]] %s11207_s19  ;;  %s11209_s20 = smov (!%p40_p0, %s42_s20), %s5926_s16 }
  0x11   : > { %p6072_p2 = scmp.eq.s32.totalorder %s4757_s0, 7  ;;  %p247_p3 = scmp.ne.s32.totalorder %s5906_s28, %s5902_s27 }
  0x12   : > { %p44_p4 = scmp.ge.s32.totalorder %s11209_s20, 2  ;;  %p248_p5 = scmp.eq.s32.totalorder %s4758_s18, 7 }
  0x13   : > { %p6080_p6 = por %p6072_p2, %p241_p1  ;;  %p4761_p7 = scmp.ge.s32.totalorder %s5930_s17, 1 }
  0x14   : > { %s11211_s20 = smov (%p44_p4, %s11209_s20), 0  ;;  %p6087_p8 = por %p248_p5, %p247_p3 }
  0x15   : > { %10465 = sst [smem:[#allocation27_spill]] %s11211_s20  ;;  %p388_p9 = scmp.lt.s32.totalorder %s5930_s17, 9 }
  0x16   : > { %s10466_s24 = scalar_select %p6087_p8, 1, 0 }
  0x17   : > { %s227_s25 = smul.u32 %s11211_s20, %s11207_s19  ;;  %p389_p10 = pnand %p4761_p7, %p388_p9 }
  0x18   : > { %10467 = sst [smem:[#allocation28_spill]] %s10466_s24  ;;  %s231_s0 = sadd.s32 1, %s5910_s29 }
  0x19   : > { %s228_s26 = ssub.s32 %s226_s21, %s227_s25 }
  0x1a   : > { %p229_p11 = scmp.eq.s32.totalorder %s228_s26, 0  ;;  %392 = sbr.rel (%p389_p10) target bundleno = 2484 (0x9b4), region = 52 }
  0x1c   : > { %s6096_s18 = scalar_select %p229_p11, %s5910_s29, %s231_s0  }
  0x1e   : > { %10468 = sst [smem:[#allocation29_spill]] %s6096_s18 }
  0x1f   : > { %s10137_s16 = sand.u32 1, %s5906_s28   ;;  %s6101_s15 = smul.u32 %s5914_s30, %s5918_s14  ;;  %v492_v0 = vld [vmem:[%s10121_s3 + $0x38] sm:$0xff]  ;;  %v491_v1 = vld [vmem:[%s10121_s3 + $0x30] sm:$0xff]  ;;  %v490_v2 = vld [vmem:[%s10121_s3 + $0x28] sm:$0xff]  ;;  %vm500_vm0 = vcmask 523264   ;;  %v10145_v40 = vlaneseq }
  0x20   : > { %s6111_s25 = sshll.u32 %s10137_s16, 8  ;;  %5038 = vmatprep.subr.mxu0 %v492_v0  ;;  %5182 = vmatprep.subr.mxu1 %v492_v0  ;;  %s4763_s13 = sshll.u32 %s5914_s30, 5  ;;  %v489_v3 = vld [vmem:[%s10121_s3 + $0x20] sm:$0xff]  ;;  %v488_v4 = vld [vmem:[%s10121_s3 + $0x18] sm:$0xff]  ;;  %v487_v5 = vld [vmem:[%s10121_s3 + $0x10] sm:$0xff] }
  0x21   : > { %s4765_s26 = sshll.u32 %s6101_s15, 5  ;;  %5039 = vmatpush3.msra.mxu0 %v492_v0  ;;  %5190 = vmatpush3.msra.mxu1 %v492_v0  ;;  %p437_p13 = scmp.lt.s32.totalorder %s4763_s13, 127  ;;  %v486_v6 = vld [vmem:[%s10121_s3 + $0x8] sm:$0xff]  ;;  %v485_v7 = vld [vmem:[%s10121_s3] sm:$0xff]  ;;  %v6208_v41 = vshrl.u32 %v10145_v40, 7 }
  0x22   : > { %p444_p12 = scmp.lt.s32.totalorder %s4765_s26, 127  ;;  %5040 = vmatprep.subr.mxu0 %v491_v1  ;;  %5183 = vmatprep.subr.mxu1 %v491_v1  ;;  %p986_p0 = scmp.eq.s32.totalorder %s5918_s14, 0 }
  0x23   : > { %5041 = vmatpush3.msra.mxu0 %v491_v1  ;;  %5191 = vmatpush3.msra.mxu1 %v491_v1  ;;  %s11215_s13 = smov (!%p437_p13, %s4763_s13), 127  ;;  %10469 = vst [vmem:[#allocation30_spill] sm:$0xff] %v6208_v41  ;;  %v825_v42 = vadd.s32 8, %v6208_v41  ;;  %v826_v43 = vadd.s32 16, %v6208_v41  ;;  %v827_v44 = vadd.s32 24, %v6208_v41  ;;  %v828_v45 = vadd.s32 32, %v6208_v41 }
  0x24   : > { %s11213_s26 = smov (!%p444_p12, %s4765_s26), 127  ;;  %5042 = vmatprep.subr.mxu0 %v490_v2  ;;  %5184 = vmatprep.subr.mxu1 %v490_v2  ;;  %s4764_s24 = sshll.u32 %s11215_s13, 3  ;;  %v829_v46 = vadd.s32 40, %v6208_v41  ;;  %v830_v47 = vadd.s32 48, %v6208_v41  ;;  %v831_v48 = vadd.s32 56, %v6208_v41  ;;  %v832_v49 = vadd.s32 64, %v6208_v41 }
  0x25   : > { %5043 = vmatpush3.msra.mxu0 %v490_v2  ;;  %5192 = vmatpush3.msra.mxu1 %v490_v2  ;;  %s4766_s19 = sshll.u32 %s11213_s26, 3  ;;  %v833_v50 = vadd.s32 72, %v6208_v41  ;;  %v834_v51 = vadd.s32 80, %v6208_v41  ;;  %v835_v52 = vadd.s32 88, %v6208_v41  ;;  %v836_v53 = vadd.s32 96, %v6208_v41  ;;  %p987_p1 = scmp.eq.s32.totalorder %s5914_s30, 0 }
  0x26   : > { %5044 = vmatprep.subr.mxu0 %v489_v3  ;;  %5185 = vmatprep.subr.mxu1 %v489_v3  ;;  %s6127_s29 = scalar_lea.vmem %s10120_s2, %s4766_s19  ;;  %s6138_s19 = scalar_lea.vmem %s10119_s1, %s4764_s24  ;;  %v837_v54 = vadd.s32 104, %v6208_v41  ;;  %v838_v55 = vadd.s32 112, %v6208_v41  ;;  %v839_v56 = vadd.s32 120, %v6208_v41  ;;  %v840_v57 = vadd.s32 128, %v6208_v41 }
  0x27   : > { %5045 = vmatpush3.msra.mxu0 %v489_v3  ;;  %5193 = vmatpush3.msra.mxu1 %v489_v3  ;;  %v453_v8 = vld [vmem:[%s6138_s19] sm:$0xff]  ;;  %v454_v10 = vld [vmem:[%s6138_s19 + $0x8] sm:$0xff]  ;;  %v455_v12 = vld [vmem:[%s6138_s19 + $0x10] sm:$0xff]  ;;  %s4800_s24 = sshll.u32 %s5914_s30, 8  ;;  %v841_v58 = vadd.s32 136, %v6208_v41  ;;  %v842_v59 = vadd.s32 144, %v6208_v41  ;;  %p6235_p3 = pnand %p987_p1, %p986_p0 }
  0x28   : > { %5046 = vmatprep.subr.mxu0 %v488_v4  ;;  %5186 = vmatprep.subr.mxu1 %v488_v4  ;;  %v469_v9 = vld [vmem:[%s6138_s19 + $0x80] sm:$0xff]  ;;  %v470_v11 = vld [vmem:[%s6138_s19 + $0x88] sm:$0xff]  ;;  %v471_v13 = vld [vmem:[%s6138_s19 + $0x90] sm:$0xff]  ;;  %v843_v60 = vadd.s32 152, %v6208_v41  ;;  %v844_v61 = vadd.s32 160, %v6208_v41  ;;  %v845_v62 = vadd.s32 168, %v6208_v41 }
  0x29   : > { %5047 = vmatpush3.msra.mxu0 %v488_v4  ;;  %5194 = vmatpush3.msra.mxu1 %v488_v4  ;;  %v456_v14 = vld [vmem:[%s6138_s19 + $0x18] sm:$0xff]  ;;  %v457_v16 = vld [vmem:[%s6138_s19 + $0x20] sm:$0xff]  ;;  %v458_v18 = vld [vmem:[%s6138_s19 + $0x28] sm:$0xff]  ;;  %v846_v63 = vadd.s32 176, %v6208_v41  ;;  %v847_v0 = vadd.s32 184, %v6208_v41  ;;  %v848_v1 = vadd.s32 192, %v6208_v41 }
  0x2a   : > { %5048 = vmatprep.subr.mxu0 %v487_v5  ;;  %5187 = vmatprep.subr.mxu1 %v487_v5  ;;  %v472_v15 = vld [vmem:[%s6138_s19 + $0x98] sm:$0xff]  ;;  %v473_v17 = vld [vmem:[%s6138_s19 + $0xa0] sm:$0xff]  ;;  %v474_v19 = vld [vmem:[%s6138_s19 + $0xa8] sm:$0xff]  ;;  %v849_v2 = vadd.s32 200, %v6208_v41  ;;  %v850_v3 = vadd.s32 208, %v6208_v41  ;;  %v851_v4 = vadd.s32 216, %v6208_v41 }
  0x2b   : > { %5049 = vmatpush3.msra.mxu0 %v487_v5  ;;  %5195 = vmatpush3.msra.mxu1 %v487_v5  ;;  %v459_v20 = vld [vmem:[%s6138_s19 + $0x30] sm:$0xff]  ;;  %v460_v22 = vld [vmem:[%s6138_s19 + $0x38] sm:$0xff]  ;;  %v461_v24 = vld [vmem:[%s6138_s19 + $0x40] sm:$0xff]  ;;  %v852_v5 = vadd.s32 224, %v6208_v41  ;;  %s6246_s20 = sld [smem:[#allocation10]]  ;;  %s6644_s18 = scalar_lea.vmem [#allocation11], %s6111_s25 }
  0x2c   : > { %5050 = vmatprep.subr.mxu0 %v486_v6  ;;  %5188 = vmatprep.subr.mxu1 %v486_v6  ;;  %v475_v21 = vld [vmem:[%s6138_s19 + $0xb0] sm:$0xff]  ;;  %v476_v23 = vld [vmem:[%s6138_s19 + $0xb8] sm:$0xff]  ;;  %v477_v25 = vld [vmem:[%s6138_s19 + $0xc0] sm:$0xff] }
  0x2d   : > { %5051 = vmatpush3.msra.mxu0 %v486_v6  ;;  %5196 = vmatpush3.msra.mxu1 %v486_v6  ;;  %v462_v26 = vld [vmem:[%s6138_s19 + $0x48] sm:$0xff]  ;;  %v463_v28 = vld [vmem:[%s6138_s19 + $0x50] sm:$0xff]  ;;  %v464_v30 = vld [vmem:[%s6138_s19 + $0x58] sm:$0xff]  ;;  %v853_v6 = vadd.s32 232, %v6208_v41 }
  0x2e   : > { %5052 = vmatprep.subr.mxu0 %v485_v7  ;;  %5189 = vmatprep.subr.mxu1 %v485_v7  ;;  %v478_v27 = vld [vmem:[%s6138_s19 + $0xc8] sm:$0xff]  ;;  %v479_v29 = vld [vmem:[%s6138_s19 + $0xd0] sm:$0xff]  ;;  %v480_v31 = vld [vmem:[%s6138_s19 + $0xd8] sm:$0xff] }
  0x2f   : > { %5053 = vmatpush3.msra.mxu0 %v485_v7  ;;  %5197 = vmatpush3.msra.mxu1 %v485_v7  ;;  %v465_v32 = vld [vmem:[%s6138_s19 + $0x60] sm:$0xff]  ;;  %v466_v34 = vld [vmem:[%s6138_s19 + $0x68] sm:$0xff]  ;;  %v467_v36 = vld [vmem:[%s6138_s19 + $0x70] sm:$0xff]  ;;  %v856_v7 = vstv %s4800_s24 }
  0x30   : > { %5054 = vmatprep.mubr.msk.f32.mxu0 %vm500_vm0, %v453_v8  ;;  %5078 = vmatprep.mubr.msk.f32.mxu1 %vm500_vm0, %v469_v9  ;;  %v481_v33 = vld [vmem:[%s6138_s19 + $0xe0] sm:$0xff]  ;;  %v482_v35 = vld [vmem:[%s6138_s19 + $0xe8] sm:$0xff]  ;;  %v483_v37 = vld [vmem:[%s6138_s19 + $0xf0] sm:$0xff]  ;;  %v854_v8 = vadd.s32 240, %v6208_v41  ;;  %v855_v9 = vadd.s32 248, %v6208_v41 }
  0x31   : > { %5055 = vmatmul.mubr.msk.f32.vlgmr.msra.gmra.mxu0 %vm500_vm0, %v454_v10  ;;  %5079 = vmatmul.mubr.msk.f32.vlgmr.msra.gmra.mxu1 %vm500_vm0, %v470_v11  ;;  %v468_v38 = vld [vmem:[%s6138_s19 + $0x78] sm:$0xff]  ;;  %v6251_v10 = vadd.s32 %v856_v7, %v6208_v41  ;;  %v6253_v11 = vadd.s32 %v856_v7, %v825_v42 }
  0x32   : > { %5057 = vmatprep.mubr.msk.f32.mxu0 %vm500_vm0, %v455_v12  ;;  %5081 = vmatprep.mubr.msk.f32.mxu1 %vm500_vm0, %v471_v13  ;;  %v484_v39 = vld [vmem:[%s6138_s19 + $0xf8] sm:$0xff]  ;;  %v6255_v12 = vadd.s32 %v856_v7, %v826_v43  ;;  %v6257_v13 = vadd.s32 %v856_v7, %v827_v44  ;;  %v6311_v42 = vadd.s32 %v856_v7, %v854_v8  ;;  %v6316_v44 = vstv %s6246_s20 }
  0x33   : > { %10471 = vst [vmem:[#allocation31_spill] sm:$0xff] %v6251_v10  ;;  %10472 = vst [vmem:[#allocation32_spill] sm:$0xff] %v6253_v11  ;;  %v6313_v43 = vadd.s32 %v856_v7, %v855_v9  ;;  %vm10344_vm1 = vcmp.lt.s32.totalorder %v6251_v10, %v6316_v44  ;;  %vm10358_vm2 = vcmp.lt.s32.totalorder %v6253_v11, %v6316_v44 }
  0x34   : > { %10473 = vst [vmem:[#allocation33_spill] sm:$0xff] %v6255_v12  ;;  %10474 = vst [vmem:[#allocation34_spill] sm:$0xff] %v6257_v13  ;;  %vm10357_vm3 = vcmp.lt.s32.totalorder %v6255_v12, %v6316_v44  ;;  %vm10356_vm4 = vcmp.lt.s32.totalorder %v6257_v13, %v6316_v44  ;;  %vm10343_vm10 = vcmp.lt.s32.totalorder %v6311_v42, %v6316_v44 }
  0x35   : > { %5058 = vmatmul.mubr.msk.f32.gmra.mxu0 %vm500_vm0, %v456_v14  ;;  %5082 = vmatmul.mubr.msk.f32.gmra.mxu1 %vm500_vm0, %v472_v15  ;;  %v6259_v14 = vadd.s32 %v856_v7, %v828_v45  ;;  %v6261_v15 = vadd.s32 %v856_v7, %v829_v46  ;;  %10501 = vst [vmem:[#allocation61_spill] sm:$0xff] %v6311_v42  ;;  %10502 = vst [vmem:[#allocation62_spill] sm:$0xff] %v6313_v43  ;;  %v5932_v45 = vmov 0.0  }
  0x36   : > { %5060 = vmatprep.mubr.msk.f32.mxu0 %vm500_vm0, %v457_v16  ;;  %5084 = vmatprep.mubr.msk.f32.mxu1 %vm500_vm0, %v473_v17  ;;  %v6263_v16 = vadd.s32 %v856_v7, %v830_v47  ;;  %v6265_v17 = vadd.s32 %v856_v7, %v831_v48  ;;  %10503 = vst [vmem:[#allocation63_spill] sm:$0xff] %v6316_v44  ;;  %v6385_v46 = vsel %vm10344_vm1, 1.0, %v5932_v45  ;;  %v6390_v47 = vsel %vm10358_vm2, 1.0, %v5932_v45 }
  0x37   : > { %10475 = vst [vmem:[#allocation35_spill] sm:$0xff] %v6259_v14  ;;  %10476 = vst [vmem:[#allocation36_spill] sm:$0xff] %v6261_v15  ;;  %vm10140_vm5 = vcmp.lt.s32.totalorder %v6259_v14, %v6316_v44  ;;  %vm10141_vm6 = vcmp.lt.s32.totalorder %v6261_v15, %v6316_v44  ;;  %vm10361_vm11 = vcmp.lt.s32.totalorder %v6313_v43, %v6316_v44  ;;  %v6395_v48 = vsel %vm10357_vm3, 1.0, %v5932_v45 }
  0x38   : > { %10477 = vst [vmem:[#allocation37_spill] sm:$0xff] %v6263_v16  ;;  %10478 = vst [vmem:[#allocation38_spill] sm:$0xff] %v6265_v17  ;;  %vm10142_vm7 = vcmp.lt.s32.totalorder %v6263_v16, %v6316_v44  ;;  %vm10143_vm8 = vcmp.lt.s32.totalorder %v6265_v17, %v6316_v44 }
  0x39   : > { %5061 = vmatmul.mubr.msk.f32.gmra.mxu0 %vm500_vm0, %v458_v18  ;;  %5085 = vmatmul.mubr.msk.f32.gmra.mxu1 %vm500_vm0, %v474_v19  ;;  %v6267_v18 = vadd.s32 %v856_v7, %v832_v49  ;;  %v6269_v19 = vadd.s32 %v856_v7, %v833_v50  ;;  %v6400_v49 = vsel %vm10356_vm4, 1.0, %v5932_v45  ;;  %v6405_v50 = vsel %vm10140_vm5, 1.0, %v5932_v45 }
  0x3a   : > { %5063 = vmatprep.mubr.msk.f32.mxu0 %vm500_vm0, %v459_v20  ;;  %5087 = vmatprep.mubr.msk.f32.mxu1 %vm500_vm0, %v475_v21  ;;  %v6271_v20 = vadd.s32 %v856_v7, %v834_v51  ;;  %v6273_v21 = vadd.s32 %v856_v7, %v835_v52  ;;  %v6410_v51 = vsel %vm10141_vm6, 1.0, %v5932_v45  ;;  %v6415_v52 = vsel %vm10142_vm7, 1.0, %v5932_v45 }
  0x3b   : > { %10479 = vst [vmem:[#allocation39_spill] sm:$0xff] %v6267_v18  ;;  %10480 = vst [vmem:[#allocation40_spill] sm:$0xff] %v6269_v19  ;;  %vm10144_vm9 = vcmp.lt.s32.totalorder %v6267_v18, %v6316_v44  ;;  %vm10504_vm5 = vcmp.lt.s32.totalorder %v6269_v19, %v6316_v44 }
  0x3c   : > { %10481 = vst [vmem:[#allocation41_spill] sm:$0xff] %v6271_v20  ;;  %10482 = vst [vmem:[#allocation42_spill] sm:$0xff] %v6273_v21  ;;  %vm10505_vm6 = vcmp.lt.s32.totalorder %v6271_v20, %v6316_v44  ;;  %vm10506_vm7 = vcmp.lt.s32.totalorder %v6273_v21, %v6316_v44 }
  0x3d   : > { %5064 = vmatmul.mubr.msk.f32.gmra.mxu0 %vm500_vm0, %v460_v22  ;;  %5088 = vmatmul.mubr.msk.f32.gmra.mxu1 %vm500_vm0, %v476_v23  ;;  %v6275_v22 = vadd.s32 %v856_v7, %v836_v53  ;;  %v6277_v23 = vadd.s32 %v856_v7, %v837_v54  ;;  %v6420_v53 = vsel %vm10143_vm8, 1.0, %v5932_v45  ;;  %v6425_v54 = vsel %vm10144_vm9, 1.0, %v5932_v45 }
  0x3e   : > { %5066 = vmatprep.mubr.msk.f32.mxu0 %vm500_vm0, %v461_v24  ;;  %5090 = vmatprep.mubr.msk.f32.mxu1 %vm500_vm0, %v477_v25  ;;  %v6279_v24 = vadd.s32 %v856_v7, %v838_v55  ;;  %v6281_v25 = vadd.s32 %v856_v7, %v839_v56  ;;  %v6430_v55 = vsel %vm10504_vm5, 1.0, %v5932_v45  ;;  %v6435_v56 = vsel %vm10505_vm6, 1.0, %v5932_v45 }
  0x3f   : > { %10483 = vst [vmem:[#allocation43_spill] sm:$0xff] %v6275_v22  ;;  %10484 = vst [vmem:[#allocation44_spill] sm:$0xff] %v6277_v23  ;;  %vm10507_vm8 = vcmp.lt.s32.totalorder %v6275_v22, %v6316_v44  ;;  %vm10508_vm9 = vcmp.lt.s32.totalorder %v6277_v23, %v6316_v44 }
  0x40   : > { %10485 = vst [vmem:[#allocation45_spill] sm:$0xff] %v6279_v24  ;;  %10486 = vst [vmem:[#allocation46_spill] sm:$0xff] %v6281_v25  ;;  %vm10509_vm5 = vcmp.lt.s32.totalorder %v6279_v24, %v6316_v44  ;;  %vm10510_vm6 = vcmp.lt.s32.totalorder %v6281_v25, %v6316_v44 }
  0x41   : > { %5067 = vmatmul.mubr.msk.f32.gmra.mxu0 %vm500_vm0, %v462_v26  ;;  %5091 = vmatmul.mubr.msk.f32.gmra.mxu1 %vm500_vm0, %v478_v27  ;;  %v6283_v26 = vadd.s32 %v856_v7, %v840_v57  ;;  %v6285_v27 = vadd.s32 %v856_v7, %v841_v58  ;;  %v6440_v57 = vsel %vm10506_vm7, 1.0, %v5932_v45  ;;  %v6445_v58 = vsel %vm10507_vm8, 1.0, %v5932_v45 }
  0x42   : > { %5069 = vmatprep.mubr.msk.f32.mxu0 %vm500_vm0, %v463_v28  ;;  %5093 = vmatprep.mubr.msk.f32.mxu1 %vm500_vm0, %v479_v29  ;;  %v6287_v28 = vadd.s32 %v856_v7, %v842_v59  ;;  %v6289_v29 = vadd.s32 %v856_v7, %v843_v60  ;;  %v6450_v59 = vsel %vm10508_vm9, 1.0, %v5932_v45  ;;  %v6455_v60 = vsel %vm10509_vm5, 1.0, %v5932_v45 }
  0x43   : > { %10487 = vst [vmem:[#allocation47_spill] sm:$0xff] %v6283_v26  ;;  %10488 = vst [vmem:[#allocation48_spill] sm:$0xff] %v6285_v27  ;;  %vm10511_vm7 = vcmp.lt.s32.totalorder %v6283_v26, %v6316_v44  ;;  %vm10512_vm8 = vcmp.lt.s32.totalorder %v6285_v27, %v6316_v44 }
  0x44   : > { %10489 = vst [vmem:[#allocation49_spill] sm:$0xff] %v6287_v28  ;;  %10490 = vst [vmem:[#allocation50_spill] sm:$0xff] %v6289_v29  ;;  %vm10513_vm9 = vcmp.lt.s32.totalorder %v6287_v28, %v6316_v44  ;;  %vm10514_vm5 = vcmp.lt.s32.totalorder %v6289_v29, %v6316_v44 }
  0x45   : > { %5070 = vmatmul.mubr.msk.f32.gmra.mxu0 %vm500_vm0, %v464_v30  ;;  %5094 = vmatmul.mubr.msk.f32.gmra.mxu1 %vm500_vm0, %v480_v31  ;;  %v6291_v30 = vadd.s32 %v856_v7, %v844_v61  ;;  %v6293_v31 = vadd.s32 %v856_v7, %v845_v62  ;;  %v6460_v61 = vsel %vm10510_vm6, 1.0, %v5932_v45  ;;  %v6465_v62 = vsel %vm10511_vm7, 1.0, %v5932_v45 }
  0x46   : > { %5072 = vmatprep.mubr.msk.f32.mxu0 %vm500_vm0, %v465_v32  ;;  %5096 = vmatprep.mubr.msk.f32.mxu1 %vm500_vm0, %v481_v33  ;;  %v6295_v32 = vadd.s32 %v856_v7, %v846_v63  ;;  %v6297_v33 = vadd.s32 %v856_v7, %v847_v0  ;;  %v6470_v63 = vsel %vm10512_vm8, 1.0, %v5932_v45  ;;  %v6475_v0 = vsel %vm10513_vm9, 1.0, %v5932_v45 }
  0x47   : > { %10491 = vst [vmem:[#allocation51_spill] sm:$0xff] %v6291_v30  ;;  %10492 = vst [vmem:[#allocation52_spill] sm:$0xff] %v6293_v31  ;;  %vm10515_vm6 = vcmp.lt.s32.totalorder %v6291_v30, %v6316_v44  ;;  %vm10516_vm7 = vcmp.lt.s32.totalorder %v6293_v31, %v6316_v44 }
  0x48   : > { %10493 = vst [vmem:[#allocation53_spill] sm:$0xff] %v6295_v32  ;;  %10494 = vst [vmem:[#allocation54_spill] sm:$0xff] %v6297_v33  ;;  %vm10517_vm8 = vcmp.lt.s32.totalorder %v6295_v32, %v6316_v44  ;;  %vm10518_vm9 = vcmp.lt.s32.totalorder %v6297_v33, %v6316_v44 }
  0x49   : > { %5073 = vmatmul.mubr.msk.f32.gmra.mxu0 %vm500_vm0, %v466_v34  ;;  %5097 = vmatmul.mubr.msk.f32.gmra.mxu1 %vm500_vm0, %v482_v35  ;;  %v6299_v34 = vadd.s32 %v856_v7, %v848_v1  ;;  %v6301_v35 = vadd.s32 %v856_v7, %v849_v2  ;;  %v6480_v1 = vsel %vm10514_vm5, 1.0, %v5932_v45  ;;  %v6485_v2 = vsel %vm10515_vm6, 1.0, %v5932_v45 }
  0x4a   : > { %5075 = vmatprep.mubr.msk.f32.mxu0 %vm500_vm0, %v467_v36  ;;  %5099 = vmatprep.mubr.msk.f32.mxu1 %vm500_vm0, %v483_v37  ;;  %v6303_v36 = vadd.s32 %v856_v7, %v850_v3  ;;  %v6305_v37 = vadd.s32 %v856_v7, %v851_v4  ;;  %v6490_v3 = vsel %vm10516_vm7, 1.0, %v5932_v45  ;;  %v6495_v4 = vsel %vm10517_vm8, 1.0, %v5932_v45 }
  0x4b   : > { %10495 = vst [vmem:[#allocation55_spill] sm:$0xff] %v6299_v34  ;;  %10496 = vst [vmem:[#allocation56_spill] sm:$0xff] %v6301_v35  ;;  %vm10362_vm12 = vcmp.lt.s32.totalorder %v6301_v35, %v6316_v44  ;;  %vm10519_vm5 = vcmp.lt.s32.totalorder %v6299_v34, %v6316_v44  ;;  %v6540_v34 = vsel %vm10361_vm11, 1.0, %v5932_v45 }
  0x4c   : > { %10497 = vst [vmem:[#allocation57_spill] sm:$0xff] %v6303_v36  ;;  %10498 = vst [vmem:[#allocation58_spill] sm:$0xff] %v6305_v37  ;;  %vm10360_vm13 = vcmp.lt.s32.totalorder %v6303_v36, %v6316_v44  ;;  %vm10363_vm14 = vcmp.lt.s32.totalorder %v6305_v37, %v6316_v44  ;;  %v6535_v36 = vsel %vm10343_vm10, 1.0, %v5932_v45 }
  0x4d   : > { %5076 = vmatmul.mubr.msk.f32.gmra.mxu0 %vm500_vm0, %v468_v38  ;;  %5100 = vmatmul.mubr.msk.f32.gmra.mxu1 %vm500_vm0, %v484_v39  ;;  %v6307_v38 = vadd.s32 %v856_v7, %v852_v5  ;;  %v6309_v39 = vadd.s32 %v856_v7, %v853_v6  ;;  %v6500_v5 = vsel %vm10518_vm9, 1.0, %v5932_v45  ;;  %v6505_v6 = vsel %vm10519_vm5, 1.0, %v5932_v45  ;;  %10524 = vst [vmem:[#allocation68_spill] sm:$0xff] %v6535_v36 }
  0x4e   : > { %v6510_v7 = vsel %vm10362_vm12, 1.0, %v5932_v45  ;;  %v6515_v8 = vsel %vm10360_vm13, 1.0, %v5932_v45  ;;  %v6520_v9 = vsel %vm10363_vm14, 1.0, %v5932_v45  ;;  %10525 = vst [vmem:[#allocation69_spill] sm:$0xff] %v6540_v34 }
  0x4f   : > { %10499 = vst [vmem:[#allocation59_spill] sm:$0xff] %v6307_v38  ;;  %10500 = vst [vmem:[#allocation60_spill] sm:$0xff] %v6309_v39  ;;  %vm10359_vm15 = vcmp.lt.s32.totalorder %v6307_v38, %v6316_v44  ;;  %vm10364_vm0 = vcmp.lt.s32.totalorder %v6309_v39, %v6316_v44  ;;  %v6545_v38 = vld [vmem:[%s10122_s4] ss:$0 sm:$0xff] }
  0x50   : > { %10520 = vst [vmem:[#allocation64_spill] sm:$0xff] %v6515_v8  ;;  %10521 = vst [vmem:[#allocation65_spill] sm:$0xff] %v6520_v9  ;;  %v6525_v40 = vsel %vm10359_vm15, 1.0, %v5932_v45  ;;  %v6530_v41 = vsel %vm10364_vm0, 1.0, %v5932_v45 }
  0x51   : > { %10522 = vst [vmem:[#allocation66_spill] sm:$0xff] %v6525_v40  ;;  %10523 = vst [vmem:[#allocation67_spill] sm:$0xff] %v6530_v41 }
  0xf1   : > { %v5056_v32 = vpop.f32.mrf.mxu0  ;;  %v5080_v30 = vpop.f32.mrf.mxu1 }
  0xf2   : > { %v6548_v28 = vadd.f32 %v5056_v32, %v6545_v38  ;;  %v6551_v39 = vadd.f32 %v5080_v30, %v6545_v38 }
  0xf3   : > { %v663_v42 = vpop.f32.mrf.mxu0  ;;  %v743_v37 = vpop.f32.mrf.mxu1 }
  0xf4   : > { %10526 = vst [vmem:[#allocation70_spill] sm:$0xff] %v6548_v28  ;;  %10527 = vst [vmem:[#allocation71_spill] sm:$0xff] %v6551_v39  ;;  %v6554_v35 = vadd.f32 %v6545_v38, %v663_v42  ;;  %v6557_v45 = vadd.f32 %v6545_v38, %v743_v37 }
  0xf5   : > { %v5059_v43 = vpop.f32.mrf.mxu0  ;;  %v5083_v33 = vpop.f32.mrf.mxu1 }
  0xf6   : > { %10528 = vst [vmem:[#allocation72_spill] sm:$0xff] %v6554_v35  ;;  %10529 = vst [vmem:[#allocation73_spill] sm:$0xff] %v6557_v45  ;;  %v6560_v31 = vadd.f32 %v5059_v43, %v6545_v38  ;;  %v6563_v26 = vadd.f32 %v5083_v33, %v6545_v38 }
  0xf7   : > { %v673_v32 = vpop.f32.mrf.mxu0  ;;  %v753_v29 = vpop.f32.mrf.mxu1 }
  0xf8   : > { %10530 = vst [vmem:[#allocation74_spill] sm:$0xff] %v6560_v31  ;;  %10531 = vst [vmem:[#allocation75_spill] sm:$0xff] %v6563_v26  ;;  %v6566_v30 = vadd.f32 %v6545_v38, %v673_v32  ;;  %v6569_v27 = vadd.f32 %v6545_v38, %v753_v29 }
  0xf9   : > { %v5062_v42 = vpop.f32.mrf.mxu0  ;;  %v5086_v25 = vpop.f32.mrf.mxu1 }
  0xfa   : > { %10532 = vst [vmem:[#allocation76_spill] sm:$0xff] %v6566_v30  ;;  %10533 = vst [vmem:[#allocation77_spill] sm:$0xff] %v6569_v27  ;;  %v6572_v37 = vadd.f32 %v5062_v42, %v6545_v38  ;;  %v6575_v24 = vadd.f32 %v5086_v25, %v6545_v38 }
  0xfb   : > { %v683_v43 = vpop.f32.mrf.mxu0  ;;  %v763_v23 = vpop.f32.mrf.mxu1 }
  0xfc   : > { %10534 = vst [vmem:[#allocation78_spill] sm:$0xff] %v6572_v37  ;;  %10535 = vst [vmem:[#allocation79_spill] sm:$0xff] %v6575_v24  ;;  %v6578_v33 = vadd.f32 %v6545_v38, %v683_v43  ;;  %v6581_v22 = vadd.f32 %v6545_v38, %v763_v23 }
  0xfd   : > { %v5065_v32 = vpop.f32.mrf.mxu0  ;;  %v5089_v21 = vpop.f32.mrf.mxu1 }
  0xfe   : > { %10536 = vst [vmem:[#allocation80_spill] sm:$0xff] %v6578_v33  ;;  %10537 = vst [vmem:[#allocation81_spill] sm:$0xff] %v6581_v22  ;;  %v6584_v29 = vadd.f32 %v5065_v32, %v6545_v38  ;;  %v6587_v20 = vadd.f32 %v5089_v21, %v6545_v38 }
  0xff   : > { %v693_v42 = vpop.f32.mrf.mxu0  ;;  %v773_v19 = vpop.f32.mrf.mxu1 }
 0x100   : > { %10538 = vst [vmem:[#allocation82_spill] sm:$0xff] %v6584_v29  ;;  %10539 = vst [vmem:[#allocation83_spill] sm:$0xff] %v6587_v20  ;;  %v6590_v25 = vadd.f32 %v6545_v38, %v693_v42  ;;  %v6593_v18 = vadd.f32 %v6545_v38, %v773_v19 }
 0x101   : > { %v5068_v43 = vpop.f32.mrf.mxu0  ;;  %v5092_v17 = vpop.f32.mrf.mxu1 }
 0x102   : > { %10540 = vst [vmem:[#allocation84_spill] sm:$0xff] %v6590_v25  ;;  %10541 = vst [vmem:[#allocation85_spill] sm:$0xff] %v6593_v18  ;;  %v6596_v23 = vadd.f32 %v5068_v43, %v6545_v38  ;;  %v6599_v16 = vadd.f32 %v5092_v17, %v6545_v38 }
 0x103   : > { %v703_v32 = vpop.f32.mrf.mxu0  ;;  %v783_v15 = vpop.f32.mrf.mxu1 }
 0x104   : > { %10542 = vst [vmem:[#allocation86_spill] sm:$0xff] %v6596_v23  ;;  %10543 = vst [vmem:[#allocation87_spill] sm:$0xff] %v6599_v16  ;;  %v6602_v21 = vadd.f32 %v6545_v38, %v703_v32  ;;  %v6605_v14 = vadd.f32 %v6545_v38, %v783_v15 }
 0x105   : > { %v5071_v42 = vpop.f32.mrf.mxu0  ;;  %v5095_v13 = vpop.f32.mrf.mxu1 }
 0x106   : > { %10544 = vst [vmem:[#allocation88_spill] sm:$0xff] %v6602_v21  ;;  %10545 = vst [vmem:[#allocation89_spill] sm:$0xff] %v6605_v14  ;;  %v6608_v19 = vadd.f32 %v5071_v42, %v6545_v38  ;;  %v6611_v12 = vadd.f32 %v5095_v13, %v6545_v38 }
 0x107   : > { %v713_v43 = vpop.f32.mrf.mxu0  ;;  %v793_v11 = vpop.f32.mrf.mxu1 }
 0x108   : > { %10546 = vst [vmem:[#allocation90_spill] sm:$0xff] %v6608_v19  ;;  %10547 = vst [vmem:[#allocation91_spill] sm:$0xff] %v6611_v12  ;;  %v6614_v17 = vadd.f32 %v6545_v38, %v713_v43  ;;  %v6617_v44 = vadd.f32 %v6545_v38, %v793_v11 }
 0x109   : > { %v5074_v32 = vpop.f32.mrf.mxu0  ;;  %v5098_v15 = vpop.f32.mrf.mxu1 }
 0x10a   : > { %10548 = vst [vmem:[#allocation92_spill] sm:$0xff] %v6614_v17  ;;  %10549 = vst [vmem:[#allocation93_spill] sm:$0xff] %v6617_v44  ;;  %v6620_v10 = vadd.f32 %v5074_v32, %v6545_v38  ;;  %v6623_v42 = vadd.f32 %v5098_v15, %v6545_v38 }
 0x10b   : > { %v723_v34 = vpop.f32.mrf.mxu0  ;;  %v803_v13 = vpop.f32.mrf.mxu1 }
 0x10c   : > { %10550 = vst [vmem:[#allocation94_spill] sm:$0xff] %v6620_v10  ;;  %10551 = vst [vmem:[#allocation95_spill] sm:$0xff] %v6623_v42  ;;  %v6626_v36 = vadd.f32 %v6545_v38, %v723_v34  ;;  %v6629_v43 = vadd.f32 %v6545_v38, %v803_v13 }
 0x10d   : > { %v5077_v41 = vpop.f32.mrf.mxu0  ;;  %v5101_v11 = vpop.f32.mrf.mxu1 }
 0x10e   : > { %10552 = vst [vmem:[#allocation96_spill] sm:$0xff] %v6626_v36  ;;  %10553 = vst [vmem:[#allocation97_spill] sm:$0xff] %v6629_v43  ;;  %v6632_v40 = vadd.f32 %v5077_v41, %v6545_v38  ;;  %v6635_v9 = vadd.f32 %v5101_v11, %v6545_v38  ;;  %991 = sbr.rel (%p6235_p3) target bundleno = 280 (0x118), region = 56 }
 0x10f   : > { %v733_v32 = vpop.f32.mrf.mxu0  ;;  %v813_v12 = vpop.f32.mrf.mxu1 }
 0x110   : > { %10554 = vst [vmem:[#allocation98_spill] sm:$0xff] %v6632_v40  ;;  %10555 = vst [vmem:[#allocation99_spill] sm:$0xff] %v6635_v9  ;;  %v6638_v15 = vadd.f32 %v6545_v38, %v733_v32  ;;  %v6641_v42 = vadd.f32 %v6545_v38, %v813_v12 }
 0x112   : > { %10556 = vst [vmem:[#allocation100_spill] sm:$0xff] %v6638_v15  ;;  %10557 = vst [vmem:[#allocation101_spill] sm:$0xff] %v6641_v42 }
 0x113   : > { %vm994_vm6 = vcmask 0   ;;  %v5933_v34 = vmov 0.0  }
 0x114   : > { %992 = vst [vmem:[#allocation2] sm:$0x1] %v5933_v34  ;;  %993 = vst [vmem:[#allocation3] sm:$0x1] %v5933_v34 }
 0x115   : > { %995 = vst.msk [vmem:[#allocation4] sm:$0x1] %vm994_vm6, %v5933_v34  ;;  %996 = vst.msk [vmem:[#allocation5] sm:$0x1] %vm994_vm6, %v5933_v34 }
 0x116   : > { %997 = vst.msk [vmem:[#allocation6] sm:$0x1] %vm994_vm6, %v5933_v34  ;;  %998 = vst.msk [vmem:[#allocation7] sm:$0x1] %vm994_vm6, %v5933_v34 }
 0x117   : > { %999 = vst.msk [vmem:[#allocation8] sm:$0x1] %vm994_vm6, %v5933_v34 }
 0x118 PF: > { %p4833_p4 = scmp.ne.s32.totalorder %s5918_s14, 0 }
 0x11a   : > { %1002 = sbr.rel (%p4833_p4) target bundleno = 368 (0x170), region = 60 }
 0x11f   : > { %v1003_v41 = vmul.f32 %v6385_v46, %v6554_v35  ;;  %v1004_v12 = vmul.f32 %v6390_v47, %v6548_v28  ;;  %v1005_v38 = vmul.f32 %v6395_v48, %v6566_v30  ;;  %v1006_v11 = vmul.f32 %v6400_v49, %v6560_v31 }
 0x120   : > { %v1007_v34 = vmul.f32 %v6405_v50, %v6578_v33  ;;  %v1008_v46 = vmul.f32 %v6410_v51, %v6572_v37  ;;  %v1009_v48 = vmul.f32 %v6415_v52, %v6590_v25  ;;  %v1010_v50 = vmul.f32 %v6420_v53, %v6584_v29 }
 0x121   : > { %v1036_v13 = vadd.f32 %v1004_v12, %v1003_v41  ;;  %v1076_v42 = vmul.f32 %v1003_v41, %v6554_v35  ;;  %v1077_v43 = vmul.f32 %v1004_v12, %v6548_v28  ;;  %v1078_v8 = vmul.f32 %v1005_v38, %v6566_v30 }
 0x122   : > { %v1079_v49 = vmul.f32 %v1006_v11, %v6560_v31  ;;  %v1080_v41 = vmul.f32 %v1007_v34, %v6578_v33  ;;  %v1011_v51 = vmul.f32 %v6425_v54, %v6602_v21  ;;  %v1012_v52 = vmul.f32 %v6430_v55, %v6596_v23 }
 0x123   : > { %v1037_v32 = vadd.f32 %v1036_v13, %v1005_v38  ;;  %v1108_v13 = vadd.f32 %v1077_v43, %v1076_v42  ;;  %v1081_v38 = vmul.f32 %v1008_v46, %v6572_v37  ;;  %v1082_v42 = vmul.f32 %v1009_v48, %v6590_v25 }
 0x124   : > { %v1014_v54 = vmul.f32 %v6440_v57, %v6608_v19  ;;  %v1015_v55 = vmul.f32 %v6445_v58, %v6626_v36  ;;  %v1017_v57 = vmul.f32 %v6455_v60, %v6638_v15  ;;  %v1018_v58 = vmul.f32 %v6460_v61, %v6632_v40 }
 0x125   : > { %v1038_v9 = vadd.f32 %v1037_v32, %v1006_v11  ;;  %v1109_v12 = vadd.f32 %v1108_v13, %v1078_v8  ;;  %v1083_v8 = vmul.f32 %v1010_v50, %v6584_v29  ;;  %v1020_v60 = vmul.f32 %v6470_v63, %v6551_v39 }
 0x126   : > { %v1021_v61 = vmul.f32 %v6475_v0, %v6569_v27  ;;  %v1023_v63 = vmul.f32 %v6485_v2, %v6581_v22  ;;  %v1024_v0 = vmul.f32 %v6490_v3, %v6575_v24  ;;  %v1026_v2 = vmul.f32 %v6500_v5, %v6587_v20  ;;  %v10559_v5 = vld [vmem:[#allocation64_spill] sm:$0xff] }
 0x127   : > { %v1039_v47 = vadd.f32 %v1038_v9, %v1007_v34  ;;  %v1110_v28 = vadd.f32 %v1109_v12, %v1079_v49  ;;  %v1027_v3 = vmul.f32 %v6505_v6, %v6605_v14  ;;  %v10561_v6 = vld [vmem:[#allocation65_spill] sm:$0xff] }
 0x129   : > { %v1040_v44 = vadd.f32 %v1039_v47, %v1008_v46  ;;  %v1111_v43 = vadd.f32 %v1110_v28, %v1080_v41  ;;  %v1084_v46 = vmul.f32 %v1011_v51, %v6602_v21  ;;  %v1085_v28 = vmul.f32 %v1012_v52, %v6596_v23 }
 0x12b   : > { %v1041_v32 = vadd.f32 %v1040_v44, %v1009_v48  ;;  %v1013_v44 = vmul.f32 %v6435_v56, %v6614_v17  ;;  %v1112_v11 = vadd.f32 %v1111_v43, %v1081_v38  ;;  %v1016_v56 = vmul.f32 %v6450_v59, %v6620_v10 }
 0x12c   : > { %v1019_v59 = vmul.f32 %v6465_v62, %v6557_v45  ;;  %v1022_v62 = vmul.f32 %v6480_v1, %v6563_v26  ;;  %v1025_v1 = vmul.f32 %v6495_v4, %v6593_v18  ;;  %v1028_v4 = vmul.f32 %v6510_v7, %v6599_v16  ;;  %v10563_v7 = vld [vmem:[#allocation66_spill] sm:$0xff] }
 0x12d   : > { %v1042_v9 = vadd.f32 %v1041_v32, %v1010_v50  ;;  %v1113_v49 = vadd.f32 %v1112_v11, %v1082_v42  ;;  %v1086_v50 = vmul.f32 %v1013_v44, %v6614_v17  ;;  %v1089_v43 = vmul.f32 %v1016_v56, %v6620_v10 }
 0x12f   : > { %v1043_v47 = vadd.f32 %v1042_v9, %v1011_v51  ;;  %v1114_v48 = vadd.f32 %v1113_v49, %v1083_v8  ;;  %v1087_v51 = vmul.f32 %v1014_v54, %v6608_v19  ;;  %v1090_v8 = vmul.f32 %v1017_v57, %v6638_v15 }
 0x131   : > { %v1044_v53 = vadd.f32 %v1043_v47, %v1012_v52  ;;  %v1115_v41 = vadd.f32 %v1114_v48, %v1084_v46  ;;  %v1088_v52 = vmul.f32 %v1015_v55, %v6626_v36  ;;  %v1093_v48 = vmul.f32 %v1020_v60, %v6551_v39 }
 0x133   : > { %v1045_v34 = vadd.f32 %v1044_v53, %v1013_v44  ;;  %v1116_v9 = vadd.f32 %v1115_v41, %v1085_v28 }
 0x135   : > { %v1046_v13 = vadd.f32 %v1045_v34, %v1014_v54  ;;  %v1117_v47 = vadd.f32 %v1116_v9, %v1086_v50  ;;  %v1091_v34 = vmul.f32 %v1018_v58, %v6632_v40  ;;  %v1094_v50 = vmul.f32 %v1021_v61, %v6569_v27 }
 0x137   : > { %v1047_v32 = vadd.f32 %v1046_v13, %v1015_v55  ;;  %v1118_v44 = vadd.f32 %v1117_v47, %v1087_v51  ;;  %v1092_v55 = vmul.f32 %v1019_v59, %v6557_v45  ;;  %v1097_v47 = vmul.f32 %v1024_v0, %v6575_v24 }
 0x139   : > { %v1048_v12 = vadd.f32 %v1047_v32, %v1016_v56  ;;  %v1119_v11 = vadd.f32 %v1118_v44, %v1088_v52 }
 0x13b   : > { %v1049_v38 = vadd.f32 %v1048_v12, %v1017_v57  ;;  %v1120_v46 = vadd.f32 %v1119_v11, %v1089_v43  ;;  %v1095_v12 = vmul.f32 %v1022_v62, %v6563_v26  ;;  %v1098_v43 = vmul.f32 %v1025_v1, %v6593_v18 }
 0x13c   : > { %v1099_v11 = vmul.f32 %v1026_v2, %v6587_v20 }
 0x13d   : > { %v1050_v42 = vadd.f32 %v1049_v38, %v1018_v58  ;;  %v1121_v13 = vadd.f32 %v1120_v46, %v1090_v8  ;;  %v1096_v58 = vmul.f32 %v1023_v63, %v6581_v22 }
 0x13f   : > { %v1051_v53 = vadd.f32 %v1050_v42, %v1019_v59  ;;  %v1122_v56 = vadd.f32 %v1121_v13, %v1091_v34 }
 0x141   : > { %v1052_v54 = vadd.f32 %v1051_v53, %v1020_v60  ;;  %v1123_v41 = vadd.f32 %v1122_v56, %v1092_v55  ;;  %v10558_v60 = vld [vmem:[#allocation93_spill] sm:$0xff]  ;;  %v10564_v56 = vld [vmem:[#allocation95_spill] sm:$0xff] }
 0x142   : > { %v1029_v53 = vmul.f32 %v10559_v5, %v10558_v60  ;;  %v10562_v55 = vld [vmem:[#allocation97_spill] sm:$0xff] }
 0x143   : > { %v1053_v49 = vadd.f32 %v1052_v54, %v1021_v61  ;;  %v1124_v51 = vadd.f32 %v1123_v41, %v1093_v48  ;;  %v10560_v54 = vld [vmem:[#allocation91_spill] sm:$0xff]  ;;  %v1031_v13 = vmul.f32 %v10563_v7, %v10562_v55 }
 0x144   : > { %v1030_v34 = vmul.f32 %v10561_v6, %v10560_v54  ;;  %v1102_v41 = vmul.f32 %v1029_v53, %v10558_v60 }
 0x145   : > { %v1054_v28 = vadd.f32 %v1053_v49, %v1022_v62  ;;  %v1125_v38 = vadd.f32 %v1124_v51, %v1094_v50  ;;  %v1100_v62 = vmul.f32 %v1027_v3, %v6605_v14 }
 0x147   : > { %v1055_v32 = vadd.f32 %v1054_v28, %v1023_v63  ;;  %v1126_v59 = vadd.f32 %v1125_v38, %v1095_v12  ;;  %v1101_v28 = vmul.f32 %v1028_v4, %v6599_v16  ;;  %v10567_v12 = vld [vmem:[#allocation68_spill] sm:$0xff]  ;;  %v10568_v38 = vld [vmem:[#allocation99_spill] sm:$0xff] }
 0x149   : > { %v1056_v57 = vadd.f32 %v1055_v32, %v1024_v0  ;;  %v1127_v44 = vadd.f32 %v1126_v59, %v1096_v58  ;;  %v10565_v0 = vld [vmem:[#allocation67_spill] sm:$0xff]  ;;  %v1104_v59 = vmul.f32 %v1031_v13, %v10562_v55 }
 0x14a   : > { %v1032_v32 = vmul.f32 %v10565_v0, %v10564_v56  ;;  %v1075_v0 = vld [vmem:[#allocation3] sm:$0x1] }
 0x14b   : > { %v1057_v9 = vadd.f32 %v1056_v57, %v1025_v1  ;;  %v1128_v61 = vadd.f32 %v1127_v44, %v1097_v47  ;;  %v10566_v57 = vld [vmem:[#allocation101_spill] sm:$0xff] }
 0x14c   : > { %v1033_v51 = vmul.f32 %v10567_v12, %v10566_v57 }
 0x14d   : > { %v1058_v52 = vadd.f32 %v1057_v9, %v1026_v2  ;;  %v1129_v49 = vadd.f32 %v1128_v61, %v1098_v43  ;;  %v1103_v9 = vmul.f32 %v1030_v34, %v10560_v54  ;;  %v1105_v43 = vmul.f32 %v1032_v32, %v10564_v56 }
 0x14e   : > { %v1106_v5 = vmul.f32 %v1033_v51, %v10566_v57 }
 0x14f   : > { %v1059_v42 = vadd.f32 %v1058_v52, %v1027_v3  ;;  %v1130_v48 = vadd.f32 %v1129_v49, %v1099_v11  ;;  %v10569_v3 = vld [vmem:[#allocation69_spill] sm:$0xff]  ;;  %v1035_v49 = vld [vmem:[#allocation2] sm:$0x1] }
 0x150   : > { %v1034_v52 = vmul.f32 %v10569_v3, %v10568_v38 }
 0x151   : > { %v1060_v8 = vadd.f32 %v1059_v42, %v1028_v4  ;;  %v1131_v1 = vadd.f32 %v1130_v48, %v1100_v62 }
 0x152   : > { %v1107_v11 = vmul.f32 %v1034_v52, %v10568_v38 }
 0x153   : > { %v1061_v46 = vadd.f32 %v1060_v8, %v1029_v53  ;;  %v1132_v58 = vadd.f32 %v1131_v1, %v1101_v28 }
 0x155   : > { %v1062_v63 = vadd.f32 %v1061_v46, %v1030_v34  ;;  %v1133_v4 = vadd.f32 %v1132_v58, %v1102_v41 }
 0x157   : > { %v1063_v50 = vadd.f32 %v1062_v63, %v1031_v13  ;;  %v1134_v44 = vadd.f32 %v1133_v4, %v1103_v9 }
 0x159   : > { %v1064_v2 = vadd.f32 %v1063_v50, %v1032_v32  ;;  %v1135_v53 = vadd.f32 %v1134_v44, %v1104_v59 }
 0x15b   : > { %v1065_v47 = vadd.f32 %v1064_v2, %v1033_v51  ;;  %v1136_v61 = vadd.f32 %v1135_v53, %v1105_v43 }
 0x15d   : > { %v1066_v42 = vadd.f32 %v1065_v47, %v1034_v52  ;;  %v1137_v6 = vadd.f32 %v1136_v61, %v1106_v5 }
 0x15f   : > { %v1067_v60 = vrot.slane %v1066_v42, 4  ;;  %v1138_v46 = vadd.f32 %v1137_v6, %v1107_v11 }
 0x161   : > { %v1068_v8 = vadd.f32 %v1067_v60, %v1066_v42  ;;  %v1139_v55 = vrot.slane %v1138_v46, 4 }
 0x163   : > { %v1069_v54 = vrot.slane %v1068_v8, 2  ;;  %v1140_v13 = vadd.f32 %v1139_v55, %v1138_v46 }
 0x165   : > { %v1070_v34 = vadd.f32 %v1069_v54, %v1068_v8  ;;  %v1141_v28 = vrot.slane %v1140_v13, 2 }
 0x167   : > { %v1071_v62 = vrot.slane %v1070_v34, 1  ;;  %v1142_v48 = vadd.f32 %v1141_v28, %v1140_v13 }
 0x169   : > { %v1072_v7 = vadd.f32 %v1071_v62, %v1070_v34  ;;  %v1143_v56 = vrot.slane %v1142_v48, 1 }
 0x16b   : > { %v1073_v63 = vadd.f32 %v1072_v7, %v1035_v49  ;;  %v1144_v32 = vadd.f32 %v1143_v56, %v1142_v48 }
 0x16d   : > { %1074 = vst [vmem:[#allocation2] sm:$0x1] %v1073_v63  ;;  %v1145_v50 = vadd.f32 %v1144_v32, %v1075_v0 }
 0x16f   : > { %1146 = vst [vmem:[#allocation3] sm:$0x1] %v1145_v50 }
 0x170 PF: > { %p4834_p5 = scmp.ne.s32.totalorder %s5918_s14, 1 }
 0x172   : > { %1150 = sbr.rel (%p4834_p5) target bundleno = 2401 (0x961), region = 64 }
 0x177   : > { %p4835_p7 = scmp.ne.s32.totalorder %s5914_s30, 0 }
 0x178   : > { %s1154_s25 = scvt.s32.f32 (!%p4835_p7), %s6246_s20 }
 0x179   : > { %1153 = sbr.rel (%p4835_p7) target bundleno = 428 (0x1ac), region = 68 }
 0x17e   : > { %v1156_v41 = vstv %s1154_s25  ;;  %v1155_v1 = vld [vmem:[#allocation2] sm:$0x1]  ;;  %v1159_v57 = vld [vmem:[#allocation3] sm:$0x1] }
 0x17f   : > { %5404 = vrcp.f32 %v1156_v41  ;;  %v1164_v52 = vld [vmem:[%s10123_s5] sm:$0x1] }
 0x180   : > { %v1169_v4 = vld [vmem:[%s10124_s6] sm:$0x1] }
 0x18c   : > { %v5405_v12 = vpop.eup %5404 }
 0x18d   : > { %v1158_v51 = vmul.f32 %v5405_v12, %v1155_v1  ;;  %v1160_v2 = vmul.f32 %v5405_v12, %v1159_v57 }
 0x18f   : > { %v1161_v9 = vmul.f32 %v1158_v51, %v1158_v51 }
 0x191   : > { %v1162_v58 = vsub.f32 %v1160_v2, %v1161_v9 }
 0x193   : > { %v1163_v38 = vmax.f32 %v1162_v58, 0.0 }
 0x195   : > { %v1165_v3 = vadd.f32 0.001, %v1163_v38 }
 0x197   : > { %5406 = vrsqrt.f32 %v1165_v3 }
 0x1a4   : > { %v5407_v47 = vpop.eup %5406 }
 0x1a5   : > { %v1167_v59 = vmul.f32 %v5407_v47, %v1164_v52 }
 0x1a7   : > { %1168 = vst [vmem:[#allocation2] sm:$0x1] %v1167_v59  ;;  %v1170_v42 = vmul.f32 %v1167_v59, %v1158_v51 }
 0x1a9   : > { %v1171_v43 = vsub.f32 %v1169_v4, %v1170_v42 }
 0x1ab   : > { %1172 = vst [vmem:[#allocation3] sm:$0x1] %v1171_v43 }
 0x1ac PF: > { %v10570_v44 = vlaneseq  ;;  %v10571_v5 = vmov 0  ;;  %v10574_v11 = vld [vmem:[#allocation70_spill] sm:$0xff]  ;;  %v10594_v58 = vld [vmem:[#allocation93_spill] sm:$0xff]  ;;  %v10596_v3 = vld [vmem:[#allocation91_spill] sm:$0xff]  ;;  %s5937_s13 = smov 122   ;;  %s5938_s0 = smov 3  }
 0x1ad   : > { %v10598_v47 = vld [vmem:[#allocation97_spill] sm:$0xff]  ;;  %v10600_v4 = vld [vmem:[#allocation95_spill] sm:$0xff]  ;;  %s5939_s20 = smov 125   ;;  %p4935_p9 = scmp.ne.s32.totalorder %s5914_s30, 3 }
 0x1ae   : > { %v6755_v60 = vand.u32 127, %v10570_v44  ;;  %v10602_v43 = vld [vmem:[#allocation101_spill] sm:$0xff] }
 0x1b0   : > { %vm1533_vm7 = vcmp.ge.s32.totalorder %v6755_v60, 64  ;;  %vm1534_vm8 = vcmp.lt.s32.totalorder %v6755_v60, 84 }
 0x1b1   : > { %vm6759_vm9 = vmand %vm1533_vm7, %vm1534_vm8 }
 0x1b2   : > { %v10572_v5 = vsel %vm6759_vm9, 4294967295, %v10571_v5  ;;  %v6766_v53 = vsel %vm6759_vm9, %v6554_v35, -1e+30  ;;  %v6771_v8 = vsel %vm6759_vm9, %v6566_v30, -1e+30  ;;  %v1652_v30 = vld [vmem:[%s6127_s29 + $0xa0] sm:$0xff] }
 0x1b3   : > { %10573 = vst [vmem:[#allocation102_spill] sm:$0xff] %v10572_v5  ;;  %1728 = vmax.xlane.f32.xlu0 %v6766_v53  ;;  %1732 = vmax.xlane.f32.xlu1 %v6771_v8  ;;  %v6778_v61 = vsel %vm6759_vm9, %v10574_v11, -1e+30  ;;  %v6783_v54 = vsel %vm6759_vm9, %v6560_v31, -1e+30  ;;  %v5270_v35 = vtrunc.f32 %v1652_v30 }
 0x1b4   : > { %v6790_v6 = vsel %vm6759_vm9, %v6578_v33, -1e+30  ;;  %v6795_v34 = vsel %vm6759_vm9, %v6572_v37, -1e+30  ;;  %v6802_v46 = vsel %vm6759_vm9, %v6590_v25, -1e+30 }
 0x1b5   : > { %v6807_v62 = vsel %vm6759_vm9, %v6584_v29, -1e+30  ;;  %v6814_v49 = vsel %vm6759_vm9, %v6602_v21, -1e+30  ;;  %v6819_v55 = vsel %vm6759_vm9, %v6596_v23, -1e+30 }
 0x1b6   : > { %10575 = vst [vmem:[#allocation103_spill] sm:$0xff] %v6807_v62  ;;  %10576 = vst [vmem:[#allocation104_spill] sm:$0xff] %v6814_v49  ;;  %v6826_v7 = vsel %vm6759_vm9, %v6614_v17, -1e+30  ;;  %v6831_v13 = vsel %vm6759_vm9, %v6608_v19, -1e+30 }
 0x1b7   : > { %1730 = vmax.xlane.f32.xlu0 %v6778_v61  ;;  %1734 = vmax.xlane.f32.xlu1 %v6783_v54  ;;  %10577 = vst [vmem:[#allocation105_spill] sm:$0xff] %v6819_v55  ;;  %10578 = vst [vmem:[#allocation106_spill] sm:$0xff] %v6826_v7  ;;  %v6838_v63 = vsel %vm6759_vm9, %v6626_v36, -1e+30  ;;  %v6843_v28 = vsel %vm6759_vm9, %v6620_v10, -1e+30 }
 0x1b8   : > { %10579 = vst [vmem:[#allocation107_spill] sm:$0xff] %v6831_v13  ;;  %10580 = vst [vmem:[#allocation108_spill] sm:$0xff] %v6838_v63  ;;  %v6850_v48 = vsel %vm6759_vm9, %v6638_v15, -1e+30  ;;  %v6855_v56 = vsel %vm6759_vm9, %v6632_v40, -1e+30 }
 0x1b9   : > { %10581 = vst [vmem:[#allocation109_spill] sm:$0xff] %v6843_v28  ;;  %10582 = vst [vmem:[#allocation110_spill] sm:$0xff] %v6850_v48  ;;  %v6862_v0 = vsel %vm6759_vm9, %v6557_v45, -1e+30  ;;  %v6867_v32 = vsel %vm6759_vm9, %v6551_v39, -1e+30 }
 0x1ba   : > { %10583 = vst [vmem:[#allocation111_spill] sm:$0xff] %v6855_v56  ;;  %10584 = vst [vmem:[#allocation112_spill] sm:$0xff] %v6862_v0  ;;  %v6874_v50 = vsel %vm6759_vm9, %v6569_v27, -1e+30  ;;  %v6879_v41 = vsel %vm6759_vm9, %v6563_v26, -1e+30 }
 0x1bb   : > { %1736 = vmax.xlane.f32.xlu0 %v6790_v6  ;;  %1738 = vmax.xlane.f32.xlu1 %v6795_v34  ;;  %10585 = vst [vmem:[#allocation113_spill] sm:$0xff] %v6867_v32  ;;  %10586 = vst [vmem:[#allocation114_spill] sm:$0xff] %v6874_v50  ;;  %v6886_v1 = vsel %vm6759_vm9, %v6581_v22, -1e+30  ;;  %v6891_v57 = vsel %vm6759_vm9, %v6575_v24, -1e+30 }
 0x1bc   : > { %10587 = vst [vmem:[#allocation115_spill] sm:$0xff] %v6879_v41  ;;  %10588 = vst [vmem:[#allocation116_spill] sm:$0xff] %v6886_v1  ;;  %v6898_v12 = vsel %vm6759_vm9, %v6593_v18, -1e+30  ;;  %v6903_v51 = vsel %vm6759_vm9, %v6587_v20, -1e+30 }
 0x1bd   : > { %10589 = vst [vmem:[#allocation117_spill] sm:$0xff] %v6891_v57  ;;  %10590 = vst [vmem:[#allocation118_spill] sm:$0xff] %v6898_v12  ;;  %v6910_v2 = vsel %vm6759_vm9, %v6605_v14, -1e+30  ;;  %v6915_v9 = vsel %vm6759_vm9, %v6599_v16, -1e+30 }
 0x1be   : > { %10591 = vst [vmem:[#allocation119_spill] sm:$0xff] %v6903_v51  ;;  %10592 = vst [vmem:[#allocation120_spill] sm:$0xff] %v6910_v2  ;;  %v6922_v38 = vsel %vm6759_vm9, %v10594_v58, -1e+30  ;;  %v6927_v52 = vsel %vm6759_vm9, %v10596_v3, -1e+30 }
 0x1bf   : > { %1740 = vmax.xlane.f32.xlu0 %v6802_v46  ;;  %1742 = vmax.xlane.f32.xlu1 %v6807_v62  ;;  %10593 = vst [vmem:[#allocation121_spill] sm:$0xff] %v6915_v9  ;;  %10595 = vst [vmem:[#allocation122_spill] sm:$0xff] %v6922_v38  ;;  %v6934_v59 = vsel %vm6759_vm9, %v10598_v47, -1e+30  ;;  %v6939_v42 = vsel %vm6759_vm9, %v10600_v4, -1e+30 }
 0x1c0   : > { %10597 = vst [vmem:[#allocation123_spill] sm:$0xff] %v6927_v52  ;;  %10599 = vst [vmem:[#allocation124_spill] sm:$0xff] %v6934_v59  ;;  %v6946_v44 = vsel %vm6759_vm9, %v10602_v43, -1e+30  ;;  %v10604_v3 = vld [vmem:[#allocation99_spill] sm:$0xff]  ;;  %v5934_v4 = vmov 6  }
 0x1c1   : > { %10601 = vst [vmem:[#allocation125_spill] sm:$0xff] %v6939_v42  ;;  %10603 = vst [vmem:[#allocation126_spill] sm:$0xff] %v6946_v44  ;;  %v6951_v58 = vsel %vm6759_vm9, %v10604_v3, -1e+30  ;;  %5409 = vset.pattern.permute.xlu1 %v5934_v4  ;;  %5408 = vset.pattern.permute.xlu0 %v5934_v4  ;;  %v1646_v29 = vld [vmem:[%s6127_s29 + $0x70] sm:$0xff]  ;;  %v1648_v33 = vld [vmem:[%s6127_s29 + $0x80] sm:$0xff] }
 0x1c2   : > { %10605 = vst [vmem:[#allocation127_spill] sm:$0xff] %v6951_v58  ;;  %v5258_v37 = vtrunc.f32 %v1646_v29 }
 0x1c3   : > { %1744 = vmax.xlane.f32.xlu0 %v6814_v49  ;;  %1746 = vmax.xlane.f32.xlu1 %v6819_v55 }
 0x1c7   : > { %1748 = vmax.xlane.f32.xlu0 %v6826_v7  ;;  %1750 = vmax.xlane.f32.xlu1 %v6831_v13 }
 0x1cb   : > { %1752 = vmax.xlane.f32.xlu0 %v6838_v63  ;;  %1754 = vmax.xlane.f32.xlu1 %v6843_v28 }
 0x1cf   : > { %1756 = vmax.xlane.f32.xlu0 %v6850_v48  ;;  %1758 = vmax.xlane.f32.xlu1 %v6855_v56 }
 0x1d3   : > { %1760 = vmax.xlane.f32.xlu0 %v6862_v0  ;;  %1762 = vmax.xlane.f32.xlu1 %v6867_v32 }
 0x1d7   : > { %1764 = vmax.xlane.f32.xlu0 %v6874_v50  ;;  %1766 = vmax.xlane.f32.xlu1 %v6879_v41 }
 0x1db   : > { %1768 = vmax.xlane.f32.xlu0 %v6886_v1  ;;  %1770 = vmax.xlane.f32.xlu1 %v6891_v57 }
 0x1df   : > { %1772 = vmax.xlane.f32.xlu0 %v6898_v12  ;;  %1774 = vmax.xlane.f32.xlu1 %v6903_v51 }
 0x1e3   : > { %1776 = vmax.xlane.f32.xlu0 %v6910_v2  ;;  %1778 = vmax.xlane.f32.xlu1 %v6915_v9 }
 0x1e7   : > { %1780 = vmax.xlane.f32.xlu0 %v6922_v38  ;;  %1782 = vmax.xlane.f32.xlu1 %v6927_v52 }
 0x1eb   : > { %1784 = vmax.xlane.f32.xlu0 %v6934_v59  ;;  %1786 = vmax.xlane.f32.xlu1 %v6939_v42 }
 0x1ef   : > { %1788 = vmax.xlane.f32.xlu0 %v6946_v44  ;;  %1790 = vmax.xlane.f32.xlu1 %v6951_v58 }
 0x23c   : > { %v6955_v47 = vpop.xlane.xlu0 %1728  ;;  %v6957_v16 = vpop.xlane.xlu1 %1732 }
 0x23d   : > { %v1792_v43 = vsub.f32 %v6766_v53, %v6955_v47  ;;  %v1794_v14 = vsub.f32 %v6771_v8, %v6957_v16 }
 0x23f   : > { %v1824_v5 = vmul.f32 1.442695, %v1792_v43  ;;  %v1828_v3 = vmul.f32 1.442695, %v1794_v14 }
 0x240   : > { %v6963_v20 = vpop.xlane.xlu0 %1730  ;;  %v6965_v18 = vpop.xlane.xlu1 %1734 }
 0x241   : > { %5410 = vpow2.f32 %v1824_v5  ;;  %v1793_v4 = vsub.f32 %v6778_v61, %v6963_v20  ;;  %v1795_v24 = vsub.f32 %v6783_v54, %v6965_v18 }
 0x242   : > { %5412 = vpow2.f32 %v1828_v3 }
 0x243   : > { %v1826_v22 = vmul.f32 1.442695, %v1793_v4  ;;  %v1830_v26 = vmul.f32 1.442695, %v1795_v24 }
 0x244   : > { %v6971_v27 = vpop.xlane.xlu0 %1736  ;;  %v6973_v39 = vpop.xlane.xlu1 %1738 }
 0x245   : > { %5414 = vpow2.f32 %v1826_v22  ;;  %v1796_v14 = vsub.f32 %v6790_v6, %v6971_v27  ;;  %v1797_v5 = vsub.f32 %v6795_v34, %v6973_v39 }
 0x246   : > { %5416 = vpow2.f32 %v1830_v26 }
 0x247   : > { %v1832_v43 = vmul.f32 1.442695, %v1796_v14  ;;  %v1834_v45 = vmul.f32 1.442695, %v1797_v5 }
 0x248   : > { %v6979_v40 = vpop.xlane.xlu0 %1740  ;;  %v6981_v15 = vpop.xlane.xlu1 %1742 }
 0x249   : > { %10606 = vst [vmem:[#allocation128_spill] sm:$0xff] %v6981_v15  ;;  %5418 = vpow2.f32 %v1832_v43  ;;  %v1798_v24 = vsub.f32 %v6802_v46, %v6979_v40  ;;  %v1799_v22 = vsub.f32 %v6807_v62, %v6981_v15  ;;  %v1654_v15 = vld [vmem:[%s6127_s29 + $0xb0] sm:$0xff] }
 0x24a   : > { %5420 = vpow2.f32 %v1834_v45 }
 0x24b   : > { %v1836_v3 = vmul.f32 1.442695, %v1798_v24  ;;  %v1838_v4 = vmul.f32 1.442695, %v1799_v22 }
 0x24c   : > { %v6987_v10 = vpop.xlane.xlu0 %1744  ;;  %v6989_v36 = vpop.xlane.xlu1 %1746 }
 0x24d   : > { %10607 = vst [vmem:[#allocation129_spill] sm:$0xff] %v6987_v10  ;;  %10608 = vst [vmem:[#allocation130_spill] sm:$0xff] %v6989_v36  ;;  %5422 = vpow2.f32 %v1836_v3  ;;  %v1800_v26 = vsub.f32 %v6814_v49, %v6987_v10  ;;  %v1801_v14 = vsub.f32 %v6819_v55, %v6989_v36  ;;  %v7195_v36 = vcvt.f32.s32 %v5258_v37  ;;  %v1650_v10 = vld [vmem:[%s6127_s29 + $0x90] sm:$0xff] }
 0x24e   : > { %v5411_v5 = vpop.eup %5410  ;;  %5424 = vpow2.f32 %v1838_v4  ;;  %v5266_v29 = vtrunc.f32 %v1650_v10  ;;  %v5274_v10 = vtrunc.f32 %v1654_v15 }
 0x24f   : > { %v1840_v43 = vmul.f32 1.442695, %v1800_v26  ;;  %1888 = vadd.xlane.f32.xlu0 %v5411_v5  ;;  %v1842_v19 = vmul.f32 1.442695, %v1801_v14  ;;  %v5413_v17 = vpop.eup %5412 }
 0x250   : > { %v6995_v45 = vpop.xlane.xlu0 %1748  ;;  %v6997_v24 = vpop.xlane.xlu1 %1750 }
 0x251   : > { %10609 = vst [vmem:[#allocation131_spill] sm:$0xff] %v6995_v45  ;;  %10610 = vst [vmem:[#allocation132_spill] sm:$0xff] %v6997_v24  ;;  %5426 = vpow2.f32 %v1840_v43  ;;  %v1802_v22 = vsub.f32 %v6826_v7, %v6995_v45  ;;  %v1803_v3 = vsub.f32 %v6831_v13, %v6997_v24 }
 0x252   : > { %v5415_v23 = vpop.eup %5414  ;;  %5428 = vpow2.f32 %v1842_v19 }
 0x253   : > { %v1844_v55 = vmul.f32 1.442695, %v1802_v22  ;;  %1892 = vadd.xlane.f32.xlu0 %v5413_v17  ;;  %1890 = vadd.xlane.f32.xlu1 %v5415_v23  ;;  %v1846_v4 = vmul.f32 1.442695, %v1803_v3  ;;  %v5417_v26 = vpop.eup %5416 }
 0x254   : > { %v7003_v14 = vpop.xlane.xlu0 %1752  ;;  %v7005_v5 = vpop.xlane.xlu1 %1754 }
 0x255   : > { %10611 = vst [vmem:[#allocation133_spill] sm:$0xff] %v7003_v14  ;;  %10612 = vst [vmem:[#allocation134_spill] sm:$0xff] %v7005_v5  ;;  %5430 = vpow2.f32 %v1844_v55  ;;  %v1804_v43 = vsub.f32 %v6838_v63, %v7003_v14  ;;  %v1805_v7 = vsub.f32 %v6843_v28, %v7005_v5 }
 0x256   : > { %v5419_v45 = vpop.eup %5418  ;;  %5432 = vpow2.f32 %v1846_v4 }
 0x257   : > { %v1848_v13 = vmul.f32 1.442695, %v1804_v43  ;;  %1894 = vadd.xlane.f32.xlu1 %v5417_v26  ;;  %1896 = vadd.xlane.f32.xlu0 %v5419_v45  ;;  %v1850_v19 = vmul.f32 1.442695, %v1805_v7  ;;  %v5421_v23 = vpop.eup %5420 }
 0x258   : > { %v7011_v17 = vpop.xlane.xlu0 %1756  ;;  %v7013_v22 = vpop.xlane.xlu1 %1758 }
 0x259   : > { %10613 = vst [vmem:[#allocation135_spill] sm:$0xff] %v7011_v17  ;;  %10614 = vst [vmem:[#allocation136_spill] sm:$0xff] %v7013_v22  ;;  %5434 = vpow2.f32 %v1848_v13  ;;  %v1806_v55 = vsub.f32 %v6850_v48, %v7011_v17  ;;  %v1807_v3 = vsub.f32 %v6855_v56, %v7013_v22  ;;  %v1642_v22 = vld [vmem:[%s6127_s29 + $0x50] sm:$0xff] }
 0x25a   : > { %v5423_v63 = vpop.eup %5422  ;;  %5436 = vpow2.f32 %v1850_v19  ;;  %v5250_v5 = vtrunc.f32 %v1642_v22 }
 0x25b   : > { %v1852_v28 = vmul.f32 1.442695, %v1806_v55  ;;  %1898 = vadd.xlane.f32.xlu1 %v5421_v23  ;;  %1900 = vadd.xlane.f32.xlu0 %v5423_v63  ;;  %v1854_v4 = vmul.f32 1.442695, %v1807_v3  ;;  %v5425_v45 = vpop.eup %5424 }
 0x25c   : > { %v7019_v7 = vpop.xlane.xlu0 %1760  ;;  %v7021_v26 = vpop.xlane.xlu1 %1762 }
 0x25d   : > { %10615 = vst [vmem:[#allocation137_spill] sm:$0xff] %v7019_v7  ;;  %10616 = vst [vmem:[#allocation138_spill] sm:$0xff] %v7021_v26  ;;  %5438 = vpow2.f32 %v1852_v28  ;;  %v1808_v13 = vsub.f32 %v6862_v0, %v7019_v7  ;;  %v1809_v43 = vsub.f32 %v6867_v32, %v7021_v26 }
 0x25e   : > { %v5427_v48 = vpop.eup %5426  ;;  %5440 = vpow2.f32 %v1854_v4 }
 0x25f   : > { %v1856_v56 = vmul.f32 1.442695, %v1808_v13  ;;  %1902 = vadd.xlane.f32.xlu1 %v5425_v45  ;;  %1904 = vadd.xlane.f32.xlu0 %v5427_v48  ;;  %v1858_v19 = vmul.f32 1.442695, %v1809_v43  ;;  %v5429_v63 = vpop.eup %5428 }
 0x260   : > { %v7027_v23 = vpop.xlane.xlu0 %1764  ;;  %v7029_v55 = vpop.xlane.xlu1 %1766 }
 0x261   : > { %10617 = vst [vmem:[#allocation139_spill] sm:$0xff] %v7027_v23  ;;  %10618 = vst [vmem:[#allocation140_spill] sm:$0xff] %v7029_v55  ;;  %5442 = vpow2.f32 %v1856_v56  ;;  %v1810_v28 = vsub.f32 %v6874_v50, %v7027_v23  ;;  %v1811_v3 = vsub.f32 %v6879_v41, %v7029_v55  ;;  %v1659_v55 = vld [vmem:[%s6127_s29 + $0xd8] sm:$0xff]  ;;  %v1661_v23 = vld [vmem:[%s6127_s29 + $0xe8] sm:$0xff] }
 0x262   : > { %v5431_v0 = vpop.eup %5430  ;;  %5444 = vpow2.f32 %v1858_v19 }
 0x263   : > { %v1860_v32 = vmul.f32 1.442695, %v1810_v28  ;;  %1906 = vadd.xlane.f32.xlu1 %v5429_v63  ;;  %1908 = vadd.xlane.f32.xlu0 %v5431_v0  ;;  %v1862_v4 = vmul.f32 1.442695, %v1811_v3  ;;  %v5433_v48 = vpop.eup %5432 }
 0x264   : > { %v7035_v45 = vpop.xlane.xlu0 %1768  ;;  %v7037_v13 = vpop.xlane.xlu1 %1770 }
 0x265   : > { %10619 = vst [vmem:[#allocation141_spill] sm:$0xff] %v7035_v45  ;;  %10620 = vst [vmem:[#allocation142_spill] sm:$0xff] %v7037_v13  ;;  %5446 = vpow2.f32 %v1860_v32  ;;  %v1812_v56 = vsub.f32 %v6886_v1, %v7035_v45  ;;  %v1813_v43 = vsub.f32 %v6891_v57, %v7037_v13  ;;  %v1655_v13 = vld [vmem:[%s6127_s29 + $0xb8] sm:$0xff] }
 0x266   : > { %v5435_v50 = vpop.eup %5434  ;;  %5448 = vpow2.f32 %v1862_v4  ;;  %v5276_v45 = vtrunc.f32 %v1655_v13  ;;  %v5284_v13 = vtrunc.f32 %v1659_v55 }
 0x267   : > { %v1864_v41 = vmul.f32 1.442695, %v1812_v56  ;;  %1910 = vadd.xlane.f32.xlu1 %v5433_v48  ;;  %1912 = vadd.xlane.f32.xlu0 %v5435_v50  ;;  %v1866_v19 = vmul.f32 1.442695, %v1813_v43  ;;  %v5437_v0 = vpop.eup %5436 }
 0x268   : > { %v7043_v63 = vpop.xlane.xlu0 %1772  ;;  %v7045_v28 = vpop.xlane.xlu1 %1774  ;;  %v7149_v7 = vcvt.f32.s32 %v5284_v13 }
 0x269   : > { %10621 = vst [vmem:[#allocation143_spill] sm:$0xff] %v7043_v63  ;;  %10622 = vst [vmem:[#allocation144_spill] sm:$0xff] %v7045_v28  ;;  %5450 = vpow2.f32 %v1864_v41  ;;  %v1814_v32 = vsub.f32 %v6898_v12, %v7043_v63  ;;  %v1815_v3 = vsub.f32 %v6903_v51, %v7045_v28 }
 0x26a   : > { %v5439_v1 = vpop.eup %5438  ;;  %5452 = vpow2.f32 %v1866_v19  ;;  %vm2107_vm11 = vcmp.ne.s32.totalorder %v7149_v7, 4294967295 }
 0x26b   : > { %v1868_v57 = vmul.f32 1.442695, %v1814_v32  ;;  %1914 = vadd.xlane.f32.xlu1 %v5437_v0  ;;  %1916 = vadd.xlane.f32.xlu0 %v5439_v1  ;;  %v1870_v4 = vmul.f32 1.442695, %v1815_v3  ;;  %v5441_v50 = vpop.eup %5440 }
 0x26c   : > { %v7051_v48 = vpop.xlane.xlu0 %1776  ;;  %v7053_v56 = vpop.xlane.xlu1 %1778 }
 0x26d   : > { %10623 = vst [vmem:[#allocation145_spill] sm:$0xff] %v7051_v48  ;;  %10624 = vst [vmem:[#allocation146_spill] sm:$0xff] %v7053_v56  ;;  %5454 = vpow2.f32 %v1868_v57  ;;  %v1816_v41 = vsub.f32 %v6910_v2, %v7051_v48  ;;  %v1817_v43 = vsub.f32 %v6915_v9, %v7053_v56  ;;  %v1638_v56 = vld [vmem:[%s6127_s29 + $0x30] sm:$0xff]  ;;  %v1647_v48 = vld [vmem:[%s6127_s29 + $0x78] sm:$0xff] }
 0x26e   : > { %v5443_v12 = vpop.eup %5442  ;;  %5456 = vpow2.f32 %v1870_v4 }
 0x26f   : > { %v1872_v51 = vmul.f32 1.442695, %v1816_v41  ;;  %1918 = vadd.xlane.f32.xlu1 %v5441_v50  ;;  %1920 = vadd.xlane.f32.xlu0 %v5443_v12  ;;  %v1874_v19 = vmul.f32 1.442695, %v1817_v43  ;;  %v5445_v1 = vpop.eup %5444 }
 0x270   : > { %v7059_v0 = vpop.xlane.xlu0 %1780  ;;  %v7061_v32 = vpop.xlane.xlu1 %1782 }
 0x271   : > { %10625 = vst [vmem:[#allocation147_spill] sm:$0xff] %v7059_v0  ;;  %10626 = vst [vmem:[#allocation148_spill] sm:$0xff] %v7061_v32  ;;  %5458 = vpow2.f32 %v1872_v51  ;;  %v1818_v57 = vsub.f32 %v6922_v38, %v7059_v0  ;;  %v1819_v3 = vsub.f32 %v6927_v52, %v7061_v32  ;;  %v1637_v32 = vld [vmem:[%s6127_s29 + $0x28] sm:$0xff] }
 0x272   : > { %v5447_v2 = vpop.eup %5446  ;;  %5460 = vpow2.f32 %v1874_v19 }
 0x273   : > { %v1876_v9 = vmul.f32 1.442695, %v1818_v57  ;;  %1922 = vadd.xlane.f32.xlu1 %v5445_v1  ;;  %1924 = vadd.xlane.f32.xlu0 %v5447_v2  ;;  %v1878_v4 = vmul.f32 1.442695, %v1819_v3  ;;  %v5449_v12 = vpop.eup %5448 }
 0x274   : > { %v7067_v50 = vpop.xlane.xlu0 %1784  ;;  %v7069_v41 = vpop.xlane.xlu1 %1786 }
 0x275   : > { %10627 = vst [vmem:[#allocation149_spill] sm:$0xff] %v7067_v50  ;;  %10628 = vst [vmem:[#allocation150_spill] sm:$0xff] %v7069_v41  ;;  %5462 = vpow2.f32 %v1876_v9  ;;  %v1820_v51 = vsub.f32 %v6934_v59, %v7067_v50  ;;  %v1821_v43 = vsub.f32 %v6939_v42, %v7069_v41 }
 0x276   : > { %v5451_v38 = vpop.eup %5450  ;;  %5464 = vpow2.f32 %v1878_v4 }
 0x277   : > { %v1880_v52 = vmul.f32 1.442695, %v1820_v51  ;;  %1926 = vadd.xlane.f32.xlu1 %v5449_v12  ;;  %1928 = vadd.xlane.f32.xlu0 %v5451_v38  ;;  %v1882_v19 = vmul.f32 1.442695, %v1821_v43  ;;  %v5453_v2 = vpop.eup %5452 }
 0x278   : > { %v7075_v1 = vpop.xlane.xlu0 %1788 }
 0x279   : > { %10629 = vst [vmem:[#allocation151_spill] sm:$0xff] %v7075_v1  ;;  %5466 = vpow2.f32 %v1880_v52  ;;  %v1822_v57 = vsub.f32 %v6946_v44, %v7075_v1  ;;  %v1641_v44 = vld [vmem:[%s6127_s29 + $0x48] sm:$0xff]  ;;  %v1636_v1 = vld [vmem:[%s6127_s29 + $0x20] sm:$0xff] }
 0x27a   : > { %v5455_v9 = vpop.eup %5454  ;;  %5468 = vpow2.f32 %v1882_v19 }
 0x27b   : > { %v1884_v3 = vmul.f32 1.442695, %v1822_v57  ;;  %1930 = vadd.xlane.f32.xlu1 %v5453_v2  ;;  %1932 = vadd.xlane.f32.xlu0 %v5455_v9  ;;  %v5457_v59 = vpop.eup %5456  ;;  %v1634_v57 = vld [vmem:[%s6127_s29 + $0x10] sm:$0xff]  ;;  %v1632_v9 = vld [vmem:[%s6127_s29] sm:$0xff] }
 0x27d   : > { %5470 = vpow2.f32 %v1884_v3 }
 0x27e   : > { %v5459_v4 = vpop.eup %5458 }
 0x27f   : > { %1934 = vadd.xlane.f32.xlu1 %v5457_v59  ;;  %1936 = vadd.xlane.f32.xlu0 %v5459_v4  ;;  %v5461_v38 = vpop.eup %5460  ;;  %v1633_v59 = vld [vmem:[%s6127_s29 + $0x8] sm:$0xff]  ;;  %v5234_v4 = vtrunc.f32 %v1634_v57 }
 0x280   : > { %v5232_v2 = vtrunc.f32 %v1633_v59  ;;  %v1643_v59 = vld [vmem:[%s6127_s29 + $0x58] sm:$0xff] }
 0x282   : > { %v5463_v12 = vpop.eup %5462  ;;  %v7082_v3 = vcvt.f32.s32 %v5232_v2 }
 0x283   : > { %1938 = vadd.xlane.f32.xlu1 %v5461_v38  ;;  %1940 = vadd.xlane.f32.xlu0 %v5463_v12  ;;  %v5465_v52 = vpop.eup %5464  ;;  %v5230_v38 = vtrunc.f32 %v1632_v9  ;;  %v1635_v12 = vld [vmem:[%s6127_s29 + $0x18] sm:$0xff]  ;;  %v5238_v9 = vtrunc.f32 %v1636_v1 }
 0x284   : > { %vm2081_vm6 = vcmp.ne.s32.totalorder %v7082_v3, 4294967295 }
 0x285   : > { %v7089_v42 = vcvt.f32.s32 %v5230_v38  ;;  %v7102_v38 = vcvt.f32.s32 %v5238_v9  ;;  %vm2113_vm8 = vmand %vm2081_vm6, %vm10358_vm2 }
 0x286   : > { %v5467_v51 = vpop.eup %5466 }
 0x287   : > { %1942 = vadd.xlane.f32.xlu1 %v5465_v52  ;;  %1944 = vadd.xlane.f32.xlu0 %v5467_v51  ;;  %v5469_v43 = vpop.eup %5468  ;;  %v2209_v52 = vadd.s32 64, %v7082_v3  ;;  %v7087_v51 = vcvt.f32.s32 %v5234_v4  ;;  %v2208_v41 = vadd.s32 64, %v7089_v42  ;;  %v5252_v4 = vtrunc.f32 %v1643_v59  ;;  %v1660_v3 = vld [vmem:[%s6127_s29 + $0xe0] sm:$0xff] }
 0x288   : > { %vm2080_vm5 = vcmp.ne.s32.totalorder %v7089_v42, 4294967295 }
 0x289   : > { %v2210_v2 = vadd.s32 64, %v7087_v51  ;;  %v7105_v0 = vcvt.f32.s32 %v5252_v4  ;;  %vm2112_vm7 = vmand %vm2080_vm5, %vm10344_vm1  ;;  %vm2082_vm10 = vcmp.ne.s32.totalorder %v7087_v51, 4294967295  ;;  %vm2593_vm5 = vcmask 56368  }
 0x28a   : > { %v5471_v19 = vpop.eup %5470  ;;  %vm2114_vm6 = vmand %vm2082_vm10, %vm10357_vm3 }
 0x28b   : > { %1946 = vadd.xlane.f32.xlu1 %v5469_v43  ;;  %1948 = vadd.xlane.f32.xlu0 %v5471_v19  ;;  %v5236_v43 = vtrunc.f32 %v1635_v12  ;;  %v5248_v19 = vtrunc.f32 %v1641_v44  ;;  %v1645_v12 = vld [vmem:[%s6127_s29 + $0x68] sm:$0xff]  ;;  %v2219_v9 = vadd.s32 64, %v7105_v0 }
 0x28c   : > { %v5256_v1 = vtrunc.f32 %v1645_v12 }
 0x28d   : > { %v7094_v57 = vcvt.f32.s32 %v5236_v43  ;;  %v7097_v50 = vcvt.f32.s32 %v5248_v19  ;;  %v2212_v19 = vadd.s32 64, %v7102_v38 }
 0x28e   : > { %v7113_v28 = vcvt.f32.s32 %v5256_v1 }
 0x28f   : > { %v2211_v44 = vadd.s32 64, %v7094_v57  ;;  %v2217_v43 = vadd.s32 64, %v7097_v50  ;;  %vm2083_vm1 = vcmp.ne.s32.totalorder %v7094_v57, 4294967295 }
 0x290   : > { %vm2115_vm10 = vmand %vm2083_vm1, %vm10356_vm4 }
 0x29c   : > { %2244 = vperm.xlu1 %5409, %v2209_v52   ;;  %v5240_v52 = vtrunc.f32 %v1637_v32  ;;  %v5260_v32 = vtrunc.f32 %v1647_v48 }
 0x29e   : > { %v7110_v59 = vcvt.f32.s32 %v5240_v52  ;;  %v7120_v52 = vcvt.f32.s32 %v5260_v32 }
 0x2a0   : > { %2247 = vperm.xlu1 %5409, %v2210_v2   ;;  %v5242_v2 = vtrunc.f32 %v1638_v56  ;;  %v2213_v4 = vadd.s32 64, %v7110_v59  ;;  %v2223_v48 = vadd.s32 64, %v7120_v52  ;;  %vm2095_vm3 = vcmp.ne.s32.totalorder %v7120_v52, 4294967295 }
 0x2a1   : > { %2241 = vperm.xlu0 %5408, %v2208_v41   ;;  %v1649_v41 = vld [vmem:[%s6127_s29 + $0x88] sm:$0xff] }
 0x2a2   : > { %v7117_v12 = vcvt.f32.s32 %v5242_v2  ;;  %v5264_v56 = vtrunc.f32 %v1649_v41  ;;  %v1653_v2 = vld [vmem:[%s6127_s29 + $0xa8] sm:$0xff] }
 0x2a3   : > { %v5272_v41 = vtrunc.f32 %v1653_v2 }
 0x2a4   : > { %2250 = vperm.xlu1 %5409, %v2211_v44   ;;  %v2221_v44 = vadd.s32 64, %v7113_v28  ;;  %v2214_v1 = vadd.s32 64, %v7117_v12 }
 0x2a5   : > { %2268 = vperm.xlu0 %5408, %v2217_v43   ;;  %v1651_v43 = vld [vmem:[%s6127_s29 + $0x98] sm:$0xff] }
 0x2a6   : > { %v5268_v63 = vtrunc.f32 %v1651_v43 }
 0x2a8   : > { %2253 = vperm.xlu1 %5409, %v2212_v19   ;;  %v7125_v19 = vcvt.f32.s32 %v5264_v56  ;;  %v7129_v32 = vcvt.f32.s32 %v5268_v63  ;;  %v1657_v56 = vld [vmem:[%s6127_s29 + $0xc8] sm:$0xff] }
 0x2a9   : > { %2274 = vperm.xlu0 %5408, %v2219_v9   ;;  %v5280_v63 = vtrunc.f32 %v1657_v56  ;;  %v1663_v56 = vld [vmem:[%s6127_s29 + $0xf8] sm:$0xff] }
 0x2aa   : > { %v2225_v9 = vadd.s32 64, %v7125_v19 }
 0x2ac   : > { %2256 = vperm.xlu1 %5409, %v2213_v4   ;;  %v2227_v4 = vadd.s32 64, %v7129_v32 }
 0x2ad   : > { %2280 = vperm.xlu0 %5408, %v2221_v44   ;;  %v7133_v44 = vcvt.f32.s32 %v5272_v41  ;;  %v7145_v41 = vcvt.f32.s32 %v5280_v63  ;;  %v5292_v63 = vtrunc.f32 %v1663_v56 }
 0x2af   : > { %v2229_v43 = vadd.s32 64, %v7133_v44  ;;  %v2233_v26 = vadd.s32 64, %v7145_v41  ;;  %vm2101_vm2 = vcmp.ne.s32.totalorder %v7133_v44, 4294967295 }
 0x2b0   : > { %2259 = vperm.xlu1 %5409, %v2214_v1   ;;  %v7137_v1 = vpop.xlane.xlu1 %1790 }
 0x2b1   : > { %2286 = vperm.xlu0 %5408, %v2223_v48   ;;  %10630 = vst [vmem:[#allocation152_spill] sm:$0xff] %v7137_v1  ;;  %v7139_v48 = vcvt.f32.s32 %v5276_v45  ;;  %v1823_v2 = vsub.f32 %v6951_v58, %v7137_v1  ;;  %v5288_v45 = vtrunc.f32 %v1661_v23  ;;  %v1639_v23 = vld [vmem:[%s6127_s29 + $0x38] sm:$0xff] }
 0x2b3   : > { %v7153_v58 = vcvt.f32.s32 %v5288_v45  ;;  %v1640_v45 = vld [vmem:[%s6127_s29 + $0x40] sm:$0xff]  ;;  %vm2103_vm15 = vcmp.ne.s32.totalorder %v7139_v48, 4294967295 }
 0x2b5   : > { %2292 = vperm.xlu0 %5408, %v2225_v9   ;;  %v2231_v9 = vadd.s32 64, %v7139_v48  ;;  %v2237_v55 = vadd.s32 64, %v7153_v58 }
 0x2b9   : > { %2298 = vperm.xlu0 %5408, %v2227_v4   ;;  %v1886_v4 = vmul.f32 1.442695, %v1823_v2  ;;  %v7156_v2 = vcvt.f32.s32 %v5292_v63  ;;  %v5246_v63 = vtrunc.f32 %v1640_v45  ;;  %v7181_v45 = vcvt.f32.s32 %v5250_v5 }
 0x2bb   : > { %5472 = vpow2.f32 %v1886_v4  ;;  %v5244_v4 = vtrunc.f32 %v1639_v23  ;;  %v1644_v23 = vld [vmem:[%s6127_s29 + $0x60] sm:$0xff]  ;;  %v2218_v22 = vadd.s32 64, %v7181_v45 }
 0x2bc   : > { %v5254_v21 = vtrunc.f32 %v1644_v23  ;;  %v5262_v23 = vtrunc.f32 %v1648_v33  ;;  %v7211_v33 = vcvt.f32.s32 %v5266_v29 }
 0x2bd   : > { %2304 = vperm.xlu0 %5408, %v2229_v43   ;;  %v2235_v43 = vadd.s32 64, %v7149_v7 }
 0x2be   : > { %v7203_v31 = vcvt.f32.s32 %v5262_v23  ;;  %v2226_v23 = vadd.s32 64, %v7211_v33 }
 0x2c0   : > { %v2224_v37 = vadd.s32 64, %v7203_v31 }
 0x2c1   : > { %2310 = vperm.xlu0 %5408, %v2231_v9   ;;  %v2239_v9 = vadd.s32 64, %v7156_v2 }
 0x2c5   : > { %2316 = vperm.xlu0 %5408, %v2233_v26  }
 0x2c8   : > { %v5473_v13 = vpop.eup %5472 }
 0x2c9   : > { %2322 = vperm.xlu0 %5408, %v2235_v43   ;;  %v7165_v43 = vcvt.f32.s32 %v5244_v4 }
 0x2cd   : > { %2328 = vperm.xlu0 %5408, %v2237_v55  }
 0x2d1   : > { %2334 = vperm.xlu0 %5408, %v2239_v9   ;;  %v2215_v9 = vadd.s32 64, %v7165_v43 }
 0x2d4   : > { %1950 = vadd.xlane.f32.xlu1 %v5473_v13  ;;  %v7173_v13 = vcvt.f32.s32 %v5246_v63  ;;  %v7189_v63 = vcvt.f32.s32 %v5254_v21  ;;  %v2222_v21 = vadd.s32 64, %v7195_v36 }
 0x2d6   : > { %v2216_v4 = vadd.s32 64, %v7173_v13  ;;  %v2220_v5 = vadd.s32 64, %v7189_v63  ;;  %vm2088_vm4 = vcmp.ne.s32.totalorder %v7173_v13, 4294967295 }
 0x2d8   : > { %v7160_v26 = vpop.xlane.xlu0 %1888 }
 0x2dc   : > { %v1891_v1 = vpop.xlane.xlu1 %1890  ;;  %v7163_v56 = vpop.xlane.xlu0 %1892 }
 0x2dd   : > { %5474 = vlog2.f32 %v1891_v1 }
 0x2de   : > { %5476 = vlog2.f32 %v7163_v56 }
 0x2e0   : > { %v7168_v55 = vpop.xlane.xlu1 %1894  ;;  %v7170_v17 = vpop.xlane.xlu0 %1896 }
 0x2e1   : > { %5478 = vlog2.f32 %v7170_v17 }
 0x2e4   : > { %v7176_v14 = vpop.xlane.xlu1 %1898  ;;  %v7178_v24 = vpop.xlane.xlu0 %1900 }
 0x2e5   : > { %2262 = vperm.xlu1 %5409, %v2215_v9   ;;  %5480 = vlog2.f32 %v7178_v24 }
 0x2e6   : > { %5482 = vlog2.f32 %v7160_v26 }
 0x2e7   : > { %5484 = vlog2.f32 %v7168_v55  ;;  %v10675_v55 = vld [vmem:[#allocation41_spill] sm:$0xff] }
 0x2e8   : > { %v7184_v25 = vpop.xlane.xlu1 %1902  ;;  %v7186_v49 = vpop.xlane.xlu0 %1904  ;;  %5486 = vlog2.f32 %v7176_v14 }
 0x2e9   : > { %2265 = vperm.xlu1 %5409, %v2216_v4   ;;  %5488 = vlog2.f32 %v7184_v25 }
 0x2ea   : > { %5490 = vlog2.f32 %v7186_v49 }
 0x2ec   : > { %v7192_v9 = vpop.xlane.xlu1 %1906  ;;  %v7197_v62 = vpop.xlane.xlu0 %1908 }
 0x2ed   : > { %2271 = vperm.xlu1 %5409, %v2218_v22   ;;  %10631 = vst [vmem:[#allocation153_spill] sm:$0xff] %v7197_v62  ;;  %5492 = vlog2.f32 %v7192_v9 }
 0x2f0   : > { %v7200_v4 = vpop.xlane.xlu1 %1910  ;;  %v7206_v22 = vpop.xlane.xlu0 %1912 }
 0x2f1   : > { %10632 = vst [vmem:[#allocation154_spill] sm:$0xff] %v7200_v4  ;;  %2277 = vperm.xlu1 %5409, %v2220_v5   ;;  %10633 = vst [vmem:[#allocation155_spill] sm:$0xff] %v7206_v22  ;;  %v7217_v4 = vcvt.f32.s32 %v5270_v35  ;;  %v1656_v22 = vld [vmem:[%s6127_s29 + $0xc0] sm:$0xff]  ;;  %v10345_v35 = vmov 0.0  }
 0x2f2   : > { %v5278_v29 = vtrunc.f32 %v1656_v22  ;;  %v7248_v1 = vsel %vm2112_vm7, 1.0, %v10345_v35  ;;  %vm2084_vm7 = vcmp.ne.s32.totalorder %v7102_v38, 4294967295 }
 0x2f3   : > { %v2228_v30 = vadd.s32 64, %v7217_v4  ;;  %10646 = vst [vmem:[#allocation165_spill] sm:$0xff] %v7248_v1 }
 0x2f4   : > { %v7208_v11 = vpop.xlane.xlu1 %1914  ;;  %v7219_v62 = vpop.xlane.xlu0 %1916 }
 0x2f5   : > { %10634 = vst [vmem:[#allocation156_spill] sm:$0xff] %v7208_v11  ;;  %2283 = vperm.xlu1 %5409, %v2222_v21   ;;  %10636 = vst [vmem:[#allocation158_spill] sm:$0xff] %v7219_v62  ;;  %v7226_v21 = vcvt.f32.s32 %v5274_v10 }
 0x2f7   : > { %10638 = vst [vmem:[#allocation160_spill] sm:$0xff] %v7226_v21  ;;  %v2230_v42 = vadd.s32 64, %v7226_v21 }
 0x2f8   : > { %v7214_v5 = vpop.xlane.xlu1 %1918  ;;  %v7233_v15 = vpop.xlane.xlu0 %1920 }
 0x2f9   : > { %10635 = vst [vmem:[#allocation157_spill] sm:$0xff] %v7214_v5  ;;  %2289 = vperm.xlu1 %5409, %v2224_v37   ;;  %v1658_v37 = vld [vmem:[%s6127_s29 + $0xd0] sm:$0xff]  ;;  %10641 = vst [vmem:[#allocation161_spill] sm:$0xff] %v7233_v15 }
 0x2fa   : > { %v10640_v5 = vld [vmem:[#allocation63_spill] sm:$0xff]  ;;  %v5282_v10 = vtrunc.f32 %v1658_v37 }
 0x2fc   : > { %v7222_v11 = vpop.xlane.xlu1 %1922  ;;  %v7255_v37 = vcvt.f32.s32 %v5282_v10  ;;  %v7261_v51 = vpop.xlane.xlu0 %1924  ;;  %v10651_v10 = vmov 0.0  }
 0x2fd   : > { %10637 = vst [vmem:[#allocation159_spill] sm:$0xff] %v7222_v11  ;;  %2295 = vperm.xlu1 %5409, %v2226_v23   ;;  %v7238_v23 = vcvt.f32.s32 %v5278_v29  ;;  %v5286_v11 = vtrunc.f32 %v1660_v3  ;;  %10649 = vst [vmem:[#allocation167_spill] sm:$0xff] %v7261_v51  ;;  %v7271_v15 = vsel %vm2114_vm6, 1.0, %v10651_v10  ;;  %v10655_v3 = vld [vmem:[#allocation35_spill] sm:$0xff]  ;;  %vm2085_vm6 = vcmp.ne.s32.totalorder %v7110_v59, 4294967295 }
 0x2fe   : > { %10652 = vst [vmem:[#allocation169_spill] sm:$0xff] %v7271_v15  ;;  %v2234_v57 = vadd.s32 64, %v7255_v37  ;;  %vm10656_vm1 = vcmp.lt.s32.totalorder %v10655_v3, %v10640_v5  ;;  %v10659_v3 = vld [vmem:[#allocation36_spill] sm:$0xff] }
 0x2ff   : > { %10643 = vst [vmem:[#allocation163_spill] sm:$0xff] %v7238_v23  ;;  %v2232_v29 = vadd.s32 64, %v7238_v23 }
 0x300   : > { %v7235_v62 = vpop.xlane.xlu1 %1926  ;;  %v7285_v23 = vpop.xlane.xlu0 %1928 }
 0x301   : > { %10642 = vst [vmem:[#allocation162_spill] sm:$0xff] %v7235_v62  ;;  %2301 = vperm.xlu1 %5409, %v2228_v30   ;;  %v7251_v30 = vsel %vm2113_vm8, 1.0, %v10345_v35  ;;  %v2685_v35 = vsel %vm2593_vm5, %v7248_v1, 0.0  ;;  %v7277_v62 = vcvt.f32.s32 %v5286_v11  ;;  %vm2116_vm8 = vmand %vm2084_vm7, %vm10656_vm1  ;;  %vm2086_vm1 = vcmp.ne.s32.totalorder %v7117_v12, 4294967295 }
 0x302   : > { %10647 = vst [vmem:[#allocation166_spill] sm:$0xff] %v7251_v30  ;;  %v2686_v56 = vsel %vm2593_vm5, %v7251_v30, 0.0  ;;  %v2688_v30 = vsel %vm2593_vm5, %v7271_v15, 0.0 }
 0x303   : > { %v2687_v1 = vadd.f32 %v2686_v56, %v2685_v35  ;;  %v2236_v11 = vadd.s32 64, %v7277_v62  ;;  %v5475_v35 = vpop.eup %5474  ;;  %v7300_v56 = vsel %vm2116_vm8, 1.0, %v10651_v10 }
 0x304   : > { %v7245_v22 = vpop.xlane.xlu1 %1930  ;;  %10657 = vst [vmem:[#allocation171_spill] sm:$0xff] %v7300_v56  ;;  %v1955_v17 = vmul.f32 0.6931472, %v5475_v35  ;;  %v7309_v59 = vpop.xlane.xlu0 %1932 }
 0x305   : > { %10645 = vst [vmem:[#allocation164_spill] sm:$0xff] %v7245_v22  ;;  %2307 = vperm.xlu1 %5409, %v2230_v42   ;;  %v1662_v22 = vld [vmem:[%s6127_s29 + $0xf0] sm:$0xff] }
 0x306   : > { %v5290_v51 = vtrunc.f32 %v1662_v22  ;;  %v2689_v22 = vadd.f32 %v2688_v30, %v2687_v1  ;;  %v2692_v30 = vsel %vm2593_vm5, %v7300_v56, 0.0  ;;  %v2017_v12 = vadd.f32 %v1955_v17, %v6963_v20 }
 0x308   : > { %v7268_v42 = vpop.xlane.xlu1 %1934  ;;  %v7294_v38 = vcvt.f32.s32 %v5290_v51  ;;  %v7329_v56 = vpop.xlane.xlu0 %1936  ;;  %v2049_v20 = vsub.f32 %v6778_v61, %v2017_v12  ;;  %v10669_v61 = vld [vmem:[#allocation39_spill] sm:$0xff] }
 0x309   : > { %10650 = vst [vmem:[#allocation168_spill] sm:$0xff] %v7268_v42  ;;  %2313 = vperm.xlu1 %5409, %v2232_v29   ;;  %v7283_v42 = vsel %vm2115_vm10, 1.0, %v10651_v10  ;;  %vm10660_vm10 = vcmp.lt.s32.totalorder %v10659_v3, %v10640_v5  ;;  %v10663_v3 = vld [vmem:[#allocation37_spill] sm:$0xff] }
 0x30a   : > { %10654 = vst [vmem:[#allocation170_spill] sm:$0xff] %v7283_v42  ;;  %v2690_v29 = vsel %vm2593_vm5, %v7283_v42, 0.0  ;;  %vm2117_vm7 = vmand %vm2085_vm6, %vm10660_vm10  ;;  %v2238_v51 = vadd.s32 64, %v7294_v38  ;;  %vm10664_vm8 = vcmp.lt.s32.totalorder %v10663_v3, %v10640_v5  ;;  %vm2087_vm10 = vcmp.ne.s32.totalorder %v7165_v43, 4294967295  ;;  %v10666_v3 = vld [vmem:[#allocation38_spill] sm:$0xff] }
 0x30b   : > { %v2691_v1 = vadd.f32 %v2690_v29, %v2689_v22  ;;  %v7314_v42 = vsel %vm2117_vm7, 1.0, %v10651_v10  ;;  %vm2118_vm6 = vmand %vm2086_vm1, %vm10664_vm8  ;;  %vm10667_vm7 = vcmp.lt.s32.totalorder %v10666_v3, %v10640_v5 }
 0x30c   : > { %v7287_v21 = vpop.xlane.xlu1 %1938  ;;  %10661 = vst [vmem:[#allocation173_spill] sm:$0xff] %v7314_v42  ;;  %v2694_v22 = vsel %vm2593_vm5, %v7314_v42, 0.0  ;;  %v7327_v29 = vsel %vm2118_vm6, 1.0, %v10651_v10  ;;  %vm2119_vm1 = vmand %vm2087_vm10, %vm10667_vm7  ;;  %vm10670_vm6 = vcmp.lt.s32.totalorder %v10669_v61, %v10640_v5  ;;  %v7351_v13 = vpop.xlane.xlu0 %1940  ;;  %v7803_v61 = vld [vmem:[#allocation2] ss:$0 sm:$0xff] }
 0x30d   : > { %2319 = vperm.xlu1 %5409, %v2234_v57   ;;  %v5477_v57 = vpop.eup %5476  ;;  %v2693_v35 = vadd.f32 %v2692_v30, %v2691_v1  ;;  %10665 = vst [vmem:[#allocation175_spill] sm:$0xff] %v7327_v29  ;;  %v7342_v30 = vsel %vm2119_vm1, 1.0, %v10651_v10  ;;  %vm2120_vm10 = vmand %vm2088_vm4, %vm10670_vm6  ;;  %vm2090_vm6 = vcmp.ne.s32.totalorder %v7181_v45, 4294967295 }
 0x30e   : > { %v5479_v43 = vpop.eup %5478  ;;  %10668 = vst [vmem:[#allocation176_spill] sm:$0xff] %v7342_v30  ;;  %v2698_v26 = vsel %vm2593_vm5, %v7342_v30, 0.0 }
 0x310   : > { %v7302_v15 = vpop.xlane.xlu1 %1942 }
 0x311   : > { %10658 = vst [vmem:[#allocation172_spill] sm:$0xff] %v7302_v15  ;;  %2325 = vperm.xlu1 %5409, %v2236_v11   ;;  %v1957_v11 = vmul.f32 0.6931472, %v5477_v57  ;;  %v2696_v57 = vsel %vm2593_vm5, %v7327_v29, 0.0  ;;  %v10801_v29 = vld [vmem:[#allocation133_spill] sm:$0xff] }
 0x313   : > { %v2018_v24 = vadd.f32 %v1957_v11, %v6957_v16 }
 0x314   : > { %v7316_v15 = vpop.xlane.xlu1 %1946 }
 0x315   : > { %10662 = vst [vmem:[#allocation174_spill] sm:$0xff] %v7316_v15  ;;  %2331 = vperm.xlu1 %5409, %v2238_v51   ;;  %v2695_v51 = vadd.f32 %v2694_v22, %v2693_v35  ;;  %v2050_v16 = vsub.f32 %v6771_v8, %v2018_v24  ;;  %v7357_v22 = vsel %vm2120_vm10, 1.0, %v10651_v10  ;;  %vm10676_vm10 = vcmp.lt.s32.totalorder %v10675_v55, %v10640_v5 }
 0x316   : > { %10671 = vst [vmem:[#allocation177_spill] sm:$0xff] %v7357_v22 }
 0x317   : > { %v2697_v12 = vadd.f32 %v2696_v57, %v2695_v51  ;;  %v7372_v51 = vpop.xlane.xlu0 %1944 }
 0x318   : > { %v2245_v15 = vpop.permute.xlu1 %2244 }
 0x319   : > { %vm2337_vm8 = vcmp.eq.s32.totalorder %v6755_v60, %v2245_v15  ;;  %v1961_v15 = vmul.f32 0.6931472, %v5479_v43  ;;  %v2699_v24 = vadd.f32 %v2698_v26, %v2697_v12  ;;  %v2700_v43 = vsel %vm2593_vm5, %v7357_v22, 0.0  ;;  %v10678_v26 = vld [vmem:[#allocation42_spill] sm:$0xff]  ;;  %v10800_v22 = vld [vmem:[#allocation105_spill] sm:$0xff] }
 0x31a   : > { %v4872_v17 = vsel %vm2337_vm8, 1.0, %v10651_v10  ;;  %vm2089_vm8 = vcmp.ne.s32.totalorder %v7097_v50, 4294967295  ;;  %v5481_v50 = vpop.eup %5480 }
 0x31b   : > { %v2433_v1 = vmul.f32 %v4872_v17, %v2049_v20  ;;  %v2020_v8 = vadd.f32 %v1961_v15, %v6971_v27  ;;  %v2701_v15 = vadd.f32 %v2700_v43, %v2699_v24 }
 0x31c   : > { %v2248_v3 = vpop.permute.xlu1 %2247 }
 0x31d   : > { %vm2338_vm7 = vcmp.eq.s32.totalorder %v6755_v60, %v2248_v3  ;;  %2466 = vadd.xlane.f32.xlu0 %v2433_v1  ;;  %v10672_v3 = vld [vmem:[#allocation40_spill] sm:$0xff]  ;;  %v1965_v1 = vmul.f32 0.6931472, %v5481_v50  ;;  %v2052_v27 = vsub.f32 %v6790_v6, %v2020_v8 }
 0x31e   : > { %v4873_v11 = vsel %vm2338_vm7, 1.0, %v10651_v10  ;;  %vm10673_vm4 = vcmp.lt.s32.totalorder %v10672_v3, %v10640_v5  ;;  %vm2122_vm7 = vmand %vm2090_vm6, %vm10676_vm10  ;;  %vm2092_vm10 = vcmp.ne.s32.totalorder %v7189_v63, 4294967295 }
 0x31f   : > { %v2434_v35 = vmul.f32 %v4873_v11, %v2050_v16  ;;  %vm2121_vm1 = vmand %vm2089_vm8, %vm10673_vm4  ;;  %vm2091_vm4 = vcmp.ne.s32.totalorder %v7105_v0, 4294967295  ;;  %v7385_v14 = vsel %vm2122_vm7, 1.0, %v10651_v10  ;;  %v2022_v6 = vadd.f32 %v1965_v1, %v6979_v40  ;;  %v5483_v0 = vpop.eup %5482 }
 0x320   : > { %v7359_v20 = vpop.permute.xlu1 %2250  ;;  %v7370_v17 = vsel %vm2121_vm1, 1.0, %v10651_v10  ;;  %10677 = vst [vmem:[#allocation179_spill] sm:$0xff] %v7385_v14  ;;  %vm10679_vm1 = vcmp.lt.s32.totalorder %v10678_v26, %v10640_v5  ;;  %v2704_v50 = vsel %vm2593_vm5, %v7385_v14, 0.0  ;;  %v5485_v63 = vpop.eup %5484 }
 0x321   : > { %2468 = vadd.xlane.f32.xlu0 %v2434_v35  ;;  %10674 = vst [vmem:[#allocation178_spill] sm:$0xff] %v7370_v17  ;;  %v2702_v16 = vsel %vm2593_vm5, %v7370_v17, 0.0  ;;  %vm2123_vm6 = vmand %vm2091_vm4, %vm10679_vm1  ;;  %v7394_v35 = vpop.xlane.xlu0 %1948  ;;  %v2054_v40 = vsub.f32 %v6802_v46, %v2022_v6  ;;  %vm2093_vm1 = vcmp.ne.s32.totalorder %v7113_v28, 4294967295  ;;  %v1959_v6 = vmul.f32 0.6931472, %v5485_v63  ;;  %v5487_v28 = vpop.eup %5486  ;;  %v1298_v63 = vld [vmem:[%s10125_s7 + $0x78] sm:$0xff] }
 0x322   : > { %v2703_v8 = vadd.f32 %v2702_v16, %v2701_v15  ;;  %v7399_v24 = vsel %vm2123_vm6, 1.0, %v10651_v10  ;;  %5102 = vmatprep.subr.mxu0 %v1298_v63  ;;  %5198 = vmatprep.subr.mxu1 %v1298_v63 }
 0x323   : > { %10680 = vst [vmem:[#allocation180_spill] sm:$0xff] %v7399_v24  ;;  %v2706_v16 = vsel %vm2593_vm5, %v7399_v24, 0.0  ;;  %5103 = vmatpush3.msra.mxu0 %v1298_v63  ;;  %5214 = vmatpush3.msra.mxu1 %v1298_v63  ;;  %v1290_v63 = vld [vmem:[%s10125_s7 + $0x38] sm:$0xff] }
 0x324   : > { %v2254_v57 = vpop.permute.xlu1 %2253  ;;  %v2705_v15 = vadd.f32 %v2704_v50, %v2703_v8 }
 0x325   : > { %vm2340_vm8 = vcmp.eq.s32.totalorder %v6755_v60, %v2254_v57  ;;  %v1953_v57 = vmul.f32 0.6931472, %v5483_v0  ;;  %v2242_v1 = vpop.permute.xlu0 %2241 }
 0x326   : > { %v4875_v45 = vsel %vm2340_vm8, 1.0, %v10651_v10  ;;  %v2707_v8 = vadd.f32 %v2706_v16, %v2705_v15  ;;  %v1297_v15 = vld [vmem:[%s10125_s7 + $0x70] sm:$0xff] }
 0x327   : > { %v2436_v11 = vmul.f32 %v4875_v45, %v2052_v27  ;;  %v10681_v27 = vld [vmem:[#allocation43_spill] sm:$0xff]  ;;  %v2016_v46 = vadd.f32 %v1953_v57, %v6955_v47  ;;  %v10687_v47 = vld [vmem:[#allocation45_spill] sm:$0xff]  ;;  %5104 = vmatprep.subr.mxu0 %v1297_v15  ;;  %5199 = vmatprep.subr.mxu1 %v1297_v15 }
 0x328   : > { %v7387_v12 = vpop.permute.xlu1 %2256  ;;  %vm10682_vm7 = vcmp.lt.s32.totalorder %v10681_v27, %v10640_v5  ;;  %v10684_v27 = vld [vmem:[#allocation44_spill] sm:$0xff]  ;;  %5105 = vmatpush3.msra.mxu0 %v1297_v15  ;;  %5215 = vmatpush3.msra.mxu1 %v1297_v15  ;;  %v1293_v15 = vld [vmem:[%s10125_s7 + $0x50] sm:$0xff] }
 0x329   : > { %2472 = vadd.xlane.f32.xlu0 %v2436_v11  ;;  %vm2124_vm8 = vmand %vm2092_vm10, %vm10682_vm7  ;;  %vm10685_vm6 = vcmp.lt.s32.totalorder %v10684_v27, %v10640_v5  ;;  %vm2336_vm7 = vcmp.eq.s32.totalorder %v6755_v60, %v2242_v1  ;;  %v1963_v27 = vmul.f32 0.6931472, %v5487_v28  ;;  %v2048_v57 = vsub.f32 %v6766_v53, %v2016_v46  ;;  %v1296_v28 = vld [vmem:[%s10125_s7 + $0x68] sm:$0xff] }
 0x32a   : > { %v7411_v0 = vsel %vm2124_vm8, 1.0, %v10651_v10  ;;  %vm2125_vm10 = vmand %vm2093_vm1, %vm10685_vm6  ;;  %vm10688_vm8 = vcmp.lt.s32.totalorder %v10687_v47, %v10640_v5  ;;  %vm2339_vm6 = vcmp.eq.s32.totalorder %v6755_v60, %v7359_v20  ;;  %v10690_v20 = vld [vmem:[#allocation46_spill] sm:$0xff]  ;;  %5106 = vmatprep.subr.mxu0 %v1296_v28  ;;  %5200 = vmatprep.subr.mxu1 %v1296_v28 }
 0x32b   : > { %10683 = vst [vmem:[#allocation181_spill] sm:$0xff] %v7411_v0  ;;  %v2708_v50 = vsel %vm2593_vm5, %v7411_v0, 0.0  ;;  %v4874_v52 = vsel %vm2339_vm6, 1.0, %v10651_v10  ;;  %vm2096_vm6 = vcmp.ne.s32.totalorder %v7203_v31, 4294967295  ;;  %5107 = vmatpush3.msra.mxu0 %v1296_v28  ;;  %5216 = vmatpush3.msra.mxu1 %v1296_v28  ;;  %v10768_v28 = vld [vmem:[#allocation59_spill] sm:$0xff]  ;;  %v10790_v0 = vld [vmem:[#allocation130_spill] sm:$0xff] }
 0x32c   : > { %v2260_v43 = vpop.permute.xlu1 %2259 }
 0x32d   : > { %vm2342_vm4 = vcmp.eq.s32.totalorder %v6755_v60, %v2260_v43  ;;  %v7422_v43 = vsel %vm2125_vm10, 1.0, %v10651_v10  ;;  %vm2097_vm10 = vcmp.ne.s32.totalorder %v7125_v19, 4294967295  ;;  %v10699_v19 = vld [vmem:[#allocation50_spill] sm:$0xff] }
 0x32e   : > { %v4877_v45 = vsel %vm2342_vm4, 1.0, %v10651_v10  ;;  %vm2094_vm4 = vcmp.ne.s32.totalorder %v7195_v36, 4294967295  ;;  %10686 = vst [vmem:[#allocation182_spill] sm:$0xff] %v7422_v43  ;;  %v2709_v36 = vadd.f32 %v2708_v50, %v2707_v8  ;;  %v10694_v8 = vld [vmem:[#allocation48_spill] sm:$0xff] }
 0x32f   : > { %v2438_v11 = vmul.f32 %v4877_v45, %v2054_v40  ;;  %v4871_v40 = vsel %vm2336_vm7, 1.0, %v10651_v10  ;;  %v2019_v45 = vadd.f32 %v1959_v6, %v6965_v18  ;;  %vm2126_vm1 = vmand %vm2094_vm4, %vm10688_vm8  ;;  %v2710_v18 = vsel %vm2593_vm5, %v7422_v43, 0.0 }
 0x330   : > { %v2432_v1 = vmul.f32 %v4871_v40, %v2048_v57  ;;  %v7443_v53 = vsel %vm2126_vm1, 1.0, %v10651_v10  ;;  %vm10691_vm7 = vcmp.lt.s32.totalorder %v10690_v20, %v10640_v5  ;;  %vm2099_vm8 = vcmp.ne.s32.totalorder %v7129_v32, 4294967295  ;;  %v10703_v32 = vld [vmem:[#allocation47_spill] sm:$0xff]  ;;  %v10733_v57 = vld [vmem:[#allocation154_spill] sm:$0xff] }
 0x331   : > { %2476 = vadd.xlane.f32.xlu0 %v2438_v11  ;;  %10689 = vst [vmem:[#allocation183_spill] sm:$0xff] %v7443_v53  ;;  %vm7449_vm4 = vmand %vm2095_vm3, %vm10691_vm7  ;;  %v2021_v11 = vadd.f32 %v1963_v27, %v6973_v39  ;;  %v2051_v46 = vsub.f32 %v6783_v54, %v2019_v45  ;;  %vm2341_vm1 = vcmp.eq.s32.totalorder %v6755_v60, %v7387_v12  ;;  %v2712_v54 = vsel %vm2593_vm5, %v7443_v53, 0.0  ;;  %v1295_v45 = vld [vmem:[%s10125_s7 + $0x60] sm:$0xff]  ;;  %v10739_v40 = vld [vmem:[#allocation155_spill] sm:$0xff] }
 0x332   : > { %v2711_v6 = vadd.f32 %v2710_v18, %v2709_v36  ;;  %vm10695_vm3 = vcmp.lt.s32.totalorder %v10694_v8, %v10640_v5  ;;  %v7478_v50 = vsel %vm7449_vm4, 1.0, %v10651_v10  ;;  %v4876_v25 = vsel %vm2341_vm1, 1.0, %v10651_v10  ;;  %5108 = vmatprep.subr.mxu0 %v1295_v45  ;;  %v10707_v36 = vld [vmem:[#allocation52_spill] sm:$0xff]  ;;  %5201 = vmatprep.subr.mxu1 %v1295_v45 }
 0x333   : > { %vm7467_vm7 = vmand %vm2097_vm10, %vm10695_vm3  ;;  %v2435_v27 = vmul.f32 %v4874_v52, %v2051_v46  ;;  %10698 = vst [vmem:[#allocation184_spill] sm:$0xff] %v7478_v50  ;;  %vm10700_vm10 = vcmp.lt.s32.totalorder %v10699_v19, %v10640_v5  ;;  %vm2105_vm4 = vcmp.ne.s32.totalorder %v7145_v41, 4294967295  ;;  %v2053_v12 = vsub.f32 %v6795_v34, %v2021_v11  ;;  %5109 = vmatpush3.msra.mxu0 %v1295_v45  ;;  %v1294_v34 = vld [vmem:[%s10125_s7 + $0x58] sm:$0xff]  ;;  %v1292_v46 = vld [vmem:[%s10125_s7 + $0x48] sm:$0xff] }
 0x334   : > { %vm7485_vm3 = vmand %vm2099_vm8, %vm10700_vm10  ;;  %vm10704_vm8 = vcmp.lt.s32.totalorder %v10703_v32, %v10640_v5  ;;  %vm10708_vm1 = vcmp.lt.s32.totalorder %v10707_v36, %v10640_v5  ;;  %v2713_v31 = vadd.f32 %v2712_v54, %v2711_v6  ;;  %v2714_v18 = vsel %vm2593_vm5, %v7478_v50, 0.0  ;;  %5110 = vmatprep.subr.mxu0 %v1294_v34  ;;  %5217 = vmatpush3.msra.mxu1 %v1295_v45  ;;  %v10725_v6 = vld [vmem:[#allocation62_spill] sm:$0xff]  ;;  %v1291_v39 = vld [vmem:[%s10125_s7 + $0x40] sm:$0xff] }
 0x335   : > { %vm7503_vm10 = vmand %vm2096_vm6, %vm10704_vm8  ;;  %vm2109_vm8 = vcmp.ne.s32.totalorder %v7153_v58, 4294967295  ;;  %v2437_v49 = vmul.f32 %v4876_v25, %v2053_v12  ;;  %5111 = vmatpush3.msra.mxu0 %v1294_v34  ;;  %5202 = vmatprep.subr.mxu1 %v1294_v34  ;;  %v10729_v58 = vld [vmem:[#allocation153_spill] sm:$0xff]  ;;  %v7590_v25 = vsel %vm7467_vm7, 1.0, %v10651_v10  ;;  %v7595_v45 = vsel %vm7485_vm3, 1.0, %v10651_v10 }
 0x336   : > { %vm7513_vm13 = vmand %vm2101_vm2, %vm10708_vm1  ;;  %vm2111_vm1 = vcmp.ne.s32.totalorder %v7156_v2, 4294967295  ;;  %v7551_v9 = vsel %vm7503_vm10, 1.0, %v10651_v10  ;;  %5112 = vmatprep.subr.mxu0 %v1293_v15  ;;  %v2715_v7 = vadd.f32 %v2714_v18, %v2713_v31  ;;  %5494 = vlog2.f32 %v10729_v58  ;;  %5218 = vmatpush3.msra.mxu1 %v1294_v34  ;;  %10731 = vst [vmem:[#allocation153_spill] sm:$0xff] %v7590_v25  ;;  %v10734_v12 = vld [vmem:[#allocation49_spill] sm:$0xff]  ;;  %v10738_v34 = vld [vmem:[#allocation163_spill] sm:$0xff] }
 0x337   : > { %10718 = vst [vmem:[#allocation185_spill] sm:$0xff] %v7551_v9  ;;  %vm7568_vm10 = vmand %vm2109_vm8, %vm10364_vm0  ;;  %5113 = vmatpush3.msra.mxu0 %v1293_v15  ;;  %v2716_v54 = vsel %vm2593_vm5, %v7551_v9, 0.0  ;;  %5496 = vlog2.f32 %v10733_v57  ;;  %vm2104_vm0 = vcmp.ne.s32.totalorder %v10738_v34, 4294967295  ;;  %5203 = vmatprep.subr.mxu1 %v1293_v15  ;;  %v10740_v18 = vld [vmem:[#allocation51_spill] sm:$0xff]  ;;  %v10745_v58 = vld [vmem:[#allocation156_spill] sm:$0xff] }
 0x338   : > { %5114 = vmatprep.subr.mxu0 %v1292_v46  ;;  %5498 = vlog2.f32 %v10739_v40  ;;  %vm10741_vm7 = vcmp.lt.s32.totalorder %v10740_v18, %v10640_v5  ;;  %5219 = vmatpush3.msra.mxu1 %v1293_v15  ;;  %v10746_v57 = vld [vmem:[#allocation53_spill] sm:$0xff]  ;;  %v2717_v40 = vadd.f32 %v2716_v54, %v2715_v7  ;;  %v2718_v15 = vsel %vm2593_vm5, %v7590_v25, 0.0  ;;  %v5489_v54 = vpop.eup %5488 }
 0x339   : > { %2464 = vadd.xlane.f32.xlu1 %v2432_v1  ;;  %v10711_v1 = vld [vmem:[#allocation54_spill] sm:$0xff]  ;;  %5115 = vmatpush3.msra.mxu0 %v1292_v46  ;;  %5500 = vlog2.f32 %v10745_v58  ;;  %v7644_v58 = vsel %vm2593_vm5, %v7595_v45, 0.0  ;;  %v7688_v31 = vsel %vm7568_vm10, 1.0, %v10651_v10  ;;  %v10761_v52 = vld [vmem:[#allocation57_spill] sm:$0xff] }
 0x33a   : > { %vm10712_vm2 = vcmp.lt.s32.totalorder %v10711_v1, %v10640_v5  ;;  %5116 = vmatprep.subr.mxu0 %v1291_v39  ;;  %5204 = vmatprep.subr.mxu1 %v1292_v46  ;;  %10759 = vst [vmem:[#allocation186_spill] sm:$0xff] %v7688_v31  ;;  %v7758_v18 = vsel %vm2593_vm5, %v7688_v31, 0.0  ;;  %v10777_v19 = vld [vmem:[#allocation161_spill] sm:$0xff] }
 0x33b   : > { %vm7529_vm6 = vmand %vm2103_vm15, %vm10712_vm2  ;;  %5117 = vmatpush3.msra.mxu0 %v1291_v39  ;;  %5220 = vmatpush3.msra.mxu1 %v1292_v46  ;;  %v1289_v46 = vld [vmem:[%s10125_s7 + $0x30] sm:$0xff]  ;;  %v10788_v25 = vld [vmem:[#allocation129_spill] sm:$0xff] }
 0x33c   : > { %vm7543_vm15 = vmand %vm2105_vm4, %vm10362_vm12  ;;  %vm2098_vm4 = vcmp.ne.s32.totalorder %v7211_v33, 4294967295  ;;  %vm2100_vm12 = vcmp.ne.s32.totalorder %v7217_v4, 4294967295  ;;  %5118 = vmatprep.subr.mxu0 %v1290_v63  ;;  %v7660_v2 = vsel %vm7529_vm6, 1.0, %v10651_v10  ;;  %5205 = vmatprep.subr.mxu1 %v1291_v39  ;;  %vm10762_vm6 = vcmp.lt.s32.totalorder %v10761_v52, %v10640_v5  ;;  %v1288_v4 = vld [vmem:[%s10125_s7 + $0x28] sm:$0xff]  ;;  %v5491_v52 = vpop.eup %5490 }
 0x33d   : > { %2470 = vadd.xlane.f32.xlu1 %v2435_v27  ;;  %vm7558_vm2 = vmand %vm2107_vm11, %vm10363_vm14  ;;  %vm10726_vm11 = vcmp.lt.s32.totalorder %v10725_v6, %v10640_v5  ;;  %v10730_v27 = vld [vmem:[#allocation160_spill] sm:$0xff]  ;;  %v10751_v6 = vld [vmem:[#allocation55_spill] sm:$0xff]  ;;  %10755 = vst [vmem:[#allocation163_spill] sm:$0xff] %v7660_v2  ;;  %5119 = vmatpush3.msra.mxu0 %v1290_v63  ;;  %v2719_v33 = vadd.f32 %v2718_v15, %v2717_v40  ;;  %v7733_v7 = vsel %vm2593_vm5, %v7660_v2, 0.0  ;;  %v5493_v36 = vpop.eup %5492  ;;  %v1969_v55 = vmul.f32 0.6931472, %v5491_v52 }
 0x33e   : > { %vm7579_vm14 = vmand %vm2111_vm1, %vm10726_vm11  ;;  %vm2102_vm8 = vcmp.ne.s32.totalorder %v10730_v27, 4294967295  ;;  %10732 = vst [vmem:[#allocation160_spill] sm:$0xff] %v7595_v45  ;;  %vm10735_vm1 = vcmp.lt.s32.totalorder %v10734_v12, %v10640_v5  ;;  %v10750_v27 = vld [vmem:[#allocation158_spill] sm:$0xff]  ;;  %v7683_v48 = vsel %vm7558_vm2, 1.0, %v10651_v10  ;;  %5120 = vmatprep.subr.mxu0 %v1289_v46  ;;  %5221 = vmatpush3.msra.mxu1 %v1291_v39  ;;  %v10772_v40 = vld [vmem:[#allocation61_spill] sm:$0xff] }
 0x33f   : > { %vm7603_vm11 = vmand %vm2098_vm4, %vm10735_vm1  ;;  %vm10747_vm4 = vcmp.lt.s32.totalorder %v10746_v57, %v10640_v5  ;;  %5502 = vlog2.f32 %v10750_v27  ;;  %v7665_v27 = vsel %vm7543_vm15, 1.0, %v10651_v10  ;;  %10758 = vst [vmem:[#allocation158_spill] sm:$0xff] %v7683_v48  ;;  %v7693_v16 = vsel %vm7579_vm14, 1.0, %v10651_v10  ;;  %5121 = vmatpush3.msra.mxu0 %v1289_v46  ;;  %5206 = vmatprep.subr.mxu1 %v1290_v63  ;;  %v7750_v57 = vpop.permute.xlu0 %2268  ;;  %v10782_v39 = vld [vmem:[#allocation159_spill] sm:$0xff]  ;;  %v10783_v52 = vld [vmem:[#allocation72_spill] sm:$0xff] }
 0x340   : > { %vm7617_vm3 = vmand %vm2100_vm12, %vm10741_vm7  ;;  %vm2106_vm12 = vcmp.ne.s32.totalorder %v7255_v37, 4294967295  ;;  %vm2108_vm7 = vcmp.ne.s32.totalorder %v7277_v62, 4294967295  ;;  %10756 = vst [vmem:[#allocation155_spill] sm:$0xff] %v7665_v27  ;;  %v7670_v34 = vsel %vm7603_vm11, 1.0, %v10651_v10  ;;  %vm10769_vm14 = vcmp.lt.s32.totalorder %v10768_v28, %v10640_v5  ;;  %5122 = vmatprep.subr.mxu0 %v1288_v4  ;;  %5222 = vmatpush3.msra.mxu1 %v1290_v63  ;;  %v1287_v63 = vld [vmem:[%s10125_s7 + $0x20] sm:$0xff] }
 0x341   : > { %2474 = vadd.xlane.f32.xlu1 %v2437_v49  ;;  %v7624_v49 = vsel %vm7513_vm13, 1.0, %v10651_v10  ;;  %vm7632_vm1 = vmand %vm2102_vm8, %vm10747_vm4  ;;  %vm10752_vm13 = vcmp.lt.s32.totalorder %v10751_v6, %v10640_v5  ;;  %10757 = vst [vmem:[#allocation156_spill] sm:$0xff] %v7670_v34  ;;  %v7707_v41 = vsel %vm7617_vm3, 1.0, %v10651_v10  ;;  %v7737_v28 = vsel %vm2593_vm5, %v7665_v27, 0.0  ;;  %5123 = vmatpush3.msra.mxu0 %v1288_v4  ;;  %v10781_v6 = vld [vmem:[#allocation128_spill] sm:$0xff] }
 0x342   : > { %10744 = vst [vmem:[#allocation154_spill] sm:$0xff] %v7624_v49  ;;  %vm7652_vm8 = vmand %vm2104_vm0, %vm10752_vm13  ;;  %vm2110_vm0 = vcmp.ne.s32.totalorder %v7294_v38, 4294967295  ;;  %v7678_v44 = vsel %vm2593_vm5, %v7624_v49, 0.0  ;;  %v7712_v11 = vsel %vm7632_vm1, 1.0, %v10651_v10  ;;  %v1967_v62 = vmul.f32 0.6931472, %v5489_v54  ;;  %5207 = vmatprep.subr.mxu1 %v1289_v46  ;;  %5124 = vmatprep.subr.mxu0 %v1287_v63 }
 0x343   : > { %10760 = vst [vmem:[#allocation187_spill] sm:$0xff] %v7693_v16  ;;  %vm7700_vm15 = vmand %vm2106_vm12, %vm10762_vm6  ;;  %v7717_v37 = vsel %vm7652_vm8, 1.0, %v10651_v10  ;;  %v2720_v1 = vsel %vm2593_vm5, %v7670_v34, 0.0  ;;  %vm10773_vm10 = vcmp.lt.s32.totalorder %v10772_v40, %v10640_v5  ;;  %v7754_v54 = vsel %vm2593_vm5, %v7683_v48, 0.0  ;;  %v10776_v40 = vld [vmem:[#allocation157_spill] sm:$0xff]  ;;  %5223 = vmatpush3.msra.mxu1 %v1289_v46  ;;  %5125 = vmatpush3.msra.mxu0 %v1287_v63  ;;  %v1286_v46 = vld [vmem:[%s10125_s7 + $0x18] sm:$0xff]  ;;  %v5495_v15 = vpop.eup %5494 }
 0x344   : > { %10765 = vst [vmem:[#allocation188_spill] sm:$0xff] %v7707_v41  ;;  %10766 = vst [vmem:[#allocation189_spill] sm:$0xff] %v7712_v11  ;;  %v7762_v38 = vsel %vm2593_vm5, %v7693_v16, 0.0  ;;  %5504 = vlog2.f32 %v10776_v40  ;;  %v7771_v12 = vsel %vm2593_vm5, %v7707_v41, 0.0  ;;  %v7775_v8 = vsel %vm2593_vm5, %v7712_v11, 0.0  ;;  %5208 = vmatprep.subr.mxu1 %v1288_v4  ;;  %5126 = vmatprep.subr.mxu0 %v1286_v46  ;;  %v10786_v5 = vld [vmem:[#allocation74_spill] sm:$0xff]  ;;  %v5497_v31 = vpop.eup %5496  ;;  %v7836_v11 = vpop.permute.xlu0 %2274 }
 0x345   : > { %10767 = vst [vmem:[#allocation190_spill] sm:$0xff] %v7717_v37  ;;  %vm7724_vm2 = vmand %vm2108_vm7, %vm10769_vm14  ;;  %5506 = vlog2.f32 %v10777_v19  ;;  %v7779_v32 = vsel %vm2593_vm5, %v7717_v37, 0.0  ;;  %v7784_v40 = vsel %vm7700_vm15, 1.0, %v10651_v10  ;;  %v2721_v47 = vadd.f32 %v2720_v1, %v2719_v33  ;;  %5224 = vmatpush3.msra.mxu1 %v1288_v4  ;;  %5127 = vmatpush3.msra.mxu0 %v1286_v46  ;;  %v7808_v1 = vld [vmem:[%s10125_s7 + $0x10] sm:$0xff]  ;;  %v7813_v33 = vld [vmem:[%s10125_s7 + $0x8] sm:$0xff] }
 0x346   : > { %vm7746_vm11 = vmand %vm2110_vm0, %vm10773_vm10  ;;  %10778 = vst [vmem:[#allocation157_spill] sm:$0xff] %v7784_v40  ;;  %v7789_v19 = vsel %vm7724_vm2, 1.0, %v10651_v10  ;;  %v7800_v26 = vadd.f32 %v1967_v62, %v10781_v6  ;;  %v1971_v3 = vmul.f32 0.6931472, %v5493_v36  ;;  %5508 = vlog2.f32 %v10782_v39  ;;  %v10784_v62 = vld [vmem:[#allocation70_spill] sm:$0xff]  ;;  %v10785_v39 = vld [vmem:[#allocation76_spill] sm:$0xff]  ;;  %5128 = vmatprep.subr.mxu0 %v7808_v1  ;;  %5209 = vmatprep.subr.mxu1 %v1287_v63 }
 0x347   : > { %10779 = vst [vmem:[#allocation161_spill] sm:$0xff] %v7789_v19  ;;  %v7794_v20 = vsel %vm7746_vm11, 1.0, %v10651_v10  ;;  %v1180_v36 = vmul.f32 %v7803_v61, %v10783_v52  ;;  %v1181_v6 = vmul.f32 %v7803_v61, %v10784_v62  ;;  %v1182_v4 = vmul.f32 %v7803_v61, %v10785_v39  ;;  %v10787_v48 = vld [vmem:[#allocation167_spill] sm:$0xff]  ;;  %v7839_v49 = vld [vmem:[#allocation3] ss:$0 sm:$0xff]  ;;  %5129 = vmatpush3.msra.mxu0 %v7808_v1 }
 0x348   : > { %10780 = vst [vmem:[#allocation191_spill] sm:$0xff] %v7794_v20  ;;  %v1183_v16 = vmul.f32 %v7803_v61, %v10786_v5  ;;  %5510 = vlog2.f32 %v10787_v48  ;;  %v7826_v27 = vsel %vm2593_vm5, %v7784_v40, 0.0  ;;  %v7830_v37 = vsel %vm2593_vm5, %v7789_v19, 0.0  ;;  %v5499_v48 = vpop.eup %5498  ;;  %v7846_v19 = vld [vmem:[%s10125_s7] sm:$0xff]  ;;  %5130 = vmatprep.subr.mxu0 %v7813_v33  ;;  %5225 = vmatpush3.msra.mxu1 %v1287_v63 }
 0x349   : > { %v7834_v2 = vsel %vm2593_vm5, %v7794_v20, 0.0  ;;  %v2723_v41 = vadd.f32 %v7644_v58, %v2721_v47  ;;  %v1219_v20 = vadd.f32 %v7839_v49, %v1180_v36  ;;  %v1220_v40 = vadd.f32 %v7839_v49, %v1181_v6  ;;  %v5501_v34 = vpop.eup %5500  ;;  %v10789_v47 = vld [vmem:[#allocation103_spill] sm:$0xff]  ;;  %5131 = vmatpush3.msra.mxu0 %v7813_v33  ;;  %5210 = vmatprep.subr.mxu1 %v1286_v46  ;;  %v10813_v39 = vld [vmem:[#allocation136_spill] sm:$0xff] }
 0x34a   : > { %v1221_v45 = vadd.f32 %v7839_v49, %v1182_v4  ;;  %v7852_v9 = vadd.f32 %v1969_v55, %v10788_v25  ;;  %v1973_v50 = vmul.f32 0.6931472, %v5495_v15  ;;  %v1222_v53 = vadd.f32 %v7839_v49, %v1183_v16  ;;  %v10791_v25 = vld [vmem:[#allocation162_spill] sm:$0xff]  ;;  %5132 = vmatprep.subr.mxu0 %v7846_v19  ;;  %v10792_v15 = vld [vmem:[#allocation80_spill] sm:$0xff]  ;;  %5226 = vmatpush3.msra.mxu1 %v1286_v46 }
 0x34b   : > { %v7859_v36 = vadd.f32 %v1971_v3, %v10790_v0  ;;  %v1251_v6 = vmax.f32 %v1219_v20, 0.0  ;;  %v1252_v4 = vmax.f32 %v1220_v40, 0.0  ;;  %v1975_v55 = vmul.f32 0.6931472, %v5497_v31  ;;  %v10793_v16 = vld [vmem:[#allocation78_spill] sm:$0xff]  ;;  %5133 = vmatpush3.msra.mxu0 %v7846_v19  ;;  %v7871_v31 = vpop.permute.xlu0 %2280  ;;  %5211 = vmatprep.subr.mxu1 %v7808_v1 }
 0x34c   : > { %v5503_v43 = vpop.eup %5502  ;;  %v1253_v24 = vmax.f32 %v1221_v45, 0.0  ;;  %5512 = vlog2.f32 %v10791_v25  ;;  %v1184_v58 = vmul.f32 %v7803_v61, %v10792_v15  ;;  %v1185_v63 = vmul.f32 %v7803_v61, %v10793_v16  ;;  %5227 = vmatpush3.msra.mxu1 %v7808_v1  ;;  %v10812_v16 = vld [vmem:[#allocation90_spill] sm:$0xff] }
 0x34d   : > { %v1977_v3 = vmul.f32 0.6931472, %v5499_v48  ;;  %v1979_v0 = vmul.f32 0.6931472, %v5501_v34  ;;  %5514 = vlog2.f32 %v7285_v23  ;;  %v2725_v20 = vadd.f32 %v7771_v12, %v2723_v41  ;;  %5134 = vmatprep.mubr.f32.mxu0 %v1251_v6  ;;  %v10794_v34 = vld [vmem:[#allocation104_spill] sm:$0xff]  ;;  %v10796_v41 = vld [vmem:[#allocation82_spill] sm:$0xff]  ;;  %5212 = vmatprep.subr.mxu1 %v7813_v33 }
 0x34e   : > { %v1981_v45 = vmul.f32 0.6931472, %v5503_v43  ;;  %5135 = vmatmul.mubr.f32.vlgmr.msra.gmra.mxu0 %v1252_v4  ;;  %v1254_v40 = vmax.f32 %v1222_v53, 0.0  ;;  %v1223_v25 = vadd.f32 %v7839_v49, %v1184_v58  ;;  %v1224_v14 = vadd.f32 %v7839_v49, %v1185_v63  ;;  %v10795_v23 = vld [vmem:[#allocation84_spill] sm:$0xff]  ;;  %v10798_v4 = vld [vmem:[#allocation131_spill] sm:$0xff]  ;;  %5228 = vmatpush3.msra.mxu1 %v7813_v33  ;;  %v10809_v33 = vld [vmem:[#allocation109_spill] sm:$0xff] }
 0x34f   : > { %5137 = vmatprep.mubr.f32.mxu0 %v1253_v24  ;;  %v1186_v12 = vmul.f32 %v7803_v61, %v10795_v23  ;;  %v1187_v43 = vmul.f32 %v7803_v61, %v10796_v41  ;;  %v10797_v48 = vld [vmem:[#allocation88_spill] sm:$0xff]  ;;  %v7885_v58 = vadd.f32 %v1973_v50, %v10798_v4  ;;  %v7894_v42 = vadd.f32 %v1977_v3, %v10801_v29  ;;  %v10802_v23 = vld [vmem:[#allocation134_spill] sm:$0xff] }
 0x350   : > { %v1188_v6 = vmul.f32 %v7803_v61, %v10797_v48  ;;  %v10799_v63 = vld [vmem:[#allocation132_spill] sm:$0xff]  ;;  %v1255_v24 = vmax.f32 %v1223_v25, 0.0  ;;  %v7897_v41 = vadd.f32 %v1979_v0, %v10802_v23  ;;  %v2727_v48 = vadd.f32 %v7678_v44, %v2725_v20  ;;  %5213 = vmatprep.subr.mxu1 %v7846_v19 }
 0x351   : > { %v5505_v53 = vpop.eup %5504  ;;  %v7888_v17 = vadd.f32 %v1975_v55, %v10799_v63  ;;  %v1225_v50 = vadd.f32 %v7839_v49, %v1186_v12  ;;  %v10803_v55 = vld [vmem:[#allocation135_spill] sm:$0xff]  ;;  %v1256_v25 = vmax.f32 %v1224_v14, 0.0  ;;  %v1226_v1 = vadd.f32 %v7839_v49, %v1187_v43  ;;  %v10804_v63 = vld [vmem:[#allocation86_spill] sm:$0xff]  ;;  %v10805_v20 = vld [vmem:[#allocation92_spill] sm:$0xff]  ;;  %v7915_v43 = vpop.permute.xlu0 %2286  ;;  %5229 = vmatpush3.msra.mxu1 %v7846_v19 }
 0x352   : > { %v5507_v30 = vpop.eup %5506  ;;  %v7903_v4 = vadd.f32 %v1981_v45, %v10803_v55  ;;  %5138 = vmatmul.mubr.f32.gmra.mxu0 %v1254_v40  ;;  %v1189_v29 = vmul.f32 %v7803_v61, %v10804_v63  ;;  %v1983_v46 = vmul.f32 0.6931472, %v5505_v53  ;;  %v1227_v44 = vadd.f32 %v7839_v49, %v1188_v6  ;;  %v10806_v12 = vld [vmem:[#allocation164_spill] sm:$0xff]  ;;  %v10807_v14 = vld [vmem:[#allocation107_spill] sm:$0xff]  ;;  %v10808_v53 = vld [vmem:[#allocation106_spill] sm:$0xff] }
 0x353   : > { %v5509_v3 = vpop.eup %5508  ;;  %5140 = vmatprep.mubr.f32.mxu0 %v1255_v24  ;;  %v1257_v0 = vmax.f32 %v1225_v50, 0.0  ;;  %v1190_v23 = vmul.f32 %v7803_v61, %v10805_v20  ;;  %v1985_v45 = vmul.f32 0.6931472, %v5507_v30  ;;  %5516 = vlog2.f32 %v10806_v12  ;;  %v10810_v50 = vld [vmem:[#allocation108_spill] sm:$0xff]  ;;  %v10811_v20 = vld [vmem:[#allocation110_spill] sm:$0xff] }
 0x354   : > { %5518 = vlog2.f32 %v7309_v59  ;;  %v2729_v40 = vadd.f32 %v7775_v8, %v2727_v48  ;;  %v1258_v24 = vmax.f32 %v1226_v1, 0.0  ;;  %v1228_v15 = vadd.f32 %v7839_v49, %v1189_v29  ;;  %v10814_v8 = vld [vmem:[#allocation96_spill] sm:$0xff]  ;;  %v10815_v48 = vld [vmem:[#allocation137_spill] sm:$0xff] }
 0x355   : > { %v5511_v6 = vpop.eup %5510  ;;  %v1191_v59 = vmul.f32 %v7803_v61, %v10812_v16  ;;  %v7935_v5 = vadd.f32 %v1983_v46, %v10813_v39  ;;  %v1259_v30 = vmax.f32 %v1227_v44, 0.0  ;;  %v1229_v12 = vadd.f32 %v7839_v49, %v1190_v23  ;;  %v10816_v63 = vld [vmem:[#allocation168_spill] sm:$0xff]  ;;  %v10817_v23 = vld [vmem:[#allocation94_spill] sm:$0xff] }
 0x356   : > { %5141 = vmatmul.mubr.f32.gmra.mxu0 %v1256_v25  ;;  %v1192_v19 = vmul.f32 %v7803_v61, %v10814_v8  ;;  %v7941_v52 = vadd.f32 %v1985_v45, %v10815_v48  ;;  %v1987_v25 = vmul.f32 0.6931472, %v5509_v3  ;;  %v1989_v1 = vmul.f32 0.6931472, %v5511_v6  ;;  %v10820_v8 = vld [vmem:[#allocation138_spill] sm:$0xff] }
 0x357   : > { %5143 = vmatprep.mubr.f32.mxu0 %v1257_v0  ;;  %5520 = vlog2.f32 %v10816_v63  ;;  %vm2345_vm3 = vcmp.eq.s32.totalorder %v6755_v60, %v7750_v57  ;;  %v2731_v39 = vadd.f32 %v7733_v7, %v2729_v40  ;;  %v7949_v0 = vpop.permute.xlu0 %2292  ;;  %v1260_v3 = vmax.f32 %v1228_v15, 0.0  ;;  %v10821_v15 = vld [vmem:[#allocation139_spill] sm:$0xff] }
 0x358   : > { %5522 = vlog2.f32 %v7329_v56  ;;  %v1230_v63 = vadd.f32 %v7839_v49, %v1191_v59  ;;  %v1193_v45 = vmul.f32 %v7803_v61, %v10817_v23  ;;  %v10818_v56 = vld [vmem:[#allocation111_spill] sm:$0xff]  ;;  %v10819_v48 = vsub.f32 %v10789_v47, %v7800_v26  ;;  %v10822_v23 = vld [vmem:[#allocation112_spill] sm:$0xff] }
 0x359   : > { %v5513_v62 = vpop.eup %5512  ;;  %v1261_v7 = vmax.f32 %v1229_v12, 0.0  ;;  %v1231_v40 = vadd.f32 %v7839_v49, %v1192_v19  ;;  %v7962_v16 = vadd.f32 %v1987_v25, %v10820_v8  ;;  %v4880_v59 = vsel %vm2345_vm3, 1.0, %v10651_v10 }
 0x35a   : > { %v5515_v46 = vpop.eup %5514  ;;  %5144 = vmatmul.mubr.f32.gmra.mxu0 %v1258_v24  ;;  %v7965_v24 = vadd.f32 %v1989_v1, %v10821_v15  ;;  %v2064_v26 = vsub.f32 %v10822_v23, %v7941_v52  ;;  %v1991_v47 = vmul.f32 0.6931472, %v5513_v62  ;;  %vm2347_vm1 = vcmp.eq.s32.totalorder %v6755_v60, %v7836_v11 }
 0x35b   : > { %5146 = vmatprep.mubr.f32.mxu0 %v1259_v30  ;;  %v1993_v30 = vmul.f32 0.6931472, %v5515_v46  ;;  %v2733_v8 = vadd.f32 %v7779_v32, %v2731_v39  ;;  %v1262_v19 = vmax.f32 %v1230_v63, 0.0  ;;  %v1232_v57 = vadd.f32 %v7839_v49, %v1193_v45  ;;  %v10825_v39 = vld [vmem:[#allocation113_spill] sm:$0xff] }
 0x35c   : > { %5524 = vlog2.f32 %v7287_v21  ;;  %v10823_v62 = vsub.f32 %v10800_v22, %v7859_v36  ;;  %v10824_v11 = vsub.f32 %v10794_v34, %v7852_v9  ;;  %v1263_v46 = vmax.f32 %v1231_v40, 0.0  ;;  %v10827_v9 = vld [vmem:[#allocation172_spill] sm:$0xff] }
 0x35d   : > { %v7917_v55 = vpop.xlane.xlu1 %1950  ;;  %5526 = vlog2.f32 %v7351_v13  ;;  %v4882_v32 = vsel %vm2347_vm1, 1.0, %v10651_v10  ;;  %vm2349_vm13 = vcmp.eq.s32.totalorder %v6755_v60, %v7871_v31  ;;  %v2065_v21 = vsub.f32 %v10825_v39, %v7962_v16  ;;  %v10828_v13 = vld [vmem:[#allocation114_spill] sm:$0xff] }
 0x35e   : > { %5147 = vmatmul.mubr.f32.gmra.mxu0 %v1260_v3  ;;  %v2441_v25 = vmul.f32 %v4880_v59, %v10823_v62  ;;  %v10826_v3 = vld [vmem:[#allocation140_spill] sm:$0xff]  ;;  %5528 = vlog2.f32 %v10827_v9  ;;  %v2066_v34 = vsub.f32 %v10828_v13, %v7965_v24  ;;  %v1264_v40 = vmax.f32 %v1232_v57, 0.0  ;;  %v10834_v57 = vld [vmem:[#allocation115_spill] sm:$0xff] }
 0x35f   : > { %5149 = vmatprep.mubr.f32.mxu0 %v1261_v7  ;;  %v7995_v63 = vadd.f32 %v1991_v47, %v10826_v3  ;;  %v2735_v7 = vadd.f32 %v7737_v28, %v2733_v8  ;;  %v10830_v15 = vsub.f32 %v10807_v14, %v7888_v17  ;;  %v4884_v47 = vsel %vm2349_vm13, 1.0, %v10651_v10  ;;  %v10832_v62 = vld [vmem:[#allocation100_spill] sm:$0xff]  ;;  %v10833_v14 = vld [vmem:[#allocation98_spill] sm:$0xff] }
 0x360   : > { %v5517_v36 = vpop.eup %5516  ;;  %5530 = vlog2.f32 %v7372_v51  ;;  %vm2351_vm7 = vcmp.eq.s32.totalorder %v6755_v60, %v7915_v43  ;;  %v1195_v8 = vmul.f32 %v7803_v61, %v10833_v14  ;;  %v10835_v51 = vsub.f32 %v10809_v33, %v7897_v41  ;;  %v10837_v33 = vld [vmem:[#allocation73_spill] sm:$0xff] }
 0x361   : > { %v2263_v29 = vpop.permute.xlu1 %2262  ;;  %v5519_v45 = vpop.eup %5518  ;;  %v2443_v59 = vmul.f32 %v4882_v32, %v10830_v15  ;;  %v1995_v28 = vmul.f32 0.6931472, %v5517_v36  ;;  %v4886_v3 = vsel %vm2351_vm7, 1.0, %v10651_v10  ;;  %v10836_v9 = vsub.f32 %v10810_v50, %v7894_v42  ;;  %v10839_v15 = vld [vmem:[#allocation71_spill] sm:$0xff]  ;;  %v10841_v42 = vld [vmem:[#allocation174_spill] sm:$0xff] }
 0x362   : > { %vm2343_vm4 = vcmp.eq.s32.totalorder %v6755_v60, %v2263_v29  ;;  %5150 = vmatmul.mubr.f32.gmra.mxu0 %v1262_v19  ;;  %v1997_v19 = vmul.f32 0.6931472, %v5519_v45  ;;  %v1234_v36 = vadd.f32 %v7839_v49, %v1195_v8  ;;  %vm2353_vm6 = vcmp.eq.s32.totalorder %v6755_v60, %v7949_v0 }
 0x363   : > { %v4878_v44 = vsel %vm2343_vm4, 1.0, %v10651_v10  ;;  %5152 = vmatprep.mubr.f32.mxu0 %v1263_v46  ;;  %v1197_v43 = vmul.f32 %v7803_v61, %v10839_v15  ;;  %5532 = vlog2.f32 %v10841_v42  ;;  %v4888_v8 = vsel %vm2353_vm6, 1.0, %v10651_v10 }
 0x364   : > { %v2439_v29 = vmul.f32 %v4878_v44, %v10819_v48  ;;  %v7992_v44 = vpop.permute.xlu0 %2298  ;;  %v5521_v31 = vpop.eup %5520  ;;  %5534 = vlog2.f32 %v7394_v35  ;;  %v2449_v35 = vmul.f32 %v4888_v8, %v2065_v21 }
 0x365   : > { %v2266_v6 = vpop.permute.xlu1 %2265  ;;  %vm2355_vm14 = vcmp.eq.s32.totalorder %v6755_v60, %v7992_v44  ;;  %5536 = vlog2.f32 %v7917_v55  ;;  %v10849_v55 = vld [vmem:[#allocation79_spill] sm:$0xff]  ;;  %v10850_v44 = vld [vmem:[#allocation144_spill] sm:$0xff] }
 0x366   : > { %vm2344_vm12 = vcmp.eq.s32.totalorder %v6755_v60, %v2266_v6  ;;  %2478 = vadd.xlane.f32.xlu1 %v2439_v29  ;;  %v10829_v6 = vld [vmem:[#allocation141_spill] sm:$0xff]  ;;  %5153 = vmatmul.mubr.f32.gmra.mxu0 %v1264_v40  ;;  %v1266_v40 = vmax.f32 %v1234_v36, 0.0  ;;  %v10845_v36 = vld [vmem:[#allocation143_spill] sm:$0xff]  ;;  %v4890_v16 = vsel %vm2355_vm14, 1.0, %v10651_v10 }
 0x367   : > { %v4879_v12 = vsel %vm2344_vm12, 1.0, %v10651_v10  ;;  %v8002_v48 = vadd.f32 %v1993_v30, %v10829_v6  ;;  %v1196_v6 = vmul.f32 %v7803_v61, %v10837_v33 }
 0x368   : > { %v2440_v1 = vmul.f32 %v4879_v12, %v10824_v11  ;;  %v10831_v12 = vsub.f32 %v10808_v53, %v7885_v58  ;;  %v2067_v58 = vsub.f32 %v10834_v57, %v7995_v63  ;;  %v5523_v11 = vpop.eup %5522  ;;  %v8030_v46 = vpop.permute.xlu0 %2304  ;;  %v10853_v57 = vld [vmem:[#allocation83_spill] sm:$0xff] }
 0x369   : > { %v2272_v22 = vpop.permute.xlu1 %2271  ;;  %v1235_v50 = vadd.f32 %v7839_v49, %v1196_v6  ;;  %v2001_v23 = vmul.f32 0.6931472, %v5523_v11  ;;  %vm2357_vm10 = vcmp.eq.s32.totalorder %v6755_v60, %v8030_v46  ;;  %v10854_v46 = vld [vmem:[#allocation145_spill] sm:$0xff] }
 0x36a   : > { %vm2346_vm8 = vcmp.eq.s32.totalorder %v6755_v60, %v2272_v22  ;;  %2480 = vadd.xlane.f32.xlu0 %v2440_v1  ;;  %2482 = vadd.xlane.f32.xlu1 %v2441_v25  ;;  %v1194_v25 = vmul.f32 %v7803_v61, %v10832_v62  ;;  %v2445_v1 = vmul.f32 %v4884_v47, %v10835_v51 }
 0x36b   : > { %v4881_v29 = vsel %vm2346_vm8, 1.0, %v10651_v10  ;;  %v2737_v22 = vadd.f32 %v7826_v27, %v2735_v7  ;;  %v2451_v11 = vmul.f32 %v4890_v16, %v2067_v58  ;;  %v1203_v58 = vmul.f32 %v7803_v61, %v10853_v57 }
 0x36c   : > { %v2442_v30 = vmul.f32 %v4881_v29, %v10831_v12  ;;  %v1233_v53 = vadd.f32 %v7839_v49, %v1194_v25  ;;  %v10838_v29 = vld [vmem:[#allocation116_spill] sm:$0xff]  ;;  %v10842_v12 = vsub.f32 %v10818_v56, %v7935_v5  ;;  %v10844_v5 = vld [vmem:[#allocation77_spill] sm:$0xff] }
 0x36d   : > { %v2278_v17 = vpop.permute.xlu1 %2277  ;;  %v2068_v7 = vsub.f32 %v10838_v29, %v8002_v48  ;;  %v1198_v56 = vmul.f32 %v7803_v61, %v10844_v5 }
 0x36e   : > { %vm2348_vm0 = vcmp.eq.s32.totalorder %v6755_v60, %v2278_v17  ;;  %2484 = vadd.xlane.f32.xlu0 %v2442_v30  ;;  %2486 = vadd.xlane.f32.xlu1 %v2443_v59  ;;  %v1265_v41 = vmax.f32 %v1233_v53, 0.0  ;;  %v10840_v59 = vld [vmem:[#allocation142_spill] sm:$0xff]  ;;  %v2447_v30 = vmul.f32 %v4886_v3, %v10842_v12  ;;  %v2739_v17 = vadd.f32 %v7754_v54, %v2737_v22  ;;  %v8075_v22 = vpop.permute.xlu0 %2310 }
 0x36f   : > { %v4883_v32 = vsel %vm2348_vm0, 1.0, %v10651_v10  ;;  %v8051_v47 = vadd.f32 %v1995_v28, %v10840_v59  ;;  %v1236_v28 = vadd.f32 %v7839_v49, %v1197_v43  ;;  %v10843_v53 = vsub.f32 %v10811_v20, %v7903_v4  ;;  %v10847_v59 = vld [vmem:[#allocation81_spill] sm:$0xff] }
 0x370   : > { %v2444_v45 = vmul.f32 %v4883_v32, %v10836_v9  ;;  %5155 = vmatprep.mubr.f32.mxu0 %v1265_v41  ;;  %v5525_v32 = vpop.eup %5524  ;;  %v8072_v54 = vadd.f32 %v1997_v19, %v10845_v36  ;;  %v10846_v9 = vld [vmem:[#allocation75_spill] sm:$0xff]  ;;  %v1999_v20 = vmul.f32 0.6931472, %v5521_v31  ;;  %v1237_v19 = vadd.f32 %v7839_v49, %v1198_v56  ;;  %v10852_v36 = vld [vmem:[#allocation118_spill] sm:$0xff] }
 0x371   : > { %v2284_v27 = vpop.permute.xlu1 %2283  ;;  %5156 = vmatmul.mubr.f32.gmra.mxu0 %v1266_v40  ;;  %v1268_v0 = vmax.f32 %v1236_v28, 0.0  ;;  %v5527_v4 = vpop.eup %5526  ;;  %v1200_v42 = vmul.f32 %v7803_v61, %v10847_v59  ;;  %v1201_v12 = vmul.f32 %v7803_v61, %v10849_v55  ;;  %v2003_v24 = vmul.f32 0.6931472, %v5525_v32 }
 0x372   : > { %vm2350_vm15 = vcmp.eq.s32.totalorder %v6755_v60, %v2284_v27  ;;  %2488 = vadd.xlane.f32.xlu0 %v2444_v45  ;;  %2490 = vadd.xlane.f32.xlu1 %v2445_v1  ;;  %v1267_v1 = vmax.f32 %v1235_v50, 0.0  ;;  %v1199_v45 = vmul.f32 %v7803_v61, %v10846_v9  ;;  %v5529_v41 = vpop.eup %5528  ;;  %v2741_v27 = vadd.f32 %v7830_v37, %v2739_v17  ;;  %v10848_v37 = vld [vmem:[#allocation117_spill] sm:$0xff] }
 0x373   : > { %v4885_v25 = vsel %vm2350_vm15, 1.0, %v10651_v10  ;;  %v1269_v43 = vmax.f32 %v1237_v19, 0.0  ;;  %v2069_v39 = vsub.f32 %v10848_v37, %v8051_v47  ;;  %v5531_v52 = vpop.eup %5530  ;;  %v1240_v28 = vadd.f32 %v7839_v49, %v1201_v12  ;;  %v10855_v19 = vld [vmem:[#allocation119_spill] sm:$0xff] }
 0x374   : > { %v2446_v51 = vmul.f32 %v4885_v25, %v10843_v53  ;;  %5158 = vmatprep.mubr.f32.mxu1 %v1267_v1  ;;  %v1238_v31 = vadd.f32 %v7839_v49, %v1199_v45  ;;  %v2317_v25 = vpop.permute.xlu0 %2316  ;;  %v2743_v17 = vadd.f32 %v7758_v18, %v2741_v27  ;;  %v4892_v18 = vsel %vm2357_vm10, 1.0, %v10651_v10  ;;  %v10858_v12 = vld [vmem:[#allocation147_spill] sm:$0xff] }
 0x375   : > { %v2290_v3 = vpop.permute.xlu1 %2289  ;;  %5159 = vmatmul.mubr.f32.vlgmr.msra.gmra.mxu1 %v1268_v0  ;;  %v1272_v63 = vmax.f32 %v1240_v28, 0.0  ;;  %vm2359_vm3 = vcmp.eq.s32.totalorder %v6755_v60, %v8075_v22  ;;  %v2040_v0 = vadd.f32 %v2001_v23, %v10854_v46  ;;  %v2453_v32 = vmul.f32 %v4892_v18, %v2069_v39  ;;  %v10856_v39 = vld [vmem:[#allocation146_spill] sm:$0xff]  ;;  %v10860_v28 = vld [vmem:[#allocation121_spill] sm:$0xff] }
 0x376   : > { %vm2352_vm2 = vcmp.eq.s32.totalorder %v6755_v60, %v2290_v3  ;;  %2492 = vadd.xlane.f32.xlu0 %v2446_v51  ;;  %2494 = vadd.xlane.f32.xlu1 %v2447_v30  ;;  %v1270_v50 = vmax.f32 %v1238_v31, 0.0  ;;  %v2039_v30 = vadd.f32 %v1999_v20, %v10850_v44  ;;  %v10851_v51 = vld [vmem:[#allocation85_spill] sm:$0xff]  ;;  %v2070_v3 = vsub.f32 %v10852_v36, %v8072_v54  ;;  %v10864_v46 = vld [vmem:[#allocation150_spill] sm:$0xff] }
 0x377   : > { %v4887_v6 = vsel %vm2352_vm2, 1.0, %v10651_v10  ;;  %5161 = vmatprep.mubr.f32.mxu1 %v1269_v43  ;;  %v1202_v1 = vmul.f32 %v7803_v61, %v10851_v51  ;;  %v2745_v54 = vadd.f32 %v7834_v2, %v2743_v17  ;;  %v1242_v20 = vadd.f32 %v7839_v49, %v1203_v58 }
 0x378   : > { %v2448_v40 = vmul.f32 %v4887_v6, %v2064_v26  ;;  %v1239_v26 = vadd.f32 %v7839_v49, %v1200_v42  ;;  %v2005_v31 = vmul.f32 0.6931472, %v5527_v4  ;;  %v4894_v43 = vsel %vm2359_vm3, 1.0, %v10651_v10  ;;  %v2323_v2 = vpop.permute.xlu0 %2322  ;;  %v10857_v4 = vld [vmem:[#allocation120_spill] sm:$0xff] }
 0x379   : > { %v2296_v21 = vpop.permute.xlu1 %2295  ;;  %5162 = vmatmul.mubr.f32.gmra.mxu1 %v1270_v50  ;;  %v1241_v13 = vadd.f32 %v7839_v49, %v1202_v1  ;;  %v1274_v16 = vmax.f32 %v1242_v20, 0.0  ;;  %vm2361_vm1 = vcmp.eq.s32.totalorder %v6755_v60, %v2317_v25  ;;  %v2747_v29 = vadd.f32 %v7762_v38, %v2745_v54 }
 0x37a   : > { %vm2354_vm11 = vcmp.eq.s32.totalorder %v6755_v60, %v2296_v21  ;;  %2496 = vadd.xlane.f32.xlu0 %v2448_v40  ;;  %2498 = vadd.xlane.f32.xlu1 %v2449_v35  ;;  %v1271_v53 = vmax.f32 %v1239_v26, 0.0  ;;  %v2071_v35 = vsub.f32 %v10855_v19, %v2039_v30  ;;  %v2007_v40 = vmul.f32 0.6931472, %v5529_v41  ;;  %v10859_v26 = vld [vmem:[#allocation148_spill] sm:$0xff] }
 0x37b   : > { %v4889_v47 = vsel %vm2354_vm11, 1.0, %v10651_v10  ;;  %v1273_v27 = vmax.f32 %v1241_v13, 0.0  ;;  %v2041_v21 = vadd.f32 %v2003_v24, %v10856_v39  ;;  %v2072_v41 = vsub.f32 %v10857_v4, %v2040_v0  ;;  %v10863_v13 = vld [vmem:[#allocation122_spill] sm:$0xff]  ;;  %v10865_v19 = vld [vmem:[#allocation152_spill] sm:$0xff] }
 0x37c   : > { %v2450_v8 = vmul.f32 %v4889_v47, %v2066_v34  ;;  %v5533_v34 = vpop.eup %5532  ;;  %5164 = vmatprep.mubr.f32.mxu1 %v1271_v53  ;;  %v2042_v23 = vadd.f32 %v2005_v31, %v10858_v12  ;;  %v2043_v44 = vadd.f32 %v2007_v40, %v10859_v26  ;;  %v2009_v30 = vmul.f32 0.6931472, %v5531_v52  ;;  %v2329_v38 = vpop.permute.xlu0 %2328  ;;  %v10861_v52 = vld [vmem:[#allocation149_spill] sm:$0xff] }
 0x37d   : > { %v2302_v56 = vpop.permute.xlu1 %2301  ;;  %5165 = vmatmul.mubr.f32.gmra.mxu1 %v1272_v63  ;;  %v5535_v37 = vpop.eup %5534  ;;  %v4896_v25 = vsel %vm2361_vm1, 1.0, %v10651_v10  ;;  %v2011_v17 = vmul.f32 0.6931472, %v5533_v34  ;;  %vm2363_vm13 = vcmp.eq.s32.totalorder %v6755_v60, %v2323_v2  ;;  %v2748_v53 = vrot.slane %v2747_v29, 4 }
 0x37e   : > { %vm2356_vm4 = vcmp.eq.s32.totalorder %v6755_v60, %v2302_v56  ;;  %2500 = vadd.xlane.f32.xlu0 %v2450_v8  ;;  %2502 = vadd.xlane.f32.xlu1 %v2451_v11  ;;  %v5537_v50 = vpop.eup %5536  ;;  %v2073_v11 = vsub.f32 %v10860_v28, %v2041_v21  ;;  %v2044_v36 = vadd.f32 %v2009_v30, %v10861_v52  ;;  %v4898_v58 = vsel %vm2363_vm13, 1.0, %v10651_v10 }
 0x37f   : > { %v4891_v45 = vsel %vm2356_vm4, 1.0, %v10651_v10  ;;  %5167 = vmatprep.mubr.f32.mxu1 %v1273_v27  ;;  %v2015_v18 = vmul.f32 0.6931472, %v5537_v50  ;;  %v2074_v34 = vsub.f32 %v10863_v13, %v2042_v23  ;;  %v2045_v0 = vadd.f32 %v2011_v17, %v10864_v46  ;;  %v10870_v50 = vld [vmem:[#allocation126_spill] sm:$0xff]  ;;  %v10876_v46 = vld [vmem:[#allocation91_spill] sm:$0xff] }
 0x380   : > { %v2452_v6 = vmul.f32 %v4891_v45, %v2068_v7  ;;  %v2455_v7 = vmul.f32 %v4894_v43, %v2071_v35  ;;  %v2457_v1 = vmul.f32 %v4896_v25, %v2073_v11  ;;  %v2013_v45 = vmul.f32 0.6931472, %v5535_v37  ;;  %v2335_v31 = vpop.permute.xlu0 %2334  ;;  %v10866_v43 = vld [vmem:[#allocation124_spill] sm:$0xff]  ;;  %v10868_v37 = vld [vmem:[#allocation125_spill] sm:$0xff] }
 0x381   : > { %v2308_v42 = vpop.permute.xlu1 %2307  ;;  %5168 = vmatmul.mubr.f32.gmra.mxu1 %v1274_v16  ;;  %vm2365_vm7 = vcmp.eq.s32.totalorder %v6755_v60, %v2329_v38  ;;  %v2749_v20 = vadd.f32 %v2748_v53, %v2747_v29  ;;  %v2047_v35 = vadd.f32 %v2015_v18, %v10865_v19  ;;  %v2076_v2 = vsub.f32 %v10866_v43, %v2044_v36  ;;  %v10871_v38 = vld [vmem:[#allocation30_spill] sm:$0xff] }
 0x382   : > { %vm2358_vm12 = vcmp.eq.s32.totalorder %v6755_v60, %v2308_v42  ;;  %2504 = vadd.xlane.f32.xlu0 %v2452_v6  ;;  %2506 = vadd.xlane.f32.xlu1 %v2453_v32  ;;  %v4900_v27 = vsel %vm2365_vm7, 1.0, %v10651_v10  ;;  %v10867_v42 = vld [vmem:[#allocation151_spill] sm:$0xff]  ;;  %v2077_v39 = vsub.f32 %v10868_v37, %v2045_v0  ;;  %vm2367_vm15 = vcmp.eq.s32.totalorder %v6755_v60, %v2335_v31  ;;  %v8200_v31 = vld [vmem:[%s6127_s29] sm:$0xff]  ;;  %v8206_v43 = vld [vmem:[%s6127_s29 + $0x8] sm:$0xff] }
 0x383   : > { %v4893_v48 = vsel %vm2358_vm12, 1.0, %v10651_v10  ;;  %v2046_v16 = vadd.f32 %v2013_v45, %v10867_v42  ;;  %v4902_v23 = vsel %vm2367_vm15, 1.0, %v10651_v10  ;;  %v1207_v0 = vmul.f32 %v7803_v61, %v10876_v46 }
 0x384   : > { %v2454_v22 = vmul.f32 %v4893_v48, %v2070_v3  ;;  %v10862_v3 = vld [vmem:[#allocation123_spill] sm:$0xff]  ;;  %v2750_v48 = vrot.slane %v2749_v20, 2  ;;  %v2461_v29 = vmul.f32 %v4900_v27, %v2077_v39  ;;  %vm2682_vm2 = vcmask 0  }
 0x385   : > { %v2314_v47 = vpop.permute.xlu1 %2313  ;;  %v2075_v63 = vsub.f32 %v10862_v3, %v2043_v44  ;;  %v2078_v12 = vsub.f32 %v10870_v50, %v2046_v16  ;;  %v5936_v44 = vmov 1966171168   ;;  %v10879_v16 = vld [vmem:[#allocation101_spill] sm:$0xff]  ;;  %vm3384_vm13 = vcmask 64568  }
 0x386   : > { %vm2360_vm8 = vcmp.eq.s32.totalorder %v6755_v60, %v2314_v47  ;;  %2508 = vadd.xlane.f32.xlu0 %v2454_v22  ;;  %2510 = vadd.xlane.f32.xlu1 %v2455_v7  ;;  %v10869_v22 = vld [vmem:[#allocation127_spill] sm:$0xff]  ;;  %v2665_v30 = vunpack.c.l.s4 %v5936_v44  ;;  %v2751_v25 = vadd.f32 %v2750_v48, %v2749_v20  ;;  %v1210_v37 = vmul.f32 %v7803_v61, %v10879_v16  ;;  %v8228_v50 = vld [vmem:[%s6127_s29 + $0x20] sm:$0xff]  ;;  %v8253_v44 = vld [vmem:[%s6127_s29 + $0x48] sm:$0xff] }
 0x387   : > { %v4895_v8 = vsel %vm2360_vm8, 1.0, %v10651_v10  ;;  %v2459_v32 = vmul.f32 %v4898_v58, %v2075_v63  ;;  %v2079_v4 = vsub.f32 %v10869_v22, %v2047_v35  ;;  %v8222_v22 = vld [vmem:[%s6127_s29 + $0x18] sm:$0xff] }
 0x388   : > { %v2456_v56 = vmul.f32 %v4895_v8, %v2072_v41  ;;  %v2666_v28 = vunpack.c.0.s8 %v2665_v30  ;;  %v2752_v11 = vrot.slane %v2751_v25, 1  ;;  %v8258_v30 = vld [vmem:[%s6127_s29 + $0x50] sm:$0xff] }
 0x389   : > { %v2320_v24 = vpop.permute.xlu1 %2319  ;;  %v2463_v17 = vmul.f32 %v4902_v23, %v2079_v4  ;;  %v8238_v23 = vld [vmem:[%s6127_s29 + $0x30] sm:$0xff] }
 0x38a   : > { %vm2362_vm0 = vcmp.eq.s32.totalorder %v6755_v60, %v2320_v24  ;;  %2512 = vadd.xlane.f32.xlu0 %v2456_v56  ;;  %2514 = vadd.xlane.f32.xlu1 %v2457_v1  ;;  %v8178_v8 = vsub.s32 %v2666_v28, %v10871_v38  ;;  %v2753_v53 = vadd.f32 %v2752_v11, %v2751_v25  ;;  %v10873_v1 = vld [vmem:[#allocation89_spill] sm:$0xff]  ;;  %v10874_v56 = vld [vmem:[#allocation87_spill] sm:$0xff] }
 0x38b   : > { %v4897_v54 = vsel %vm2362_vm0, 1.0, %v10651_v10  ;;  %v1204_v18 = vmul.f32 %v7803_v61, %v10873_v1  ;;  %v1205_v52 = vmul.f32 %v7803_v61, %v10874_v56  ;;  %v10875_v24 = vld [vmem:[#allocation93_spill] sm:$0xff]  ;;  %v8263_v25 = vld [vmem:[%s6127_s29 + $0x58] sm:$0xff]  ;;  %v8278_v28 = vld [vmem:[%s6127_s29 + $0x70] sm:$0xff] }
 0x38c   : > { %v2458_v6 = vmul.f32 %v4897_v54, %v2074_v34  ;;  %10872 = vst [vmem:[#allocation128_spill] sm:$0xff] %v8178_v8  ;;  %v1206_v13 = vmul.f32 %v7803_v61, %v10875_v24  ;;  %v1246_v54 = vadd.f32 %v7839_v49, %v1207_v0  ;;  %v8283_v11 = vld [vmem:[%s6127_s29 + $0x78] sm:$0xff]  ;;  %v8288_v38 = vld [vmem:[%s6127_s29 + $0x80] sm:$0xff]  ;;  %v8340_v0 = vld [vmem:[%s6127_s29 + $0xd0] sm:$0xff] }
 0x38d   : > { %v2326_v40 = vpop.permute.xlu1 %2325  ;;  %v1243_v3 = vadd.f32 %v7839_v49, %v1204_v18  ;;  %v1244_v63 = vadd.f32 %v7839_v49, %v1205_v52  ;;  %v8303_v18 = vld [vmem:[%s6127_s29 + $0x98] sm:$0xff]  ;;  %v8308_v52 = vld [vmem:[%s6127_s29 + $0xa0] sm:$0xff] }
 0x38e   : > { %vm2364_vm6 = vcmp.eq.s32.totalorder %v6755_v60, %v2326_v40  ;;  %2516 = vadd.xlane.f32.xlu0 %v2458_v6  ;;  %2518 = vadd.xlane.f32.xlu1 %v2459_v32  ;;  %v1245_v45 = vadd.f32 %v7839_v49, %v1206_v13  ;;  %v10877_v32 = vld [vmem:[#allocation97_spill] sm:$0xff]  ;;  %v1278_v35 = vmax.f32 %v1246_v54, 0.0  ;;  %v10878_v6 = vld [vmem:[#allocation95_spill] sm:$0xff] }
 0x38f   : > { %v4899_v21 = vsel %vm2364_vm6, 1.0, %v10651_v10  ;;  %v1275_v58 = vmax.f32 %v1243_v3, 0.0  ;;  %v1276_v34 = vmax.f32 %v1244_v63, 0.0  ;;  %v1208_v19 = vmul.f32 %v7803_v61, %v10877_v32  ;;  %v8318_v3 = vld [vmem:[%s6127_s29 + $0xb0] sm:$0xff]  ;;  %v8323_v63 = vld [vmem:[%s6127_s29 + $0xb8] sm:$0xff]  ;;  %v8333_v13 = vld [vmem:[%s6127_s29 + $0xc8] sm:$0xff] }
 0x390   : > { %v2460_v7 = vmul.f32 %v4899_v21, %v2076_v2  ;;  %v1277_v20 = vmax.f32 %v1245_v45, 0.0  ;;  %v1209_v27 = vmul.f32 %v7803_v61, %v10878_v6  ;;  %v10880_v21 = vld [vmem:[#allocation99_spill] sm:$0xff] }
 0x391   : > { %v2332_v41 = vpop.permute.xlu1 %2331  ;;  %5170 = vmatprep.mubr.f32.mxu1 %v1275_v58  ;;  %v1247_v40 = vadd.f32 %v7839_v49, %v1208_v19  ;;  %v1211_v48 = vmul.f32 %v7803_v61, %v10880_v21  ;;  %v8328_v58 = vld [vmem:[%s6127_s29 + $0xc0] sm:$0xff]  ;;  %v8345_v45 = vld [vmem:[%s6127_s29 + $0xd8] sm:$0xff]  ;;  %v8357_v19 = vld [vmem:[%s6127_s29 + $0xe8] sm:$0xff] }
 0x392   : > { %vm2366_vm14 = vcmp.eq.s32.totalorder %v6755_v60, %v2332_v41  ;;  %2520 = vadd.xlane.f32.xlu0 %v2460_v7  ;;  %2522 = vadd.xlane.f32.xlu1 %v2461_v29  ;;  %v2761_v60 = vrot.slane %v2753_v53, %v8178_v8  ;;  %v1248_v2 = vadd.f32 %v7839_v49, %v1209_v27  ;;  %v8216_v29 = vld [vmem:[%s6127_s29 + $0x10] sm:$0xff]  ;;  %v8293_v53 = vld [vmem:[%s6127_s29 + $0x88] sm:$0xff] }
 0x393   : > { %v4901_v26 = vsel %vm2366_vm14, 1.0, %v10651_v10  ;;  %5171 = vmatmul.mubr.f32.gmra.mxu1 %v1276_v34  ;;  %v1279_v42 = vmax.f32 %v1247_v40, 0.0  ;;  %v1249_v7 = vadd.f32 %v7839_v49, %v1210_v37  ;;  %v1250_v61 = vadd.f32 %v7839_v49, %v1211_v48  ;;  %v8243_v49 = vld [vmem:[%s6127_s29 + $0x38] sm:$0xff]  ;;  %10882 = vst [vmem:[#allocation167_spill] sm:$0xff] %v8357_v19  ;;  %v8366_v40 = vld [vmem:[%s6127_s29 + $0xf0] sm:$0xff] }
 0x394   : > { %v2462_v47 = vmul.f32 %v4901_v26, %v2078_v12  ;;  %v2768_v36 = vrot.slane %v2761_v60, %v8178_v8  ;;  %5173 = vmatprep.mubr.f32.mxu1 %v1277_v20  ;;  %v1280_v39 = vmax.f32 %v1248_v2, 0.0  ;;  %v8233_v12 = vld [vmem:[%s6127_s29 + $0x28] sm:$0xff]  ;;  %v8248_v26 = vld [vmem:[%s6127_s29 + $0x40] sm:$0xff]  ;;  %v8298_v60 = vld [vmem:[%s6127_s29 + $0x90] sm:$0xff]  ;;  %10883 = vst [vmem:[#allocation129_spill] sm:$0xff] %v8366_v40 }
 0x395   : > { %v1281_v4 = vmax.f32 %v1249_v7, 0.0  ;;  %v1282_v41 = vmax.f32 %v1250_v61, 0.0  ;;  %v8352_v20 = vld [vmem:[%s6127_s29 + $0xe0] sm:$0xff]  ;;  %v8371_v2 = vld [vmem:[%s6127_s29 + $0xf8] sm:$0xff] }
 0x396   : > { %2524 = vadd.xlane.f32.xlu0 %v2462_v47  ;;  %2526 = vadd.xlane.f32.xlu1 %v2463_v17  ;;  %v8268_v47 = vld [vmem:[%s6127_s29 + $0x60] sm:$0xff]  ;;  %v8273_v17 = vld [vmem:[%s6127_s29 + $0x68] sm:$0xff]  ;;  %10881 = vst [vmem:[#allocation159_spill] sm:$0xff] %v8352_v20  ;;  %10884 = vst [vmem:[#allocation103_spill] sm:$0xff] %v8371_v2 }
 0x397   : > { %5174 = vmatmul.mubr.f32.gmra.mxu1 %v1278_v35 }
 0x398   : > { %5176 = vmatprep.mubr.f32.mxu1 %v1279_v42 }
 0x39b   : > { %5177 = vmatmul.mubr.f32.gmra.mxu1 %v1280_v39 }
 0x39c   : > { %5179 = vmatprep.mubr.f32.mxu1 %v1281_v4 }
 0x39f   : > { %5180 = vmatmul.mubr.f32.gmra.mxu1 %v1282_v41 }
 0x3a6   : > { %v8349_v54 = vpop.xlane.xlu0 %2466 }
 0x3a7   : > { %2769 = vrot.lane.b32.xlu1 %v2768_v36, %s5937_s13  ;;  %v8313_v36 = vld [vmem:[%s6127_s29 + $0xa8] sm:$0xff] }
 0x3aa   : > { %v8363_v27 = vpop.xlane.xlu0 %2468 }
 0x3ab   : > { %2934 = vrot.lane.b32.xlu1 %v8200_v31, %s5938_s0 }
 0x3ac   : > { %2936 = vrot.lane.b32.xlu0 %v8206_v43, %s5938_s0 }
 0x3af   : > { %2938 = vrot.lane.b32.xlu1 %v8216_v29, %s5938_s0 }
 0x3b0   : > { %2940 = vrot.lane.b32.xlu0 %v8222_v22, %s5938_s0 }
 0x3b2   : > { %v8375_v42 = vpop.xlane.xlu0 %2472 }
 0x3b3   : > { %2942 = vrot.lane.b32.xlu1 %v8228_v50, %s5938_s0 }
 0x3b4   : > { %2944 = vrot.lane.b32.xlu0 %v8233_v12, %s5938_s0 }
 0x3b7   : > { %2946 = vrot.lane.b32.xlu1 %v8238_v23, %s5938_s0 }
 0x3b8   : > { %2948 = vrot.lane.b32.xlu0 %v8243_v49, %s5938_s0 }
 0x3ba   : > { %v8379_v39 = vpop.xlane.xlu0 %2476 }
 0x3bb   : > { %2950 = vrot.lane.b32.xlu1 %v8248_v26, %s5938_s0 }
 0x3bc   : > { %2952 = vrot.lane.b32.xlu0 %v8253_v44, %s5938_s0 }
 0x3bf   : > { %2954 = vrot.lane.b32.xlu1 %v8258_v30, %s5938_s0 }
 0x3c0   : > { %2956 = vrot.lane.b32.xlu0 %v8263_v25, %s5938_s0 }
 0x3c2   : > { %v8337_v34 = vpop.xlane.xlu1 %2464 }
 0x3c3   : > { %2958 = vrot.lane.b32.xlu1 %v8268_v47, %s5938_s0 }
 0x3c4   : > { %2960 = vrot.lane.b32.xlu0 %v8273_v17, %s5938_s0 }
 0x3c6   : > { %v8361_v35 = vpop.xlane.xlu1 %2470 }
 0x3c7   : > { %2962 = vrot.lane.b32.xlu1 %v8278_v28, %s5938_s0 }
 0x3c8   : > { %2964 = vrot.lane.b32.xlu0 %v8283_v11, %s5938_s0 }
 0x3ca   : > { %v8377_v37 = vpop.xlane.xlu1 %2474 }
 0x3cb   : > { %2966 = vrot.lane.b32.xlu1 %v8288_v38, %s5938_s0 }
 0x3cc   : > { %2968 = vrot.lane.b32.xlu0 %v8293_v53, %s5938_s0 }
 0x3cf   : > { %2970 = vrot.lane.b32.xlu1 %v8298_v60, %s5938_s0 }
 0x3d0   : > { %2972 = vrot.lane.b32.xlu0 %v8303_v18, %s5938_s0 }
 0x3d3   : > { %2974 = vrot.lane.b32.xlu1 %v8308_v52, %s5938_s0 }
 0x3d4   : > { %2976 = vrot.lane.b32.xlu0 %v8313_v36, %s5938_s0 }
 0x3d7   : > { %2978 = vrot.lane.b32.xlu1 %v8318_v3, %s5938_s0 }
 0x3d8   : > { %2980 = vrot.lane.b32.xlu0 %v8323_v63, %s5938_s0 }
 0x3db   : > { %2982 = vrot.lane.b32.xlu1 %v8328_v58, %s5938_s0 }
 0x3dc   : > { %2984 = vrot.lane.b32.xlu0 %v8333_v13, %s5938_s0 }
 0x3df   : > { %2986 = vrot.lane.b32.xlu1 %v8340_v0, %s5938_s0 }
 0x3e0   : > { %2988 = vrot.lane.b32.xlu0 %v8345_v45, %s5938_s0 }
 0x3e3   : > { %2990 = vrot.lane.b32.xlu1 %v8352_v20, %s5938_s0 }
 0x3e4   : > { %2992 = vrot.lane.b32.xlu0 %v8357_v19, %s5938_s0 }
 0x3e7   : > { %2994 = vrot.lane.b32.xlu1 %v8366_v40, %s5938_s0 }
 0x3e8   : > { %2996 = vrot.lane.b32.xlu0 %v8371_v2, %s5938_s0 }
 0x3ef   : > { %v8381_v48 = vpop.xlane.xlu1 %2478 }
 0x3f3   : > { %v8383_v7 = vpop.xlane.xlu1 %2482  ;;  %v8385_v61 = vpop.xlane.xlu0 %2480 }
 0x3f4   : > { %10885 = vst [vmem:[#allocation130_spill] sm:$0xff] %v8383_v7  ;;  %v10911_v7 = vld [vmem:[#allocation74_spill] sm:$0xff] }
 0x3f7   : > { %v8387_v4 = vpop.xlane.xlu1 %2486  ;;  %v8389_v41 = vpop.xlane.xlu0 %2484 }
 0x3f8   : > { %10886 = vst [vmem:[#allocation162_spill] sm:$0xff] %v8387_v4  ;;  %10887 = vst [vmem:[#allocation104_spill] sm:$0xff] %v8389_v41 }
 0x3fb   : > { %v8391_v10 = vpop.xlane.xlu1 %2490  ;;  %v8393_v8 = vpop.xlane.xlu0 %2488 }
 0x3fc   : > { %10888 = vst [vmem:[#allocation131_spill] sm:$0xff] %v8391_v10  ;;  %10889 = vst [vmem:[#allocation132_spill] sm:$0xff] %v8393_v8 }
 0x3ff   : > { %v8395_v16 = vpop.xlane.xlu1 %2494  ;;  %v8397_v21 = vpop.xlane.xlu0 %2492 }
 0x400   : > { %10890 = vst [vmem:[#allocation105_spill] sm:$0xff] %v8395_v16  ;;  %10891 = vst [vmem:[#allocation133_spill] sm:$0xff] %v8397_v21 }
 0x403   : > { %v8399_v32 = vpop.xlane.xlu1 %2498  ;;  %v8401_v6 = vpop.xlane.xlu0 %2496 }
 0x404   : > { %10892 = vst [vmem:[#allocation134_spill] sm:$0xff] %v8399_v32  ;;  %10893 = vst [vmem:[#allocation135_spill] sm:$0xff] %v8401_v6  ;;  %v8422_v32 = vld [vmem:[%s10126_s8] ss:$0 sm:$0xff] }
 0x405   : > { %v10997_v6 = vld [vmem:[#allocation188_spill] sm:$0xff] }
 0x407   : > { %v8403_v24 = vpop.xlane.xlu1 %2502  ;;  %v8405_v46 = vpop.xlane.xlu0 %2500 }
 0x408   : > { %10894 = vst [vmem:[#allocation164_spill] sm:$0xff] %v8403_v24  ;;  %10895 = vst [vmem:[#allocation107_spill] sm:$0xff] %v8405_v46 }
 0x40b   : > { %v8407_v1 = vpop.xlane.xlu1 %2506  ;;  %v8409_v4 = vpop.xlane.xlu0 %2504 }
 0x40c   : > { %10896 = vst [vmem:[#allocation106_spill] sm:$0xff] %v8407_v1  ;;  %10897 = vst [vmem:[#allocation109_spill] sm:$0xff] %v8409_v4  ;;  %v10904_v4 = vld [vmem:[#allocation70_spill] sm:$0xff] }
 0x40e   : > { %v5136_v1 = vpop.f32.mrf.mxu0 }
 0x40f   : > { %v8411_v56 = vpop.xlane.xlu1 %2510  ;;  %v8413_v10 = vpop.xlane.xlu0 %2508 }
 0x410   : > { %10898 = vst [vmem:[#allocation108_spill] sm:$0xff] %v8411_v56  ;;  %10899 = vst [vmem:[#allocation110_spill] sm:$0xff] %v8413_v10  ;;  %v1537_v56 = vsel %vm6759_vm9, %v10904_v4, 0.0  ;;  %v1372_v10 = vpop.f32.mrf.mxu0 }
 0x412   : > { %v5139_v4 = vpop.f32.mrf.mxu0 }
 0x413   : > { %v8415_v8 = vpop.xlane.xlu1 %2514  ;;  %v8417_v16 = vpop.xlane.xlu0 %2512 }
 0x414   : > { %10900 = vst [vmem:[#allocation136_spill] sm:$0xff] %v8415_v8  ;;  %10901 = vst [vmem:[#allocation137_spill] sm:$0xff] %v8417_v16  ;;  %v8432_v8 = vadd.f32 %v5136_v1, %v8422_v32  ;;  %v10907_v16 = vld [vmem:[#allocation72_spill] sm:$0xff]  ;;  %v1539_v1 = vsel %vm6759_vm9, %v10911_v7, 0.0 }
 0x415   : > { %v1536_v21 = vsel %vm6759_vm9, %v10907_v16, 0.0  ;;  %v8451_v16 = vadd.f32 %v5139_v4, %v8422_v32  ;;  %v2684_v7 = vld [vmem:[#allocation5] sm:$0x1] }
 0x416   : > { %10906 = vst [vmem:[#allocation138_spill] sm:$0xff] %v8432_v8 }
 0x417   : > { %v8424_v24 = vpop.xlane.xlu1 %2518  ;;  %v8426_v46 = vpop.xlane.xlu0 %2516  ;;  %10912 = vst [vmem:[#allocation140_spill] sm:$0xff] %v8451_v16 }
 0x418   : > { %10902 = vst [vmem:[#allocation168_spill] sm:$0xff] %v8424_v24  ;;  %10903 = vst [vmem:[#allocation111_spill] sm:$0xff] %v8426_v46  ;;  %v1569_v24 = vadd.f32 %v1537_v56, %v8432_v8  ;;  %v8443_v46 = vadd.f32 %v8422_v32, %v1372_v10  ;;  %v1571_v10 = vadd.f32 %v1539_v1, %v8451_v16  ;;  %v10916_v8 = vld [vmem:[#allocation76_spill] sm:$0xff] }
 0x41a   : > { %10910 = vst [vmem:[#allocation113_spill] sm:$0xff] %v8443_v46  ;;  %1601 = vst [vmem:[%s6644_s18 + $0x8] sm:$0xff] %v1569_v24  ;;  %v1568_v2 = vadd.f32 %v1536_v21, %v8443_v46  ;;  %v1538_v24 = vsel %vm6759_vm9, %v10916_v8, 0.0 }
 0x41b   : > { %v8437_v40 = vpop.xlane.xlu1 %2522  ;;  %v8439_v41 = vpop.xlane.xlu0 %2520  ;;  %1603 = vst [vmem:[%s6644_s18 + $0x18] sm:$0xff] %v1571_v10  ;;  %v10919_v10 = vld [vmem:[#allocation80_spill] sm:$0xff] }
 0x41c   : > { %10908 = vst [vmem:[#allocation139_spill] sm:$0xff] %v8437_v40  ;;  %10909 = vst [vmem:[#allocation112_spill] sm:$0xff] %v8439_v41  ;;  %v1382_v40 = vpop.f32.mrf.mxu0 }
 0x41d   : > { %1600 = vst [vmem:[%s6644_s18] sm:$0xff] %v1568_v2  ;;  %v8460_v41 = vadd.f32 %v8422_v32, %v1382_v40 }
 0x41e   : > { %v5142_v21 = vpop.f32.mrf.mxu0 }
 0x41f   : > { %v8453_v20 = vpop.xlane.xlu1 %2526  ;;  %v8455_v56 = vpop.xlane.xlu0 %2524  ;;  %10915 = vst [vmem:[#allocation141_spill] sm:$0xff] %v8460_v41  ;;  %v1570_v4 = vadd.f32 %v1538_v24, %v8460_v41  ;;  %v1540_v24 = vsel %vm6759_vm9, %v10919_v10, 0.0  ;;  %v10922_v10 = vld [vmem:[#allocation84_spill] sm:$0xff] }
 0x420   : > { %10913 = vst [vmem:[#allocation172_spill] sm:$0xff] %v8453_v20  ;;  %10914 = vst [vmem:[#allocation114_spill] sm:$0xff] %v8455_v56  ;;  %v8468_v20 = vadd.f32 %v5142_v21, %v8422_v32  ;;  %v10918_v56 = vld [vmem:[#allocation78_spill] sm:$0xff]  ;;  %v1392_v1 = vpop.f32.mrf.mxu0 }
 0x421   : > { %v1541_v2 = vsel %vm6759_vm9, %v10918_v56, 0.0  ;;  %1602 = vst [vmem:[%s6644_s18 + $0x10] sm:$0xff] %v1570_v4  ;;  %v8476_v46 = vadd.f32 %v8422_v32, %v1392_v1 }
 0x422   : > { %10917 = vst [vmem:[#allocation115_spill] sm:$0xff] %v8468_v20  ;;  %v1573_v8 = vadd.f32 %v1541_v2, %v8468_v20  ;;  %v5145_v56 = vpop.f32.mrf.mxu0  ;;  %v10921_v2 = vld [vmem:[#allocation82_spill] sm:$0xff] }
 0x423   : > { %v2770_v40 = vpop.permute.xlu1 %2769  ;;  %v2937_v16 = vpop.permute.xlu0 %2936  ;;  %v1572_v19 = vadd.f32 %v1540_v24, %v8476_v46  ;;  %v8487_v4 = vadd.f32 %v5145_v56, %v8422_v32  ;;  %v1543_v1 = vsel %vm6759_vm9, %v10921_v2, 0.0  ;;  %v1542_v24 = vsel %vm6759_vm9, %v10922_v10, 0.0 }
 0x424   : > { %v2772_v21 = vadd.f32 %v2770_v40, %v2684_v7  ;;  %v8482_v41 = vsub.f32 %v8206_v43, %v2937_v16  ;;  %1605 = vst [vmem:[%s6644_s18 + $0x28] sm:$0xff] %v1573_v8  ;;  %v1402_v43 = vpop.f32.mrf.mxu0 }
 0x425   : > { %1604 = vst [vmem:[%s6644_s18 + $0x20] sm:$0xff] %v1572_v19  ;;  %v1575_v40 = vadd.f32 %v1543_v1, %v8487_v4  ;;  %v8498_v8 = vadd.f32 %v8422_v32, %v1402_v43 }
 0x426   : > { %10920 = vst [vmem:[#allocation116_spill] sm:$0xff] %v8482_v41  ;;  %2773 = vst.msk [vmem:[#allocation5] sm:$0x1] %vm2682_vm2, %v2772_v21  ;;  %3096 = vrot.lane.b32.xlu0 %v8482_v41, %s5939_s20  ;;  %v5148_v2 = vpop.f32.mrf.mxu0  ;;  %v10925_v41 = vld [vmem:[#allocation86_spill] sm:$0xff] }
 0x427   : > { %v2935_v16 = vpop.permute.xlu1 %2934  ;;  %v2941_v7 = vpop.permute.xlu0 %2940  ;;  %v1545_v19 = vsel %vm6759_vm9, %v10925_v41, 0.0  ;;  %1607 = vst [vmem:[%s6644_s18 + $0x38] sm:$0xff] %v1575_v40  ;;  %v1574_v1 = vadd.f32 %v1542_v24, %v8498_v8  ;;  %v8515_v43 = vadd.f32 %v5148_v2, %v8422_v32  ;;  %v10926_v40 = vld [vmem:[#allocation88_spill] sm:$0xff] }
 0x428   : > { %v8504_v21 = vsub.f32 %v8200_v31, %v2935_v16  ;;  %v8507_v56 = vsub.f32 %v8222_v22, %v2941_v7  ;;  %v1412_v31 = vpop.f32.mrf.mxu0  ;;  %v1544_v10 = vsel %vm6759_vm9, %v10926_v40, 0.0 }
 0x429   : > { %1606 = vst [vmem:[%s6644_s18 + $0x30] sm:$0xff] %v1574_v1  ;;  %v1577_v41 = vadd.f32 %v1545_v19, %v8515_v43  ;;  %v8524_v7 = vadd.f32 %v8422_v32, %v1412_v31 }
 0x42a   : > { %10923 = vst [vmem:[#allocation142_spill] sm:$0xff] %v8504_v21  ;;  %10924 = vst [vmem:[#allocation174_spill] sm:$0xff] %v8507_v56  ;;  %3094 = vrot.lane.b32.xlu1 %v8504_v21, %s5939_s20  ;;  %3100 = vrot.lane.b32.xlu0 %v8507_v56, %s5939_s20  ;;  %v5151_v56 = vpop.f32.mrf.mxu0  ;;  %v10929_v21 = vld [vmem:[#allocation90_spill] sm:$0xff] }
 0x42b   : > { %v2939_v22 = vpop.permute.xlu1 %2938  ;;  %v2945_v16 = vpop.permute.xlu0 %2944  ;;  %v1547_v1 = vsel %vm6759_vm9, %v10929_v21, 0.0  ;;  %1609 = vst [vmem:[%s6644_s18 + $0x48] sm:$0xff] %v1577_v41  ;;  %v1576_v19 = vadd.f32 %v1544_v10, %v8524_v7  ;;  %v8541_v31 = vadd.f32 %v5151_v56, %v8422_v32  ;;  %v10930_v41 = vld [vmem:[#allocation92_spill] sm:$0xff] }
 0x42c   : > { %v8530_v24 = vsub.f32 %v8216_v29, %v2939_v22  ;;  %v8533_v2 = vsub.f32 %v8233_v12, %v2945_v16  ;;  %v1422_v29 = vpop.f32.mrf.mxu0  ;;  %v1546_v56 = vsel %vm6759_vm9, %v10930_v41, 0.0 }
 0x42d   : > { %1608 = vst [vmem:[%s6644_s18 + $0x40] sm:$0xff] %v1576_v19  ;;  %v1579_v21 = vadd.f32 %v1547_v1, %v8541_v31  ;;  %v8550_v16 = vadd.f32 %v8422_v32, %v1422_v29 }
 0x42e   : > { %10927 = vst [vmem:[#allocation143_spill] sm:$0xff] %v8530_v24  ;;  %10928 = vst [vmem:[#allocation117_spill] sm:$0xff] %v8533_v2  ;;  %3098 = vrot.lane.b32.xlu1 %v8530_v24, %s5939_s20  ;;  %3104 = vrot.lane.b32.xlu0 %v8533_v2, %s5939_s20  ;;  %v5154_v2 = vpop.f32.mrf.mxu0  ;;  %v10932_v24 = vld [vmem:[#allocation94_spill] sm:$0xff] }
 0x42f   : > { %v2943_v12 = vpop.permute.xlu1 %2942  ;;  %v2949_v22 = vpop.permute.xlu0 %2948  ;;  %v1549_v19 = vsel %vm6759_vm9, %v10932_v24, 0.0  ;;  %1611 = vst [vmem:[%s6644_s18 + $0x58] sm:$0xff] %v1579_v21  ;;  %v1578_v1 = vadd.f32 %v1546_v56, %v8550_v16  ;;  %v8567_v29 = vadd.f32 %v5154_v2, %v8422_v32  ;;  %v10933_v21 = vld [vmem:[#allocation96_spill] sm:$0xff] }
 0x430   : > { %v8556_v40 = vsub.f32 %v8228_v50, %v2943_v12  ;;  %v8559_v10 = vsub.f32 %v8243_v49, %v2949_v22  ;;  %v1432_v50 = vpop.f32.mrf.mxu0  ;;  %v1548_v2 = vsel %vm6759_vm9, %v10933_v21, 0.0 }
 0x431   : > { %1610 = vst [vmem:[%s6644_s18 + $0x50] sm:$0xff] %v1578_v1  ;;  %v1581_v24 = vadd.f32 %v1549_v19, %v8567_v29  ;;  %v8576_v22 = vadd.f32 %v8422_v32, %v1432_v50  ;;  %v1551_v1 = vsel %vm6759_vm9, %v10833_v14, 0.0 }
 0x432   : > { %10931 = vst [vmem:[#allocation144_spill] sm:$0xff] %v8559_v10  ;;  %3102 = vrot.lane.b32.xlu1 %v8556_v40, %s5939_s20  ;;  %3108 = vrot.lane.b32.xlu0 %v8559_v10, %s5939_s20  ;;  %v5157_v10 = vpop.f32.mrf.mxu0 }
 0x433   : > { %v2947_v49 = vpop.permute.xlu1 %2946  ;;  %v2953_v12 = vpop.permute.xlu0 %2952  ;;  %1613 = vst [vmem:[%s6644_s18 + $0x68] sm:$0xff] %v1581_v24  ;;  %v1580_v19 = vadd.f32 %v1548_v2, %v8576_v22  ;;  %v8593_v50 = vadd.f32 %v5157_v10, %v8422_v32  ;;  %v1550_v10 = vsel %vm6759_vm9, %v10832_v62, 0.0 }
 0x434   : > { %v8582_v41 = vsub.f32 %v8238_v23, %v2947_v49  ;;  %v8585_v56 = vsub.f32 %v8253_v44, %v2953_v12  ;;  %v1442_v23 = vpop.f32.mrf.mxu0 }
 0x435   : > { %1612 = vst [vmem:[%s6644_s18 + $0x60] sm:$0xff] %v1580_v19  ;;  %v1583_v14 = vadd.f32 %v1551_v1, %v8593_v50  ;;  %v8602_v12 = vadd.f32 %v8422_v32, %v1442_v23  ;;  %v5160_v2 = vpop.f32.mrf.mxu1  ;;  %v1553_v19 = vsel %vm6759_vm9, %v10839_v15, 0.0 }
 0x436   : > { %3106 = vrot.lane.b32.xlu1 %v8582_v41, %s5939_s20  ;;  %3112 = vrot.lane.b32.xlu0 %v8585_v56, %s5939_s20  ;;  %v8619_v23 = vadd.f32 %v5160_v2, %v8422_v32 }
 0x437   : > { %v2951_v44 = vpop.permute.xlu1 %2950  ;;  %v2957_v49 = vpop.permute.xlu0 %2956  ;;  %1615 = vst [vmem:[%s6644_s18 + $0x78] sm:$0xff] %v1583_v14  ;;  %v1582_v1 = vadd.f32 %v1550_v10, %v8602_v12 }
 0x438   : > { %v8608_v24 = vsub.f32 %v8248_v26, %v2951_v44  ;;  %v8611_v21 = vsub.f32 %v8263_v25, %v2957_v49  ;;  %v1452_v62 = vpop.f32.mrf.mxu1  ;;  %v1585_v15 = vadd.f32 %v1553_v19, %v8619_v23  ;;  %v1552_v49 = vsel %vm6759_vm9, %v10837_v33, 0.0 }
 0x439   : > { %1614 = vst [vmem:[%s6644_s18 + $0x70] sm:$0xff] %v1582_v1  ;;  %v8628_v44 = vadd.f32 %v8422_v32, %v1452_v62  ;;  %v1555_v1 = vsel %vm6759_vm9, %v10846_v9, 0.0 }
 0x43a   : > { %3110 = vrot.lane.b32.xlu1 %v8608_v24, %s5939_s20  ;;  %3116 = vrot.lane.b32.xlu0 %v8611_v21, %s5939_s20  ;;  %v5163_v2 = vpop.f32.mrf.mxu1  ;;  %1617 = vst [vmem:[%s6644_s18 + $0x88] sm:$0xff] %v1585_v15 }
 0x43b   : > { %v2955_v26 = vpop.permute.xlu1 %2954  ;;  %v2961_v25 = vpop.permute.xlu0 %2960  ;;  %v1584_v19 = vadd.f32 %v1552_v49, %v8628_v44  ;;  %v8645_v62 = vadd.f32 %v5163_v2, %v8422_v32 }
 0x43c   : > { %v8634_v14 = vsub.f32 %v8258_v30, %v2955_v26  ;;  %v8637_v10 = vsub.f32 %v8273_v17, %v2961_v25  ;;  %v1462_v33 = vpop.f32.mrf.mxu1  ;;  %v1554_v25 = vsel %vm6759_vm9, %v10844_v5, 0.0 }
 0x43d   : > { %1616 = vst [vmem:[%s6644_s18 + $0x80] sm:$0xff] %v1584_v19  ;;  %v1587_v26 = vadd.f32 %v1555_v1, %v8645_v62  ;;  %v8654_v9 = vadd.f32 %v8422_v32, %v1462_v33  ;;  %v1557_v19 = vsel %vm6759_vm9, %v10849_v55, 0.0 }
 0x43e   : > { %3114 = vrot.lane.b32.xlu1 %v8634_v14, %s5939_s20  ;;  %3120 = vrot.lane.b32.xlu0 %v8637_v10, %s5939_s20  ;;  %v5166_v2 = vpop.f32.mrf.mxu1 }
 0x43f   : > { %v2959_v30 = vpop.permute.xlu1 %2958  ;;  %v2965_v17 = vpop.permute.xlu0 %2964  ;;  %1619 = vst [vmem:[%s6644_s18 + $0x98] sm:$0xff] %v1587_v26  ;;  %v1586_v1 = vadd.f32 %v1554_v25, %v8654_v9  ;;  %v8671_v33 = vadd.f32 %v5166_v2, %v8422_v32  ;;  %v1556_v26 = vsel %vm6759_vm9, %v10847_v59, 0.0 }
 0x440   : > { %v8660_v15 = vsub.f32 %v8268_v47, %v2959_v30  ;;  %v8663_v49 = vsub.f32 %v8283_v11, %v2965_v17  ;;  %v1472_v5 = vpop.f32.mrf.mxu1  ;;  %v2529_v47 = vsub.f32 0.0, %v8337_v34 }
 0x441   : > { %10935 = vst [vmem:[#allocation145_spill] sm:$0xff] %v8671_v33  ;;  %1618 = vst [vmem:[%s6644_s18 + $0x90] sm:$0xff] %v1586_v1  ;;  %v1589_v55 = vadd.f32 %v1557_v19, %v8671_v33  ;;  %v8681_v17 = vadd.f32 %v8422_v32, %v1472_v5  ;;  %v1559_v1 = vsel %vm6759_vm9, %v10853_v57, 0.0  ;;  %v2530_v19 = vsub.f32 0.0, %v8349_v54 }
 0x442   : > { %10934 = vst [vmem:[#allocation118_spill] sm:$0xff] %v8663_v49  ;;  %3118 = vrot.lane.b32.xlu1 %v8660_v15, %s5939_s20  ;;  %3124 = vrot.lane.b32.xlu0 %v8663_v49, %s5939_s20  ;;  %v5169_v34 = vpop.f32.mrf.mxu1 }
 0x443   : > { %v2963_v11 = vpop.permute.xlu1 %2962  ;;  %v2969_v30 = vpop.permute.xlu0 %2968  ;;  %1621 = vst [vmem:[%s6644_s18 + $0xa8] sm:$0xff] %v1589_v55  ;;  %v1588_v5 = vadd.f32 %v1556_v26, %v8681_v17  ;;  %v8699_v49 = vadd.f32 %v5169_v34, %v8422_v32  ;;  %v1558_v55 = vsel %vm6759_vm9, %v10851_v51, 0.0 }
 0x444   : > { %v8687_v25 = vsub.f32 %v8278_v28, %v2963_v11  ;;  %v8690_v2 = vsub.f32 %v8293_v53, %v2969_v30  ;;  %v1482_v59 = vpop.f32.mrf.mxu1  ;;  %v10937_v28 = vld [vmem:[#allocation165_spill] sm:$0xff] }
 0x445   : > { %10936 = vst [vmem:[#allocation119_spill] sm:$0xff] %v8699_v49  ;;  %v2561_v53 = vmul.f32 %v10937_v28, %v2529_v47  ;;  %1620 = vst [vmem:[%s6644_s18 + $0xa0] sm:$0xff] %v1588_v5  ;;  %v1591_v54 = vadd.f32 %v1559_v1, %v8699_v49  ;;  %v8709_v30 = vadd.f32 %v8422_v32, %v1482_v59  ;;  %v10938_v47 = vld [vmem:[#allocation166_spill] sm:$0xff]  ;;  %v2531_v5 = vsub.f32 0.0, %v8363_v27 }
 0x446   : > { %3122 = vrot.lane.b32.xlu1 %v8687_v25, %s5939_s20  ;;  %3128 = vrot.lane.b32.xlu0 %v8690_v2, %s5939_s20  ;;  %v2562_v28 = vmul.f32 %v10938_v47, %v2530_v19 }
 0x447   : > { %v2967_v11 = vpop.permute.xlu1 %2966  ;;  %v2973_v57 = vpop.permute.xlu0 %2972  ;;  %1623 = vst [vmem:[%s6644_s18 + $0xb8] sm:$0xff] %v1591_v54  ;;  %v1590_v1 = vadd.f32 %v1558_v55, %v8709_v30  ;;  %v2594_v51 = vsel %vm2593_vm5, %v2561_v53, 0.0 }
 0x448   : > { %v8715_v26 = vsub.f32 %v8288_v38, %v2967_v11  ;;  %v8718_v34 = vsub.f32 %v8303_v18, %v2973_v57  ;;  %v2532_v38 = vsub.f32 0.0, %v8361_v35  ;;  %v2595_v11 = vsel %vm2593_vm5, %v2562_v28, 0.0  ;;  %v10940_v57 = vld [vmem:[#allocation169_spill] sm:$0xff]  ;;  %v10941_v35 = vld [vmem:[#allocation170_spill] sm:$0xff] }
 0x449   : > { %1622 = vst [vmem:[%s6644_s18 + $0xb0] sm:$0xff] %v1590_v1  ;;  %v2563_v54 = vmul.f32 %v10940_v57, %v2531_v5  ;;  %v2596_v55 = vadd.f32 %v2595_v11, %v2594_v51  ;;  %v2533_v5 = vsub.f32 0.0, %v8375_v42  ;;  %v10943_v42 = vld [vmem:[#allocation171_spill] sm:$0xff] }
 0x44a   : > { %3126 = vrot.lane.b32.xlu1 %v8715_v26, %s5939_s20  ;;  %3132 = vrot.lane.b32.xlu0 %v8718_v34, %s5939_s20  ;;  %v2564_v53 = vmul.f32 %v10941_v35, %v2532_v38 }
 0x44b   : > { %v2971_v59 = vpop.permute.xlu1 %2970  ;;  %v2977_v18 = vpop.permute.xlu0 %2976  ;;  %v2597_v28 = vsel %vm2593_vm5, %v2563_v54, 0.0  ;;  %v2565_v57 = vmul.f32 %v10943_v42, %v2533_v5  ;;  %v10950_v42 = vld [vmem:[#allocation176_spill] sm:$0xff] }
 0x44c   : > { %v8732_v19 = vsub.f32 %v8298_v60, %v2971_v59  ;;  %v8735_v27 = vsub.f32 %v8313_v36, %v2977_v18  ;;  %v2598_v51 = vadd.f32 %v2597_v28, %v2596_v55  ;;  %v2599_v38 = vsel %vm2593_vm5, %v2564_v53, 0.0  ;;  %v10944_v55 = vld [vmem:[#allocation173_spill] sm:$0xff] }
 0x44d   : > { %v2534_v59 = vsub.f32 0.0, %v8377_v37  ;;  %v2536_v28 = vsub.f32 0.0, %v8381_v48  ;;  %v10949_v48 = vld [vmem:[#allocation175_spill] sm:$0xff] }
 0x44e   : > { %10939 = vst [vmem:[#allocation146_spill] sm:$0xff] %v8735_v27  ;;  %3130 = vrot.lane.b32.xlu1 %v8732_v19, %s5939_s20  ;;  %3136 = vrot.lane.b32.xlu0 %v8735_v27, %s5939_s20  ;;  %v2600_v54 = vadd.f32 %v2599_v38, %v2598_v51 }
 0x44f   : > { %v2975_v47 = vpop.permute.xlu1 %2974  ;;  %v2981_v1 = vpop.permute.xlu0 %2980  ;;  %v2566_v35 = vmul.f32 %v10944_v55, %v2534_v59 }
 0x450   : > { %v8745_v60 = vsub.f32 %v8308_v52, %v2975_v47  ;;  %v8748_v36 = vsub.f32 %v8323_v63, %v2981_v1  ;;  %v2535_v1 = vsub.f32 0.0, %v8379_v39 }
 0x451   : > { %v2603_v51 = vsel %vm2593_vm5, %v2566_v35, 0.0 }
 0x452   : > { %3134 = vrot.lane.b32.xlu1 %v8745_v60, %s5939_s20  ;;  %3140 = vrot.lane.b32.xlu0 %v8748_v36, %s5939_s20 }
 0x453   : > { %v2979_v52 = vpop.permute.xlu1 %2978  ;;  %v2985_v18 = vpop.permute.xlu0 %2984 }
 0x454   : > { %v8759_v63 = vsub.f32 %v8318_v3, %v2979_v52  ;;  %v8762_v11 = vsub.f32 %v8333_v13, %v2985_v18  ;;  %v2601_v13 = vsel %vm2593_vm5, %v2565_v57, 0.0  ;;  %v10947_v52 = vld [vmem:[#allocation167_spill] sm:$0xff]  ;;  %v2567_v18 = vmul.f32 %v10949_v48, %v2535_v1 }
 0x455   : > { %v2602_v5 = vadd.f32 %v2601_v13, %v2600_v54  ;;  %v2568_v57 = vmul.f32 %v10950_v42, %v2536_v28  ;;  %v10954_v13 = vld [vmem:[#allocation103_spill] sm:$0xff] }
 0x456   : > { %10942 = vst [vmem:[#allocation120_spill] sm:$0xff] %v8762_v11  ;;  %3138 = vrot.lane.b32.xlu1 %v8759_v63, %s5939_s20  ;;  %3144 = vrot.lane.b32.xlu0 %v8762_v11, %s5939_s20  ;;  %v2605_v1 = vsel %vm2593_vm5, %v2567_v18, 0.0  ;;  %v10960_v18 = vld [vmem:[#allocation178_spill] sm:$0xff]  ;;  %v10987_v11 = vld [vmem:[#allocation185_spill] sm:$0xff] }
 0x457   : > { %v2983_v37 = vpop.permute.xlu1 %2982  ;;  %v2989_v53 = vpop.permute.xlu0 %2988  ;;  %v2604_v54 = vadd.f32 %v2603_v51, %v2602_v5  ;;  %v2607_v28 = vsel %vm2593_vm5, %v2568_v57, 0.0  ;;  %v10956_v5 = vld [vmem:[#allocation130_spill] sm:$0xff] }
 0x458   : > { %v8771_v47 = vsub.f32 %v8328_v58, %v2983_v37  ;;  %v8774_v3 = vsub.f32 %v8345_v45, %v2989_v53  ;;  %v2537_v58 = vsub.f32 0.0, %v8385_v61  ;;  %v10951_v61 = vld [vmem:[#allocation177_spill] sm:$0xff]  ;;  %v2538_v51 = vsub.f32 0.0, %v10956_v5  ;;  %v10962_v5 = vld [vmem:[#allocation87_spill] sm:$0xff] }
 0x45a   : > { %10945 = vst [vmem:[#allocation147_spill] sm:$0xff] %v8774_v3  ;;  %3142 = vrot.lane.b32.xlu1 %v8771_v47, %s5939_s20  ;;  %3148 = vrot.lane.b32.xlu0 %v8774_v3, %s5939_s20  ;;  %v2569_v55 = vmul.f32 %v10951_v61, %v2537_v58  ;;  %v2570_v57 = vmul.f32 %v10960_v18, %v2538_v51  ;;  %v10966_v18 = vld [vmem:[#allocation132_spill] sm:$0xff] }
 0x45b   : > { %v2987_v38 = vpop.permute.xlu1 %2986  ;;  %v2993_v45 = vpop.permute.xlu0 %2992 }
 0x45c   : > { %v8786_v59 = vsub.f32 %v8340_v0, %v2987_v38  ;;  %v8789_v39 = vsub.f32 %v10947_v52, %v2993_v45  ;;  %v10952_v0 = vld [vmem:[#allocation159_spill] sm:$0xff]  ;;  %v2606_v45 = vadd.f32 %v2605_v1, %v2604_v54  ;;  %v2609_v58 = vsel %vm2593_vm5, %v2569_v55, 0.0  ;;  %v10957_v52 = vld [vmem:[#allocation104_spill] sm:$0xff]  ;;  %v5172_v1 = vpop.f32.mrf.mxu1 }
 0x45d   : > { %v2539_v48 = vsub.f32 0.0, %v10957_v52  ;;  %v10961_v54 = vld [vmem:[#allocation179_spill] sm:$0xff]  ;;  %v1561_v55 = vsel %vm6759_vm9, %v10962_v5, 0.0  ;;  %v2611_v52 = vsel %vm2593_vm5, %v2570_v57, 0.0 }
 0x45e   : > { %10946 = vst [vmem:[#allocation148_spill] sm:$0xff] %v8786_v59  ;;  %10948 = vst [vmem:[#allocation121_spill] sm:$0xff] %v8789_v39  ;;  %3146 = vrot.lane.b32.xlu1 %v8786_v59, %s5939_s20  ;;  %3152 = vrot.lane.b32.xlu0 %v8789_v39, %s5939_s20  ;;  %v2608_v61 = vadd.f32 %v2607_v28, %v2606_v45  ;;  %v10963_v28 = vld [vmem:[#allocation162_spill] sm:$0xff] }
 0x45f   : > { %v2991_v35 = vpop.permute.xlu1 %2990  ;;  %v2997_v37 = vpop.permute.xlu0 %2996  ;;  %v2540_v45 = vsub.f32 0.0, %v10963_v28 }
 0x460   : > { %v8799_v53 = vsub.f32 %v10952_v0, %v2991_v35  ;;  %v8802_v38 = vsub.f32 %v10954_v13, %v2997_v37  ;;  %v10958_v35 = vld [vmem:[#allocation129_spill] sm:$0xff]  ;;  %v2610_v0 = vadd.f32 %v2609_v58, %v2608_v61  ;;  %v2571_v13 = vmul.f32 %v10961_v54, %v2539_v48  ;;  %v1492_v58 = vpop.f32.mrf.mxu1 }
 0x461   : > { %v10965_v61 = vld [vmem:[#allocation89_spill] sm:$0xff]  ;;  %v2541_v54 = vsub.f32 0.0, %v10966_v18  ;;  %v8835_v57 = vadd.f32 %v8422_v32, %v1492_v58 }
 0x462   : > { %10953 = vst [vmem:[#allocation149_spill] sm:$0xff] %v8799_v53  ;;  %10955 = vst [vmem:[#allocation123_spill] sm:$0xff] %v8802_v38  ;;  %3150 = vrot.lane.b32.xlu1 %v8799_v53, %s5939_s20  ;;  %3156 = vrot.lane.b32.xlu0 %v8802_v38, %s5939_s20  ;;  %v2612_v51 = vadd.f32 %v2611_v52, %v2610_v0  ;;  %v1560_v48 = vsel %vm6759_vm9, %v10965_v61, 0.0  ;;  %v5175_v28 = vpop.f32.mrf.mxu1  ;;  %v10968_v38 = vld [vmem:[#allocation91_spill] sm:$0xff]  ;;  %v11010_v53 = vld [vmem:[#allocation141_spill] sm:$0xff] }
 0x463   : > { %v2995_v42 = vpop.permute.xlu1 %2994  ;;  %10967 = vst [vmem:[#allocation152_spill] sm:$0xff] %v8835_v57  ;;  %v1563_v0 = vsel %vm6759_vm9, %v10968_v38, 0.0  ;;  %v1592_v61 = vadd.f32 %v1560_v48, %v8835_v57  ;;  %v10974_v48 = vld [vmem:[#allocation95_spill] sm:$0xff] }
 0x464   : > { %v8814_v37 = vsub.f32 %v10958_v35, %v2995_v42  ;;  %v8826_v42 = vadd.f32 %v5172_v1, %v8422_v32  ;;  %v2613_v35 = vsel %vm2593_vm5, %v2571_v13, 0.0  ;;  %v10969_v1 = vld [vmem:[#allocation180_spill] sm:$0xff]  ;;  %v8844_v13 = vadd.f32 %v5175_v28, %v8422_v32  ;;  %v1502_v39 = vpop.f32.mrf.mxu1 }
 0x465   : > { %v2572_v52 = vmul.f32 %v10969_v1, %v2540_v45  ;;  %v2614_v18 = vadd.f32 %v2613_v35, %v2612_v51  ;;  %1624 = vst [vmem:[%s6644_s18 + $0xc0] sm:$0xff] %v1592_v61  ;;  %v8853_v45 = vadd.f32 %v8422_v32, %v1502_v39  ;;  %v1565_v28 = vsel %vm6759_vm9, %v10974_v48, 0.0  ;;  %v10975_v35 = vld [vmem:[#allocation131_spill] sm:$0xff]  ;;  %v10977_v61 = vld [vmem:[#allocation97_spill] sm:$0xff] }
 0x466   : > { %10959 = vst [vmem:[#allocation122_spill] sm:$0xff] %v8814_v37  ;;  %3154 = vrot.lane.b32.xlu1 %v8814_v37, %s5939_s20  ;;  %10964 = vst [vmem:[#allocation150_spill] sm:$0xff] %v8826_v42  ;;  %v1593_v5 = vadd.f32 %v1561_v55, %v8826_v42  ;;  %v10971_v55 = vld [vmem:[#allocation93_spill] sm:$0xff]  ;;  %v1595_v38 = vadd.f32 %v1563_v0, %v8844_v13  ;;  %v2542_v1 = vsub.f32 0.0, %v10975_v35  ;;  %v10980_v35 = vld [vmem:[#allocation99_spill] sm:$0xff] }
 0x467   : > { %10970 = vst [vmem:[#allocation124_spill] sm:$0xff] %v8844_v13  ;;  %v1562_v58 = vsel %vm6759_vm9, %v10971_v55, 0.0  ;;  %v10972_v42 = vld [vmem:[#allocation181_spill] sm:$0xff]  ;;  %10973 = vst [vmem:[#allocation151_spill] sm:$0xff] %v8853_v45  ;;  %v2615_v51 = vsel %vm2593_vm5, %v2572_v52, 0.0  ;;  %v1564_v55 = vsel %vm6759_vm9, %v10977_v61, 0.0 }
 0x468   : > { %1625 = vst [vmem:[%s6644_s18 + $0xc8] sm:$0xff] %v1593_v5  ;;  %v2573_v3 = vmul.f32 %v10972_v42, %v2541_v54  ;;  %v5178_v5 = vpop.f32.mrf.mxu1  ;;  %1627 = vst [vmem:[%s6644_s18 + $0xd8] sm:$0xff] %v1595_v38  ;;  %v1594_v42 = vadd.f32 %v1562_v58, %v8853_v45  ;;  %v2616_v0 = vadd.f32 %v2615_v51, %v2614_v18  ;;  %v10978_v13 = vld [vmem:[#allocation133_spill] sm:$0xff]  ;;  %v1567_v18 = vsel %vm6759_vm9, %v10980_v35, 0.0  ;;  %v10981_v51 = vld [vmem:[#allocation182_spill] sm:$0xff] }
 0x469   : > { %v8863_v54 = vadd.f32 %v5178_v5, %v8422_v32  ;;  %v2543_v52 = vsub.f32 0.0, %v10978_v13  ;;  %v2574_v45 = vmul.f32 %v10981_v51, %v2542_v1 }
 0x46a   : > { %v1512_v39 = vpop.f32.mrf.mxu1  ;;  %v2617_v48 = vsel %vm2593_vm5, %v2573_v3, 0.0  ;;  %1626 = vst [vmem:[%s6644_s18 + $0xd0] sm:$0xff] %v1594_v42  ;;  %v10983_v42 = vld [vmem:[#allocation183_spill] sm:$0xff] }
 0x46b   : > { %10976 = vst [vmem:[#allocation125_spill] sm:$0xff] %v8863_v54  ;;  %v1597_v38 = vadd.f32 %v1565_v28, %v8863_v54  ;;  %v8873_v58 = vadd.f32 %v8422_v32, %v1512_v39  ;;  %v2618_v13 = vadd.f32 %v2617_v48, %v2616_v0  ;;  %v2575_v57 = vmul.f32 %v10983_v42, %v2543_v52  ;;  %v10984_v54 = vld [vmem:[#allocation105_spill] sm:$0xff]  ;;  %v10988_v52 = vld [vmem:[#allocation134_spill] sm:$0xff] }
 0x46c   : > { %v5181_v5 = vpop.f32.mrf.mxu1  ;;  %v2619_v39 = vsel %vm2593_vm5, %v2574_v45, 0.0  ;;  %v2544_v37 = vsub.f32 0.0, %v10984_v54  ;;  %v10989_v54 = vld [vmem:[#allocation107_spill] sm:$0xff] }
 0x46d   : > { %10979 = vst [vmem:[#allocation127_spill] sm:$0xff] %v8873_v58  ;;  %1629 = vst [vmem:[%s6644_s18 + $0xe8] sm:$0xff] %v1597_v38  ;;  %v1596_v61 = vadd.f32 %v1564_v55, %v8873_v58  ;;  %v8882_v3 = vadd.f32 %v5181_v5, %v8422_v32  ;;  %v2620_v35 = vadd.f32 %v2619_v39, %v2618_v13  ;;  %v2621_v1 = vsel %vm2593_vm5, %v2575_v57, 0.0  ;;  %v10985_v38 = vld [vmem:[#allocation135_spill] sm:$0xff]  ;;  %v10986_v55 = vld [vmem:[#allocation184_spill] sm:$0xff] }
 0x46e   : > { %v2545_v51 = vsub.f32 0.0, %v10985_v38  ;;  %v2576_v58 = vmul.f32 %v10986_v55, %v2544_v37  ;;  %v2547_v42 = vsub.f32 0.0, %v10989_v54  ;;  %v10990_v13 = vld [vmem:[#allocation153_spill] sm:$0xff]  ;;  %v10991_v39 = vld [vmem:[#allocation156_spill] sm:$0xff] }
 0x46f   : > { %10982 = vst [vmem:[#allocation126_spill] sm:$0xff] %v8882_v3  ;;  %1628 = vst [vmem:[%s6644_s18 + $0xe0] sm:$0xff] %v1596_v61  ;;  %v1599_v28 = vadd.f32 %v1567_v18, %v8882_v3  ;;  %v2622_v5 = vadd.f32 %v2621_v1, %v2620_v35  ;;  %v2546_v61 = vsub.f32 0.0, %v10988_v52  ;;  %v1522_v3 = vpop.f32.mrf.mxu1  ;;  %v10992_v37 = vld [vmem:[#allocation101_spill] sm:$0xff]  ;;  %v10993_v35 = vld [vmem:[#allocation164_spill] sm:$0xff] }
 0x470   : > { %v2577_v0 = vmul.f32 %v10987_v11, %v2545_v51  ;;  %v2623_v48 = vsel %vm2593_vm5, %v2576_v58, 0.0  ;;  %v2579_v38 = vmul.f32 %v10991_v39, %v2547_v42  ;;  %v1566_v11 = vsel %vm6759_vm9, %v10992_v37, 0.0 }
 0x471   : > { %1631 = vst [vmem:[%s6644_s18 + $0xf8] sm:$0xff] %v1599_v28  ;;  %v2624_v18 = vadd.f32 %v2623_v48, %v2622_v5  ;;  %v2578_v28 = vmul.f32 %v10990_v13, %v2546_v61  ;;  %v2548_v1 = vsub.f32 0.0, %v10993_v35  ;;  %v8906_v51 = vadd.f32 %v8422_v32, %v1522_v3  ;;  %v10996_v61 = vld [vmem:[#allocation160_spill] sm:$0xff]  ;;  %v10998_v13 = vld [vmem:[#allocation106_spill] sm:$0xff]  ;;  %v11001_v35 = vld [vmem:[#allocation189_spill] sm:$0xff] }
 0x472   : > { %v2625_v45 = vsel %vm2593_vm5, %v2577_v0, 0.0  ;;  %v2629_v5 = vsel %vm2593_vm5, %v2579_v38, 0.0  ;;  %v10995_v0 = vld [vmem:[#allocation109_spill] sm:$0xff]  ;;  %v10999_v3 = vld [vmem:[#allocation110_spill] sm:$0xff]  ;;  %vm3254_vm9 = vcmask 23552  }
 0x473   : > { %v2626_v57 = vadd.f32 %v2625_v45, %v2624_v18  ;;  %v2627_v58 = vsel %vm2593_vm5, %v2578_v28, 0.0  ;;  %10994 = vst [vmem:[#allocation102_spill] sm:$0xff] %v8906_v51  ;;  %v2549_v48 = vsub.f32 0.0, %v10995_v0  ;;  %v1598_v52 = vadd.f32 %v1566_v11, %v8906_v51  ;;  %v11000_v38 = vld [vmem:[#allocation154_spill] sm:$0xff] }
 0x474   : > { %v2580_v18 = vmul.f32 %v10996_v61, %v2548_v1  ;;  %v2550_v28 = vsub.f32 0.0, %v10998_v13 }
 0x475   : > { %v2628_v55 = vadd.f32 %v2627_v58, %v2626_v57  ;;  %1630 = vst [vmem:[%s6644_s18 + $0xf0] sm:$0xff] %v1598_v52  ;;  %v2581_v54 = vmul.f32 %v10997_v6, %v2549_v48  ;;  %v2551_v57 = vsub.f32 0.0, %v10999_v3  ;;  %v11003_v48 = vld [vmem:[#allocation138_spill] sm:$0xff] }
 0x476   : > { %v2631_v42 = vsel %vm2593_vm5, %v2580_v18, 0.0  ;;  %v2582_v37 = vmul.f32 %v11000_v38, %v2550_v28  ;;  %v11005_v28 = vld [vmem:[#allocation163_spill] sm:$0xff] }
 0x477   : > { %v2630_v45 = vadd.f32 %v2629_v5, %v2628_v55  ;;  %v2633_v32 = vsel %vm2593_vm5, %v2581_v54, 0.0  ;;  %v2583_v11 = vmul.f32 %v11001_v35, %v2551_v57  ;;  %v11002_v55 = vld [vmem:[#allocation108_spill] sm:$0xff] }
 0x478   : > { %v2635_v1 = vsel %vm2593_vm5, %v2582_v37, 0.0  ;;  %v2552_v5 = vsub.f32 0.0, %v11002_v55  ;;  %v11007_v57 = vld [vmem:[#allocation140_spill] sm:$0xff] }
 0x479   : > { %v2632_v39 = vadd.f32 %v2631_v42, %v2630_v45  ;;  %v2637_v18 = vsel %vm2593_vm5, %v2583_v11, 0.0  ;;  %v11004_v45 = vld [vmem:[#allocation137_spill] sm:$0xff]  ;;  %v11009_v11 = vld [vmem:[#allocation136_spill] sm:$0xff] }
 0x47a   : > { %v2553_v6 = vsub.f32 0.0, %v11004_v45  ;;  %v2554_v55 = vsub.f32 0.0, %v11009_v11 }
 0x47b   : > { %v2634_v58 = vadd.f32 %v2633_v32, %v2632_v39  ;;  %v2584_v39 = vmul.f32 %v11005_v28, %v2552_v5  ;;  %v11006_v32 = vld [vmem:[#allocation113_spill] sm:$0xff] }
 0x47d   : > { %v2636_v61 = vadd.f32 %v2635_v1, %v2634_v58 }
 0x47f   : > { %v2638_v35 = vadd.f32 %v2637_v18, %v2636_v61  ;;  %v11011_v18 = vld [vmem:[#allocation111_spill] sm:$0xff] }
 0x498   : > { %v3097_v0 = vpop.permute.xlu0 %3096 }
 0x499   : > { %v3191_v52 = vsub.f32 %v11003_v48, %v3097_v0  ;;  %v11008_v0 = vld [vmem:[#allocation190_spill] sm:$0xff]  ;;  %v2639_v48 = vsel %vm2593_vm5, %v2584_v39, 0.0 }
 0x49a   : > { %v2585_v58 = vmul.f32 %v11008_v0, %v2553_v6  ;;  %v2640_v28 = vadd.f32 %v2639_v48, %v2638_v35  ;;  %v2555_v6 = vsub.f32 0.0, %v11011_v18  ;;  %v11013_v35 = vld [vmem:[#allocation157_spill] sm:$0xff] }
 0x49b   : > { %v3223_v54 = vand.u32 2147483647, %v3191_v52 }
 0x49c   : > { %v3095_v42 = vpop.permute.xlu1 %3094  ;;  %v3101_v13 = vpop.permute.xlu0 %3100  ;;  %v2641_v61 = vsel %vm2593_vm5, %v2585_v58, 0.0  ;;  %v2587_v58 = vmul.f32 %v11013_v35, %v2555_v6 }
 0x49d   : > { %v3190_v3 = vsub.f32 %v11006_v32, %v3095_v42  ;;  %v3193_v38 = vsub.f32 %v11007_v57, %v3101_v13  ;;  %v3258_v37 = vsel %vm3254_vm9, %v3223_v54, 0.0  ;;  %v2642_v48 = vadd.f32 %v2641_v61, %v2640_v28 }
 0x49e   : > { %3259 = vadd.xlane.f32.xlu0 %v3258_v37  ;;  %v2645_v6 = vsel %vm2593_vm5, %v2587_v58, 0.0  ;;  %v11017_v58 = vld [vmem:[#allocation161_spill] sm:$0xff] }
 0x49f   : > { %v3222_v1 = vand.u32 2147483647, %v3190_v3  ;;  %v3225_v45 = vand.u32 2147483647, %v3193_v38  ;;  %v11012_v3 = vld [vmem:[#allocation155_spill] sm:$0xff] }
 0x4a0   : > { %v3099_v52 = vpop.permute.xlu1 %3098  ;;  %v3105_v51 = vpop.permute.xlu0 %3104  ;;  %v2586_v37 = vmul.f32 %v11012_v3, %v2554_v55  ;;  %v11014_v55 = vld [vmem:[#allocation168_spill] sm:$0xff] }
 0x4a1   : > { %v3192_v5 = vsub.f32 %v11010_v53, %v3099_v52  ;;  %v3195_v42 = vsub.f32 %v8468_v20, %v3105_v51  ;;  %v3255_v13 = vsel %vm3254_vm9, %v3222_v1, 0.0  ;;  %v3264_v11 = vsel %vm3254_vm9, %v3225_v45, 0.0 }
 0x4a2   : > { %3256 = vadd.xlane.f32.xlu1 %v3255_v13  ;;  %v2556_v18 = vsub.f32 0.0, %v11014_v55 }
 0x4a3   : > { %v3224_v54 = vand.u32 2147483647, %v3192_v5  ;;  %v3227_v39 = vand.u32 2147483647, %v3195_v42  ;;  %v2643_v5 = vsel %vm2593_vm5, %v2586_v37, 0.0 }
 0x4a4   : > { %v3103_v38 = vpop.permute.xlu1 %3102  ;;  %v3109_v0 = vpop.permute.xlu0 %3108  ;;  %v2644_v61 = vadd.f32 %v2643_v5, %v2642_v48 }
 0x4a5   : > { %v3194_v52 = vsub.f32 %v8476_v46, %v3103_v38  ;;  %v3197_v51 = vsub.f32 %v8487_v4, %v3109_v0  ;;  %v3261_v1 = vsel %vm3254_vm9, %v3224_v54, 0.0  ;;  %v3270_v28 = vsel %vm3254_vm9, %v3227_v39, 0.0  ;;  %v11015_v54 = vld [vmem:[#allocation112_spill] sm:$0xff] }
 0x4a6   : > { %3262 = vadd.xlane.f32.xlu0 %v3261_v1  ;;  %3265 = vadd.xlane.f32.xlu1 %v3264_v11  ;;  %v2557_v37 = vsub.f32 0.0, %v11015_v54  ;;  %v2646_v48 = vadd.f32 %v2645_v6, %v2644_v61 }
 0x4a7   : > { %v3226_v13 = vand.u32 2147483647, %v3194_v52  ;;  %v3229_v3 = vand.u32 2147483647, %v3197_v51  ;;  %v11016_v52 = vld [vmem:[#allocation158_spill] sm:$0xff] }
 0x4a8   : > { %v3107_v20 = vpop.permute.xlu1 %3106  ;;  %v3113_v45 = vpop.permute.xlu0 %3112  ;;  %v2588_v51 = vmul.f32 %v11016_v52, %v2556_v18  ;;  %v2589_v5 = vmul.f32 %v11017_v58, %v2557_v37  ;;  %v11018_v18 = vld [vmem:[#allocation139_spill] sm:$0xff] }
 0x4a9   : > { %v3196_v42 = vsub.f32 %v8498_v8, %v3107_v20  ;;  %v3199_v38 = vsub.f32 %v8515_v43, %v3113_v45  ;;  %v3267_v0 = vsel %vm3254_vm9, %v3226_v13, 0.0  ;;  %v3276_v20 = vsel %vm3254_vm9, %v3229_v3, 0.0 }
 0x4aa   : > { %3268 = vadd.xlane.f32.xlu0 %v3267_v0  ;;  %3271 = vadd.xlane.f32.xlu1 %v3270_v28  ;;  %v2558_v28 = vsub.f32 0.0, %v11018_v18  ;;  %v2649_v37 = vsel %vm2593_vm5, %v2589_v5, 0.0  ;;  %v11021_v5 = vld [vmem:[#allocation191_spill] sm:$0xff] }
 0x4ab   : > { %v3228_v11 = vand.u32 2147483647, %v3196_v42  ;;  %v3231_v55 = vand.u32 2147483647, %v3199_v38  ;;  %v2647_v42 = vsel %vm2593_vm5, %v2588_v51, 0.0 }
 0x4ac   : > { %v3111_v1 = vpop.permute.xlu1 %3110  ;;  %v3117_v35 = vpop.permute.xlu0 %3116  ;;  %v2648_v6 = vadd.f32 %v2647_v42, %v2646_v48 }
 0x4ad   : > { %v3198_v45 = vsub.f32 %v8524_v7, %v3111_v1  ;;  %v3201_v13 = vsub.f32 %v8541_v31, %v3117_v35  ;;  %v3273_v39 = vsel %vm3254_vm9, %v3228_v11, 0.0  ;;  %v3282_v61 = vsel %vm3254_vm9, %v3231_v55, 0.0  ;;  %v11019_v11 = vld [vmem:[#allocation114_spill] sm:$0xff] }
 0x4ae   : > { %3274 = vadd.xlane.f32.xlu0 %v3273_v39  ;;  %3277 = vadd.xlane.f32.xlu1 %v3276_v20  ;;  %v2559_v51 = vsub.f32 0.0, %v11019_v11  ;;  %v2650_v48 = vadd.f32 %v2649_v37, %v2648_v6 }
 0x4af   : > { %v3230_v0 = vand.u32 2147483647, %v3198_v45  ;;  %v3233_v54 = vand.u32 2147483647, %v3201_v13  ;;  %v11020_v45 = vld [vmem:[#allocation186_spill] sm:$0xff] }
 0x4b0   : > { %v3115_v52 = vpop.permute.xlu1 %3114  ;;  %v3121_v3 = vpop.permute.xlu0 %3120  ;;  %v2590_v13 = vmul.f32 %v11020_v45, %v2558_v28  ;;  %v2591_v42 = vmul.f32 %v11021_v5, %v2559_v51  ;;  %v11022_v28 = vld [vmem:[#allocation172_spill] sm:$0xff] }
 0x4b1   : > { %v3200_v38 = vsub.f32 %v8550_v16, %v3115_v52  ;;  %v3203_v1 = vsub.f32 %v8567_v29, %v3121_v3  ;;  %v3279_v35 = vsel %vm3254_vm9, %v3230_v0, 0.0  ;;  %v3288_v18 = vsel %vm3254_vm9, %v3233_v54, 0.0 }
 0x4b2   : > { %3280 = vadd.xlane.f32.xlu0 %v3279_v35  ;;  %3283 = vadd.xlane.f32.xlu1 %v3282_v61  ;;  %v2560_v61 = vsub.f32 0.0, %v11022_v28  ;;  %v2653_v51 = vsel %vm2593_vm5, %v2591_v42, 0.0 }
 0x4b3   : > { %v3232_v20 = vand.u32 2147483647, %v3200_v38  ;;  %v3235_v52 = vand.u32 2147483647, %v3203_v1  ;;  %v2651_v38 = vsel %vm2593_vm5, %v2590_v13, 0.0  ;;  %v11023_v13 = vld [vmem:[#allocation187_spill] sm:$0xff] }
 0x4b4   : > { %v3119_v39 = vpop.permute.xlu1 %3118  ;;  %v3125_v58 = vpop.permute.xlu0 %3124  ;;  %v2652_v37 = vadd.f32 %v2651_v38, %v2650_v48 }
 0x4b5   : > { %v3202_v3 = vsub.f32 %v8576_v22, %v3119_v39  ;;  %v3205_v0 = vsub.f32 %v8593_v50, %v3125_v58  ;;  %v3285_v55 = vsel %vm3254_vm9, %v3232_v20, 0.0  ;;  %v3294_v6 = vsel %vm3254_vm9, %v3235_v52, 0.0 }
 0x4b6   : > { %3286 = vadd.xlane.f32.xlu0 %v3285_v55  ;;  %3289 = vadd.xlane.f32.xlu1 %v3288_v18  ;;  %v2592_v18 = vmul.f32 %v11023_v13, %v2560_v61  ;;  %v2654_v52 = vadd.f32 %v2653_v51, %v2652_v37 }
 0x4b7   : > { %v3234_v35 = vand.u32 2147483647, %v3202_v3  ;;  %v3237_v11 = vand.u32 2147483647, %v3205_v0 }
 0x4b8   : > { %v3123_v45 = vpop.permute.xlu1 %3122  ;;  %v3129_v54 = vpop.permute.xlu0 %3128  ;;  %v2655_v42 = vsel %vm2593_vm5, %v2592_v18, 0.0 }
 0x4b9   : > { %v3204_v1 = vsub.f32 %v8602_v12, %v3123_v45  ;;  %v3207_v39 = vsub.f32 %v8619_v23, %v3129_v54  ;;  %v3291_v58 = vsel %vm3254_vm9, %v3234_v35, 0.0  ;;  %v3300_v55 = vsel %vm3254_vm9, %v3237_v11, 0.0 }
 0x4ba   : > { %3292 = vadd.xlane.f32.xlu0 %v3291_v58  ;;  %3295 = vadd.xlane.f32.xlu1 %v3294_v6  ;;  %v2656_v6 = vadd.f32 %v2655_v42, %v2654_v52 }
 0x4bb   : > { %v3236_v20 = vand.u32 2147483647, %v3204_v1  ;;  %v3239_v5 = vand.u32 2147483647, %v3207_v39 }
 0x4bc   : > { %v3127_v3 = vpop.permute.xlu1 %3126  ;;  %v3133_v0 = vpop.permute.xlu0 %3132 }
 0x4bd   : > { %v3206_v28 = vsub.f32 %v8628_v44, %v3127_v3  ;;  %v3209_v45 = vsub.f32 %v8645_v62, %v3133_v0  ;;  %v3297_v35 = vsel %vm3254_vm9, %v3236_v20, 0.0  ;;  %v3306_v58 = vsel %vm3254_vm9, %v3239_v5, 0.0 }
 0x4be   : > { %3298 = vadd.xlane.f32.xlu0 %v3297_v35  ;;  %3301 = vadd.xlane.f32.xlu1 %v3300_v55 }
 0x4bf   : > { %v3238_v48 = vand.u32 2147483647, %v3206_v28  ;;  %v3241_v38 = vand.u32 2147483647, %v3209_v45  ;;  %v2657_v28 = vrot.slane %v2656_v6, 4 }
 0x4c0   : > { %v3131_v54 = vpop.permute.xlu1 %3130  ;;  %v3137_v61 = vpop.permute.xlu0 %3136 }
 0x4c1   : > { %v3208_v1 = vsub.f32 %v8654_v9, %v3131_v54  ;;  %v3211_v11 = vsub.f32 %v8671_v33, %v3137_v61  ;;  %v3303_v39 = vsel %vm3254_vm9, %v3238_v48, 0.0  ;;  %v3312_v13 = vsel %vm3254_vm9, %v3241_v38, 0.0 }
 0x4c2   : > { %3304 = vadd.xlane.f32.xlu0 %v3303_v39  ;;  %3307 = vadd.xlane.f32.xlu1 %v3306_v58  ;;  %v2658_v38 = vadd.f32 %v2657_v28, %v2656_v6  ;;  %v11026_v6 = vld [vmem:[#allocation143_spill] sm:$0xff]  ;;  %v11027_v28 = vld [vmem:[#allocation142_spill] sm:$0xff] }
 0x4c3   : > { %v3240_v37 = vand.u32 2147483647, %v3208_v1  ;;  %v3243_v18 = vand.u32 2147483647, %v3211_v11 }
 0x4c4   : > { %v3135_v51 = vpop.permute.xlu1 %3134  ;;  %v3141_v20 = vpop.permute.xlu0 %3140  ;;  %v2659_v11 = vrot.slane %v2658_v38, 2 }
 0x4c5   : > { %v3210_v3 = vsub.f32 %v8681_v17, %v3135_v51  ;;  %v3213_v0 = vsub.f32 %v8699_v49, %v3141_v20  ;;  %v3309_v55 = vsel %vm3254_vm9, %v3240_v37, 0.0  ;;  %v3318_v42 = vsel %vm3254_vm9, %v3243_v18, 0.0  ;;  %v11024_v51 = vld [vmem:[#allocation116_spill] sm:$0xff] }
 0x4c6   : > { %3310 = vadd.xlane.f32.xlu0 %v3309_v55  ;;  %3313 = vadd.xlane.f32.xlu1 %v3312_v13  ;;  %v2660_v39 = vadd.f32 %v2659_v11, %v2658_v38  ;;  %v3789_v20 = vmul.f32 %v11024_v51, %v11024_v51  ;;  %v11025_v13 = vld [vmem:[#allocation128_spill] sm:$0xff]  ;;  %v3790_v18 = vmul.f32 %v11026_v6, %v11026_v6 }
 0x4c7   : > { %v3242_v45 = vand.u32 2147483647, %v3210_v3  ;;  %v3245_v35 = vand.u32 2147483647, %v3213_v0  ;;  %v3792_v55 = vmul.f32 %v8556_v40, %v8556_v40  ;;  %v3800_v11 = vmul.f32 %v8660_v15, %v8660_v15 }
 0x4c8   : > { %v3139_v5 = vpop.permute.xlu1 %3138  ;;  %v2661_v58 = vrot.slane %v2660_v39, 1 }
 0x4c9   : > { %v3212_v52 = vsub.f32 %v8709_v30, %v3139_v5  ;;  %v3315_v48 = vsel %vm3254_vm9, %v3242_v45, 0.0  ;;  %v3324_v1 = vsel %vm3254_vm9, %v3245_v35, 0.0  ;;  %v3788_v45 = vmul.f32 %v11027_v28, %v11027_v28  ;;  %v11028_v35 = vld [vmem:[#allocation174_spill] sm:$0xff] }
 0x4ca   : > { %3316 = vadd.xlane.f32.xlu0 %v3315_v48  ;;  %3319 = vadd.xlane.f32.xlu1 %v3318_v42  ;;  %v2662_v37 = vadd.f32 %v2661_v58, %v2660_v39  ;;  %v3794_v5 = vmul.f32 %v8582_v41, %v8582_v41  ;;  %v3796_v48 = vmul.f32 %v8608_v24, %v8608_v24  ;;  %v11029_v42 = vld [vmem:[#allocation117_spill] sm:$0xff] }
 0x4cb   : > { %v3244_v54 = vand.u32 2147483647, %v3212_v52  ;;  %v3791_v52 = vmul.f32 %v11028_v35, %v11028_v35  ;;  %v3793_v38 = vmul.f32 %v11029_v42, %v11029_v42  ;;  %v3797_v39 = vmul.f32 %v8585_v56, %v8585_v56 }
 0x4cc   : > { %v2670_v3 = vrot.slane %v2662_v37, %v11025_v13  ;;  %v3802_v58 = vmul.f32 %v8687_v25, %v8687_v25  ;;  %v3799_v37 = vmul.f32 %v8611_v21, %v8611_v21 }
 0x4cd   : > { %v3321_v61 = vsel %vm3254_vm9, %v3244_v54, 0.0  ;;  %v3798_v54 = vmul.f32 %v8634_v14, %v8634_v14 }
 0x4ce   : > { %3322 = vadd.xlane.f32.xlu0 %v3321_v61  ;;  %3325 = vadd.xlane.f32.xlu1 %v3324_v1  ;;  %v2677_v0 = vrot.slane %v2670_v3, %v11025_v13  ;;  %v11030_v61 = vld [vmem:[#allocation144_spill] sm:$0xff]  ;;  %v3801_v3 = vmul.f32 %v8637_v10, %v8637_v10 }
 0x4cf   : > { %v3795_v1 = vmul.f32 %v11030_v61, %v11030_v61 }
 0x4df   : > { %3854 = vrot.lane.b32.xlu1 %v3789_v20, %s5939_s20  ;;  %v3804_v20 = vmul.f32 %v8715_v26, %v8715_v26 }
 0x4e3   : > { %3856 = vrot.lane.b32.xlu1 %v3790_v18, %s5939_s20  ;;  %v3806_v18 = vmul.f32 %v8732_v19, %v8732_v19 }
 0x4e4   : > { %2678 = vrot.lane.b32.xlu0 %v2677_v0, %s5937_s13  ;;  %v11031_v0 = vld [vmem:[#allocation118_spill] sm:$0xff] }
 0x4e7   : > { %3860 = vrot.lane.b32.xlu1 %v3792_v55, %s5939_s20  ;;  %v3803_v55 = vmul.f32 %v11031_v0, %v11031_v0 }
 0x4e8   : > { %3852 = vrot.lane.b32.xlu0 %v3788_v45, %s5939_s20  ;;  %v3808_v45 = vmul.f32 %v8745_v60, %v8745_v60 }
 0x4eb   : > { %3864 = vrot.lane.b32.xlu1 %v3794_v5, %s5939_s20  ;;  %v3805_v5 = vmul.f32 %v8690_v2, %v8690_v2 }
 0x4ec   : > { %3858 = vrot.lane.b32.xlu0 %v3791_v52, %s5939_s20  ;;  %v3810_v52 = vmul.f32 %v8759_v63, %v8759_v63 }
 0x4ef   : > { %3868 = vrot.lane.b32.xlu1 %v3796_v48, %s5939_s20  ;;  %v3807_v48 = vmul.f32 %v8718_v34, %v8718_v34 }
 0x4f0   : > { %3862 = vrot.lane.b32.xlu0 %v3793_v38, %s5939_s20  ;;  %v3812_v38 = vmul.f32 %v8771_v47, %v8771_v47 }
 0x4f3   : > { %3872 = vrot.lane.b32.xlu1 %v3798_v54, %s5939_s20  ;;  %v3809_v54 = vmul.f32 %v8735_v27, %v8735_v27 }
 0x4f4   : > { %3866 = vrot.lane.b32.xlu0 %v3795_v1, %s5939_s20  ;;  %v3814_v1 = vmul.f32 %v8786_v59, %v8786_v59 }
 0x4f7   : > { %3876 = vrot.lane.b32.xlu1 %v3800_v11, %s5939_s20  ;;  %v3811_v11 = vmul.f32 %v8748_v36, %v8748_v36 }
 0x4f8   : > { %3870 = vrot.lane.b32.xlu0 %v3797_v39, %s5939_s20  ;;  %v11032_v39 = vld [vmem:[#allocation149_spill] sm:$0xff] }
 0x4fb   : > { %3880 = vrot.lane.b32.xlu1 %v3802_v58, %s5939_s20  ;;  %v3816_v58 = vmul.f32 %v11032_v39, %v11032_v39 }
 0x4fc   : > { %3874 = vrot.lane.b32.xlu0 %v3799_v37, %s5939_s20  ;;  %v9080_v37 = vpop.permute.xlu0 %3144 }
 0x4fd   : > { %11033 = vst [vmem:[#allocation165_spill] sm:$0xff] %v9080_v37 }
 0x4ff   : > { %3884 = vrot.lane.b32.xlu1 %v3804_v20, %s5939_s20  ;;  %v9082_v20 = vpop.permute.xlu1 %3142 }
 0x500   : > { %3878 = vrot.lane.b32.xlu0 %v3801_v3, %s5939_s20  ;;  %11034 = vst [vmem:[#allocation166_spill] sm:$0xff] %v9082_v20  ;;  %v11035_v3 = vld [vmem:[#allocation120_spill] sm:$0xff] }
 0x503   : > { %3888 = vrot.lane.b32.xlu1 %v3806_v18, %s5939_s20  ;;  %v3813_v18 = vmul.f32 %v11035_v3, %v11035_v3 }
 0x504   : > { %3882 = vrot.lane.b32.xlu0 %v3803_v55, %s5939_s20  ;;  %v11036_v55 = vld [vmem:[#allocation122_spill] sm:$0xff] }
 0x507   : > { %3892 = vrot.lane.b32.xlu1 %v3808_v45, %s5939_s20  ;;  %v3818_v45 = vmul.f32 %v11036_v55, %v11036_v55 }
 0x508   : > { %3886 = vrot.lane.b32.xlu0 %v3805_v5, %s5939_s20  ;;  %v11037_v5 = vld [vmem:[#allocation147_spill] sm:$0xff] }
 0x50b   : > { %3896 = vrot.lane.b32.xlu1 %v3810_v52, %s5939_s20  ;;  %v3815_v52 = vmul.f32 %v11037_v5, %v11037_v5 }
 0x50c   : > { %3890 = vrot.lane.b32.xlu0 %v3807_v48, %s5939_s20  ;;  %v9092_v48 = vpop.permute.xlu0 %3148 }
 0x50d   : > { %11038 = vst [vmem:[#allocation169_spill] sm:$0xff] %v9092_v48 }
 0x50f   : > { %3900 = vrot.lane.b32.xlu1 %v3812_v38, %s5939_s20  ;;  %v9094_v38 = vpop.permute.xlu1 %3146 }
 0x510   : > { %3894 = vrot.lane.b32.xlu0 %v3809_v54, %s5939_s20  ;;  %11039 = vst [vmem:[#allocation170_spill] sm:$0xff] %v9094_v38  ;;  %v11040_v54 = vld [vmem:[#allocation121_spill] sm:$0xff] }
 0x513   : > { %3904 = vrot.lane.b32.xlu1 %v3814_v1, %s5939_s20  ;;  %v3817_v1 = vmul.f32 %v11040_v54, %v11040_v54 }
 0x514   : > { %3898 = vrot.lane.b32.xlu0 %v3811_v11, %s5939_s20  ;;  %v9101_v11 = vpop.permute.xlu0 %3152 }
 0x515   : > { %11041 = vst [vmem:[#allocation171_spill] sm:$0xff] %v9101_v11 }
 0x517   : > { %3908 = vrot.lane.b32.xlu1 %v3816_v58, %s5939_s20  ;;  %v9103_v58 = vpop.permute.xlu1 %3150 }
 0x518   : > { %3902 = vrot.lane.b32.xlu0 %v3813_v18, %s5939_s20  ;;  %11042 = vst [vmem:[#allocation173_spill] sm:$0xff] %v9103_v58  ;;  %v9105_v18 = vpop.permute.xlu0 %3156 }
 0x519   : > { %11043 = vst [vmem:[#allocation167_spill] sm:$0xff] %v9105_v18 }
 0x51b   : > { %3912 = vrot.lane.b32.xlu1 %v3818_v45, %s5939_s20  ;;  %v9107_v13 = vpop.permute.xlu1 %3154 }
 0x51c   : > { %3906 = vrot.lane.b32.xlu0 %v3815_v52, %s5939_s20  ;;  %11044 = vst [vmem:[#allocation175_spill] sm:$0xff] %v9107_v13 }
 0x520   : > { %3910 = vrot.lane.b32.xlu0 %v3817_v1, %s5939_s20 }
 0x527   : > { %v9109_v48 = vpop.xlane.xlu0 %3259 }
 0x528   : > { %11045 = vst [vmem:[#allocation176_spill] sm:$0xff] %v9109_v48 }
 0x52b   : > { %v9111_v38 = vpop.xlane.xlu1 %3256 }
 0x52c   : > { %11046 = vst [vmem:[#allocation177_spill] sm:$0xff] %v9111_v38 }
 0x52f   : > { %v9113_v45 = vpop.xlane.xlu0 %3262  ;;  %v9115_v52 = vpop.xlane.xlu1 %3265 }
 0x530   : > { %11047 = vst [vmem:[#allocation159_spill] sm:$0xff] %v9113_v45  ;;  %11048 = vst [vmem:[#allocation103_spill] sm:$0xff] %v9115_v52 }
 0x533   : > { %v9117_v37 = vpop.xlane.xlu0 %3268  ;;  %v9119_v20 = vpop.xlane.xlu1 %3271 }
 0x534   : > { %11049 = vst [vmem:[#allocation130_spill] sm:$0xff] %v9117_v37  ;;  %11050 = vst [vmem:[#allocation104_spill] sm:$0xff] %v9119_v20 }
 0x537   : > { %v9121_v1 = vpop.xlane.xlu0 %3274  ;;  %v9123_v11 = vpop.xlane.xlu1 %3277 }
 0x538   : > { %11051 = vst [vmem:[#allocation129_spill] sm:$0xff] %v9121_v1  ;;  %11052 = vst [vmem:[#allocation178_spill] sm:$0xff] %v9123_v11 }
 0x53b   : > { %v9125_v58 = vpop.xlane.xlu0 %3280  ;;  %v9127_v18 = vpop.xlane.xlu1 %3283 }
 0x53c   : > { %11053 = vst [vmem:[#allocation179_spill] sm:$0xff] %v9125_v58  ;;  %11054 = vst [vmem:[#allocation162_spill] sm:$0xff] %v9127_v18 }
 0x53f   : > { %v9129_v13 = vpop.xlane.xlu0 %3286  ;;  %v9131_v48 = vpop.xlane.xlu1 %3289 }
 0x540   : > { %11055 = vst [vmem:[#allocation132_spill] sm:$0xff] %v9129_v13  ;;  %11056 = vst [vmem:[#allocation180_spill] sm:$0xff] %v9131_v48 }
 0x543   : > { %v9133_v38 = vpop.xlane.xlu0 %3292  ;;  %v9135_v45 = vpop.xlane.xlu1 %3295 }
 0x544   : > { %11057 = vst [vmem:[#allocation181_spill] sm:$0xff] %v9133_v38  ;;  %11058 = vst [vmem:[#allocation131_spill] sm:$0xff] %v9135_v45  ;;  %v2528_v45 = vld [vmem:[#allocation4] sm:$0x1] }
 0x547   : > { %v9137_v52 = vpop.xlane.xlu0 %3298  ;;  %v9139_v37 = vpop.xlane.xlu1 %3301 }
 0x548   : > { %11059 = vst [vmem:[#allocation133_spill] sm:$0xff] %v9137_v52  ;;  %11060 = vst [vmem:[#allocation182_spill] sm:$0xff] %v9139_v37 }
 0x54b   : > { %v9141_v20 = vpop.xlane.xlu0 %3304  ;;  %v9143_v1 = vpop.xlane.xlu1 %3307 }
 0x54c   : > { %11061 = vst [vmem:[#allocation183_spill] sm:$0xff] %v9141_v20  ;;  %11062 = vst [vmem:[#allocation105_spill] sm:$0xff] %v9143_v1 }
 0x54f   : > { %v9145_v11 = vpop.xlane.xlu0 %3310  ;;  %v9147_v58 = vpop.xlane.xlu1 %3313 }
 0x550   : > { %11063 = vst [vmem:[#allocation135_spill] sm:$0xff] %v9145_v11  ;;  %11064 = vst [vmem:[#allocation184_spill] sm:$0xff] %v9147_v58 }
 0x553   : > { %v9149_v18 = vpop.xlane.xlu0 %3316  ;;  %v9151_v13 = vpop.xlane.xlu1 %3319 }
 0x554   : > { %11065 = vst [vmem:[#allocation185_spill] sm:$0xff] %v9149_v18  ;;  %11066 = vst [vmem:[#allocation134_spill] sm:$0xff] %v9151_v13 }
 0x557   : > { %v9153_v48 = vpop.xlane.xlu0 %3322  ;;  %v9155_v38 = vpop.xlane.xlu1 %3325 }
 0x558   : > { %11067 = vst [vmem:[#allocation107_spill] sm:$0xff] %v9153_v48  ;;  %11068 = vst [vmem:[#allocation153_spill] sm:$0xff] %v9155_v38 }
 0x55b   : > { %v2679_v52 = vpop.permute.xlu0 %2678  ;;  %v3855_v55 = vpop.permute.xlu1 %3854 }
 0x55c   : > { %v2681_v37 = vadd.f32 %v2679_v52, %v2528_v45  ;;  %v3951_v20 = vsel %vm3254_vm9, %v3855_v55, 0.0 }
 0x55d   : > { %3952 = vadd.xlane.f32.xlu1 %v3951_v20 }
 0x55e   : > { %2683 = vst.msk [vmem:[#allocation4] sm:$0x1] %vm2682_vm2, %v2681_v37 }
 0x55f   : > { %v3853_v11 = vpop.permute.xlu0 %3852  ;;  %v3857_v1 = vpop.permute.xlu1 %3856 }
 0x560   : > { %v3948_v58 = vsel %vm3254_vm9, %v3853_v11, 0.0  ;;  %v3954_v18 = vsel %vm3254_vm9, %v3857_v1, 0.0 }
 0x561   : > { %3949 = vadd.xlane.f32.xlu0 %v3948_v58  ;;  %3955 = vadd.xlane.f32.xlu1 %v3954_v18  ;;  %v11069_v18 = vld [vmem:[#allocation123_spill] sm:$0xff] }
 0x563   : > { %v3859_v48 = vpop.permute.xlu0 %3858  ;;  %v3861_v13 = vpop.permute.xlu1 %3860 }
 0x564   : > { %v3957_v38 = vsel %vm3254_vm9, %v3859_v48, 0.0  ;;  %v3960_v55 = vsel %vm3254_vm9, %v3861_v13, 0.0  ;;  %v3819_v48 = vmul.f32 %v11069_v18, %v11069_v18 }
 0x565   : > { %3958 = vadd.xlane.f32.xlu1 %v3957_v38 }
 0x567   : > { %v3863_v39 = vpop.permute.xlu0 %3862  ;;  %v3865_v45 = vpop.permute.xlu1 %3864 }
 0x568   : > { %v3963_v37 = vsel %vm3254_vm9, %v3863_v39, 0.0 }
 0x569   : > { %3961 = vadd.xlane.f32.xlu1 %v3960_v55 }
 0x56b   : > { %v3869_v20 = vpop.permute.xlu1 %3868  ;;  %v3867_v52 = vpop.permute.xlu0 %3866 }
 0x56c   : > { %v3969_v1 = vsel %vm3254_vm9, %v3867_v52, 0.0  ;;  %v3972_v58 = vsel %vm3254_vm9, %v3869_v20, 0.0 }
 0x56d   : > { %3964 = vadd.xlane.f32.xlu1 %v3963_v37 }
 0x56f   : > { %v3873_v11 = vpop.permute.xlu1 %3872  ;;  %v3871_v38 = vpop.permute.xlu0 %3870 }
 0x570   : > { %v3975_v13 = vsel %vm3254_vm9, %v3871_v38, 0.0  ;;  %v3978_v37 = vsel %vm3254_vm9, %v3873_v11, 0.0 }
 0x571   : > { %3970 = vadd.xlane.f32.xlu1 %v3969_v1 }
 0x573   : > { %v3877_v59 = vpop.permute.xlu1 %3876  ;;  %v3875_v55 = vpop.permute.xlu0 %3874 }
 0x574   : > { %v3981_v52 = vsel %vm3254_vm9, %v3875_v55, 0.0  ;;  %v3984_v27 = vsel %vm3254_vm9, %v3877_v59, 0.0 }
 0x575   : > { %3973 = vadd.xlane.f32.xlu1 %v3972_v58 }
 0x577   : > { %3914 = vrot.lane.b32.xlu0 %v3819_v48, %s5939_s20  ;;  %v3881_v39 = vpop.permute.xlu1 %3880  ;;  %v3879_v20 = vpop.permute.xlu0 %3878 }
 0x578   : > { %v3987_v48 = vsel %vm3254_vm9, %v3879_v20, 0.0  ;;  %v3990_v38 = vsel %vm3254_vm9, %v3881_v39, 0.0 }
 0x579   : > { %3976 = vadd.xlane.f32.xlu1 %v3975_v13 }
 0x57b   : > { %v3885_v1 = vpop.permute.xlu1 %3884  ;;  %v3883_v58 = vpop.permute.xlu0 %3882 }
 0x57c   : > { %v3996_v11 = vsel %vm3254_vm9, %v3885_v1, 0.0  ;;  %v3993_v39 = vsel %vm3254_vm9, %v3883_v58, 0.0 }
 0x57d   : > { %3979 = vadd.xlane.f32.xlu1 %v3978_v37 }
 0x57f   : > { %v3889_v18 = vpop.permute.xlu1 %3888  ;;  %v3887_v54 = vpop.permute.xlu0 %3886 }
 0x580   : > { %v3999_v1 = vsel %vm3254_vm9, %v3887_v54, 0.0  ;;  %v3564_v54 = vmul.f32 %v11006_v32, %v11006_v32 }
 0x581   : > { %3982 = vadd.xlane.f32.xlu1 %v3981_v52  ;;  %v4002_v52 = vsel %vm3254_vm9, %v3889_v18, 0.0 }
 0x583   : > { %v3893_v13 = vpop.permute.xlu1 %3892  ;;  %v3891_v37 = vpop.permute.xlu0 %3890 }
 0x584   : > { %v4008_v59 = vsel %vm3254_vm9, %v3893_v13, 0.0 }
 0x585   : > { %3985 = vadd.xlane.f32.xlu1 %v3984_v27  ;;  %v3966_v27 = vsel %vm3254_vm9, %v3865_v45, 0.0  ;;  %v4005_v45 = vsel %vm3254_vm9, %v3891_v37, 0.0  ;;  %v3596_v37 = vsel %vm3254_vm9, %v3564_v54, 0.0 }
 0x587   : > { %v3897_v55 = vpop.permute.xlu1 %3896 }
 0x589   : > { %3988 = vadd.xlane.f32.xlu1 %v3987_v48  ;;  %v3895_v48 = vpop.permute.xlu0 %3894 }
 0x58a   : > { %v4011_v58 = vsel %vm3254_vm9, %v3895_v48, 0.0 }
 0x58b   : > { %v3901_v20 = vpop.permute.xlu1 %3900 }
 0x58d   : > { %3991 = vadd.xlane.f32.xlu1 %v3990_v38  ;;  %v4014_v38 = vsel %vm3254_vm9, %v3897_v55, 0.0  ;;  %v3899_v18 = vpop.permute.xlu0 %3898 }
 0x591   : > { %3997 = vadd.xlane.f32.xlu1 %v3996_v11  ;;  %v3905_v11 = vpop.permute.xlu1 %3904 }
 0x592   : > { %v4026_v13 = vsel %vm3254_vm9, %v3905_v11, 0.0 }
 0x595   : > { %4003 = vadd.xlane.f32.xlu1 %v4002_v52  ;;  %v4020_v52 = vsel %vm3254_vm9, %v3901_v20, 0.0  ;;  %v4017_v20 = vsel %vm3254_vm9, %v3899_v18, 0.0 }
 0x596   : > { %3967 = vadd.xlane.f32.xlu0 %v3966_v27  ;;  %v3909_v27 = vpop.permute.xlu1 %3908 }
 0x597   : > { %v4032_v55 = vsel %vm3254_vm9, %v3909_v27, 0.0 }
 0x599   : > { %4009 = vadd.xlane.f32.xlu1 %v4008_v59  ;;  %v3903_v59 = vpop.permute.xlu0 %3902 }
 0x59a   : > { %3994 = vadd.xlane.f32.xlu0 %v3993_v39 }
 0x59d   : > { %4015 = vadd.xlane.f32.xlu1 %v4014_v38  ;;  %v3907_v39 = vpop.permute.xlu0 %3906  ;;  %v3913_v38 = vpop.permute.xlu1 %3912 }
 0x59e   : > { %4000 = vadd.xlane.f32.xlu0 %v3999_v1  ;;  %v4023_v1 = vsel %vm3254_vm9, %v3903_v59, 0.0  ;;  %v4038_v48 = vsel %vm3254_vm9, %v3913_v38, 0.0  ;;  %v4029_v11 = vsel %vm3254_vm9, %v3907_v39, 0.0  ;;  %v3571_v38 = vmul.f32 %v8487_v4, %v8487_v4 }
 0x5a1   : > { %4021 = vadd.xlane.f32.xlu1 %v4020_v52  ;;  %v3911_v52 = vpop.permute.xlu0 %3910 }
 0x5a2   : > { %4006 = vadd.xlane.f32.xlu0 %v4005_v45  ;;  %v4035_v45 = vsel %vm3254_vm9, %v3911_v52, 0.0  ;;  %v3575_v52 = vmul.f32 %v8541_v31, %v8541_v31 }
 0x5a5   : > { %4027 = vadd.xlane.f32.xlu1 %v4026_v13  ;;  %v11070_v13 = vld [vmem:[#allocation138_spill] sm:$0xff] }
 0x5a6   : > { %4012 = vadd.xlane.f32.xlu0 %v4011_v58  ;;  %v3565_v18 = vmul.f32 %v11070_v13, %v11070_v13  ;;  %v3566_v58 = vmul.f32 %v11010_v53, %v11010_v53 }
 0x5a8   : > { %v3599_v27 = vsel %vm3254_vm9, %v3565_v18, 0.0  ;;  %v3602_v59 = vsel %vm3254_vm9, %v3566_v58, 0.0  ;;  %v3577_v18 = vmul.f32 %v8567_v29, %v8567_v29  ;;  %v3579_v58 = vmul.f32 %v8593_v50, %v8593_v50 }
 0x5a9   : > { %4033 = vadd.xlane.f32.xlu1 %v4032_v55  ;;  %v3567_v55 = vmul.f32 %v11007_v57, %v11007_v57 }
 0x5aa   : > { %4018 = vadd.xlane.f32.xlu0 %v4017_v20  ;;  %v11071_v20 = vld [vmem:[#allocation115_spill] sm:$0xff] }
 0x5ab   : > { %v3605_v54 = vsel %vm3254_vm9, %v3567_v55, 0.0  ;;  %v3569_v39 = vmul.f32 %v11071_v20, %v11071_v20 }
 0x5ad   : > { %3597 = vadd.xlane.f32.xlu1 %v3596_v37  ;;  %v3611_v37 = vsel %vm3254_vm9, %v3569_v39, 0.0 }
 0x5ae   : > { %4024 = vadd.xlane.f32.xlu0 %v4023_v1  ;;  %v3617_v1 = vsel %vm3254_vm9, %v3571_v38, 0.0 }
 0x5b1   : > { %4039 = vadd.xlane.f32.xlu1 %v4038_v48  ;;  %v3573_v48 = vmul.f32 %v8515_v43, %v8515_v43 }
 0x5b2   : > { %4030 = vadd.xlane.f32.xlu0 %v4029_v11 }
 0x5b3   : > { %v3623_v11 = vsel %vm3254_vm9, %v3573_v48, 0.0 }
 0x5b6   : > { %4036 = vadd.xlane.f32.xlu0 %v4035_v45  ;;  %v3629_v45 = vsel %vm3254_vm9, %v3575_v52, 0.0 }
 0x5ba   : > { %3600 = vadd.xlane.f32.xlu0 %v3599_v27  ;;  %v3635_v27 = vsel %vm3254_vm9, %v3577_v18, 0.0 }
 0x5be   : > { %3603 = vadd.xlane.f32.xlu0 %v3602_v59  ;;  %v3641_v59 = vsel %vm3254_vm9, %v3579_v58, 0.0 }
 0x5c2   : > { %3606 = vadd.xlane.f32.xlu0 %v3605_v54 }
 0x5c6   : > { %3612 = vadd.xlane.f32.xlu0 %v3611_v37 }
 0x5ca   : > { %3618 = vadd.xlane.f32.xlu0 %v3617_v1 }
 0x5ce   : > { %3624 = vadd.xlane.f32.xlu0 %v3623_v11  ;;  %v3568_v11 = vmul.f32 %v8476_v46, %v8476_v46 }
 0x5d0   : > { %v3608_v52 = vsel %vm3254_vm9, %v3568_v11, 0.0 }
 0x5d2   : > { %3630 = vadd.xlane.f32.xlu0 %v3629_v45  ;;  %v3570_v45 = vmul.f32 %v8498_v8, %v8498_v8 }
 0x5d4   : > { %v3614_v18 = vsel %vm3254_vm9, %v3570_v45, 0.0 }
 0x5d6   : > { %3636 = vadd.xlane.f32.xlu0 %v3635_v27  ;;  %v3572_v27 = vmul.f32 %v8524_v7, %v8524_v7 }
 0x5da   : > { %3642 = vadd.xlane.f32.xlu0 %v3641_v59  ;;  %v3620_v59 = vsel %vm3254_vm9, %v3572_v27, 0.0 }
 0x5e6   : > { %v3953_v55 = vpop.xlane.xlu1 %3952 }
 0x5ea   : > { %v3950_v54 = vpop.xlane.xlu0 %3949  ;;  %v3956_v39 = vpop.xlane.xlu1 %3955 }
 0x5eb   : > { %v4044_v37 = vadd.f32 1e-16, %v3950_v54  ;;  %v4046_v38 = vadd.f32 1e-16, %v3956_v39  ;;  %v3574_v39 = vmul.f32 %v8550_v16, %v8550_v16 }
 0x5ed   : > { %5538 = vrsqrt.f32 %v4044_v37 }
 0x5ee   : > { %v3915_v1 = vpop.permute.xlu0 %3914  ;;  %5540 = vrsqrt.f32 %v4046_v38  ;;  %v3626_v38 = vsel %vm3254_vm9, %v3574_v39, 0.0 }
 0x5ef   : > { %v4041_v48 = vsel %vm3254_vm9, %v3915_v1, 0.0 }
 0x5f0   : > { %4042 = vadd.xlane.f32.xlu1 %v4041_v48  ;;  %v3576_v48 = vmul.f32 %v8576_v22, %v8576_v22 }
 0x5f2   : > { %v3632_v11 = vsel %vm3254_vm9, %v3576_v48, 0.0 }
 0x5f4   : > { %3609 = vadd.xlane.f32.xlu1 %v3608_v52  ;;  %v4045_v52 = vadd.f32 1e-16, %v3953_v55 }
 0x5f6   : > { %5542 = vrsqrt.f32 %v4045_v52 }
 0x5f8   : > { %3615 = vadd.xlane.f32.xlu1 %v3614_v18  ;;  %v3580_v18 = vmul.f32 %v8628_v44, %v8628_v44 }
 0x5fa   : > { %v5539_v58 = vpop.eup %5538 }
 0x5fb   : > { %v4108_v54 = vmul.f32 %v5539_v58, %v11027_v28  ;;  %v5541_v37 = vpop.eup %5540  ;;  %v3578_v28 = vmul.f32 %v8602_v12, %v8602_v12  ;;  %v3959_v58 = vpop.xlane.xlu1 %3958 }
 0x5fc   : > { %3621 = vadd.xlane.f32.xlu1 %v3620_v59  ;;  %v4110_v1 = vmul.f32 %v5541_v37, %v11026_v6  ;;  %v3644_v6 = vsel %vm3254_vm9, %v3580_v18, 0.0  ;;  %v3583_v37 = vmul.f32 %v8645_v62, %v8645_v62 }
 0x5fd   : > { %4172 = vrot.lane.b32.xlu0 %v4108_v54, %s5939_s20  ;;  %v3638_v45 = vsel %vm3254_vm9, %v3578_v28, 0.0  ;;  %v3582_v54 = vmul.f32 %v8654_v9, %v8654_v9 }
 0x5ff   : > { %v3962_v55 = vpop.xlane.xlu1 %3961  ;;  %v3650_v39 = vsel %vm3254_vm9, %v3582_v54, 0.0 }
 0x600   : > { %3627 = vadd.xlane.f32.xlu1 %v3626_v38  ;;  %v3653_v38 = vsel %vm3254_vm9, %v3583_v37, 0.0 }
 0x601   : > { %4176 = vrot.lane.b32.xlu0 %v4110_v1, %s5939_s20  ;;  %v4048_v1 = vadd.f32 1e-16, %v3962_v55  ;;  %v3586_v55 = vmul.f32 %v8709_v30, %v8709_v30 }
 0x603   : > { %v5543_v27 = vpop.eup %5542  ;;  %v3965_v48 = vpop.xlane.xlu1 %3964  ;;  %5544 = vrsqrt.f32 %v4048_v1 }
 0x604   : > { %3633 = vadd.xlane.f32.xlu1 %v3632_v11  ;;  %v4109_v59 = vmul.f32 %v5543_v27, %v11024_v51  ;;  %v4049_v11 = vadd.f32 1e-16, %v3965_v48 }
 0x606   : > { %5546 = vrsqrt.f32 %v4049_v11  ;;  %v3584_v11 = vmul.f32 %v8681_v17, %v8681_v17 }
 0x608   : > { %3639 = vadd.xlane.f32.xlu1 %v3638_v45  ;;  %v4047_v45 = vadd.f32 1e-16, %v3959_v58  ;;  %v3971_v58 = vpop.xlane.xlu1 %3970 }
 0x609   : > { %v4051_v37 = vadd.f32 1e-16, %v3971_v58 }
 0x60a   : > { %5548 = vrsqrt.f32 %v4047_v45 }
 0x60b   : > { %5550 = vrsqrt.f32 %v4051_v37 }
 0x60c   : > { %3645 = vadd.xlane.f32.xlu1 %v3644_v6  ;;  %v3581_v6 = vmul.f32 %v8619_v23, %v8619_v23 }
 0x60e   : > { %v3647_v27 = vsel %vm3254_vm9, %v3581_v6, 0.0 }
 0x610   : > { %v5545_v51 = vpop.eup %5544 }
 0x611   : > { %v4112_v28 = vmul.f32 %v5545_v51, %v8556_v40  ;;  %v3585_v40 = vmul.f32 %v8671_v33, %v8671_v33 }
 0x613   : > { %v5547_v52 = vpop.eup %5546 }
 0x614   : > { %v4113_v18 = vmul.f32 %v5547_v52, %v11029_v42  ;;  %v3659_v42 = vsel %vm3254_vm9, %v3585_v40, 0.0 }
 0x61d   : > { %4174 = vrot.lane.b32.xlu1 %v4109_v59, %s5939_s20  ;;  %v5549_v59 = vpop.eup %5548 }
 0x61e   : > { %v4111_v54 = vmul.f32 %v5549_v59, %v11028_v35  ;;  %v5551_v51 = vpop.eup %5550 }
 0x61f   : > { %v3968_v35 = vpop.xlane.xlu0 %3967  ;;  %v4115_v52 = vmul.f32 %v5551_v51, %v11030_v61 }
 0x620   : > { %3651 = vadd.xlane.f32.xlu0 %v3650_v39  ;;  %v3662_v39 = vsel %vm3254_vm9, %v3586_v55, 0.0  ;;  %v4050_v48 = vadd.f32 1e-16, %v3968_v35 }
 0x624   : > { %3654 = vadd.xlane.f32.xlu0 %v3653_v38  ;;  %v3974_v38 = vpop.xlane.xlu1 %3973 }
 0x625   : > { %v4052_v1 = vadd.f32 1e-16, %v3974_v38 }
 0x627   : > { %5552 = vrsqrt.f32 %v4052_v1 }
 0x628   : > { %5554 = vrsqrt.f32 %v4050_v48  ;;  %v3977_v59 = vpop.xlane.xlu1 %3976  ;;  %v11073_v48 = vld [vmem:[#allocation151_spill] sm:$0xff] }
 0x629   : > { %v4053_v55 = vadd.f32 1e-16, %v3977_v59 }
 0x62c   : > { %v3980_v58 = vpop.xlane.xlu1 %3979 }
 0x630   : > { %v3983_v35 = vpop.xlane.xlu1 %3982 }
 0x634   : > { %v5553_v45 = vpop.eup %5552  ;;  %v3986_v51 = vpop.xlane.xlu1 %3985 }
 0x635   : > { %v5555_v6 = vpop.eup %5554 }
 0x63a   : > { %4180 = vrot.lane.b32.xlu0 %v4112_v28, %s5939_s20  ;;  %v3656_v28 = vsel %vm3254_vm9, %v3584_v11, 0.0  ;;  %v3590_v11 = vmul.f32 %v11073_v48, %v11073_v48  ;;  %v11078_v48 = vld [vmem:[#allocation125_spill] sm:$0xff] }
 0x63e   : > { %4182 = vrot.lane.b32.xlu0 %v4113_v18, %s5939_s20  ;;  %v4116_v18 = vmul.f32 %v5553_v45, %v8608_v24  ;;  %v3587_v24 = vmul.f32 %v8699_v49, %v8699_v49  ;;  %v4055_v45 = vadd.f32 1e-16, %v3983_v35  ;;  %v11076_v35 = vld [vmem:[#allocation124_spill] sm:$0xff] }
 0x641   : > { %3648 = vadd.xlane.f32.xlu1 %v3647_v27  ;;  %v4114_v27 = vmul.f32 %v5555_v6, %v8582_v41 }
 0x652   : > { %4178 = vrot.lane.b32.xlu1 %v4111_v54, %s5939_s20  ;;  %v11072_v54 = vld [vmem:[#allocation152_spill] sm:$0xff] }
 0x653   : > { %v3588_v40 = vmul.f32 %v11072_v54, %v11072_v54 }
 0x655   : > { %v3668_v61 = vsel %vm3254_vm9, %v3588_v40, 0.0 }
 0x65d   : > { %3660 = vadd.xlane.f32.xlu0 %v3659_v42  ;;  %v4054_v42 = vadd.f32 1e-16, %v3980_v58  ;;  %v3995_v58 = vpop.xlane.xlu0 %3994 }
 0x65f   : > { %5556 = vrsqrt.f32 %v4054_v42  ;;  %v11075_v42 = vld [vmem:[#allocation127_spill] sm:$0xff] }
 0x660   : > { %5558 = vrsqrt.f32 %v4053_v55  ;;  %v3592_v55 = vmul.f32 %v11075_v42, %v11075_v42  ;;  %v4059_v42 = vadd.f32 1e-16, %v3995_v58 }
 0x661   : > { %3663 = vadd.xlane.f32.xlu0 %v3662_v39  ;;  %v3665_v39 = vsel %vm3254_vm9, %v3587_v24, 0.0  ;;  %v4001_v24 = vpop.xlane.xlu0 %4000 }
 0x66c   : > { %v5557_v41 = vpop.eup %5556 }
 0x66d   : > { %v4118_v37 = vmul.f32 %v5557_v41, %v8634_v14  ;;  %v5559_v38 = vpop.eup %5558  ;;  %v3680_v41 = vsel %vm3254_vm9, %v3592_v55, 0.0 }
 0x66e   : > { %v4117_v1 = vmul.f32 %v5559_v38, %v8585_v56  ;;  %v4007_v38 = vpop.xlane.xlu0 %4006 }
 0x676   : > { %3657 = vadd.xlane.f32.xlu1 %v3656_v28  ;;  %v3674_v28 = vsel %vm3254_vm9, %v3590_v11, 0.0 }
 0x677   : > { %4186 = vrot.lane.b32.xlu0 %v4115_v52, %s5939_s20  ;;  %v4056_v52 = vadd.f32 1e-16, %v3986_v51 }
 0x679   : > { %5560 = vrsqrt.f32 %v4056_v52 }
 0x67a   : > { %5562 = vrsqrt.f32 %v4055_v45 }
 0x67b   : > { %4188 = vrot.lane.b32.xlu0 %v4116_v18, %s5939_s20  ;;  %v11074_v18 = vld [vmem:[#allocation150_spill] sm:$0xff] }
 0x67c   : > { %v3589_v14 = vmul.f32 %v11074_v18, %v11074_v18 }
 0x67e   : > { %v3671_v6 = vsel %vm3254_vm9, %v3589_v14, 0.0 }
 0x686   : > { %v5561_v56 = vpop.eup %5560 }
 0x687   : > { %4184 = vrot.lane.b32.xlu1 %v4114_v27, %s5939_s20  ;;  %v4120_v27 = vmul.f32 %v5561_v56, %v8660_v15  ;;  %v5563_v59 = vpop.eup %5562  ;;  %v9303_v15 = vpop.xlane.xlu0 %4012 }
 0x688   : > { %v4119_v40 = vmul.f32 %v5563_v59, %v8611_v21  ;;  %v3591_v21 = vmul.f32 %v11076_v35, %v11076_v35 }
 0x68a   : > { %v3677_v51 = vsel %vm3254_vm9, %v3591_v21, 0.0 }
 0x68b   : > { %v4019_v11 = vpop.xlane.xlu0 %4018 }
 0x68f   : > { %v4025_v52 = vpop.xlane.xlu0 %4024 }
 0x693   : > { %v9310_v14 = vpop.xlane.xlu0 %4030 }
 0x697   : > { %v9312_v56 = vpop.xlane.xlu0 %4036 }
 0x69a   : > { %3669 = vadd.xlane.f32.xlu0 %v3668_v61  ;;  %v3989_v61 = vpop.xlane.xlu1 %3988 }
 0x6ab   : > { %3666 = vadd.xlane.f32.xlu1 %v3665_v39  ;;  %v3992_v39 = vpop.xlane.xlu1 %3991 }
 0x6af   : > { %v3998_v59 = vpop.xlane.xlu1 %3997 }
 0x6b0   : > { %4192 = vrot.lane.b32.xlu0 %v4118_v37, %s5939_s20  ;;  %v4058_v37 = vadd.f32 1e-16, %v3992_v39 }
 0x6b2   : > { %5564 = vrsqrt.f32 %v4058_v37 }
 0x6bc   : > { %4190 = vrot.lane.b32.xlu1 %v4117_v1, %s5939_s20  ;;  %v4057_v1 = vadd.f32 1e-16, %v3989_v61  ;;  %v4004_v61 = vpop.xlane.xlu1 %4003 }
 0x6be   : > { %5566 = vrsqrt.f32 %v4057_v1 }
 0x6c0   : > { %v4010_v39 = vpop.xlane.xlu1 %4009 }
 0x6c4   : > { %v4016_v21 = vpop.xlane.xlu1 %4015 }
 0x6c5   : > { %v4066_v58 = vadd.f32 1e-16, %v4016_v21 }
 0x6cf   : > { %3675 = vadd.xlane.f32.xlu0 %v3674_v28  ;;  %v5565_v28 = vpop.eup %5564 }
 0x6d0   : > { %v4122_v45 = vmul.f32 %v5565_v28, %v8687_v25  ;;  %v4061_v28 = vadd.f32 1e-16, %v4001_v24 }
 0x6e0   : > { %3672 = vadd.xlane.f32.xlu1 %v3671_v6  ;;  %v5567_v6 = vpop.eup %5566 }
 0x6e5   : > { %4196 = vrot.lane.b32.xlu0 %v4120_v27, %s5939_s20  ;;  %v4121_v27 = vmul.f32 %v5567_v6, %v8637_v10  ;;  %v4062_v6 = vadd.f32 1e-16, %v4004_v61 }
 0x6f1   : > { %4194 = vrot.lane.b32.xlu1 %v4119_v40, %s5939_s20  ;;  %v9316_v40 = vpop.xlane.xlu0 %3600 }
 0x6f5   : > { %v9318_v55 = vpop.xlane.xlu0 %3603 }
 0x6f9   : > { %v9322_v37 = vpop.xlane.xlu0 %3606 }
 0x6fd   : > { %v9325_v10 = vpop.xlane.xlu0 %3612 }
 0x704   : > { %3681 = vadd.xlane.f32.xlu0 %v3680_v41  ;;  %v11077_v41 = vld [vmem:[#allocation102_spill] sm:$0xff] }
 0x705   : > { %v3594_v25 = vmul.f32 %v11077_v41, %v11077_v41  ;;  %v4063_v41 = vadd.f32 1e-16, %v4007_v38 }
 0x707   : > { %v3686_v1 = vsel %vm3254_vm9, %v3594_v25, 0.0  ;;  %v3593_v25 = vmul.f32 %v11078_v48, %v11078_v48 }
 0x709   : > { %v3683_v24 = vsel %vm3254_vm9, %v3593_v25, 0.0 }
 0x715   : > { %3678 = vadd.xlane.f32.xlu1 %v3677_v51  ;;  %v4060_v51 = vadd.f32 1e-16, %v3998_v59 }
 0x717   : > { %5568 = vrsqrt.f32 %v4060_v51 }
 0x718   : > { %5570 = vrsqrt.f32 %v4061_v28 }
 0x719   : > { %5572 = vrsqrt.f32 %v4062_v6 }
 0x71a   : > { %4200 = vrot.lane.b32.xlu0 %v4122_v45, %s5939_s20  ;;  %v4022_v45 = vpop.xlane.xlu1 %4021  ;;  %5574 = vrsqrt.f32 %v4059_v42 }
 0x71b   : > { %5576 = vrsqrt.f32 %v4063_v41  ;;  %v4068_v21 = vadd.f32 1e-16, %v4022_v45 }
 0x71e   : > { %v9329_v35 = vpop.xlane.xlu1 %4027 }
 0x722   : > { %v9336_v61 = vpop.xlane.xlu1 %4033 }
 0x724   : > { %v5569_v51 = vpop.eup %5568 }
 0x725   : > { %v4124_v28 = vmul.f32 %v5569_v51, %v8715_v26  ;;  %v5571_v6 = vpop.eup %5570 }
 0x726   : > { %4198 = vrot.lane.b32.xlu1 %v4121_v27, %s5939_s20  ;;  %v9327_v27 = vpop.xlane.xlu0 %3618  ;;  %v9342_v42 = vpop.xlane.xlu1 %3597  ;;  %v4125_v41 = vmul.f32 %v5571_v6, %v8690_v2 }
 0x727   : > { %v5573_v25 = vpop.eup %5572 }
 0x728   : > { %v4126_v26 = vmul.f32 %v5573_v25, %v8732_v19  ;;  %v4071_v19 = vadd.f32 1e-16, %v9310_v14 }
 0x72a   : > { %v9333_v59 = vpop.xlane.xlu0 %3624  ;;  %v9349_v51 = vpop.xlane.xlu1 %4039 }
 0x72e   : > { %v9339_v38 = vpop.xlane.xlu0 %3630 }
 0x732   : > { %v9346_v48 = vpop.xlane.xlu0 %3636 }
 0x736   : > { %v9354_v6 = vpop.xlane.xlu0 %3642 }
 0x739   : > { %3687 = vadd.xlane.f32.xlu0 %v3686_v1  ;;  %v4064_v1 = vadd.f32 1e-16, %v4010_v39  ;;  %v4067_v39 = vadd.f32 1e-16, %v4019_v11 }
 0x73a   : > { %v9360_v25 = vpop.permute.xlu0 %4172 }
 0x73b   : > { %5578 = vrsqrt.f32 %v4064_v1  ;;  %v5575_v1 = vpop.eup %5574 }
 0x73c   : > { %5580 = vrsqrt.f32 %v4066_v58  ;;  %v4069_v58 = vadd.f32 1e-16, %v4025_v52  ;;  %v4123_v11 = vmul.f32 %v5575_v1, %v11031_v0 }
 0x73d   : > { %5582 = vrsqrt.f32 %v4067_v39 }
 0x73e   : > { %5584 = vrsqrt.f32 %v4068_v21  ;;  %v9366_v21 = vpop.permute.xlu0 %4176 }
 0x73f   : > { %5586 = vrsqrt.f32 %v4069_v58 }
 0x740   : > { %5588 = vrsqrt.f32 %v4071_v19 }
 0x742   : > { %v9370_v58 = vpop.xlane.xlu0 %3651 }
 0x746   : > { %v9375_v19 = vpop.xlane.xlu0 %3654 }
 0x74a   : > { %3684 = vadd.xlane.f32.xlu1 %v3683_v24  ;;  %v5577_v24 = vpop.eup %5576 }
 0x74b   : > { %v4127_v2 = vmul.f32 %v5577_v24, %v8718_v34  ;;  %v4073_v34 = vadd.f32 1e-16, %v9312_v56 }
 0x74d   : > { %5590 = vrsqrt.f32 %v4073_v34 }
 0x74f   : > { %4204 = vrot.lane.b32.xlu0 %v4124_v28, %s5939_s20  ;;  %v5579_v28 = vpop.eup %5578 }
 0x750   : > { %v4128_v45 = vmul.f32 %v5579_v28, %v8745_v60  ;;  %v5581_v39 = vpop.eup %5580 }
 0x751   : > { %v4130_v52 = vmul.f32 %v5581_v39, %v8759_v63  ;;  %v5583_v1 = vpop.eup %5582  ;;  %v9380_v39 = vpop.permute.xlu0 %4180 }
 0x752   : > { %v4131_v60 = vmul.f32 %v5583_v1, %v8748_v36 }
 0x753   : > { %4206 = vrot.lane.b32.xlu0 %v4125_v41, %s5939_s20  ;;  %v4043_v41 = vpop.xlane.xlu1 %4042 }
 0x754   : > { %v4075_v14 = vadd.f32 1e-16, %v4043_v41 }
 0x756   : > { %5592 = vrsqrt.f32 %v4075_v14 }
 0x757   : > { %4208 = vrot.lane.b32.xlu0 %v4126_v26, %s5939_s20  ;;  %v3610_v0 = vpop.xlane.xlu1 %3609  ;;  %v5585_v26 = vpop.eup %5584 }
 0x758   : > { %v4132_v56 = vmul.f32 %v5585_v26, %v8771_v47  ;;  %v11079_v47 = vld [vmem:[#allocation121_spill] sm:$0xff]  ;;  %v9386_v26 = vpop.permute.xlu0 %4182 }
 0x75b   : > { %4202 = vrot.lane.b32.xlu1 %v4123_v11, %s5939_s20  ;;  %4210 = vrot.lane.b32.xlu0 %v4127_v2, %s5939_s20  ;;  %v3616_v24 = vpop.xlane.xlu1 %3615  ;;  %v5587_v11 = vpop.eup %5586 }
 0x75c   : > { %v4133_v2 = vmul.f32 %v5587_v11, %v11035_v3  ;;  %v5589_v28 = vpop.eup %5588  ;;  %v11080_v3 = vld [vmem:[#allocation123_spill] sm:$0xff]  ;;  %v4070_v11 = vadd.f32 1e-16, %v9329_v35  ;;  %v4074_v35 = vadd.f32 1e-16, %v9349_v51  ;;  %v11083_v51 = vld [vmem:[#allocation148_spill] sm:$0xff] }
 0x75d   : > { %v4135_v36 = vmul.f32 %v5589_v28, %v11037_v5  ;;  %v5591_v41 = vpop.eup %5590  ;;  %v9392_v28 = vpop.xlane.xlu0 %3660 }
 0x75e   : > { %v4137_v34 = vmul.f32 %v5591_v41, %v11079_v47  ;;  %v3693_v41 = vadd.f32 1e-16, %v9316_v40  ;;  %v3694_v47 = vadd.f32 1e-16, %v9318_v55 }
 0x75f   : > { %4212 = vrot.lane.b32.xlu0 %v4128_v45, %s5939_s20  ;;  %v3622_v63 = vpop.xlane.xlu1 %3621 }
 0x763   : > { %4216 = vrot.lane.b32.xlu0 %v4130_v52, %s5939_s20  ;;  %v3628_v45 = vpop.xlane.xlu1 %3627  ;;  %v5593_v52 = vpop.eup %5592 }
 0x764   : > { %v4139_v14 = vmul.f32 %v5593_v52, %v11080_v3  ;;  %v9400_v52 = vpop.xlane.xlu0 %3663  ;;  %v3696_v3 = vadd.f32 1e-16, %v3610_v0 }
 0x767   : > { %4218 = vrot.lane.b32.xlu0 %v4131_v60, %s5939_s20  ;;  %v3634_v1 = vpop.xlane.xlu1 %3633  ;;  %v4065_v60 = vadd.f32 1e-16, %v9303_v15  ;;  %v4072_v15 = vadd.f32 1e-16, %v9336_v61 }
 0x769   : > { %5594 = vrsqrt.f32 %v4065_v60  ;;  %v9403_v60 = vpop.permute.xlu0 %4186 }
 0x76a   : > { %5596 = vrsqrt.f32 %v4070_v11  ;;  %v11082_v11 = vld [vmem:[#allocation146_spill] sm:$0xff] }
 0x76b   : > { %4220 = vrot.lane.b32.xlu0 %v4132_v56, %s5939_s20  ;;  %v11081_v56 = vld [vmem:[#allocation126_spill] sm:$0xff]  ;;  %5598 = vrsqrt.f32 %v3693_v41  ;;  %v3700_v41 = vadd.f32 1e-16, %v3622_v63  ;;  %v11084_v63 = vld [vmem:[#allocation149_spill] sm:$0xff] }
 0x76c   : > { %v3595_v5 = vmul.f32 %v11081_v56, %v11081_v56  ;;  %5600 = vrsqrt.f32 %v4072_v15 }
 0x76d   : > { %5602 = vrsqrt.f32 %v3694_v47  ;;  %v4189_v15 = vpop.permute.xlu0 %4188 }
 0x76e   : > { %5604 = vrsqrt.f32 %v4074_v35  ;;  %v3702_v35 = vadd.f32 1e-16, %v3628_v45 }
 0x76f   : > { %4222 = vrot.lane.b32.xlu0 %v4133_v2, %s5939_s20  ;;  %v3640_v2 = vpop.xlane.xlu1 %3639  ;;  %5606 = vrsqrt.f32 %v3696_v3 }
 0x771   : > { %v9413_v33 = vpop.xlane.xlu0 %3669 }
 0x773   : > { %4226 = vrot.lane.b32.xlu0 %v4135_v36, %s5939_s20  ;;  %v3689_v36 = vsel %vm3254_vm9, %v3595_v5, 0.0  ;;  %v3698_v5 = vadd.f32 1e-16, %v3616_v24 }
 0x775   : > { %5608 = vrsqrt.f32 %v3698_v5 }
 0x776   : > { %v5595_v40 = vpop.eup %5594  ;;  %5610 = vrsqrt.f32 %v3700_v41 }
 0x777   : > { %4230 = vrot.lane.b32.xlu0 %v4137_v34, %s5939_s20  ;;  %v9398_v34 = vpop.xlane.xlu1 %3645  ;;  %v4129_v55 = vmul.f32 %v5595_v40, %v11082_v11  ;;  %5612 = vrsqrt.f32 %v3702_v35 }
 0x77b   : > { %4234 = vrot.lane.b32.xlu0 %v4139_v14, %s5939_s20  ;;  %v4175_v14 = vpop.permute.xlu1 %4174 }
 0x77f   : > { %3690 = vadd.xlane.f32.xlu1 %v3689_v36  ;;  %v9405_v61 = vpop.xlane.xlu1 %3648  ;;  %v5597_v36 = vpop.eup %5596 }
 0x780   : > { %v5599_v56 = vpop.eup %5598  ;;  %v4134_v0 = vmul.f32 %v5597_v36, %v11083_v51  ;;  %v3704_v36 = vadd.f32 1e-16, %v3634_v1 }
 0x781   : > { %v5601_v47 = vpop.eup %5600  ;;  %v3757_v49 = vmul.f32 %v5599_v56, %v11070_v13  ;;  %v4193_v56 = vpop.permute.xlu0 %4192 }
 0x782   : > { %v5603_v3 = vpop.eup %5602  ;;  %v4136_v5 = vmul.f32 %v5601_v47, %v11084_v63  ;;  %5614 = vrsqrt.f32 %v3704_v36 }
 0x783   : > { %v9411_v24 = vpop.permute.xlu1 %4178  ;;  %v4269_v40 = vmul.f32 %v4175_v14, %v3757_v49  ;;  %v5605_v11 = vpop.eup %5604  ;;  %v3706_v14 = vadd.f32 1e-16, %v3640_v2 }
 0x784   : > { %v5607_v51 = vpop.eup %5606 }
 0x785   : > { %v4303_v45 = vsel %vm3254_vm9, %v4269_v40, 0.0  ;;  %v3760_v47 = vmul.f32 %v5607_v51, %v8476_v46  ;;  %v9428_v63 = vpop.xlane.xlu0 %3675  ;;  %5616 = vrsqrt.f32 %v3706_v14 }
 0x787   : > { %v9418_v41 = vpop.xlane.xlu1 %3657  ;;  %v4272_v1 = vmul.f32 %v9380_v39, %v3760_v47  ;;  %v3692_v39 = vadd.f32 1e-16, %v9342_v42 }
 0x789   : > { %v4312_v2 = vsel %vm3254_vm9, %v4272_v1, 0.0  ;;  %5618 = vrsqrt.f32 %v3692_v39 }
 0x790   : > { %4214 = vrot.lane.b32.xlu1 %v4129_v55, %s5939_s20  ;;  %v3758_v55 = vmul.f32 %v5603_v3, %v11010_v53  ;;  %v5609_v53 = vpop.eup %5608  ;;  %v4185_v3 = vpop.permute.xlu1 %4184 }
 0x791   : > { %v5611_v40 = vpop.eup %5610 }
 0x792   : > { %v4270_v13 = vmul.f32 %v9366_v21, %v3758_v55  ;;  %v3762_v21 = vmul.f32 %v5609_v53, %v8498_v8  ;;  %v3764_v46 = vmul.f32 %v5611_v40, %v8524_v7  ;;  %v4197_v55 = vpop.permute.xlu0 %4196  ;;  %v3695_v8 = vadd.f32 1e-16, %v9322_v37 }
 0x793   : > { %v3699_v37 = vadd.f32 1e-16, %v9327_v27 }
 0x794   : > { %4224 = vrot.lane.b32.xlu1 %v4134_v0, %s5939_s20  ;;  %v11085_v0 = vld [vmem:[#allocation122_spill] sm:$0xff]  ;;  %v4306_v35 = vsel %vm3254_vm9, %v4270_v13, 0.0  ;;  %v4276_v36 = vmul.f32 %v4189_v15, %v3764_v46  ;;  %5620 = vrsqrt.f32 %v3695_v8  ;;  %v3697_v15 = vadd.f32 1e-16, %v9325_v10  ;;  %v5699_v10 = vld [vmem:[%s6127_s29] sm:$0xff]  ;;  %v9450_v40 = vpop.xlane.xlu1 %3666 }
 0x795   : > { %v4138_v49 = vmul.f32 %v5605_v11, %v11085_v0  ;;  %v5613_v11 = vpop.eup %5612  ;;  %vm2774_vm10 = vcmp.ne.f32.partialorder %v5699_v10, -1.0  ;;  %v3703_v46 = vadd.f32 1e-16, %v9339_v38 }
 0x796   : > { %v3766_v13 = vmul.f32 %v5613_v11, %v8550_v16  ;;  %v9436_v0 = vpop.xlane.xlu0 %3681  ;;  %v4324_v14 = vsel %vm3254_vm9, %v4276_v36, 0.0  ;;  %5622 = vrsqrt.f32 %v3697_v15  ;;  %v5700_v11 = vld [vmem:[%s6127_s29 + $0x10] sm:$0xff]  ;;  %v11091_v36 = vmov 0.0  }
 0x797   : > { %5624 = vrsqrt.f32 %v3699_v37  ;;  %vm2776_vm12 = vcmp.ne.f32.partialorder %v5700_v11, -1.0  ;;  %v11094_v37 = vld [vmem:[#allocation34_spill] sm:$0xff] }
 0x798   : > { %4228 = vrot.lane.b32.xlu1 %v4136_v5, %s5939_s20  ;;  %v4274_v5 = vmul.f32 %v4185_v3, %v3762_v21  ;;  %v5698_v3 = vld [vmem:[%s6127_s29 + $0x8] sm:$0xff]  ;;  %v3701_v21 = vadd.f32 1e-16, %v9333_v59  ;;  %v9470_v8 = vpop.permute.xlu1 %4190 }
 0x799   : > { %vm2775_vm5 = vcmp.ne.f32.partialorder %v5698_v3, -1.0 }
 0x79a   : > { %4304 = vadd.xlane.f32.xlu0 %v4303_v45  ;;  %v4318_v51 = vsel %vm3254_vm9, %v4274_v5, 0.0  ;;  %v5615_v45 = vpop.eup %5614  ;;  %v4201_v53 = vpop.permute.xlu0 %4200  ;;  %v11087_v5 = vld [vmem:[#allocation63_spill] sm:$0xff] }
 0x79b   : > { %v3768_v7 = vmul.f32 %v5615_v45, %v8576_v22  ;;  %v5617_v42 = vpop.eup %5616  ;;  %vm11095_vm6 = vcmp.lt.s32.totalorder %v11094_v37, %v11087_v5  ;;  %v11100_v37 = vld [vmem:[#allocation37_spill] sm:$0xff] }
 0x79c   : > { %4232 = vrot.lane.b32.xlu1 %v4138_v49, %s5939_s20  ;;  %v4278_v49 = vmul.f32 %v4193_v56, %v3766_v13  ;;  %v3770_v1 = vmul.f32 %v5617_v42, %v8602_v12  ;;  %v3708_v56 = vadd.f32 1e-16, %v9398_v34  ;;  %v5619_v27 = vpop.eup %5618  ;;  %v11086_v34 = vld [vmem:[#allocation32_spill] sm:$0xff] }
 0x79d   : > { %v4280_v47 = vmul.f32 %v4197_v55, %v3768_v7  ;;  %vm11088_vm11 = vcmp.lt.s32.totalorder %v11086_v34, %v11087_v5  ;;  %v3756_v59 = vmul.f32 %v5619_v27, %v11006_v32  ;;  %v3710_v55 = vadd.f32 1e-16, %v9370_v58  ;;  %v5701_v58 = vld [vmem:[%s6127_s29 + $0x18] sm:$0xff] }
 0x79e   : > { %4307 = vadd.xlane.f32.xlu0 %v4306_v35  ;;  %v4330_v16 = vsel %vm3254_vm9, %v4278_v49, 0.0  ;;  %v4282_v35 = vmul.f32 %v4201_v53, %v3770_v1  ;;  %5626 = vrsqrt.f32 %v3708_v56  ;;  %vm2807_vm3 = vmand %vm2775_vm5, %vm11088_vm11  ;;  %v11092_v49 = vld [vmem:[#allocation33_spill] sm:$0xff]  ;;  %vm2777_vm0 = vcmp.ne.f32.partialorder %v5701_v58, -1.0 }
 0x79f   : > { %v4336_v22 = vsel %vm3254_vm9, %v4280_v47, 0.0  ;;  %5628 = vrsqrt.f32 %v3701_v21  ;;  %v4268_v45 = vmul.f32 %v9360_v25, %v3756_v59  ;;  %vm11093_vm8 = vcmp.lt.s32.totalorder %v11092_v49, %v11087_v5  ;;  %v9486_v47 = vpop.xlane.xlu1 %3672  ;;  %vm2809_vm15 = vmand %vm2777_vm0, %vm11095_vm6 }
 0x7a0   : > { %v4342_v12 = vsel %vm3254_vm9, %v4282_v35, 0.0  ;;  %vm2808_vm7 = vmand %vm2776_vm12, %vm11093_vm8  ;;  %5630 = vrsqrt.f32 %v3703_v46  ;;  %v3712_v56 = vadd.f32 1e-16, %v9418_v41  ;;  %v9501_v10 = vsel %vm2809_vm15, 1.0, %v11091_v36 }
 0x7a1   : > { %v5621_v39 = vpop.eup %5620  ;;  %5632 = vrsqrt.f32 %v3710_v55  ;;  %v9483_v42 = vsel %vm2808_vm7, 1.0, %v11091_v36  ;;  %v3480_v34 = vsel %vm3384_vm13, %v9501_v10, 0.0  ;;  %v3714_v41 = vadd.f32 1e-16, %v9400_v52 }
 0x7a2   : > { %4313 = vadd.xlane.f32.xlu0 %v4312_v2  ;;  %v11089_v2 = vld [vmem:[#allocation31_spill] sm:$0xff]  ;;  %v3759_v25 = vmul.f32 %v5621_v39, %v11007_v57  ;;  %v3478_v1 = vsel %vm3384_vm13, %v9483_v42, 0.0  ;;  %v3711_v58 = vadd.f32 1e-16, %v9375_v19  ;;  %vm11101_vm12 = vcmp.lt.s32.totalorder %v11100_v37, %v11087_v5 }
 0x7a3   : > { %vm11090_vm4 = vcmp.lt.s32.totalorder %v11089_v2, %v11087_v5  ;;  %v5623_v7 = vpop.eup %5622  ;;  %v11096_v2 = vld [vmem:[#allocation35_spill] sm:$0xff]  ;;  %v4195_v46 = vpop.permute.xlu1 %4194 }
 0x7a4   : > { %vm2806_vm1 = vmand %vm2774_vm10, %vm11090_vm4  ;;  %v4271_v15 = vmul.f32 %v9411_v24, %v3759_v25  ;;  %v5625_v57 = vpop.eup %5624  ;;  %v3761_v24 = vmul.f32 %v5623_v7, %v11071_v20  ;;  %vm11097_vm5 = vcmp.lt.s32.totalorder %v11096_v2, %v11087_v5  ;;  %v5703_v20 = vld [vmem:[%s6127_s29 + $0x28] sm:$0xff] }
 0x7a5   : > { %v9467_v13 = vsel %vm2806_vm1, 1.0, %v11091_v36  ;;  %vm2779_vm11 = vcmp.ne.f32.partialorder %v5703_v20, -1.0 }
 0x7a6   : > { %4319 = vadd.xlane.f32.xlu0 %v4318_v51  ;;  %v9464_v51 = vsel %vm2807_vm3, 1.0, %v11091_v36  ;;  %v3475_v32 = vsel %vm3384_vm13, %v9467_v13, 0.0  ;;  %v4273_v21 = vmul.f32 %v9386_v26, %v3761_v24  ;;  %v3763_v26 = vmul.f32 %v5625_v57, %v8487_v4  ;;  %v11098_v4 = vld [vmem:[#allocation36_spill] sm:$0xff] }
 0x7a7   : > { %v3476_v38 = vsel %vm3384_vm13, %v9464_v51, 0.0  ;;  %vm11099_vm3 = vcmp.lt.s32.totalorder %v11098_v4, %v11087_v5  ;;  %v3716_v57 = vadd.f32 1e-16, %v9413_v33 }
 0x7a8   : > { %v3477_v53 = vadd.f32 %v3476_v38, %v3475_v32  ;;  %vm2811_vm4 = vmand %vm2779_vm11, %vm11099_vm3 }
 0x7aa   : > { %4325 = vadd.xlane.f32.xlu0 %v4324_v14  ;;  %v3705_v14 = vadd.f32 1e-16, %v9346_v48  ;;  %v5702_v48 = vld [vmem:[%s6127_s29 + $0x20] sm:$0xff]  ;;  %v3479_v27 = vadd.f32 %v3478_v1, %v3477_v53 }
 0x7ab   : > { %vm2778_vm14 = vcmp.ne.f32.partialorder %v5702_v48, -1.0  ;;  %v5627_v35 = vpop.eup %5626 }
 0x7ac   : > { %5634 = vrsqrt.f32 %v3705_v14  ;;  %vm2810_vm10 = vmand %vm2778_vm14, %vm11097_vm5  ;;  %v3772_v11 = vmul.f32 %v5627_v35, %v8628_v44  ;;  %v5629_v59 = vpop.eup %5628  ;;  %v3481_v32 = vadd.f32 %v3480_v34, %v3479_v27  ;;  %v5704_v44 = vld [vmem:[%s6127_s29 + $0x30] sm:$0xff]  ;;  %v9529_v14 = vpop.xlane.xlu1 %3678 }
 0x7ad   : > { %5636 = vrsqrt.f32 %v3712_v56  ;;  %v9516_v39 = vsel %vm2810_vm10, 1.0, %v11091_v36  ;;  %vm2780_vm1 = vcmp.ne.f32.partialorder %v5704_v44, -1.0  ;;  %v5631_v49 = vpop.eup %5630  ;;  %v5705_v56 = vld [vmem:[%s6127_s29 + $0x38] sm:$0xff]  ;;  %v5707_v44 = vld [vmem:[%s6127_s29 + $0x48] sm:$0xff] }
 0x7ae   : > { %4331 = vadd.xlane.f32.xlu0 %v4330_v16  ;;  %v4300_v16 = vsel %vm3254_vm9, %v4268_v45, 0.0  ;;  %v4275_v45 = vmul.f32 %v9403_v60, %v3763_v26  ;;  %v3482_v52 = vsel %vm3384_vm13, %v9516_v39, 0.0  ;;  %v3765_v60 = vmul.f32 %v5629_v59, %v8515_v43  ;;  %v5633_v7 = vpop.eup %5632  ;;  %vm2812_vm8 = vmand %vm2780_vm1, %vm11101_vm12  ;;  %v5706_v26 = vld [vmem:[%s6127_s29 + $0x40] sm:$0xff] }
 0x7af   : > { %v3483_v19 = vadd.f32 %v3482_v52, %v3481_v32  ;;  %v3767_v48 = vmul.f32 %v5631_v49, %v8541_v31  ;;  %v3774_v24 = vmul.f32 %v5633_v7, %v8654_v9  ;;  %vm2781_vm7 = vcmp.ne.f32.partialorder %v5705_v56, -1.0  ;;  %v11102_v31 = vld [vmem:[#allocation38_spill] sm:$0xff]  ;;  %v11104_v32 = vld [vmem:[#allocation39_spill] sm:$0xff] }
 0x7b0   : > { %v4277_v53 = vmul.f32 %v9470_v8, %v3765_v60  ;;  %v4321_v1 = vsel %vm3254_vm9, %v4275_v45, 0.0  ;;  %vm11103_vm0 = vcmp.lt.s32.totalorder %v11102_v31, %v11087_v5  ;;  %v3717_v9 = vadd.f32 1e-16, %v9486_v47 }
 0x7b1   : > { %vm2813_vm6 = vmand %vm2781_vm7, %vm11103_vm0  ;;  %vm2782_vm15 = vcmp.ne.f32.partialorder %v5706_v26, -1.0  ;;  %vm11105_vm14 = vcmp.lt.s32.totalorder %v11104_v32, %v11087_v5  ;;  %vm2783_vm10 = vcmp.ne.f32.partialorder %v5707_v44, -1.0  ;;  %v11110_v26 = vld [vmem:[#allocation42_spill] sm:$0xff] }
 0x7b2   : > { %4337 = vadd.xlane.f32.xlu0 %v4336_v22  ;;  %v3707_v22 = vadd.f32 1e-16, %v9354_v6  ;;  %v3709_v6 = vadd.f32 1e-16, %v9405_v61  ;;  %v4315_v61 = vsel %vm3254_vm9, %v4273_v21, 0.0  ;;  %v4279_v21 = vmul.f32 %v4195_v46, %v3767_v48  ;;  %vm2814_vm5 = vmand %vm2782_vm15, %vm11105_vm14 }
 0x7b3   : > { %v4327_v34 = vsel %vm3254_vm9, %v4277_v53, 0.0  ;;  %vm11111_vm7 = vcmp.lt.s32.totalorder %v11110_v26, %v11087_v5  ;;  %v11122_v26 = vld [vmem:[#allocation48_spill] sm:$0xff] }
 0x7b4   : > { %5638 = vrsqrt.f32 %v3707_v22  ;;  %v9550_v22 = vsel %vm2812_vm8, 1.0, %v11091_v36  ;;  %v4333_v45 = vsel %vm3254_vm9, %v4279_v21, 0.0 }
 0x7b5   : > { %5640 = vrsqrt.f32 %v3709_v6  ;;  %v3486_v33 = vsel %vm3384_vm13, %v9550_v22, 0.0 }
 0x7b6   : > { %4343 = vadd.xlane.f32.xlu0 %v4342_v12  ;;  %v4309_v12 = vsel %vm3254_vm9, %v4271_v15, 0.0  ;;  %5642 = vrsqrt.f32 %v3714_v41 }
 0x7b7   : > { %5644 = vrsqrt.f32 %v3711_v58 }
 0x7b8   : > { %5646 = vrsqrt.f32 %v3716_v57 }
 0x7b9   : > { %v5635_v8 = vpop.eup %5634  ;;  %5648 = vrsqrt.f32 %v3717_v9 }
 0x7ba   : > { %v3769_v20 = vmul.f32 %v5635_v8, %v8567_v29  ;;  %v5637_v41 = vpop.eup %5636 }
 0x7bb   : > { %v3776_v52 = vmul.f32 %v5637_v41, %v8681_v17 }
 0x7c0   : > { %4301 = vadd.xlane.f32.xlu1 %v4300_v16  ;;  %v9535_v16 = vsel %vm2811_vm4, 1.0, %v11091_v36 }
 0x7c1   : > { %v3484_v43 = vsel %vm3384_vm13, %v9535_v16, 0.0 }
 0x7c2   : > { %v9498_v3 = vpop.xlane.xlu0 %3687  ;;  %v3485_v2 = vadd.f32 %v3484_v43, %v3483_v19  ;;  %v11106_v43 = vld [vmem:[#allocation40_spill] sm:$0xff] }
 0x7c3   : > { %vm11107_vm11 = vcmp.lt.s32.totalorder %v11106_v43, %v11087_v5 }
 0x7c4   : > { %4310 = vadd.xlane.f32.xlu1 %v4309_v12  ;;  %v4199_v12 = vpop.permute.xlu1 %4198  ;;  %vm2815_vm3 = vmand %vm2783_vm10, %vm11107_vm11 }
 0x7c5   : > { %v4281_v59 = vmul.f32 %v4199_v12, %v3769_v20 }
 0x7c6   : > { %v4205_v55 = vpop.permute.xlu0 %4204 }
 0x7c7   : > { %v4284_v38 = vmul.f32 %v4205_v55, %v3772_v11  ;;  %v5639_v11 = vpop.eup %5638  ;;  %v4339_v7 = vsel %vm3254_vm9, %v4281_v59, 0.0 }
 0x7c8   : > { %4316 = vadd.xlane.f32.xlu1 %v4315_v61  ;;  %v9566_v61 = vsel %vm2813_vm6, 1.0, %v11091_v36  ;;  %v5641_v29 = vpop.eup %5640  ;;  %v3771_v58 = vmul.f32 %v5639_v11, %v8593_v50 }
 0x7c9   : > { %v4348_v25 = vsel %vm3254_vm9, %v4284_v38, 0.0  ;;  %v3487_v38 = vadd.f32 %v3486_v33, %v3485_v2  ;;  %v3488_v47 = vsel %vm3384_vm13, %v9566_v61, 0.0  ;;  %v5643_v4 = vpop.eup %5642  ;;  %v3773_v37 = vmul.f32 %v5641_v29, %v8619_v23 }
 0x7ca   : > { %v9532_v15 = vpop.permute.xlu0 %4206  ;;  %4349 = vadd.xlane.f32.xlu0 %v4348_v25  ;;  %v3778_v50 = vmul.f32 %v5643_v4, %v8709_v30  ;;  %v5645_v48 = vpop.eup %5644  ;;  %v11108_v30 = vld [vmem:[#allocation41_spill] sm:$0xff]  ;;  %v11112_v4 = vld [vmem:[#allocation43_spill] sm:$0xff] }
 0x7cb   : > { %v3489_v53 = vadd.f32 %v3488_v47, %v3487_v38  ;;  %vm11109_vm1 = vcmp.lt.s32.totalorder %v11108_v30, %v11087_v5  ;;  %v5647_v33 = vpop.eup %5646  ;;  %vm11113_vm15 = vcmp.lt.s32.totalorder %v11112_v4, %v11087_v5 }
 0x7cc   : > { %4322 = vadd.xlane.f32.xlu1 %v4321_v1  ;;  %v9578_v1 = vsel %vm2814_vm5, 1.0, %v11091_v36  ;;  %v3780_v11 = vmul.f32 %v5647_v33, %v11072_v54  ;;  %v5649_v59 = vpop.eup %5648  ;;  %v11120_v33 = vld [vmem:[#allocation47_spill] sm:$0xff] }
 0x7cd   : > { %v3490_v17 = vsel %vm3384_vm13, %v9578_v1, 0.0  ;;  %v3781_v44 = vmul.f32 %v5649_v59, %v11074_v18  ;;  %v5716_v59 = vld [vmem:[%s6127_s29 + $0x90] sm:$0xff] }
 0x7ce   : > { %v4209_v35 = vpop.permute.xlu0 %4208  ;;  %v3491_v12 = vadd.f32 %v3490_v17, %v3489_v53  ;;  %v11114_v17 = vld [vmem:[#allocation44_spill] sm:$0xff] }
 0x7cf   : > { %v4286_v27 = vmul.f32 %v4209_v35, %v3774_v24  ;;  %v5708_v24 = vld [vmem:[%s6127_s29 + $0x50] sm:$0xff]  ;;  %v4285_v35 = vmul.f32 %v9532_v15, %v3773_v37  ;;  %v5709_v15 = vld [vmem:[%s6127_s29 + $0x58] sm:$0xff]  ;;  %vm11115_vm10 = vcmp.lt.s32.totalorder %v11114_v17, %v11087_v5  ;;  %v5719_v17 = vld [vmem:[%s6127_s29 + $0xa8] sm:$0xff] }
 0x7d0   : > { %4328 = vadd.xlane.f32.xlu1 %v4327_v34  ;;  %vm2784_vm4 = vcmp.ne.f32.partialorder %v5708_v24, -1.0  ;;  %v3775_v34 = vmul.f32 %v5645_v48, %v8645_v62  ;;  %vm2785_vm8 = vcmp.ne.f32.partialorder %v5709_v15, -1.0  ;;  %v5712_v37 = vld [vmem:[%s6127_s29 + $0x70] sm:$0xff]  ;;  %v11116_v24 = vld [vmem:[#allocation45_spill] sm:$0xff] }
 0x7d1   : > { %v4354_v6 = vsel %vm3254_vm9, %v4286_v27, 0.0  ;;  %v9592_v27 = vsel %vm2815_vm3, 1.0, %v11091_v36  ;;  %vm2816_vm12 = vmand %vm2784_vm4, %vm11109_vm1  ;;  %v4351_v20 = vsel %vm3254_vm9, %v4285_v35, 0.0  ;;  %vm2788_vm3 = vcmp.ne.f32.partialorder %v5712_v37, -1.0  ;;  %v5715_v15 = vld [vmem:[%s6127_s29 + $0x88] sm:$0xff] }
 0x7d2   : > { %v4211_v46 = vpop.permute.xlu0 %4210  ;;  %4355 = vadd.xlane.f32.xlu0 %v4354_v6  ;;  %v3492_v23 = vsel %vm3384_vm13, %v9592_v27, 0.0  ;;  %v9606_v41 = vsel %vm2816_vm12, 1.0, %v11091_v36  ;;  %vm2817_vm0 = vmand %vm2785_vm8, %vm11111_vm7  ;;  %vm11117_vm4 = vcmp.lt.s32.totalorder %v11116_v24, %v11087_v5  ;;  %v11130_v24 = vld [vmem:[#allocation52_spill] sm:$0xff] }
 0x7d3   : > { %v9562_v55 = vpop.xlane.xlu1 %3684  ;;  %v4287_v9 = vmul.f32 %v4211_v46, %v3775_v34  ;;  %v3493_v6 = vadd.f32 %v3492_v23, %v3491_v12  ;;  %v3494_v62 = vsel %vm3384_vm13, %v9606_v41, 0.0  ;;  %v9617_v32 = vsel %vm2817_vm0, 1.0, %v11091_v36  ;;  %vm2820_vm1 = vmand %vm2788_vm3, %vm11117_vm4  ;;  %v11118_v12 = vld [vmem:[#allocation46_spill] sm:$0xff]  ;;  %v5714_v23 = vld [vmem:[%s6127_s29 + $0x80] sm:$0xff] }
 0x7d4   : > { %4334 = vadd.xlane.f32.xlu1 %v4333_v45  ;;  %v5710_v45 = vld [vmem:[%s6127_s29 + $0x60] sm:$0xff]  ;;  %v9647_v35 = vsel %vm2820_vm1, 1.0, %v11091_v36  ;;  %vm11119_vm8 = vcmp.lt.s32.totalorder %v11118_v12, %v11087_v5  ;;  %vm2790_vm0 = vcmp.ne.f32.partialorder %v5714_v23, -1.0 }
 0x7d5   : > { %vm2786_vm6 = vcmp.ne.f32.partialorder %v5710_v45, -1.0  ;;  %v4357_v29 = vsel %vm3254_vm9, %v4287_v9, 0.0  ;;  %v3495_v47 = vadd.f32 %v3494_v62, %v3493_v6  ;;  %v3713_v9 = vadd.f32 1e-16, %v9392_v28  ;;  %v11132_v12 = vld [vmem:[#allocation145_spill] sm:$0xff] }
 0x7d6   : > { %v4213_v49 = vpop.permute.xlu0 %4212  ;;  %vm2818_vm14 = vmand %vm2786_vm6, %vm11113_vm15  ;;  %vm11121_vm6 = vcmp.lt.s32.totalorder %v11120_v33, %v11087_v5  ;;  %v3718_v45 = vadd.f32 1e-16, %v9428_v63 }
 0x7d7   : > { %v4288_v60 = vmul.f32 %v4213_v49, %v3776_v52  ;;  %v4203_v25 = vpop.permute.xlu1 %4202  ;;  %v3496_v52 = vsel %vm3384_vm13, %v9617_v32, 0.0  ;;  %v9628_v53 = vsel %vm2818_vm14, 1.0, %v11091_v36  ;;  %vm2822_vm15 = vmand %vm2790_vm0, %vm11121_vm6  ;;  %vm2791_vm14 = vcmp.ne.f32.partialorder %v5715_v15, -1.0 }
 0x7d8   : > { %v4283_v19 = vmul.f32 %v4203_v25, %v3771_v58  ;;  %4340 = vadd.xlane.f32.xlu1 %v4339_v7  ;;  %v5711_v58 = vld [vmem:[%s6127_s29 + $0x68] sm:$0xff]  ;;  %v3497_v7 = vadd.f32 %v3496_v52, %v3495_v47  ;;  %v9666_v6 = vsel %vm2822_vm15, 1.0, %v11091_v36  ;;  %5650 = vrsqrt.f32 %v3713_v9  ;;  %v5717_v47 = vld [vmem:[%s6127_s29 + $0x98] sm:$0xff] }
 0x7d9   : > { %v4360_v57 = vsel %vm3254_vm9, %v4288_v60, 0.0  ;;  %vm2787_vm5 = vcmp.ne.f32.partialorder %v5711_v58, -1.0  ;;  %v3506_v62 = vsel %vm3384_vm13, %v9666_v6, 0.0  ;;  %vm2793_vm1 = vcmp.ne.f32.partialorder %v5717_v47, -1.0  ;;  %v5718_v58 = vld [vmem:[%s6127_s29 + $0xa0] sm:$0xff] }
 0x7da   : > { %v4217_v8 = vpop.permute.xlu0 %4216  ;;  %4361 = vadd.xlane.f32.xlu0 %v4360_v57  ;;  %v4345_v56 = vsel %vm3254_vm9, %v4283_v19, 0.0  ;;  %v3498_v19 = vsel %vm3384_vm13, %v9628_v53, 0.0  ;;  %vm2819_vm11 = vmand %vm2787_vm5, %vm11115_vm10  ;;  %vm11123_vm5 = vcmp.lt.s32.totalorder %v11122_v26, %v11087_v5  ;;  %vm2795_vm15 = vcmp.ne.f32.partialorder %v5719_v17, -1.0 }
 0x7db   : > { %v4290_v21 = vmul.f32 %v4217_v8, %v3778_v50  ;;  %v3499_v50 = vadd.f32 %v3498_v19, %v3497_v7  ;;  %v9638_v57 = vsel %vm2819_vm11, 1.0, %v11091_v36  ;;  %v5713_v8 = vld [vmem:[%s6127_s29 + $0x78] sm:$0xff]  ;;  %vm2823_vm10 = vmand %vm2791_vm14, %vm11123_vm5  ;;  %vm2792_vm11 = vcmp.ne.f32.partialorder %v5716_v59, -1.0  ;;  %v11136_v59 = vld [vmem:[#allocation166_spill] sm:$0xff] }
 0x7dc   : > { %4346 = vadd.xlane.f32.xlu1 %v4345_v56  ;;  %v3500_v48 = vsel %vm3384_vm13, %v9638_v57, 0.0  ;;  %vm2789_vm12 = vcmp.ne.f32.partialorder %v5713_v8, -1.0  ;;  %v11128_v7 = vld [vmem:[#allocation51_spill] sm:$0xff]  ;;  %v3721_v19 = vadd.f32 1e-16, %v9562_v55  ;;  %vm11131_vm14 = vcmp.lt.s32.totalorder %v11130_v24, %v11087_v5 }
 0x7dd   : > { %v4366_v2 = vsel %vm3254_vm9, %v4290_v21, 0.0  ;;  %v3501_v56 = vadd.f32 %v3500_v48, %v3499_v50  ;;  %v3502_v21 = vsel %vm3384_vm13, %v9647_v35, 0.0  ;;  %vm2821_vm7 = vmand %vm2789_vm12, %vm11119_vm8  ;;  %vm11129_vm0 = vcmp.lt.s32.totalorder %v11128_v7, %v11087_v5  ;;  %v5720_v55 = vld [vmem:[%s6127_s29 + $0xb0] sm:$0xff] }
 0x7de   : > { %v9602_v31 = vpop.permute.xlu0 %4218  ;;  %4367 = vadd.xlane.f32.xlu0 %v4366_v2  ;;  %v9656_v34 = vsel %vm2821_vm7, 1.0, %v11091_v36  ;;  %vm2794_vm7 = vcmp.ne.f32.partialorder %v5718_v58, -1.0  ;;  %vm2827_vm5 = vmand %vm2795_vm15, %vm11131_vm14  ;;  %v3722_v8 = vadd.f32 1e-16, %v9498_v3  ;;  %v11135_v3 = vld [vmem:[#allocation119_spill] sm:$0xff]  ;;  %v11138_v58 = vld [vmem:[#allocation54_spill] sm:$0xff] }
 0x7df   : > { %v3503_v30 = vadd.f32 %v3502_v21, %v3501_v56  ;;  %v3504_v2 = vsel %vm3384_vm13, %v9656_v34, 0.0  ;;  %vm2826_vm6 = vmand %vm2794_vm7, %vm11129_vm0  ;;  %v9718_v33 = vsel %vm2827_vm5, 1.0, %v11091_v36 }
 0x7e0   : > { %4352 = vadd.xlane.f32.xlu1 %v4351_v20  ;;  %v9707_v37 = vsel %vm2826_vm6, 1.0, %v11091_v36  ;;  %v3516_v9 = vsel %vm3384_vm13, %v9718_v33, 0.0 }
 0x7e1   : > { %v3505_v20 = vadd.f32 %v3504_v2, %v3503_v30  ;;  %v3514_v48 = vsel %vm3384_vm13, %v9707_v37, 0.0 }
 0x7e2   : > { %v4221_v46 = vpop.permute.xlu0 %4220 }
 0x7e3   : > { %v4292_v38 = vmul.f32 %v4221_v46, %v3780_v11  ;;  %v3715_v11 = vadd.f32 1e-16, %v9450_v40  ;;  %v3507_v28 = vadd.f32 %v3506_v62, %v3505_v20  ;;  %v9677_v46 = vsel %vm2823_vm10, 1.0, %v11091_v36  ;;  %v11133_v20 = vld [vmem:[#allocation53_spill] sm:$0xff] }
 0x7e4   : > { %4358 = vadd.xlane.f32.xlu1 %v4357_v29  ;;  %v11124_v29 = vld [vmem:[#allocation49_spill] sm:$0xff]  ;;  %v3719_v40 = vadd.f32 1e-16, %v9529_v14  ;;  %vm2796_vm10 = vcmp.ne.f32.partialorder %v5720_v55, -1.0 }
 0x7e5   : > { %v4372_v49 = vsel %vm3254_vm9, %v4292_v38, 0.0  ;;  %v3508_v38 = vsel %vm3384_vm13, %v9677_v46, 0.0  ;;  %vm11125_vm3 = vcmp.lt.s32.totalorder %v11124_v29, %v11087_v5  ;;  %5652 = vrsqrt.f32 %v3715_v11 }
 0x7e6   : > { %v4223_v60 = vpop.permute.xlu0 %4222  ;;  %4373 = vadd.xlane.f32.xlu0 %v4372_v49  ;;  %vm2824_vm4 = vmand %vm2792_vm11, %vm11125_vm3  ;;  %5654 = vrsqrt.f32 %v3718_v45  ;;  %v3509_v63 = vadd.f32 %v3508_v38, %v3507_v28  ;;  %v3720_v49 = vadd.f32 1e-16, %v9436_v0  ;;  %v5651_v0 = vpop.eup %5650  ;;  %vm11134_vm11 = vcmp.lt.s32.totalorder %v11133_v20, %v11087_v5  ;;  %v5721_v28 = vld [vmem:[%s6127_s29 + $0xb8] sm:$0xff] }
 0x7e7   : > { %v4293_v25 = vmul.f32 %v4223_v60, %v3781_v44  ;;  %v9687_v52 = vsel %vm2824_vm4, 1.0, %v11091_v36  ;;  %v11126_v44 = vld [vmem:[#allocation50_spill] sm:$0xff]  ;;  %5656 = vrsqrt.f32 %v3719_v40  ;;  %v3777_v23 = vmul.f32 %v5651_v0, %v11132_v12  ;;  %vm2828_vm3 = vmand %vm2796_vm10, %vm11134_vm11  ;;  %v11137_v40 = vld [vmem:[#allocation151_spill] sm:$0xff] }
 0x7e8   : > { %v3510_v4 = vsel %vm3384_vm13, %v9687_v52, 0.0  ;;  %vm11127_vm12 = vcmp.lt.s32.totalorder %v11126_v44, %v11087_v5  ;;  %5658 = vrsqrt.f32 %v3720_v49  ;;  %v3214_v45 = vsub.f32 %v11072_v54, %v11136_v59  ;;  %v5722_v0 = vld [vmem:[%s6127_s29 + $0xc0] sm:$0xff] }
 0x7e9   : > { %v4375_v43 = vsel %vm3254_vm9, %v4293_v25, 0.0  ;;  %vm2825_vm8 = vmand %vm2793_vm1, %vm11127_vm12  ;;  %v3511_v14 = vadd.f32 %v3510_v4, %v3509_v63  ;;  %5660 = vrsqrt.f32 %v3721_v19  ;;  %vm2797_vm4 = vcmp.ne.f32.partialorder %v5721_v28, -1.0  ;;  %v11141_v19 = vld [vmem:[#allocation165_spill] sm:$0xff] }
 0x7ea   : > { %4376 = vadd.xlane.f32.xlu0 %v4375_v43  ;;  %v9697_v60 = vsel %vm2825_vm8, 1.0, %v11091_v36  ;;  %5662 = vrsqrt.f32 %v3722_v8  ;;  %v9733_v4 = vsel %vm2828_vm3, 1.0, %v11091_v36  ;;  %v4227_v44 = vpop.permute.xlu0 %4226  ;;  %vm11139_vm1 = vcmp.lt.s32.totalorder %v11138_v58, %v11087_v5  ;;  %v11146_v28 = vld [vmem:[#allocation125_spill] sm:$0xff] }
 0x7eb   : > { %v3512_v25 = vsel %vm3384_vm13, %v9697_v60, 0.0  ;;  %v3518_v54 = vsel %vm3384_vm13, %v9733_v4, 0.0  ;;  %vm2829_vm12 = vmand %vm2797_vm4, %vm11139_vm1  ;;  %v3215_v17 = vsub.f32 %v11074_v18, %v11141_v19  ;;  %vm2798_vm8 = vcmp.ne.f32.partialorder %v5722_v0, -1.0  ;;  %v11142_v18 = vld [vmem:[#allocation127_spill] sm:$0xff]  ;;  %v11150_v0 = vld [vmem:[#allocation102_spill] sm:$0xff] }
 0x7ec   : > { %v3513_v43 = vadd.f32 %v3512_v25, %v3511_v14 }
 0x7ee   : > { %v3515_v2 = vadd.f32 %v3514_v48, %v3513_v43  ;;  %v3246_v43 = vand.u32 2147483647, %v3214_v45  ;;  %v4231_v59 = vpop.permute.xlu0 %4230 }
 0x7f0   : > { %v3517_v63 = vadd.f32 %v3516_v9, %v3515_v2  ;;  %v3247_v2 = vand.u32 2147483647, %v3215_v17  ;;  %v11145_v9 = vld [vmem:[#allocation170_spill] sm:$0xff] }
 0x7f1   : > { %v3216_v20 = vsub.f32 %v11137_v40, %v11145_v9 }
 0x7f2   : > { %v5653_v56 = vpop.eup %5652  ;;  %v3519_v8 = vadd.f32 %v3518_v54, %v3517_v63  ;;  %v11149_v63 = vld [vmem:[#allocation169_spill] sm:$0xff]  ;;  %v3330_v58 = vsel %vm3254_vm9, %v3247_v2, 0.0 }
 0x7f3   : > { %v5655_v30 = vpop.eup %5654  ;;  %v3779_v62 = vmul.f32 %v5653_v56, %v11135_v3  ;;  %v9747_v56 = vsel %vm2829_vm12, 1.0, %v11091_v36  ;;  %v11153_v2 = vld [vmem:[#allocation57_spill] sm:$0xff] }
 0x7f4   : > { %v5657_v11 = vpop.eup %5656  ;;  %v3782_v47 = vmul.f32 %v5655_v30, %v11137_v40  ;;  %vm11154_vm10 = vcmp.lt.s32.totalorder %v11153_v2, %v11087_v5  ;;  %v5728_v2 = vld [vmem:[%s6127_s29 + $0xf0] sm:$0xff] }
 0x7f5   : > { %v4291_v38 = vmul.f32 %v9602_v31, %v3779_v62  ;;  %v11140_v31 = vld [vmem:[#allocation124_spill] sm:$0xff]  ;;  %v5659_v7 = vpop.eup %5658  ;;  %v3327_v62 = vsel %vm3254_vm9, %v3246_v43, 0.0 }
 0x7f6   : > { %v3783_v14 = vmul.f32 %v5657_v11, %v11140_v31  ;;  %v3784_v12 = vmul.f32 %v5659_v7, %v11142_v18  ;;  %v5661_v30 = vpop.eup %5660 }
 0x7f7   : > { %v4369_v48 = vsel %vm3254_vm9, %v4291_v38, 0.0  ;;  %v3785_v38 = vmul.f32 %v5661_v30, %v11146_v28  ;;  %v5663_v40 = vpop.eup %5662 }
 0x7f8   : > { %v3786_v43 = vmul.f32 %v5663_v40, %v11150_v0 }
 0x7f9   : > { %v4297_v54 = vmul.f32 %v4231_v59, %v3785_v38 }
 0x808   : > { %v3691_v50 = vpop.xlane.xlu1 %3690 }
 0x809   : > { %v3723_v21 = vadd.f32 1e-16, %v3691_v50  ;;  %v4295_v50 = vmul.f32 %v4227_v44, %v3783_v14  ;;  %v3217_v44 = vsub.f32 %v11140_v31, %v11149_v63 }
 0x80b   : > { %5664 = vrsqrt.f32 %v3723_v21  ;;  %v3520_v21 = vsel %vm3384_vm13, %v9747_v56, 0.0  ;;  %v3249_v31 = vand.u32 2147483647, %v3217_v44  ;;  %v5726_v44 = vld [vmem:[%s6127_s29 + $0xe0] sm:$0xff] }
 0x80c   : > { %v4215_v15 = vpop.permute.xlu1 %4214  ;;  %v3521_v11 = vadd.f32 %v3520_v21, %v3519_v8  ;;  %v5724_v8 = vld [vmem:[%s6127_s29 + $0xd0] sm:$0xff]  ;;  %vm2802_vm12 = vcmp.ne.f32.partialorder %v5726_v44, -1.0 }
 0x80d   : > { %v4289_v26 = vmul.f32 %v4215_v15, %v3777_v23  ;;  %v11143_v23 = vld [vmem:[#allocation55_spill] sm:$0xff]  ;;  %v5723_v15 = vld [vmem:[%s6127_s29 + $0xc8] sm:$0xff]  ;;  %vm2800_vm5 = vcmp.ne.f32.partialorder %v5724_v8, -1.0  ;;  %v3336_v59 = vsel %vm3254_vm9, %v3249_v31, 0.0 }
 0x80e   : > { %vm11144_vm7 = vcmp.lt.s32.totalorder %v11143_v23, %v11087_v5  ;;  %vm2799_vm6 = vcmp.ne.f32.partialorder %v5723_v15, -1.0  ;;  %v11152_v23 = vld [vmem:[#allocation126_spill] sm:$0xff]  ;;  %vm2832_vm11 = vmand %vm2800_vm5, %vm11154_vm10  ;;  %v11161_v31 = vld [vmem:[#allocation167_spill] sm:$0xff] }
 0x80f   : > { %v4363_v29 = vsel %vm3254_vm9, %v4289_v26, 0.0  ;;  %vm2830_vm0 = vmand %vm2798_vm8, %vm11144_vm7  ;;  %v4381_v26 = vsel %vm3254_vm9, %v4295_v50, 0.0  ;;  %v9789_v9 = vsel %vm2832_vm11, 1.0, %v11091_v36 }
 0x810   : > { %4364 = vadd.xlane.f32.xlu1 %v4363_v29  ;;  %v4225_v49 = vpop.permute.xlu1 %4224  ;;  %v9761_v45 = vsel %vm2830_vm0, 1.0, %v11091_v36 }
 0x811   : > { %v4294_v25 = vmul.f32 %v4225_v49, %v3782_v47  ;;  %v3522_v29 = vsel %vm3384_vm13, %v9761_v45, 0.0  ;;  %v11147_v47 = vld [vmem:[#allocation56_spill] sm:$0xff]  ;;  %v3248_v49 = vand.u32 2147483647, %v3216_v20  ;;  %v11155_v20 = vld [vmem:[#allocation171_spill] sm:$0xff] }
 0x812   : > { %vm11148_vm15 = vcmp.lt.s32.totalorder %v11147_v47, %v11087_v5  ;;  %v3523_v19 = vadd.f32 %v3522_v29, %v3521_v11  ;;  %v11156_v47 = vld [vmem:[#allocation58_spill] sm:$0xff] }
 0x813   : > { %v4378_v24 = vsel %vm3254_vm9, %v4294_v25, 0.0  ;;  %vm2831_vm14 = vmand %vm2799_vm6, %vm11148_vm15  ;;  %v3333_v21 = vsel %vm3254_vm9, %v3248_v49, 0.0  ;;  %vm11157_vm4 = vcmp.lt.s32.totalorder %v11156_v47, %v11087_v5 }
 0x814   : > { %4370 = vadd.xlane.f32.xlu1 %v4369_v48  ;;  %4379 = vadd.xlane.f32.xlu0 %v4378_v24  ;;  %v4229_v55 = vpop.permute.xlu1 %4228  ;;  %v9774_v17 = vsel %vm2831_vm14, 1.0, %v11091_v36  ;;  %v11151_v48 = vld [vmem:[#allocation173_spill] sm:$0xff]  ;;  %vm2804_vm14 = vcmp.ne.f32.partialorder %v5728_v2, -1.0 }
 0x815   : > { %v4296_v3 = vmul.f32 %v4229_v55, %v3784_v12  ;;  %v3524_v50 = vsel %vm3384_vm13, %v9774_v17, 0.0  ;;  %v3218_v24 = vsub.f32 %v11142_v18, %v11151_v48  ;;  %v4387_v12 = vsel %vm3254_vm9, %v4297_v54, 0.0  ;;  %v11158_v54 = vld [vmem:[#allocation175_spill] sm:$0xff] }
 0x816   : > { %v3525_v15 = vadd.f32 %v3524_v50, %v3523_v19  ;;  %v3526_v18 = vsel %vm3384_vm13, %v9789_v9, 0.0  ;;  %v5727_v50 = vld [vmem:[%s6127_s29 + $0xe8] sm:$0xff] }
 0x817   : > { %v4384_v14 = vsel %vm3254_vm9, %v4296_v3, 0.0  ;;  %v3219_v3 = vsub.f32 %v11146_v28, %v11155_v20  ;;  %v3250_v11 = vand.u32 2147483647, %v3218_v24  ;;  %vm2803_vm0 = vcmp.ne.f32.partialorder %v5727_v50, -1.0  ;;  %v11164_v20 = vld [vmem:[#allocation61_spill] sm:$0xff] }
 0x818   : > { %3328 = vadd.xlane.f32.xlu1 %v3327_v62  ;;  %4382 = vadd.xlane.f32.xlu0 %v4381_v26  ;;  %v5665_v25 = vpop.eup %5664  ;;  %v4233_v7 = vpop.permute.xlu1 %4232  ;;  %v5725_v26 = vld [vmem:[%s6127_s29 + $0xd8] sm:$0xff]  ;;  %v3527_v40 = vadd.f32 %v3526_v18, %v3525_v15  ;;  %vm11165_vm5 = vcmp.lt.s32.totalorder %v11164_v20, %v11087_v5 }
 0x819   : > { %v4298_v55 = vmul.f32 %v4233_v7, %v3786_v43  ;;  %v3787_v30 = vmul.f32 %v5665_v25, %v11152_v23  ;;  %v4235_v62 = vpop.permute.xlu0 %4234  ;;  %vm2801_vm3 = vcmp.ne.f32.partialorder %v5725_v26, -1.0  ;;  %v3251_v49 = vand.u32 2147483647, %v3219_v3  ;;  %v11159_v7 = vld [vmem:[#allocation59_spill] sm:$0xff]  ;;  %vm2836_vm10 = vmand %vm2804_vm14, %vm11165_vm5 }
 0x81a   : > { %vm2833_vm1 = vmand %vm2801_vm3, %vm11157_vm4  ;;  %vm11160_vm8 = vcmp.lt.s32.totalorder %v11159_v7, %v11087_v5  ;;  %v9837_v3 = vsel %vm2836_vm10, 1.0, %v11091_v36 }
 0x81b   : > { %v4390_v38 = vsel %vm3254_vm9, %v4298_v55, 0.0  ;;  %v4299_v29 = vmul.f32 %v4235_v62, %v3787_v30  ;;  %v9802_v63 = vsel %vm2833_vm1, 1.0, %v11091_v36  ;;  %vm2834_vm7 = vmand %vm2802_vm12, %vm11160_vm8  ;;  %v3342_v24 = vsel %vm3254_vm9, %v3251_v49, 0.0  ;;  %v11162_v55 = vld [vmem:[#allocation60_spill] sm:$0xff] }
 0x81c   : > { %3331 = vadd.xlane.f32.xlu1 %v3330_v58  ;;  %4385 = vadd.xlane.f32.xlu0 %v4384_v14  ;;  %v3528_v28 = vsel %vm3384_vm13, %v9802_v63, 0.0  ;;  %v3220_v58 = vsub.f32 %v11150_v0, %v11158_v54  ;;  %v3339_v14 = vsel %vm3254_vm9, %v3250_v11, 0.0  ;;  %v9815_v43 = vsel %vm2834_vm7, 1.0, %v11091_v36  ;;  %v5729_v62 = vld [vmem:[%s6127_s29 + $0xf8] sm:$0xff]  ;;  %v11166_v11 = vld [vmem:[#allocation62_spill] sm:$0xff]  ;;  %s5940_s29 = smov 121  }
 0x81d   : > { %v4393_v25 = vsel %vm3254_vm9, %v4299_v29, 0.0  ;;  %v3529_v19 = vadd.f32 %v3528_v28, %v3527_v40  ;;  %v3221_v0 = vsub.f32 %v11152_v23, %v11161_v31  ;;  %v3530_v8 = vsel %vm3384_vm13, %v9815_v43, 0.0 }
 0x81e   : > { %v3252_v48 = vand.u32 2147483647, %v3220_v58  ;;  %vm11163_vm6 = vcmp.lt.s32.totalorder %v11162_v55, %v11087_v5  ;;  %vm2805_vm11 = vcmp.ne.f32.partialorder %v5729_v62, -1.0  ;;  %v3534_v26 = vsel %vm3384_vm13, %v9837_v3, 0.0 }
 0x81f   : > { %vm2835_vm15 = vmand %vm2803_vm0, %vm11163_vm6  ;;  %v3253_v15 = vand.u32 2147483647, %v3221_v0  ;;  %vm11167_vm3 = vcmp.lt.s32.totalorder %v11166_v11, %v11087_v5 }
 0x820   : > { %3334 = vadd.xlane.f32.xlu1 %v3333_v21  ;;  %4388 = vadd.xlane.f32.xlu0 %v4387_v12  ;;  %v3531_v21 = vadd.f32 %v3530_v8, %v3529_v19  ;;  %v9827_v12 = vsel %vm2835_vm15, 1.0, %v11091_v36  ;;  %v3345_v18 = vsel %vm3254_vm9, %v3252_v48, 0.0  ;;  %vm2837_vm4 = vmand %vm2805_vm11, %vm11167_vm3 }
 0x821   : > { %v3532_v30 = vsel %vm3384_vm13, %v9827_v12, 0.0  ;;  %v3348_v29 = vsel %vm3254_vm9, %v3253_v15, 0.0 }
 0x822   : > { %v3533_v23 = vadd.f32 %v3532_v30, %v3531_v21 }
 0x823   : > { %v4305_v7 = vpop.xlane.xlu0 %4304 }
 0x824   : > { %3337 = vadd.xlane.f32.xlu1 %v3336_v59  ;;  %4391 = vadd.xlane.f32.xlu0 %v4390_v38  ;;  %v3535_v59 = vadd.f32 %v3534_v26, %v3533_v23  ;;  %v9846_v38 = vsel %vm2837_vm4, 1.0, %v11091_v36  ;;  %v4397_v36 = vsub.f32 0.0, %v4305_v7  ;;  %v11169_v26 = vld [vmem:[#allocation177_spill] sm:$0xff] }
 0x825   : > { %v3536_v47 = vsel %vm3384_vm13, %v9846_v38, 0.0  ;;  %v3352_v11 = vmul.f32 %v9467_v13, %v11169_v26 }
 0x826   : > { %v3537_v40 = vadd.f32 %v3536_v47, %v3535_v59  ;;  %v4430_v48 = vmul.f32 %v9464_v51, %v4397_v36 }
 0x827   : > { %v4308_v50 = vpop.xlane.xlu0 %4307 }
 0x828   : > { %3340 = vadd.xlane.f32.xlu1 %v3339_v14  ;;  %4394 = vadd.xlane.f32.xlu0 %v4393_v25  ;;  %v3538_v28 = vrot.slane %v3537_v40, 4  ;;  %v11168_v25 = vld [vmem:[#allocation128_spill] sm:$0xff]  ;;  %v4462_v23 = vsel %vm3384_vm13, %v4430_v48, 0.0 }
 0x82a   : > { %v3539_v44 = vadd.f32 %v3538_v28, %v3537_v40  ;;  %v11170_v40 = vld [vmem:[#allocation176_spill] sm:$0xff] }
 0x82b   : > { %v4314_v15 = vpop.xlane.xlu0 %4313  ;;  %v3353_v28 = vmul.f32 %v9464_v51, %v11170_v40 }
 0x82c   : > { %3343 = vadd.xlane.f32.xlu1 %v3342_v24  ;;  %v3540_v49 = vrot.slane %v3539_v44, 2  ;;  %v4398_v24 = vsub.f32 0.0, %v4308_v50 }
 0x82e   : > { %v3541_v54 = vadd.f32 %v3540_v49, %v3539_v44  ;;  %v4431_v2 = vmul.f32 %v9483_v42, %v4398_v24  ;;  %v11171_v44 = vld [vmem:[#allocation159_spill] sm:$0xff] }
 0x82f   : > { %v3354_v49 = vmul.f32 %v9483_v42, %v11171_v44  ;;  %v4320_v7 = vpop.xlane.xlu0 %4319 }
 0x830   : > { %3346 = vadd.xlane.f32.xlu1 %v3345_v18  ;;  %v3542_v58 = vrot.slane %v3541_v54, 1  ;;  %v4464_v59 = vsel %vm3384_vm13, %v4431_v2, 0.0  ;;  %v4402_v24 = vsub.f32 0.0, %v4320_v7 }
 0x831   : > { %v3388_v36 = vsel %vm3384_vm13, %v3354_v49, 0.0  ;;  %v11175_v49 = vld [vmem:[#allocation129_spill] sm:$0xff] }
 0x832   : > { %v3543_v14 = vadd.f32 %v3542_v58, %v3541_v54 }
 0x834   : > { %3349 = vadd.xlane.f32.xlu1 %v3348_v29  ;;  %v3551_v5 = vrot.slane %v3543_v14, %v11168_v25  ;;  %v4400_v29 = vsub.f32 0.0, %v4314_v15  ;;  %v3385_v14 = vsel %vm3384_vm13, %v3352_v11, 0.0 }
 0x836   : > { %v3558_v19 = vrot.slane %v3551_v5, %v11168_v25  ;;  %v4433_v5 = vmul.f32 %v9516_v39, %v4400_v29  ;;  %v11174_v29 = vld [vmem:[#allocation104_spill] sm:$0xff] }
 0x838   : > { %v4468_v48 = vsel %vm3384_vm13, %v4433_v5, 0.0 }
 0x845   : > { %3559 = vrot.lane.b32.xlu1 %v3558_v19, %s5940_s29 }
 0x849   : > { %v4302_v31 = vpop.xlane.xlu1 %4301 }
 0x84a   : > { %v4396_v0 = vsub.f32 0.0, %v4302_v31 }
 0x84c   : > { %v4429_v8 = vmul.f32 %v9467_v13, %v4396_v0  ;;  %v3386_v13 = vsel %vm3384_vm13, %v3353_v28, 0.0  ;;  %v11172_v0 = vld [vmem:[#allocation103_spill] sm:$0xff] }
 0x84d   : > { %v4311_v55 = vpop.xlane.xlu1 %4310  ;;  %v3387_v31 = vadd.f32 %v3386_v13, %v3385_v14  ;;  %v3355_v42 = vmul.f32 %v9501_v10, %v11172_v0 }
 0x84e   : > { %v4461_v21 = vsel %vm3384_vm13, %v4429_v8, 0.0  ;;  %v4399_v30 = vsub.f32 0.0, %v4311_v55 }
 0x84f   : > { %v4463_v18 = vadd.f32 %v4462_v23, %v4461_v21  ;;  %v3389_v8 = vadd.f32 %v3388_v36, %v3387_v31  ;;  %v11173_v21 = vld [vmem:[#allocation130_spill] sm:$0xff]  ;;  %v3390_v15 = vsel %vm3384_vm13, %v3355_v42, 0.0 }
 0x850   : > { %v4432_v20 = vmul.f32 %v9501_v10, %v4399_v30  ;;  %v3356_v30 = vmul.f32 %v9516_v39, %v11173_v21 }
 0x851   : > { %v4317_v62 = vpop.xlane.xlu1 %4316  ;;  %v4465_v47 = vadd.f32 %v4464_v59, %v4463_v18  ;;  %v4435_v18 = vmul.f32 %v9550_v22, %v4402_v24 }
 0x852   : > { %v4466_v54 = vsel %vm3384_vm13, %v4432_v20, 0.0  ;;  %v4401_v58 = vsub.f32 0.0, %v4317_v62  ;;  %v3391_v20 = vadd.f32 %v3390_v15, %v3389_v8  ;;  %v4326_v62 = vpop.xlane.xlu0 %4325  ;;  %v3392_v10 = vsel %vm3384_vm13, %v3356_v30, 0.0  ;;  %v11177_v8 = vld [vmem:[#allocation179_spill] sm:$0xff] }
 0x853   : > { %v4467_v19 = vadd.f32 %v4466_v54, %v4465_v47  ;;  %v3357_v47 = vmul.f32 %v9535_v16, %v11174_v29  ;;  %v4472_v39 = vsel %vm3384_vm13, %v4435_v18, 0.0  ;;  %v4404_v40 = vsub.f32 0.0, %v4326_v62 }
 0x854   : > { %v4434_v50 = vmul.f32 %v9535_v16, %v4401_v58  ;;  %v3393_v28 = vadd.f32 %v3392_v10, %v3391_v20  ;;  %v3358_v54 = vmul.f32 %v9550_v22, %v11175_v49  ;;  %v11178_v10 = vld [vmem:[#allocation162_spill] sm:$0xff] }
 0x855   : > { %v4323_v51 = vpop.xlane.xlu1 %4322  ;;  %v4469_v55 = vadd.f32 %v4468_v48, %v4467_v19  ;;  %v3394_v5 = vsel %vm3384_vm13, %v3357_v47, 0.0  ;;  %v4437_v7 = vmul.f32 %v9578_v1, %v4404_v40 }
 0x856   : > { %v4470_v23 = vsel %vm3384_vm13, %v4434_v50, 0.0  ;;  %v4403_v2 = vsub.f32 0.0, %v4323_v51  ;;  %v3395_v19 = vadd.f32 %v3394_v5, %v3393_v28  ;;  %v4332_v13 = vpop.xlane.xlu0 %4331  ;;  %v3396_v16 = vsel %vm3384_vm13, %v3358_v54, 0.0  ;;  %v11176_v51 = vld [vmem:[#allocation178_spill] sm:$0xff] }
 0x857   : > { %v4471_v26 = vadd.f32 %v4470_v23, %v4469_v55  ;;  %v3359_v0 = vmul.f32 %v9566_v61, %v11176_v51  ;;  %v4476_v22 = vsel %vm3384_vm13, %v4437_v7, 0.0  ;;  %v4406_v42 = vsub.f32 0.0, %v4332_v13  ;;  %v11180_v13 = vld [vmem:[#allocation180_spill] sm:$0xff]  ;;  %v11181_v51 = vld [vmem:[#allocation181_spill] sm:$0xff] }
 0x858   : > { %v4436_v11 = vmul.f32 %v9566_v61, %v4403_v2  ;;  %v3397_v48 = vadd.f32 %v3396_v16, %v3395_v19  ;;  %v3360_v55 = vmul.f32 %v9578_v1, %v11177_v8 }
 0x859   : > { %v4329_v59 = vpop.xlane.xlu1 %4328  ;;  %v4473_v44 = vadd.f32 %v4472_v39, %v4471_v26  ;;  %v3398_v23 = vsel %vm3384_vm13, %v3359_v0, 0.0  ;;  %v4439_v2 = vmul.f32 %v9606_v41, %v4406_v42  ;;  %v11179_v39 = vld [vmem:[#allocation132_spill] sm:$0xff]  ;;  %v3364_v0 = vmul.f32 %v9628_v53, %v11181_v51 }
 0x85a   : > { %v4474_v58 = vsel %vm3384_vm13, %v4436_v11, 0.0  ;;  %v4405_v14 = vsub.f32 0.0, %v4329_v59  ;;  %v3399_v15 = vadd.f32 %v3398_v23, %v3397_v48  ;;  %v4338_v18 = vpop.xlane.xlu0 %4337  ;;  %v3400_v61 = vsel %vm3384_vm13, %v3360_v55, 0.0 }
 0x85b   : > { %v4475_v36 = vadd.f32 %v4474_v58, %v4473_v44  ;;  %v3361_v11 = vmul.f32 %v9592_v27, %v11178_v10  ;;  %v4480_v1 = vsel %vm3384_vm13, %v4439_v2, 0.0  ;;  %v4408_v59 = vsub.f32 0.0, %v4338_v18  ;;  %v11182_v2 = vld [vmem:[#allocation131_spill] sm:$0xff] }
 0x85c   : > { %v4438_v50 = vmul.f32 %v9592_v27, %v4405_v14  ;;  %v3401_v29 = vadd.f32 %v3400_v61, %v3399_v15  ;;  %v3362_v40 = vmul.f32 %v9606_v41, %v11179_v39  ;;  %v3365_v15 = vmul.f32 %v9638_v57, %v11182_v2 }
 0x85d   : > { %v4335_v31 = vpop.xlane.xlu1 %4334  ;;  %v4477_v24 = vadd.f32 %v4476_v22, %v4475_v36  ;;  %v3402_v49 = vsel %vm3384_vm13, %v3361_v11, 0.0  ;;  %v4441_v54 = vmul.f32 %v9628_v53, %v4408_v59  ;;  %v3363_v36 = vmul.f32 %v9617_v32, %v11180_v13 }
 0x85e   : > { %v4478_v21 = vsel %vm3384_vm13, %v4438_v50, 0.0  ;;  %v4407_v30 = vsub.f32 0.0, %v4335_v31  ;;  %v3403_v58 = vadd.f32 %v3402_v49, %v3401_v29  ;;  %v4344_v14 = vpop.xlane.xlu0 %4343  ;;  %v3404_v27 = vsel %vm3384_vm13, %v3362_v40, 0.0  ;;  %v11184_v49 = vld [vmem:[#allocation182_spill] sm:$0xff] }
 0x85f   : > { %v4479_v20 = vadd.f32 %v4478_v21, %v4477_v24  ;;  %v4484_v41 = vsel %vm3384_vm13, %v4441_v54, 0.0  ;;  %v4410_v16 = vsub.f32 0.0, %v4344_v14  ;;  %v3406_v48 = vsel %vm3384_vm13, %v3363_v36, 0.0 }
 0x860   : > { %v4440_v62 = vmul.f32 %v9617_v32, %v4407_v30  ;;  %v3405_v50 = vadd.f32 %v3404_v27, %v3403_v58  ;;  %v3408_v32 = vsel %vm3384_vm13, %v3364_v0, 0.0  ;;  %v3410_v59 = vsel %vm3384_vm13, %v3365_v15, 0.0  ;;  %v11185_v27 = vld [vmem:[#allocation183_spill] sm:$0xff] }
 0x861   : > { %v4341_v26 = vpop.xlane.xlu1 %4340  ;;  %v4481_v47 = vadd.f32 %v4480_v1, %v4479_v20  ;;  %v4443_v24 = vmul.f32 %v9647_v35, %v4410_v16  ;;  %v3367_v54 = vmul.f32 %v9656_v34, %v11184_v49 }
 0x862   : > { %v4482_v28 = vsel %vm3384_vm13, %v4440_v62, 0.0  ;;  %v4409_v44 = vsub.f32 0.0, %v4341_v26  ;;  %v3407_v8 = vadd.f32 %v3406_v48, %v3405_v50  ;;  %v4350_v55 = vpop.xlane.xlu0 %4349  ;;  %v11183_v26 = vld [vmem:[#allocation133_spill] sm:$0xff] }
 0x863   : > { %v4483_v5 = vadd.f32 %v4482_v28, %v4481_v47  ;;  %v4488_v53 = vsel %vm3384_vm13, %v4443_v24, 0.0  ;;  %v4412_v18 = vsub.f32 0.0, %v4350_v55  ;;  %v3366_v10 = vmul.f32 %v9647_v35, %v11183_v26  ;;  %v11187_v55 = vld [vmem:[#allocation135_spill] sm:$0xff] }
 0x864   : > { %v4442_v7 = vmul.f32 %v9638_v57, %v4409_v44  ;;  %v3409_v20 = vadd.f32 %v3408_v32, %v3407_v8 }
 0x865   : > { %v4347_v19 = vpop.xlane.xlu1 %4346  ;;  %v4485_v31 = vadd.f32 %v4484_v41, %v4483_v5  ;;  %v4445_v29 = vmul.f32 %v9666_v6, %v4412_v18  ;;  %v3412_v57 = vsel %vm3384_vm13, %v3366_v10, 0.0  ;;  %v3414_v41 = vsel %vm3384_vm13, %v3367_v54, 0.0 }
 0x866   : > { %v4486_v22 = vsel %vm3384_vm13, %v4442_v7, 0.0  ;;  %v4411_v42 = vsub.f32 0.0, %v4347_v19  ;;  %v4356_v61 = vpop.xlane.xlu0 %4355  ;;  %v3411_v47 = vadd.f32 %v3410_v59, %v3409_v20  ;;  %v3368_v7 = vmul.f32 %v9666_v6, %v11185_v27 }
 0x867   : > { %v4487_v21 = vadd.f32 %v4486_v22, %v4485_v31  ;;  %v4492_v35 = vsel %vm3384_vm13, %v4445_v29, 0.0  ;;  %v4414_v58 = vsub.f32 0.0, %v4356_v61  ;;  %v11186_v22 = vld [vmem:[#allocation105_spill] sm:$0xff] }
 0x868   : > { %v4444_v30 = vmul.f32 %v9656_v34, %v4411_v42  ;;  %v3413_v14 = vadd.f32 %v3412_v57, %v3411_v47  ;;  %v3416_v34 = vsel %vm3384_vm13, %v3368_v7, 0.0  ;;  %v3369_v42 = vmul.f32 %v9677_v46, %v11186_v22 }
 0x869   : > { %v4353_v23 = vpop.xlane.xlu1 %4352  ;;  %v4489_v62 = vadd.f32 %v4488_v53, %v4487_v21  ;;  %v4447_v16 = vmul.f32 %v9687_v52, %v4414_v58  ;;  %v3370_v21 = vmul.f32 %v9687_v52, %v11187_v55 }
 0x86a   : > { %v4490_v11 = vsel %vm3384_vm13, %v4444_v30, 0.0  ;;  %v4413_v1 = vsub.f32 0.0, %v4353_v23  ;;  %v4362_v39 = vpop.xlane.xlu0 %4361  ;;  %v3415_v50 = vadd.f32 %v3414_v41, %v3413_v14  ;;  %v3418_v30 = vsel %vm3384_vm13, %v3369_v42, 0.0 }
 0x86b   : > { %v4491_v40 = vadd.f32 %v4490_v11, %v4489_v62  ;;  %v4496_v6 = vsel %vm3384_vm13, %v4447_v16, 0.0  ;;  %v4416_v48 = vsub.f32 0.0, %v4362_v39  ;;  %v11188_v62 = vld [vmem:[#allocation184_spill] sm:$0xff] }
 0x86c   : > { %v4446_v28 = vmul.f32 %v9677_v46, %v4413_v1  ;;  %v3417_v24 = vadd.f32 %v3416_v34, %v3415_v50  ;;  %v3420_v46 = vsel %vm3384_vm13, %v3370_v21, 0.0  ;;  %v3371_v26 = vmul.f32 %v9697_v60, %v11188_v62  ;;  %v11192_v62 = vld [vmem:[#allocation153_spill] sm:$0xff] }
 0x86d   : > { %v4359_v44 = vpop.xlane.xlu1 %4358  ;;  %v4493_v5 = vadd.f32 %v4492_v35, %v4491_v40  ;;  %v4449_v23 = vmul.f32 %v9707_v37, %v4416_v48  ;;  %v11189_v40 = vld [vmem:[#allocation185_spill] sm:$0xff] }
 0x86e   : > { %v4494_v19 = vsel %vm3384_vm13, %v4446_v28, 0.0  ;;  %v4415_v13 = vsub.f32 0.0, %v4359_v44  ;;  %v4368_v36 = vpop.xlane.xlu0 %4367  ;;  %v3419_v15 = vadd.f32 %v3418_v30, %v3417_v24  ;;  %v3372_v57 = vmul.f32 %v9707_v37, %v11189_v40  ;;  %v11191_v24 = vld [vmem:[#allocation107_spill] sm:$0xff] }
 0x86f   : > { %v4495_v31 = vadd.f32 %v4494_v19, %v4493_v5  ;;  %v4418_v2 = vsub.f32 0.0, %v4368_v36  ;;  %v4500_v10 = vsel %vm3384_vm13, %v4449_v23, 0.0 }
 0x870   : > { %v4448_v51 = vmul.f32 %v9697_v60, %v4415_v13  ;;  %v3421_v59 = vadd.f32 %v3420_v46, %v3419_v15  ;;  %v3422_v60 = vsel %vm3384_vm13, %v3371_v26, 0.0  ;;  %v3424_v37 = vsel %vm3384_vm13, %v3372_v57, 0.0 }
 0x871   : > { %v4497_v8 = vadd.f32 %v4496_v6, %v4495_v31  ;;  %v4451_v52 = vmul.f32 %v9733_v4, %v4418_v2  ;;  %v11190_v31 = vld [vmem:[#allocation134_spill] sm:$0xff]  ;;  %v3375_v26 = vmul.f32 %v9747_v56, %v11192_v62 }
 0x872   : > { %v4374_v0 = vpop.xlane.xlu0 %4373  ;;  %v4498_v32 = vsel %vm3384_vm13, %v4448_v51, 0.0  ;;  %v3423_v27 = vadd.f32 %v3422_v60, %v3421_v59  ;;  %v3373_v34 = vmul.f32 %v9718_v33, %v11190_v31 }
 0x873   : > { %v4499_v53 = vadd.f32 %v4498_v32, %v4497_v8  ;;  %v4420_v11 = vsub.f32 0.0, %v4374_v0  ;;  %v4504_v35 = vsel %vm3384_vm13, %v4451_v52, 0.0  ;;  %v3374_v8 = vmul.f32 %v9733_v4, %v11191_v24 }
 0x874   : > { %v3425_v22 = vadd.f32 %v3424_v37, %v3423_v27  ;;  %v3426_v23 = vsel %vm3384_vm13, %v3373_v34, 0.0  ;;  %v3430_v57 = vsel %vm3384_vm13, %v3375_v26, 0.0 }
 0x875   : > { %v4501_v29 = vadd.f32 %v4500_v10, %v4499_v53  ;;  %v4453_v58 = vmul.f32 %v9761_v45, %v4420_v11 }
 0x876   : > { %v4377_v18 = vpop.xlane.xlu0 %4376  ;;  %v3427_v2 = vadd.f32 %v3426_v23, %v3425_v22 }
 0x877   : > { %v4421_v28 = vsub.f32 0.0, %v4377_v18  ;;  %v4508_v51 = vsel %vm3384_vm13, %v4453_v58, 0.0 }
 0x879   : > { %v4454_v36 = vmul.f32 %v9774_v17, %v4421_v28 }
 0x87b   : > { %v4510_v55 = vsel %vm3384_vm13, %v4454_v36, 0.0 }
 0x899   : > { %v4365_v20 = vpop.xlane.xlu1 %4364 }
 0x89a   : > { %v4417_v61 = vsub.f32 0.0, %v4365_v20  ;;  %v3428_v20 = vsel %vm3384_vm13, %v3374_v8, 0.0 }
 0x89c   : > { %v4450_v1 = vmul.f32 %v9718_v33, %v4417_v61 }
 0x89d   : > { %v4380_v47 = vpop.xlane.xlu0 %4379  ;;  %v4371_v39 = vpop.xlane.xlu1 %4370 }
 0x89e   : > { %v4502_v44 = vsel %vm3384_vm13, %v4450_v1, 0.0  ;;  %v4419_v49 = vsub.f32 0.0, %v4371_v39  ;;  %v4422_v14 = vsub.f32 0.0, %v4380_v47  ;;  %v3429_v1 = vadd.f32 %v3428_v20, %v3427_v2 }
 0x89f   : > { %v4503_v54 = vadd.f32 %v4502_v44, %v4501_v29 }
 0x8a0   : > { %v4452_v5 = vmul.f32 %v9747_v56, %v4419_v49  ;;  %v4455_v0 = vmul.f32 %v9789_v9, %v4422_v14  ;;  %v3431_v60 = vadd.f32 %v3430_v57, %v3429_v1 }
 0x8a1   : > { %v4505_v7 = vadd.f32 %v4504_v35, %v4503_v54  ;;  %v4383_v19 = vpop.xlane.xlu0 %4382  ;;  %v3329_v13 = vpop.xlane.xlu1 %3328 }
 0x8a2   : > { %v4506_v41 = vsel %vm3384_vm13, %v4452_v5, 0.0  ;;  %v4423_v16 = vsub.f32 0.0, %v4383_v19  ;;  %v4512_v33 = vsel %vm3384_vm13, %v4455_v0, 0.0  ;;  %v3376_v52 = vmul.f32 %v9761_v45, %v3329_v13 }
 0x8a3   : > { %v4507_v50 = vadd.f32 %v4506_v41, %v4505_v7 }
 0x8a4   : > { %v4456_v21 = vmul.f32 %v9802_v63, %v4423_v16  ;;  %v3432_v44 = vsel %vm3384_vm13, %v3376_v52, 0.0 }
 0x8a5   : > { %v4509_v42 = vadd.f32 %v4508_v51, %v4507_v50  ;;  %v4386_v6 = vpop.xlane.xlu0 %4385  ;;  %v3332_v48 = vpop.xlane.xlu1 %3331  ;;  %v3433_v27 = vadd.f32 %v3432_v44, %v3431_v60 }
 0x8a6   : > { %v4424_v32 = vsub.f32 0.0, %v4386_v6  ;;  %v4514_v46 = vsel %vm3384_vm13, %v4456_v21, 0.0  ;;  %v3377_v39 = vmul.f32 %v9774_v17, %v3332_v48 }
 0x8a7   : > { %v4511_v30 = vadd.f32 %v4510_v55, %v4509_v42 }
 0x8a8   : > { %v4457_v4 = vmul.f32 %v9815_v43, %v4424_v32  ;;  %v3434_v58 = vsel %vm3384_vm13, %v3377_v39, 0.0  ;;  %v3351_v39 = vld [vmem:[#allocation6] sm:$0x1] }
 0x8a9   : > { %v4513_v15 = vadd.f32 %v4512_v33, %v4511_v30  ;;  %v4389_v53 = vpop.xlane.xlu0 %4388  ;;  %v3335_v18 = vpop.xlane.xlu1 %3334  ;;  %v3435_v37 = vadd.f32 %v3434_v58, %v3433_v27  ;;  %v3474_v33 = vld [vmem:[#allocation8] sm:$0x1] }
 0x8aa   : > { %v4425_v61 = vsub.f32 0.0, %v4389_v53  ;;  %v4516_v47 = vsel %vm3384_vm13, %v4457_v4, 0.0  ;;  %v3378_v49 = vmul.f32 %v9789_v9, %v3335_v18 }
 0x8ab   : > { %v4515_v10 = vadd.f32 %v4514_v46, %v4513_v15 }
 0x8ac   : > { %v4458_v11 = vmul.f32 %v9827_v12, %v4425_v61  ;;  %v3436_v19 = vsel %vm3384_vm13, %v3378_v49, 0.0 }
 0x8ad   : > { %v4392_v59 = vpop.xlane.xlu0 %4391  ;;  %v3338_v29 = vpop.xlane.xlu1 %3337  ;;  %v4517_v28 = vadd.f32 %v4516_v47, %v4515_v10  ;;  %v3437_v34 = vadd.f32 %v3436_v19, %v3435_v37 }
 0x8ae   : > { %v4426_v40 = vsub.f32 0.0, %v4392_v59  ;;  %v4518_v56 = vsel %vm3384_vm13, %v4458_v11, 0.0  ;;  %v3379_v17 = vmul.f32 %v9802_v63, %v3338_v29  ;;  %v4428_v59 = vld [vmem:[#allocation7] sm:$0x1] }
 0x8af   : > { %v4519_v7 = vadd.f32 %v4518_v56, %v4517_v28 }
 0x8b0   : > { %v4459_v45 = vmul.f32 %v9837_v3, %v4426_v40  ;;  %v3438_v16 = vsel %vm3384_vm13, %v3379_v17, 0.0 }
 0x8b1   : > { %v4395_v54 = vpop.xlane.xlu0 %4394  ;;  %v3341_v35 = vpop.xlane.xlu1 %3340  ;;  %v3439_v0 = vadd.f32 %v3438_v16, %v3437_v34 }
 0x8b2   : > { %v4520_v14 = vsel %vm3384_vm13, %v4459_v45, 0.0  ;;  %v4427_v5 = vsub.f32 0.0, %v4395_v54  ;;  %v3380_v9 = vmul.f32 %v9815_v43, %v3341_v35 }
 0x8b3   : > { %v4521_v36 = vadd.f32 %v4520_v14, %v4519_v7 }
 0x8b4   : > { %v4460_v13 = vmul.f32 %v9846_v38, %v4427_v5  ;;  %v3440_v51 = vsel %vm3384_vm13, %v3380_v9, 0.0 }
 0x8b5   : > { %v3344_v41 = vpop.xlane.xlu1 %3343  ;;  %v3441_v24 = vadd.f32 %v3440_v51, %v3439_v0 }
 0x8b6   : > { %v4522_v50 = vsel %vm3384_vm13, %v4460_v13, 0.0  ;;  %v3381_v31 = vmul.f32 %v9827_v12, %v3344_v41 }
 0x8b7   : > { %v4523_v63 = vadd.f32 %v4522_v50, %v4521_v36 }
 0x8b8   : > { %v3442_v6 = vsel %vm3384_vm13, %v3381_v31, 0.0 }
 0x8b9   : > { %v4524_v22 = vrot.slane %v4523_v63, 4  ;;  %v3347_v42 = vpop.xlane.xlu1 %3346  ;;  %v3443_v21 = vadd.f32 %v3442_v6, %v3441_v24 }
 0x8ba   : > { %v3382_v43 = vmul.f32 %v9837_v3, %v3347_v42 }
 0x8bb   : > { %v4525_v48 = vadd.f32 %v4524_v22, %v4523_v63 }
 0x8bc   : > { %v3444_v8 = vsel %vm3384_vm13, %v3382_v43, 0.0 }
 0x8bd   : > { %v4526_v55 = vrot.slane %v4525_v48, 2  ;;  %v3350_v32 = vpop.xlane.xlu1 %3349  ;;  %v3445_v23 = vadd.f32 %v3444_v8, %v3443_v21 }
 0x8be   : > { %v3383_v12 = vmul.f32 %v9846_v38, %v3350_v32 }
 0x8bf   : > { %v4527_v30 = vadd.f32 %v4526_v55, %v4525_v48 }
 0x8c0   : > { %v3446_v2 = vsel %vm3384_vm13, %v3383_v12, 0.0 }
 0x8c1   : > { %v4528_v15 = vrot.slane %v4527_v30, 1  ;;  %v3447_v53 = vadd.f32 %v3446_v2, %v3445_v23  ;;  %v3560_v18 = vpop.permute.xlu1 %3559 }
 0x8c2   : > { %v3562_v20 = vadd.f32 %v3560_v18, %v3474_v33 }
 0x8c3   : > { %v3448_v46 = vrot.slane %v3447_v53, 4  ;;  %v4529_v3 = vadd.f32 %v4528_v15, %v4527_v30 }
 0x8c4   : > { %3563 = vst.msk [vmem:[#allocation8] sm:$0x1] %vm2682_vm2, %v3562_v20 }
 0x8c5   : > { %v3449_v4 = vadd.f32 %v3448_v46, %v3447_v53  ;;  %v4537_v61 = vrot.slane %v4529_v3, %v11168_v25 }
 0x8c7   : > { %v3450_v62 = vrot.slane %v3449_v4, 2  ;;  %v4544_v26 = vrot.slane %v4537_v61, %v11168_v25 }
 0x8c9   : > { %v3451_v38 = vadd.f32 %v3450_v62, %v3449_v4  ;;  %4545 = vrot.lane.b32.xlu1 %v4544_v26, %s5940_s29 }
 0x8cb   : > { %v3452_v10 = vrot.slane %v3451_v38, 1 }
 0x8cd   : > { %v3453_v52 = vadd.f32 %v3452_v10, %v3451_v38 }
 0x8cf   : > { %v3461_v11 = vrot.slane %v3453_v52, %v11168_v25 }
 0x8d1   : > { %v3468_v1 = vrot.slane %v3461_v11, %v11168_v25 }
 0x8d3   : > { %3469 = vrot.lane.b32.xlu0 %v3468_v1, %s5940_s29 }
 0x93b   : > { %v4546_v29 = vpop.permute.xlu1 %4545 }
 0x93c   : > { %v4548_v47 = vadd.f32 %v4546_v29, %v4428_v59 }
 0x93e   : > { %4549 = vst.msk [vmem:[#allocation7] sm:$0x1] %vm2682_vm2, %v4548_v47 }
 0x944   : > { %4553 = sbr.rel (%p4935_p9) target bundleno = 2401 (0x961), region = 72 }
 0x945   : > { %v3470_v40 = vpop.permute.xlu0 %3469 }
 0x946   : > { %v3472_v57 = vadd.f32 %v3470_v40, %v3351_v39 }
 0x948   : > { %3473 = vst.msk [vmem:[#allocation6] sm:$0x1] %vm2682_vm2, %v3472_v57 }
 0x949   : > { %v4555_v28 = vld [vmem:[#allocation5] sm:$0x1]  ;;  %v4559_v44 = vld [vmem:[#allocation8] sm:$0x1]  ;;  %v4554_v25 = vld [vmem:[#allocation4] sm:$0x1] }
 0x94a   : > { %5730 = vrcp.f32 %v4555_v28  ;;  %v4560_v56 = vadd.f32 1e-08, %v4559_v44  ;;  %v4563_v54 = vld [vmem:[#allocation7] sm:$0x1] }
 0x94c   : > { %5732 = vrcp.f32 %v4560_v56 }
 0x94f   : > { %v4558_v60 = vld [vmem:[#allocation6] sm:$0x1] }
 0x957   : > { %v5731_v49 = vpop.eup %5730 }
 0x958   : > { %v4557_v45 = vmul.f32 %v5731_v49, %v4554_v25 }
 0x959   : > { %v5733_v35 = vpop.eup %5732 }
 0x95a   : > { %4568 = vst.msk [vmem:[#allocation15] sm:$0x1] %vm2682_vm2, %v4557_v45  ;;  %v4562_v58 = vmul.f32 %v5733_v35, %v4558_v60  ;;  %v4564_v14 = vmul.f32 %v5733_v35, %v4563_v54 }
 0x95c   : > { %v4565_v17 = vadd.f32 %v4562_v58, %v4557_v45  ;;  %4569 = vst.msk [vmem:[#allocation16] sm:$0x1] %vm2682_vm2, %v4562_v58  ;;  %4570 = vst.msk [vmem:[#allocation18] sm:$0x1] %vm2682_vm2, %v4564_v14 }
 0x95e   : > { %v4566_v5 = vadd.f32 %v4565_v17, %v4564_v14 }
 0x960   : > { %4567 = vst.msk [vmem:[#allocation13] sm:$0x1] %vm2682_vm2, %v4566_v5 }
 0x961 PF: > { %s5941_s30 = smov [#allocation13]   ;;  %s5942_s26 = smov [#allocation16]  }
 0x962   : > { %s4600_s16 = sshll.u32 %s5941_s30, 4  ;;  %s4622_s25 = sshll.u32 %s5942_s26, 4  ;;  %s4601_s16 = int_to_ptr.vmem [resolvable:$true] %s4600_s16  ;;  %s4623_s25 = int_to_ptr.vmem [resolvable:$true] %s4622_s25 }
 0x963   : > { %s5734_s21 = scalar_lea.vmem %s4601_s16, 16  ;;  %s5740_s14 = scalar_lea.vmem %s4601_s16, 32 }
 0x964   : > { %p5735_p10 = scmp.ne.s32.totalorder %s4601_s16, %s5734_s21  ;;  %p5741_p13 = scmp.lt.s32.totalorder %s4601_s16, %s4601_s16 }
 0x965   : > { %p5742_p0 = scmp.lt.s32.totalorder %s5740_s14, %s5734_s21 }
 0x966   : > { %p5736_p11 = pnand %p5735_p10, %p6072_p2 }
 0x967   : > { %p5743_p1 = por %p5742_p0, %p5741_p13 }
 0x968   : > { %p5737_p12 = pneg %p5736_p11 }
 0x96a   : > { %p5744_p3 = pnand %p5743_p1, %p5737_p12 }
 0x96c   : > { %5747 = shalt.err (!%p5744_p3)
}
 0x96d   : > { %5296 = dma.vmem_to_hbm [thread:$0]  (%p6072_p2), %s4601_s16, 16, %s10128_s10, [#allocation14]  }
 0x96e   : > { %s5758_s0 = scalar_lea.vmem %s4623_s25, 16  ;;  %s5764_s24 = scalar_lea.vmem %s4623_s25, 32 }
 0x96f   : > { %p5759_p4 = scmp.ne.s32.totalorder %s4623_s25, %s5758_s0  ;;  %p5765_p9 = scmp.lt.s32.totalorder %s4623_s25, %s4623_s25 }
 0x970   : > { %p5766_p10 = scmp.lt.s32.totalorder %s5764_s24, %s5758_s0 }
 0x971   : > { %p5760_p5 = pnand %p5759_p4, %p6072_p2 }
 0x972   : > { %p5767_p11 = por %p5766_p10, %p5765_p9 }
 0x973   : > { %p5761_p7 = pneg %p5760_p5 }
 0x975   : > { %p5768_p13 = pnand %p5767_p11, %p5761_p7 }
 0x977   : > { %5771 = shalt.err (!%p5768_p13)
}
 0x978   : > { %5300 = dma.vmem_to_hbm [thread:$0]  (%p6072_p2), %s4623_s25, 16, %s10130_s12, [#allocation17]  }
 0x979   : > { %s4949_s29 = sshll.u32 %s6101_s15, 12  ;;  %s4586_s30 = sshll.u32 %s6644_s18, 4  ;;  %s10041_s30 = int_to_ptr.vmem [resolvable:$true] %s4586_s30 }
 0x97a   : > { %s10039_s21 = scalar_lea.hbm %s10127_s9, %s4949_s29  ;;  %s11193_s14 = sand.u32 1, %s5906_s28  }
 0x97b   : > { %s10045_s19 = scalar_lea.sflag [#allocation12], %s11193_s14  ;;  %s5782_s13 = scalar_lea.vmem %s10041_s30, 4096 }
 0x97c   : > { %p5783_p12 = scmp.ne.s32.totalorder %s10041_s30, %s5782_s13  ;;  %s5943_s15 = smov [#allocation11]  }
 0x97d   : > { %s5786_s18 = sshll.u32 %s5943_s15, 4  ;;  %s5787_s18 = int_to_ptr.vmem [resolvable:$false] %s5786_s18 }
 0x97e   : > { %p5784_p0 = pnand %p5783_p12, %p6080_p6  ;;  %s5788_s25 = scalar_lea.vmem %s5787_s18, 8192 }
 0x97f   : > { %p5789_p3 = scmp.lt.s32.totalorder %s10041_s30, %s5787_s18  ;;  %p5790_p4 = scmp.lt.s32.totalorder %s5788_s25, %s5782_s13 }
 0x980   : > { %p5785_p1 = pneg %p5784_p0 }
 0x981   : > { %p5791_p5 = por %p5790_p4, %p5789_p3 }
 0x983   : > { %p5792_p7 = pnand %p5791_p5, %p5785_p1 }
 0x985   : > { %5795 = shalt.err (!%p5792_p7)
}
 0x986   : > { %s5796_s0 = scalar_lea.hbm %s10039_s21, 4096  ;;  %s5800_s20 = scalar_lea.hbm %s10127_s9, 16384 }
 0x987   : > { %p5797_p9 = scmp.ne.s32.totalorder %s10039_s21, %s5796_s0  ;;  %p5801_p13 = scmp.lt.s32.totalorder %s10039_s21, %s10127_s9 }
 0x988   : > { %p5802_p12 = scmp.lt.s32.totalorder %s5800_s20, %s5796_s0 }
 0x989   : > { %p5798_p10 = pnand %p5797_p9, %p6080_p6 }
 0x98a   : > { %p5803_p0 = por %p5802_p12, %p5801_p13 }
 0x98b   : > { %p5799_p11 = pneg %p5798_p10 }
 0x98d   : > { %p5804_p1 = pnand %p5803_p0, %p5799_p11 }
 0x98f   : > { %5807 = shalt.err (!%p5804_p1)
}
 0x990   : > { %s5944_s26 = smov 128   ;;  %s5945_s14 = smov 8  }
 0x991   : > { %5294 = dma.vmem_to_hbm [thread:$0]  (%p6080_p6), %s10041_s30, 4096, %s10039_s21, %s10045_s19, %s5944_s26, %s5944_s26, %s5945_s14  }
 0x992   : > { %s5946_s13 = smov [#allocation15]   ;;  %s5947_s18 = smov [#allocation18]  }
 0x993   : > { %s4611_s15 = sshll.u32 %s5946_s13, 4  ;;  %s4633_s25 = sshll.u32 %s5947_s18, 4  ;;  %s4612_s15 = int_to_ptr.vmem [resolvable:$true] %s4611_s15  ;;  %s4634_s25 = int_to_ptr.vmem [resolvable:$true] %s4633_s25 }
 0x994   : > { %s5808_s24 = scalar_lea.vmem %s4612_s15, 16  ;;  %s5814_s0 = scalar_lea.vmem %s4612_s15, 32 }
 0x995   : > { %p5809_p3 = scmp.ne.s32.totalorder %s4612_s15, %s5808_s24  ;;  %p5815_p7 = scmp.lt.s32.totalorder %s4612_s15, %s4612_s15 }
 0x996   : > { %p5816_p9 = scmp.lt.s32.totalorder %s5814_s0, %s5808_s24 }
 0x997   : > { %p5810_p4 = pnand %p5809_p3, %p6072_p2 }
 0x998   : > { %p5817_p10 = por %p5816_p9, %p5815_p7 }
 0x999   : > { %p5811_p5 = pneg %p5810_p4 }
 0x99b   : > { %p5818_p11 = pnand %p5817_p10, %p5811_p5 }
 0x99d   : > { %5821 = shalt.err (!%p5818_p11)
}
 0x99e   : > { %5298 = dma.vmem_to_hbm [thread:$0]  (%p6072_p2), %s4612_s15, 16, %s10129_s11, [#allocation14]  }
 0x99f   : > { %s5832_s21 = scalar_lea.vmem %s4634_s25, 16  ;;  %s5838_s19 = scalar_lea.vmem %s4634_s25, 32 }
 0x9a0   : > { %p5833_p6 = scmp.ne.s32.totalorder %s4634_s25, %s5832_s21  ;;  %p5839_p0 = scmp.lt.s32.totalorder %s4634_s25, %s4634_s25 }
 0x9a1   : > { %p5840_p1 = scmp.lt.s32.totalorder %s5838_s19, %s5832_s21 }
 0x9a2   : > { %p5834_p13 = pnand %p5833_p6, %p6072_p2 }
 0x9a3   : > { %p5841_p3 = por %p5840_p1, %p5839_p0 }
 0x9a4   : > { %p5835_p12 = pneg %p5834_p13 }
 0x9a6   : > { %p5842_p4 = pnand %p5841_p3, %p5835_p12 }
 0x9a8   : > { %5845 = shalt.err (!%p5842_p4)
}
 0x9a9   : > { %s11194_s29 = sld [smem:[#allocation192_spill]] }
 0x9af   : > { %5302 = dma.vmem_to_hbm [thread:$0]  (%p6072_p2), %s4634_s25, 16, %s11194_s29, [#allocation17]  }
 0x9b0   : > { %5889 = dma.done.wait (%p6072_p2), [#allocation14], 32  }
 0x9b1   : > { %5891 = vsyncadd (%p6072_p2), [#allocation14], 4294967264 }
 0x9b2   : > { %5893 = dma.done.wait (%p6072_p2), [#allocation17], 32  }
 0x9b3   : > { %5895 = vsyncadd (%p6072_p2), [#allocation17], 4294967264 }
 0x9b4 PF: > { %s11195_s16 = sld [smem:[#allocation22_spill]]  ;;  %p5324_p5 = scmp.ge.s32.totalorder %s5930_s17, 2 }
 0x9b6   : > { %p5313_p7 = pnand %p5324_p5, %p6087_p8 }
 0x9b8   : > { %p5314_p9 = pneg %p5313_p7 }
 0x9ba   : > { %s4661_s14 = sand.u32 1, %s11195_s16  }
 0x9bb   : > { %s4662_s13 = scalar_lea.sflag [#allocation12], %s4661_s14 }
 0x9bc   : > { %5897 = dma.done.wait (%p5314_p9), %s4662_s13, 4096  }
 0x9bd   : > { %5899 = vsyncadd (%p5314_p9), %s4662_s13, 4294963200  ;;  %s30_s17 = sadd.s32 1, %s5930_s17   ;;  %s11197_s15 = sld [smem:[#allocation23_spill]] }
 0x9be   : > { %p27_p10 = scmp.ge.s32.totalorder %s30_s17, 10   ;;  %s11198_s29 = sld [smem:[#allocation29_spill]] }
 0x9bf   : > { %s11199_s30 = sld [smem:[#allocation24_spill]]  ;;  %s11203_s27 = smov %s5906_s28 }
 0x9c0   : > { %s11200_s14 = sld [smem:[#allocation25_spill]] }
 0x9c1   : > { %s11201_s22 = sld [smem:[#allocation26_spill]] }
 0x9c2   : > { %s11202_s16 = sld [smem:[#allocation27_spill]] }
 0x9c3   : > { %s11204_s28 = smov %s11197_s15  ;;  %29 = sbr.rel (!%p27_p10) target bundleno = 10 (0xa), region = 142 }
 0x9c7   : > { %s11205_s15 = smov %s11201_s22 }
 0x9c8   :  { %4667 = vsyncpa [#allocation12], 1 }
 0x9c9   :  { %4669 = vsyncpa [#allocation12 + $0x1], 1 }
 0x9ca   :  { %4670 = vsyncpa [#allocation14], 1 }
 0x9cb   :  { %4671 = vsyncpa [#allocation17], 1 }

</bundles_post_ra>
